<compile_context>
chip_gen: v7x
topology: tpu7x:2x2x1
jax: 0.10.0
libtpu: 0.0.40
codegen_flags: <defaults>
</compile_context>

<pallas_src>
import math
import functools

import jax
import jax.numpy as jnp
from jax.experimental import pallas as pl
from jax.experimental.pallas import tpu as pltpu

# ---------------- config ----------------
N_EMBD    = 128          # config.n_embd  (= d_inner of S6)
VOCAB     = 18           # config.vocab_size (atari action space)
VOCAB_PAD = 128          # head columns padded to a lane-dense 128 (sliced outside)
N_LAYER   = 2            # config.n_layer
D_STATE   = 16           # config.d_state
D_CONV    = 4            # config.d_conv
EXPAND    = 2            # config.expand
DT_RANK   = math.ceil((N_EMBD // EXPAND) / 16)   # = 4
LN_EPS    = 1e-5
CONV_FEAT = 7 * 7 * 64   # 3136 flattened conv features per frame


# ---------------- small in-kernel helpers (pure jnp) ----------------
def _layernorm(x, g, b):
    mu = jnp.mean(x, axis=-1, keepdims=True)
    var = jnp.mean(jnp.square(x - mu), axis=-1, keepdims=True)
    return (x - mu) * jax.lax.rsqrt(var + LN_EPS) * g + b


# ---------------- row-tiled matmul kernel (bias + activation fused) ----------------
def _linear_kernel(x_ref, w_ref, b_ref, o_ref, *, act):
    y = jnp.dot(x_ref[...], w_ref[...], preferred_element_type=jnp.float32)
    y = y + b_ref[...]
    if act == "relu":
        y = jnp.maximum(y, 0.0)
    elif act == "tanh":
        y = jnp.tanh(y)
    o_ref[...] = y


def _pick_block_m(m, cap=512):
    """Largest multiple-of-8 divisor of m that is <= cap (else the full extent)."""
    if m <= cap:
        return m
    for bm in range(cap - cap % 8, 7, -8):
        if m % bm == 0:
            return bm
    return m


def pallas_linear(x, w, b, act="none"):
    M, K = x.shape
    N = w.shape[1]
    bm = _pick_block_m(M)
    kernel = functools.partial(_linear_kernel, act=act)
    return pl.pallas_call(
        kernel,
        out_shape=jax.ShapeDtypeStruct((M, N), jnp.float32),
        grid=(M // bm,),
        in_specs=[pl.BlockSpec((bm, K), lambda i: (i, 0)),
                  pl.BlockSpec((K, N), lambda i: (0, 0)),
                  pl.BlockSpec((1, N), lambda i: (0, 0))],
        out_specs=pl.BlockSpec((bm, N), lambda i: (i, 0)),
        compiler_params=pltpu.CompilerParams(
            dimension_semantics=("parallel",)),
    )(x, w, b.reshape(1, N))


# ---------------- fused trunk kernel (one program per batch element) ----------------
def _trunk_kernel(semb_ref, rtg_ref, act_ref,
                  retw_ref, retb_ref,
                  ln1g_ref, ln1b_ref,
                  convw_ref, convb_ref, wxp_ref, wdt_ref, dtb_ref, a_ref, dpar_ref,
                  ln2g_ref, ln2b_ref, fc1w_ref, fc1b_ref, fc2w_ref, fc2b_ref,
                  lnfg_ref, lnfb_ref, headw_ref,
                  o_ref, *, n_layer, d_conv, dt_rank, d_state):
    T, D = act_ref.shape
    L = 3 * T - 1

    # ---- embeddings: state already Linear+tanh (hoisted), rtg Linear(1,D)+tanh, action tanh ----
    state_emb = semb_ref[...]                                             # (T, D)
    rtg_emb = jnp.tanh(rtg_ref[...] * retw_ref[...] + retb_ref[...])      # (T, D)
    act_emb = jnp.tanh(act_ref[...])                                      # (T, D)

    # ---- token interleave: [rtg_t, state_t, act_{t+1}], last group has no action ----
    rows = []
    for t in range(T):
        rows.append(rtg_emb[t:t + 1, :])
        rows.append(state_emb[t:t + 1, :])
        if t < T - 1:
            rows.append(act_emb[t + 1:t + 2, :])
    x = jnp.concatenate(rows, axis=0)                                     # (L, D)

    for layer in range(n_layer):
        # ======== S6 mixer branch: x = x + S6(LN1(x)) ========
        h = _layernorm(x, ln1g_ref[layer], ln1b_ref[layer])

        # causal depthwise conv1d (left zero pad) + SiLU
        cw = convw_ref[layer]                                             # (Kc, D)
        xp = jnp.concatenate(
            [jnp.zeros((d_conv - 1, D), jnp.float32), h], axis=0)         # (L+Kc-1, D)
        acc = convb_ref[layer] + xp[0:L, :] * cw[0:1, :]
        for k in range(1, d_conv):
            acc = acc + xp[k:k + L, :] * cw[k:k + 1, :]
        xc = acc * (1.0 / (1.0 + jnp.exp(-acc)))                          # SiLU, (L, D)

        # x_proj -> (dt | B | C)
        x_dbl = jnp.dot(xc, wxp_ref[layer], preferred_element_type=jnp.float32)
        dt_in = x_dbl[:, :dt_rank]                                        # (L, R)
        B_T = jnp.transpose(x_dbl[:, dt_rank:dt_rank + d_state])          # (N, L)
        C_T = jnp.transpose(x_dbl[:, dt_rank + d_state:])                 # (N, L)

        # dt_proj + delta_bias, softplus (selective_scan delta_softplus=True)
        pre = jnp.dot(dt_in, wdt_ref[layer],
                      preferred_element_type=jnp.float32) + dtb_ref[layer]
        delta = jnp.maximum(pre, 0.0) + jnp.log1p(jnp.exp(-jnp.abs(pre)))

        A_T = a_ref[layer]                                                # (N, D) = -exp(A_log).T
        dx = delta * xc                                                   # (L, D)

        # fully unrolled selective scan; accumulate rows, single store at the end
        hstate = jnp.zeros((d_state, D), jnp.float32)
        ys = []
        for l in range(L):
            dA = jnp.exp(delta[l:l + 1, :] * A_T)                         # (N, D)
            hstate = dA * hstate + B_T[:, l:l + 1] * dx[l:l + 1, :]
            ys.append(jnp.sum(hstate * C_T[:, l:l + 1], axis=0, keepdims=True))
        y = jnp.concatenate(ys, axis=0) + dpar_ref[layer] * xc            # (L, D)
        x = x + y

        # ======== MLP branch: x = x + fc2(GELU(fc1(LN2(x)))) ========
        h2 = _layernorm(x, ln2g_ref[layer], ln2b_ref[layer])
        u = jnp.dot(h2, fc1w_ref[layer],
                    preferred_element_type=jnp.float32) + fc1b_ref[layer]
        u = 0.5 * u * (1.0 + jax.lax.erf(u * (1.0 / math.sqrt(2.0))))     # exact GELU
        x = x + (jnp.dot(u, fc2w_ref[layer],
                         preferred_element_type=jnp.float32) + fc2b_ref[layer])

    # ---- final LN + head, only on state-token rows (positions 1, 4, ..., 3T-2) ----
    xs = jnp.concatenate([x[3 * t + 1:3 * t + 2, :] for t in range(T)], axis=0)
    xs = _layernorm(xs, lnfg_ref[...], lnfb_ref[...])
    o_ref[...] = jnp.dot(xs, headw_ref[...], preferred_element_type=jnp.float32)


def trunk_forward(semb, rtg, act_raw, params):
    B, T, D = semb.shape
    NL = N_LAYER
    blk = params["blocks"]

    kernel = functools.partial(_trunk_kernel, n_layer=NL, d_conv=D_CONV,
                               dt_rank=DT_RANK, d_state=D_STATE)

    def rep(shape):  # full-array block, replicated across the batch grid
        nd = len(shape)
        return pl.BlockSpec(shape, lambda b, _nd=nd: (0,) * _nd)

    in_specs = [
        pl.BlockSpec((None, T, D), lambda b: (b, 0, 0)),
        pl.BlockSpec((None, T, 1), lambda b: (b, 0, 0)),
        pl.BlockSpec((None, T, D), lambda b: (b, 0, 0)),
        rep((1, D)), rep((1, D)),
        rep((NL, 1, D)), rep((NL, 1, D)),
        rep((NL, D_CONV, D)), rep((NL, 1, D)),
        rep((NL, D, DT_RANK + 2 * D_STATE)), rep((NL, DT_RANK, D)),
        rep((NL, 1, D)), rep((NL, D_STATE, D)), rep((NL, 1, D)),
        rep((NL, 1, D)), rep((NL, 1, D)),
        rep((NL, D, 4 * D)), rep((NL, 1, 4 * D)),
        rep((NL, 4 * D, D)), rep((NL, 1, D)),
        rep((1, D)), rep((1, D)), rep((D, VOCAB_PAD)),
    ]
    return pl.pallas_call(
        kernel,
        out_shape=jax.ShapeDtypeStruct((B, T, VOCAB_PAD), jnp.float32),
        grid=(B,),
        in_specs=in_specs,
        out_specs=pl.BlockSpec((None, T, VOCAB_PAD), lambda b: (b, 0, 0)),
        compiler_params=pltpu.CompilerParams(
            dimension_semantics=("parallel",),
            vmem_limit_bytes=32 * 1024 * 1024),
    )(semb, rtg, act_raw,
      params["ret_w"], params["ret_b"],
      blk["ln1_g"], blk["ln1_b"],
      blk["conv_w"], blk["conv_b"], blk["wxpT"], blk["wdtT"],
      blk["dt_bias"], blk["A_neg"], blk["D"],
      blk["ln2_g"], blk["ln2_b"],
      blk["fc1_w"], blk["fc1_b"], blk["fc2_w"], blk["fc2_b"],
      params["lnf_g"], params["lnf_b"], params["head_w_pad"])


# ---------------- conv encoder glue (NHWC im2col in XLA) ----------------
def _im2col_nhwc(x, kh, kw, stride):
    n, h, w, c = x.shape
    oh = (h - kh) // stride + 1
    ow = (w - kw) // stride + 1
    cols = []
    for i in range(kh):
        for j in range(kw):
            cols.append(x[:, i:i + stride * oh:stride, j:j + stride * ow:stride, :])
    p = jnp.stack(cols, axis=3)                      # (n, oh, ow, kh*kw, c)
    return p.reshape(n * oh * ow, kh * kw * c), oh, ow


def gpt_forward(params, states, actions, rtgs):
    B, T = states.shape[0], states.shape[1]

    # ---- state encoder: Conv(4->32,8,s4)+ReLU, Conv(32->64,4,s2)+ReLU, Conv(64->64,3,s1)+ReLU ----
    # TODO(synk): im2col patch extraction stays in XLA; a fully fused in-VMEM
    # conv1->conv2->conv3->embed kernel is future work.
    s = states.reshape(-1, 4, 84, 84).astype(jnp.float32)
    s = jnp.transpose(s, (0, 2, 3, 1))               # NCHW -> NHWC once, kept NHWC end-to-end
    p1, oh, ow = _im2col_nhwc(s, 8, 8, 4)
    s = pallas_linear(p1, params["c1_w"], params["c1_b"], act="relu")
    s = s.reshape(B * T, oh, ow, 32)
    p2, oh, ow = _im2col_nhwc(s, 4, 4, 2)
    s = pallas_linear(p2, params["c2_w"], params["c2_b"], act="relu")
    s = s.reshape(B * T, oh, ow, 64)
    p3, oh, ow = _im2col_nhwc(s, 3, 3, 1)
    s = pallas_linear(p3, params["c3_w"], params["c3_b"], act="relu")
    sfeat = s.reshape(B * T, oh * ow * 64)            # (B*T, 3136)

    # ---- state embedding Linear(3136->D)+tanh: lane-dense 128-wide output, tiled over B*T rows
    state_emb = pallas_linear(sfeat, params["se_w"], params["se_b"],
                              act="tanh").reshape(B, T, N_EMBD)

    # ---- action embedding lookup (XLA gather; tanh is fused into the trunk kernel) ----
    a = actions.astype(jnp.int32).reshape(B, T)
    act_raw = jnp.take(params["act_emb"], a, axis=0)  # (B, T, D)

    rtg = rtgs.astype(jnp.float32).reshape(B, T, 1)

    # ---- fused trunk (rtg embed + interleave + blocks + final LN + head on state tokens) ----
    logits_pad = trunk_forward(state_emb, rtg, act_raw, params)   # (B, T, VOCAB_PAD)
    # TODO(synk): targets/cross-entropy-loss path not exercised (targets=None => loss=None).
    return logits_pad[:, :, :VOCAB]


# ---------------- deterministic parameter init ----------------
def init_params(key):
    ks = iter(jax.random.split(key, 64))

    def nrm(shape, std=0.02):
        return std * jax.random.normal(next(ks), shape, jnp.float32)

    D = N_EMBD
    p = {}
    # conv weights stored directly as im2col matrices (kh*kw*cin, cout), NHWC ordering
    p["c1_w"] = nrm((8 * 8 * 4, 32));   p["c1_b"] = jnp.zeros((32,), jnp.float32)
    p["c2_w"] = nrm((4 * 4 * 32, 64));  p["c2_b"] = jnp.zeros((64,), jnp.float32)
    p["c3_w"] = nrm((3 * 3 * 64, 64));  p["c3_b"] = jnp.zeros((64,), jnp.float32)
    p["se_w"] = nrm((CONV_FEAT, D));    p["se_b"] = jnp.zeros((D,), jnp.float32)
    p["ret_w"] = nrm((1, D));           p["ret_b"] = jnp.zeros((1, D), jnp.float32)
    p["act_emb"] = nrm((VOCAB, D))
    p["lnf_g"] = jnp.ones((1, D), jnp.float32)
    p["lnf_b"] = jnp.zeros((1, D), jnp.float32)
    head = nrm((D, VOCAB))
    p["head_w_pad"] = jnp.concatenate(
        [head, jnp.zeros((D, VOCAB_PAD - VOCAB), jnp.float32)], axis=1)

    def stack(fn):
        return jnp.stack([fn() for _ in range(N_LAYER)], axis=0)

    blocks = {
        "ln1_g": jnp.ones((N_LAYER, 1, D), jnp.float32),
        "ln1_b": jnp.zeros((N_LAYER, 1, D), jnp.float32),
        "ln2_g": jnp.ones((N_LAYER, 1, D), jnp.float32),
        "ln2_b": jnp.zeros((N_LAYER, 1, D), jnp.float32),
        "conv_w": stack(lambda: nrm((D_CONV, D))),     # torch (D,1,Kc) stored as (Kc, D)
        "conv_b": stack(lambda: nrm((1, D))),
        "wxpT": stack(lambda: nrm((D, DT_RANK + 2 * D_STATE))),   # x_proj.weight.T
        "fc1_w": stack(lambda: nrm((D, 4 * D))),
        "fc1_b": jnp.zeros((N_LAYER, 1, 4 * D), jnp.float32),
        "fc2_w": stack(lambda: nrm((4 * D, D))),
        "fc2_b": jnp.zeros((N_LAYER, 1, D), jnp.float32),
        "D": jnp.ones((N_LAYER, 1, D), jnp.float32),
    }
    dt_std = DT_RANK ** -0.5
    blocks["wdtT"] = jnp.stack([
        jax.random.uniform(next(ks), (DT_RANK, D), jnp.float32,
                           minval=-dt_std, maxval=dt_std)          # dt_proj.weight.T
        for _ in range(N_LAYER)], axis=0)
    dtb = []
    for _ in range(N_LAYER):
        dt = jnp.exp(jax.random.uniform(next(ks), (D,), jnp.float32)
                     * (math.log(0.1) - math.log(0.001)) + math.log(0.001))
        dt = jnp.clip(dt, 1e-4)
        dtb.append((dt + jnp.log(-jnp.expm1(-dt))).reshape(1, D))
    blocks["dt_bias"] = jnp.stack(dtb, axis=0)
    # A = -exp(A_log) with A_log[d, n] = log(n)  ->  precomputed, transposed to (N, D)
    a_neg = -jnp.broadcast_to(
        jnp.arange(1, D_STATE + 1, dtype=jnp.float32)[:, None], (D_STATE, D))
    blocks["A_neg"] = jnp.broadcast_to(a_neg, (N_LAYER, D_STATE, D))
    p["blocks"] = blocks
    return p


if __name__ == "__main__":
    key = jax.random.PRNGKey(0)
    kp, ksn, ka, kr = jax.random.split(key, 4)
    params = init_params(kp)

    B, T = 2, 3
    states = jax.random.normal(ksn, (B, T, 4 * 84 * 84), jnp.float32)
    actions = jax.random.randint(ka, (B, T, 1), 0, VOCAB, dtype=jnp.int32)
    rtgs = jax.random.normal(kr, (B, T, 1), jnp.float32)

    fwd = jax.jit(gpt_forward)
    logits = fwd(params, states, actions, rtgs)
    jax.block_until_ready(logits)
    assert logits.shape == (B, T, VOCAB), logits.shape
    print("KERNEL_OK")
</pallas_src>

<mosaic_0001>
module attributes {stable_mosaic.version = 11 : i64} {
  func.func @_linear_kernel(%arg0: i32, %arg1: memref<480x256xf32, #tpu.memory_space<vmem>>, %arg2: memref<256x32xf32, #tpu.memory_space<vmem>>, %arg3: memref<1x32xf32, #tpu.memory_space<vmem>>, %arg4: memref<480x32xf32, #tpu.memory_space<vmem>>) attributes {dimension_semantics = [#tpu.dimension_semantics<parallel>], iteration_bounds = array<i64: 5>, scalar_prefetch = 0 : i64, scratch_operands = 0 : i64, tpu.core_type = #tpu.core_type<tc>, window_params = [{transform_indices = @transform_0, window_bounds = array<i64: 480, 256>}, {pipeline_mode = #tpu.pipeline_mode<synchronous>, transform_indices = @transform_1, window_bounds = array<i64: 256, 32>}, {pipeline_mode = #tpu.pipeline_mode<synchronous>, transform_indices = @transform_2, window_bounds = array<i64: 1, 32>}, {transform_indices = @transform_3, window_bounds = array<i64: 480, 32>}]} {
    %c0 = arith.constant 0 : index
    %c0_0 = arith.constant 0 : index
    %0 = vector.load %arg1[%c0, %c0_0] : memref<480x256xf32, #tpu.memory_space<vmem>>, vector<480x256xf32>
    %c0_1 = arith.constant 0 : index
    %c0_2 = arith.constant 0 : index
    %1 = vector.load %arg2[%c0_1, %c0_2] : memref<256x32xf32, #tpu.memory_space<vmem>>, vector<256x32xf32>
    %cst = arith.constant dense<0.000000e+00> : vector<480x32xf32>
    %2 = tpu.matmul %0, %1, %cst {dimension_numbers = #tpu.dot_dimension_numbers<[1], [0], [0], [1], [0, 0, 1, 1], [], []>} : vector<480x256xf32>, vector<256x32xf32>, vector<480x32xf32> -> vector<480x32xf32>
    %c0_3 = arith.constant 0 : index
    %c0_4 = arith.constant 0 : index
    %3 = vector.load %arg3[%c0_3, %c0_4] : memref<1x32xf32, #tpu.memory_space<vmem>>, vector<1x32xf32>
    %4 = vector.broadcast %3 : vector<1x32xf32> to vector<480x32xf32>
    %5 = arith.addf %2, %4 : vector<480x32xf32>
    %cst_5 = arith.constant 0.000000e+00 : f32
    %6 = vector.broadcast %cst_5 : f32 to vector<480x32xf32>
    %7 = arith.maximumf %5, %6 : vector<480x32xf32>
    %c0_6 = arith.constant 0 : index
    %c0_7 = arith.constant 0 : index
    %8 = vector.load %arg4[%c0_6, %c0_7] : memref<480x32xf32, #tpu.memory_space<vmem>>, vector<480x32xf32>
    tpu.vector_store %arg4[%c0_6, %c0_7], %7 {strides = array<i32>} : memref<480x32xf32, #tpu.memory_space<vmem>>, vector<480x32xf32>,
    return
  }
  func.func @transform_0(%arg0: i32) -> (i32, i32) {
    %c0_i32 = arith.constant 0 : i32
    %c0_i32_0 = arith.constant 0 : i32
    return %arg0, %c0_i32 : i32, i32
  }
  func.func @transform_1(%arg0: i32) -> (i32, i32) {
    %c0_i32 = arith.constant 0 : i32
    %c0_i32_0 = arith.constant 0 : i32
    %c0_i32_1 = arith.constant 0 : i32
    return %c0_i32, %c0_i32_0 : i32, i32
  }
  func.func @transform_2(%arg0: i32) -> (i32, i32) {
    %c0_i32 = arith.constant 0 : i32
    %c0_i32_0 = arith.constant 0 : i32
    %c0_i32_1 = arith.constant 0 : i32
    return %c0_i32, %c0_i32_0 : i32, i32
  }
  func.func @transform_3(%arg0: i32) -> (i32, i32) {
    %c0_i32 = arith.constant 0 : i32
    %c0_i32_0 = arith.constant 0 : i32
    return %arg0, %c0_i32 : i32, i32
  }
}

module attributes {stable_mosaic.version = 11 : i64} {
  func.func @_linear_kernel(%arg0: i32, %arg1: memref<486x512xf32, #tpu.memory_space<vmem>>, %arg2: memref<512x64xf32, #tpu.memory_space<vmem>>, %arg3: memref<1x64xf32, #tpu.memory_space<vmem>>, %arg4: memref<486x64xf32, #tpu.memory_space<vmem>>) attributes {dimension_semantics = [#tpu.dimension_semantics<parallel>], iteration_bounds = array<i64: 1>, scalar_prefetch = 0 : i64, scratch_operands = 0 : i64, tpu.core_type = #tpu.core_type<tc>, window_params = [{transform_indices = @transform_0, window_bounds = array<i64: 486, 512>}, {pipeline_mode = #tpu.pipeline_mode<synchronous>, transform_indices = @transform_1, window_bounds = array<i64: 512, 64>}, {pipeline_mode = #tpu.pipeline_mode<synchronous>, transform_indices = @transform_2, window_bounds = array<i64: 1, 64>}, {transform_indices = @transform_3, window_bounds = array<i64: 486, 64>}]} {
    %c0 = arith.constant 0 : index
    %c0_0 = arith.constant 0 : index
    %0 = vector.load %arg1[%c0, %c0_0] : memref<486x512xf32, #tpu.memory_space<vmem>>, vector<486x512xf32>
    %c0_1 = arith.constant 0 : index
    %c0_2 = arith.constant 0 : index
    %1 = vector.load %arg2[%c0_1, %c0_2] : memref<512x64xf32, #tpu.memory_space<vmem>>, vector<512x64xf32>
    %cst = arith.constant dense<0.000000e+00> : vector<486x64xf32>
    %2 = tpu.matmul %0, %1, %cst {dimension_numbers = #tpu.dot_dimension_numbers<[1], [0], [0], [1], [0, 0, 1, 1], [], []>} : vector<486x512xf32>, vector<512x64xf32>, vector<486x64xf32> -> vector<486x64xf32>
    %c0_3 = arith.constant 0 : index
    %c0_4 = arith.constant 0 : index
    %3 = vector.load %arg3[%c0_3, %c0_4] : memref<1x64xf32, #tpu.memory_space<vmem>>, vector<1x64xf32>
    %4 = vector.broadcast %3 : vector<1x64xf32> to vector<486x64xf32>
    %5 = arith.addf %2, %4 : vector<486x64xf32>
    %cst_5 = arith.constant 0.000000e+00 : f32
    %6 = vector.broadcast %cst_5 : f32 to vector<486x64xf32>
    %7 = arith.maximumf %5, %6 : vector<486x64xf32>
    %c0_6 = arith.constant 0 : index
    %c0_7 = arith.constant 0 : index
    %8 = vector.load %arg4[%c0_6, %c0_7] : memref<486x64xf32, #tpu.memory_space<vmem>>, vector<486x64xf32>
    tpu.vector_store %arg4[%c0_6, %c0_7], %7 {strides = array<i32>} : memref<486x64xf32, #tpu.memory_space<vmem>>, vector<486x64xf32>,
    return
  }
  func.func @transform_0(%arg0: i32) -> (i32, i32) {
    %c0_i32 = arith.constant 0 : i32
    %c0_i32_0 = arith.constant 0 : i32
    return %arg0, %c0_i32 : i32, i32
  }
  func.func @transform_1(%arg0: i32) -> (i32, i32) {
    %c0_i32 = arith.constant 0 : i32
    %c0_i32_0 = arith.constant 0 : i32
    %c0_i32_1 = arith.constant 0 : i32
    return %c0_i32, %c0_i32_0 : i32, i32
  }
  func.func @transform_2(%arg0: i32) -> (i32, i32) {
    %c0_i32 = arith.constant 0 : i32
    %c0_i32_0 = arith.constant 0 : i32
    %c0_i32_1 = arith.constant 0 : i32
    return %c0_i32, %c0_i32_0 : i32, i32
  }
  func.func @transform_3(%arg0: i32) -> (i32, i32) {
    %c0_i32 = arith.constant 0 : i32
    %c0_i32_0 = arith.constant 0 : i32
    return %arg0, %c0_i32 : i32, i32
  }
}

module attributes {stable_mosaic.version = 11 : i64} {
  func.func @_linear_kernel(%arg0: i32, %arg1: memref<294x576xf32, #tpu.memory_space<vmem>>, %arg2: memref<576x64xf32, #tpu.memory_space<vmem>>, %arg3: memref<1x64xf32, #tpu.memory_space<vmem>>, %arg4: memref<294x64xf32, #tpu.memory_space<vmem>>) attributes {dimension_semantics = [#tpu.dimension_semantics<parallel>], iteration_bounds = array<i64: 1>, scalar_prefetch = 0 : i64, scratch_operands = 0 : i64, tpu.core_type = #tpu.core_type<tc>, window_params = [{transform_indices = @transform_0, window_bounds = array<i64: 294, 576>}, {pipeline_mode = #tpu.pipeline_mode<synchronous>, transform_indices = @transform_1, window_bounds = array<i64: 576, 64>}, {pipeline_mode = #tpu.pipeline_mode<synchronous>, transform_indices = @transform_2, window_bounds = array<i64: 1, 64>}, {transform_indices = @transform_3, window_bounds = array<i64: 294, 64>}]} {
    %c0 = arith.constant 0 : index
    %c0_0 = arith.constant 0 : index
    %0 = vector.load %arg1[%c0, %c0_0] : memref<294x576xf32, #tpu.memory_space<vmem>>, vector<294x576xf32>
    %c0_1 = arith.constant 0 : index
    %c0_2 = arith.constant 0 : index
    %1 = vector.load %arg2[%c0_1, %c0_2] : memref<576x64xf32, #tpu.memory_space<vmem>>, vector<576x64xf32>
    %cst = arith.constant dense<0.000000e+00> : vector<294x64xf32>
    %2 = tpu.matmul %0, %1, %cst {dimension_numbers = #tpu.dot_dimension_numbers<[1], [0], [0], [1], [0, 0, 1, 1], [], []>} : vector<294x576xf32>, vector<576x64xf32>, vector<294x64xf32> -> vector<294x64xf32>
    %c0_3 = arith.constant 0 : index
    %c0_4 = arith.constant 0 : index
    %3 = vector.load %arg3[%c0_3, %c0_4] : memref<1x64xf32, #tpu.memory_space<vmem>>, vector<1x64xf32>
    %4 = vector.broadcast %3 : vector<1x64xf32> to vector<294x64xf32>
    %5 = arith.addf %2, %4 : vector<294x64xf32>
    %cst_5 = arith.constant 0.000000e+00 : f32
    %6 = vector.broadcast %cst_5 : f32 to vector<294x64xf32>
    %7 = arith.maximumf %5, %6 : vector<294x64xf32>
    %c0_6 = arith.constant 0 : index
    %c0_7 = arith.constant 0 : index
    %8 = vector.load %arg4[%c0_6, %c0_7] : memref<294x64xf32, #tpu.memory_space<vmem>>, vector<294x64xf32>
    tpu.vector_store %arg4[%c0_6, %c0_7], %7 {strides = array<i32>} : memref<294x64xf32, #tpu.memory_space<vmem>>, vector<294x64xf32>,
    return
  }
  func.func @transform_0(%arg0: i32) -> (i32, i32) {
    %c0_i32 = arith.constant 0 : i32
    %c0_i32_0 = arith.constant 0 : i32
    return %arg0, %c0_i32 : i32, i32
  }
  func.func @transform_1(%arg0: i32) -> (i32, i32) {
    %c0_i32 = arith.constant 0 : i32
    %c0_i32_0 = arith.constant 0 : i32
    %c0_i32_1 = arith.constant 0 : i32
    return %c0_i32, %c0_i32_0 : i32, i32
  }
  func.func @transform_2(%arg0: i32) -> (i32, i32) {
    %c0_i32 = arith.constant 0 : i32
    %c0_i32_0 = arith.constant 0 : i32
    %c0_i32_1 = arith.constant 0 : i32
    return %c0_i32, %c0_i32_0 : i32, i32
  }
  func.func @transform_3(%arg0: i32) -> (i32, i32) {
    %c0_i32 = arith.constant 0 : i32
    %c0_i32_0 = arith.constant 0 : i32
    return %arg0, %c0_i32 : i32, i32
  }
}

module attributes {stable_mosaic.version = 11 : i64} {
  func.func @_linear_kernel(%arg0: i32, %arg1: memref<6x3136xf32, #tpu.memory_space<vmem>>, %arg2: memref<3136x128xf32, #tpu.memory_space<vmem>>, %arg3: memref<1x128xf32, #tpu.memory_space<vmem>>, %arg4: memref<6x128xf32, #tpu.memory_space<vmem>>) attributes {dimension_semantics = [#tpu.dimension_semantics<parallel>], iteration_bounds = array<i64: 1>, scalar_prefetch = 0 : i64, scratch_operands = 0 : i64, tpu.core_type = #tpu.core_type<tc>, window_params = [{transform_indices = @transform_0, window_bounds = array<i64: 6, 3136>}, {pipeline_mode = #tpu.pipeline_mode<synchronous>, transform_indices = @transform_1, window_bounds = array<i64: 3136, 128>}, {pipeline_mode = #tpu.pipeline_mode<synchronous>, transform_indices = @transform_2, window_bounds = array<i64: 1, 128>}, {transform_indices = @transform_3, window_bounds = array<i64: 6, 128>}]} {
    %c0 = arith.constant 0 : index
    %c0_0 = arith.constant 0 : index
    %0 = vector.load %arg1[%c0, %c0_0] : memref<6x3136xf32, #tpu.memory_space<vmem>>, vector<6x3136xf32>
    %c0_1 = arith.constant 0 : index
    %c0_2 = arith.constant 0 : index
    %1 = vector.load %arg2[%c0_1, %c0_2] : memref<3136x128xf32, #tpu.memory_space<vmem>>, vector<3136x128xf32>
    %cst = arith.constant dense<0.000000e+00> : vector<6x128xf32>
    %2 = tpu.matmul %0, %1, %cst {dimension_numbers = #tpu.dot_dimension_numbers<[1], [0], [0], [1], [0, 0, 1, 1], [], []>} : vector<6x3136xf32>, vector<3136x128xf32>, vector<6x128xf32> -> vector<6x128xf32>
    %c0_3 = arith.constant 0 : index
    %c0_4 = arith.constant 0 : index
    %3 = vector.load %arg3[%c0_3, %c0_4] : memref<1x128xf32, #tpu.memory_space<vmem>>, vector<1x128xf32>
    %4 = vector.broadcast %3 : vector<1x128xf32> to vector<6x128xf32>
    %5 = arith.addf %2, %4 : vector<6x128xf32>
    %6 = math.tanh %5 : vector<6x128xf32>
    %c0_5 = arith.constant 0 : index
    %c0_6 = arith.constant 0 : index
    %7 = vector.load %arg4[%c0_5, %c0_6] : memref<6x128xf32, #tpu.memory_space<vmem>>, vector<6x128xf32>
    tpu.vector_store %arg4[%c0_5, %c0_6], %6 {strides = array<i32>} : memref<6x128xf32, #tpu.memory_space<vmem>>, vector<6x128xf32>,
    return
  }
  func.func @transform_0(%arg0: i32) -> (i32, i32) {
    %c0_i32 = arith.constant 0 : i32
    %c0_i32_0 = arith.constant 0 : i32
    return %arg0, %c0_i32 : i32, i32
  }
  func.func @transform_1(%arg0: i32) -> (i32, i32) {
    %c0_i32 = arith.constant 0 : i32
    %c0_i32_0 = arith.constant 0 : i32
    %c0_i32_1 = arith.constant 0 : i32
    return %c0_i32, %c0_i32_0 : i32, i32
  }
  func.func @transform_2(%arg0: i32) -> (i32, i32) {
    %c0_i32 = arith.constant 0 : i32
    %c0_i32_0 = arith.constant 0 : i32
    %c0_i32_1 = arith.constant 0 : i32
    return %c0_i32, %c0_i32_0 : i32, i32
  }
  func.func @transform_3(%arg0: i32) -> (i32, i32) {
    %c0_i32 = arith.constant 0 : i32
    %c0_i32_0 = arith.constant 0 : i32
    return %arg0, %c0_i32 : i32, i32
  }
}

module attributes {stable_mosaic.version = 11 : i64} {
  func.func @_trunk_kernel(%arg0: i32, %arg1: memref<1x3x128xf32, #tpu.memory_space<vmem>>, %arg2: memref<1x3x1xf32, #tpu.memory_space<vmem>>, %arg3: memref<1x3x128xf32, #tpu.memory_space<vmem>>, %arg4: memref<1x128xf32, #tpu.memory_space<vmem>>, %arg5: memref<1x128xf32, #tpu.memory_space<vmem>>, %arg6: memref<2x1x128xf32, #tpu.memory_space<vmem>>, %arg7: memref<2x1x128xf32, #tpu.memory_space<vmem>>, %arg8: memref<2x4x128xf32, #tpu.memory_space<vmem>>, %arg9: memref<2x1x128xf32, #tpu.memory_space<vmem>>, %arg10: memref<2x128x36xf32, #tpu.memory_space<vmem>>, %arg11: memref<2x4x128xf32, #tpu.memory_space<vmem>>, %arg12: memref<2x1x128xf32, #tpu.memory_space<vmem>>, %arg13: memref<2x16x128xf32, #tpu.memory_space<vmem>>, %arg14: memref<2x1x128xf32, #tpu.memory_space<vmem>>, %arg15: memref<2x1x128xf32, #tpu.memory_space<vmem>>, %arg16: memref<2x1x128xf32, #tpu.memory_space<vmem>>, %arg17: memref<2x128x512xf32, #tpu.memory_space<vmem>>, %arg18: memref<2x1x512xf32, #tpu.memory_space<vmem>>, %arg19: memref<2x512x128xf32, #tpu.memory_space<vmem>>, %arg20: memref<2x1x128xf32, #tpu.memory_space<vmem>>, %arg21: memref<1x128xf32, #tpu.memory_space<vmem>>, %arg22: memref<1x128xf32, #tpu.memory_space<vmem>>, %arg23: memref<128x128xf32, #tpu.memory_space<vmem>>, %arg24: memref<1x3x128xf32, #tpu.memory_space<vmem>>) attributes {dimension_semantics = [#tpu.dimension_semantics<parallel>], iteration_bounds = array<i64: 2>, scalar_prefetch = 0 : i64, scratch_operands = 0 : i64, tpu.core_type = #tpu.core_type<tc>, window_params = [{transform_indices = @transform_0, window_bounds = array<i64: 1, 3, 128>}, {transform_indices = @transform_1, window_bounds = array<i64: 1, 3, 1>}, {transform_indices = @transform_2, window_bounds = array<i64: 1, 3, 128>}, {pipeline_mode = #tpu.pipeline_mode<synchronous>, transform_indices = @transform_3, window_bounds = array<i64: 1, 128>}, {pipeline_mode = #tpu.pipeline_mode<synchronous>, transform_indices = @transform_4, window_bounds = array<i64: 1, 128>}, {pipeline_mode = #tpu.pipeline_mode<synchronous>, transform_indices = @transform_5, window_bounds = array<i64: 2, 1, 128>}, {pipeline_mode = #tpu.pipeline_mode<synchronous>, transform_indices = @transform_6, window_bounds = array<i64: 2, 1, 128>}, {pipeline_mode = #tpu.pipeline_mode<synchronous>, transform_indices = @transform_7, window_bounds = array<i64: 2, 4, 128>}, {pipeline_mode = #tpu.pipeline_mode<synchronous>, transform_indices = @transform_8, window_bounds = array<i64: 2, 1, 128>}, {pipeline_mode = #tpu.pipeline_mode<synchronous>, transform_indices = @transform_9, window_bounds = array<i64: 2, 128, 36>}, {pipeline_mode = #tpu.pipeline_mode<synchronous>, transform_indices = @transform_10, window_bounds = array<i64: 2, 4, 128>}, {pipeline_mode = #tpu.pipeline_mode<synchronous>, transform_indices = @transform_11, window_bounds = array<i64: 2, 1, 128>}, {pipeline_mode = #tpu.pipeline_mode<synchronous>, transform_indices = @transform_12, window_bounds = array<i64: 2, 16, 128>}, {pipeline_mode = #tpu.pipeline_mode<synchronous>, transform_indices = @transform_13, window_bounds = array<i64: 2, 1, 128>}, {pipeline_mode = #tpu.pipeline_mode<synchronous>, transform_indices = @transform_14, window_bounds = array<i64: 2, 1, 128>}, {pipeline_mode = #tpu.pipeline_mode<synchronous>, transform_indices = @transform_15, window_bounds = array<i64: 2, 1, 128>}, {pipeline_mode = #tpu.pipeline_mode<synchronous>, transform_indices = @transform_16, window_bounds = array<i64: 2, 128, 512>}, {pipeline_mode = #tpu.pipeline_mode<synchronous>, transform_indices = @transform_17, window_bounds = array<i64: 2, 1, 512>}, {pipeline_mode = #tpu.pipeline_mode<synchronous>, transform_indices = @transform_18, window_bounds = array<i64: 2, 512, 128>}, {pipeline_mode = #tpu.pipeline_mode<synchronous>, transform_indices = @transform_19, window_bounds = array<i64: 2, 1, 128>}, {pipeline_mode = #tpu.pipeline_mode<synchronous>, transform_indices = @transform_20, window_bounds = array<i64: 1, 128>}, {pipeline_mode = #tpu.pipeline_mode<synchronous>, transform_indices = @transform_21, window_bounds = array<i64: 1, 128>}, {pipeline_mode = #tpu.pipeline_mode<synchronous>, transform_indices = @transform_22, window_bounds = array<i64: 128, 128>}, {transform_indices = @transform_23, window_bounds = array<i64: 1, 3, 128>}]} {
    %c0 = arith.constant 0 : index
    %c0_0 = arith.constant 0 : index
    %c0_1 = arith.constant 0 : index
    %0 = vector.load %arg1[%c0, %c0_0, %c0_1] : memref<1x3x128xf32, #tpu.memory_space<vmem>>, vector<1x3x128xf32>
    %1 = vector.shape_cast %0 : vector<1x3x128xf32> to vector<3x128xf32>
    %c0_2 = arith.constant 0 : index
    %c0_3 = arith.constant 0 : index
    %c0_4 = arith.constant 0 : index
    %2 = vector.load %arg2[%c0_2, %c0_3, %c0_4] : memref<1x3x1xf32, #tpu.memory_space<vmem>>, vector<1x3x1xf32>
    %3 = vector.shape_cast %2 : vector<1x3x1xf32> to vector<3x1xf32>
    %c0_5 = arith.constant 0 : index
    %c0_6 = arith.constant 0 : index
    %4 = vector.load %arg4[%c0_5, %c0_6] : memref<1x128xf32, #tpu.memory_space<vmem>>, vector<1x128xf32>
    %5 = vector.broadcast %3 : vector<3x1xf32> to vector<3x128xf32>
    %6 = vector.broadcast %4 : vector<1x128xf32> to vector<3x128xf32>
    %7 = arith.mulf %5, %6 : vector<3x128xf32>
    %c0_7 = arith.constant 0 : index
    %c0_8 = arith.constant 0 : index
    %8 = vector.load %arg5[%c0_7, %c0_8] : memref<1x128xf32, #tpu.memory_space<vmem>>, vector<1x128xf32>
    %9 = vector.broadcast %8 : vector<1x128xf32> to vector<3x128xf32>
    %10 = arith.addf %7, %9 : vector<3x128xf32>
    %11 = math.tanh %10 : vector<3x128xf32>
    %c0_9 = arith.constant 0 : index
    %c0_10 = arith.constant 0 : index
    %c0_11 = arith.constant 0 : index
    %12 = vector.load %arg3[%c0_9, %c0_10, %c0_11] : memref<1x3x128xf32, #tpu.memory_space<vmem>>, vector<1x3x128xf32>
    %13 = vector.shape_cast %12 : vector<1x3x128xf32> to vector<3x128xf32>
    %14 = math.tanh %13 : vector<3x128xf32>
    %15 = vector.extract_strided_slice %11 {offsets = [0, 0], sizes = [1, 128], strides = [1, 1]} : vector<3x128xf32> to vector<1x128xf32>
    %16 = vector.extract_strided_slice %1 {offsets = [0, 0], sizes = [1, 128], strides = [1, 1]} : vector<3x128xf32> to vector<1x128xf32>
    %17 = vector.extract_strided_slice %14 {offsets = [1, 0], sizes = [1, 128], strides = [1, 1]} : vector<3x128xf32> to vector<1x128xf32>
    %18 = vector.extract_strided_slice %11 {offsets = [1, 0], sizes = [1, 128], strides = [1, 1]} : vector<3x128xf32> to vector<1x128xf32>
    %19 = vector.extract_strided_slice %1 {offsets = [1, 0], sizes = [1, 128], strides = [1, 1]} : vector<3x128xf32> to vector<1x128xf32>
    %20 = vector.extract_strided_slice %14 {offsets = [2, 0], sizes = [1, 128], strides = [1, 1]} : vector<3x128xf32> to vector<1x128xf32>
    %21 = vector.extract_strided_slice %11 {offsets = [2, 0], sizes = [1, 128], strides = [1, 1]} : vector<3x128xf32> to vector<1x128xf32>
    %22 = vector.extract_strided_slice %1 {offsets = [2, 0], sizes = [1, 128], strides = [1, 1]} : vector<3x128xf32> to vector<1x128xf32>
    %23 = tpu.concatenate %15, %16, %17, %18, %19, %20, %21, %22 in 0 : vector<1x128xf32>, vector<1x128xf32>, vector<1x128xf32>, vector<1x128xf32>, vector<1x128xf32>, vector<1x128xf32>, vector<1x128xf32>, vector<1x128xf32> -> vector<8x128xf32>
    %c0_12 = arith.constant 0 : index
    %c0_13 = arith.constant 0 : index
    %c0_14 = arith.constant 0 : index
    %24 = vector.load %arg6[%c0_12, %c0_13, %c0_14] : memref<2x1x128xf32, #tpu.memory_space<vmem>>, vector<1x1x128xf32>
    %25 = vector.shape_cast %24 : vector<1x1x128xf32> to vector<1x128xf32>
    %c0_15 = arith.constant 0 : index
    %c0_16 = arith.constant 0 : index
    %c0_17 = arith.constant 0 : index
    %26 = vector.load %arg7[%c0_15, %c0_16, %c0_17] : memref<2x1x128xf32, #tpu.memory_space<vmem>>, vector<1x1x128xf32>
    %27 = vector.shape_cast %26 : vector<1x1x128xf32> to vector<1x128xf32>
    %cst = arith.constant dense<0.000000e+00> : vector<8xf32>
    %28 = vector.multi_reduction <add>, %23, %cst [1] : vector<8x128xf32> to vector<8xf32>
    %29 = vector.shape_cast %28 : vector<8xf32> to vector<8x1xf32>
    %cst_18 = arith.constant 1.280000e+02 : f32
    %30 = vector.broadcast %cst_18 : f32 to vector<8x1xf32>
    %31 = arith.divf %29, %30 : vector<8x1xf32>
    %32 = vector.broadcast %31 : vector<8x1xf32> to vector<8x128xf32>
    %33 = arith.subf %23, %32 : vector<8x128xf32>
    %34 = arith.mulf %33, %33 : vector<8x128xf32>
    %cst_19 = arith.constant dense<0.000000e+00> : vector<8xf32>
    %35 = vector.multi_reduction <add>, %34, %cst_19 [1] : vector<8x128xf32> to vector<8xf32>
    %36 = vector.shape_cast %35 : vector<8xf32> to vector<8x1xf32>
    %cst_20 = arith.constant 1.280000e+02 : f32
    %37 = vector.broadcast %cst_20 : f32 to vector<8x1xf32>
    %38 = arith.divf %36, %37 : vector<8x1xf32>
    %39 = vector.broadcast %31 : vector<8x1xf32> to vector<8x128xf32>
    %40 = arith.subf %23, %39 : vector<8x128xf32>
    %cst_21 = arith.constant 9.99999974E-6 : f32
    %41 = vector.broadcast %cst_21 : f32 to vector<8x1xf32>
    %42 = arith.addf %38, %41 : vector<8x1xf32>
    %43 = math.rsqrt %42 : vector<8x1xf32>
    %44 = vector.broadcast %43 : vector<8x1xf32> to vector<8x128xf32>
    %45 = arith.mulf %40, %44 : vector<8x128xf32>
    %46 = vector.broadcast %25 : vector<1x128xf32> to vector<8x128xf32>
    %47 = arith.mulf %45, %46 : vector<8x128xf32>
    %48 = vector.broadcast %27 : vector<1x128xf32> to vector<8x128xf32>
    %49 = arith.addf %47, %48 : vector<8x128xf32>
    %c0_22 = arith.constant 0 : index
    %c0_23 = arith.constant 0 : index
    %c0_24 = arith.constant 0 : index
    %50 = vector.load %arg8[%c0_22, %c0_23, %c0_24] : memref<2x4x128xf32, #tpu.memory_space<vmem>>, vector<1x4x128xf32>
    %51 = vector.shape_cast %50 : vector<1x4x128xf32> to vector<4x128xf32>
    %cst_25 = arith.constant 0.000000e+00 : f32
    %52 = vector.broadcast %cst_25 : f32 to vector<3x128xf32>
    %53 = tpu.concatenate %52, %49 in 0 : vector<3x128xf32>, vector<8x128xf32> -> vector<11x128xf32>
    %c0_26 = arith.constant 0 : index
    %c0_27 = arith.constant 0 : index
    %c0_28 = arith.constant 0 : index
    %54 = vector.load %arg9[%c0_26, %c0_27, %c0_28] : memref<2x1x128xf32, #tpu.memory_space<vmem>>, vector<1x1x128xf32>
    %55 = vector.shape_cast %54 : vector<1x1x128xf32> to vector<1x128xf32>
    %56 = vector.extract_strided_slice %53 {offsets = [0, 0], sizes = [8, 128], strides = [1, 1]} : vector<11x128xf32> to vector<8x128xf32>
    %57 = vector.extract_strided_slice %51 {offsets = [0, 0], sizes = [1, 128], strides = [1, 1]} : vector<4x128xf32> to vector<1x128xf32>
    %58 = vector.broadcast %57 : vector<1x128xf32> to vector<8x128xf32>
    %59 = arith.mulf %56, %58 : vector<8x128xf32>
    %60 = vector.broadcast %55 : vector<1x128xf32> to vector<8x128xf32>
    %61 = arith.addf %60, %59 : vector<8x128xf32>
    %62 = vector.extract_strided_slice %53 {offsets = [1, 0], sizes = [8, 128], strides = [1, 1]} : vector<11x128xf32> to vector<8x128xf32>
    %63 = vector.extract_strided_slice %51 {offsets = [1, 0], sizes = [1, 128], strides = [1, 1]} : vector<4x128xf32> to vector<1x128xf32>
    %64 = vector.broadcast %63 : vector<1x128xf32> to vector<8x128xf32>
    %65 = arith.mulf %62, %64 : vector<8x128xf32>
    %66 = arith.addf %61, %65 : vector<8x128xf32>
    %67 = vector.extract_strided_slice %53 {offsets = [2, 0], sizes = [8, 128], strides = [1, 1]} : vector<11x128xf32> to vector<8x128xf32>
    %68 = vector.extract_strided_slice %51 {offsets = [2, 0], sizes = [1, 128], strides = [1, 1]} : vector<4x128xf32> to vector<1x128xf32>
    %69 = vector.broadcast %68 : vector<1x128xf32> to vector<8x128xf32>
    %70 = arith.mulf %67, %69 : vector<8x128xf32>
    %71 = arith.addf %66, %70 : vector<8x128xf32>
    %72 = vector.extract_strided_slice %53 {offsets = [3, 0], sizes = [8, 128], strides = [1, 1]} : vector<11x128xf32> to vector<8x128xf32>
    %73 = vector.extract_strided_slice %51 {offsets = [3, 0], sizes = [1, 128], strides = [1, 1]} : vector<4x128xf32> to vector<1x128xf32>
    %74 = vector.broadcast %73 : vector<1x128xf32> to vector<8x128xf32>
    %75 = arith.mulf %72, %74 : vector<8x128xf32>
    %76 = arith.addf %71, %75 : vector<8x128xf32>
    %cst_29 = arith.constant 0.000000e+00 : f32
    %77 = vector.broadcast %cst_29 : f32 to vector<8x128xf32>
    %78 = arith.subf %77, %76 : vector<8x128xf32>
    %79 = math.exp %78 : vector<8x128xf32>
    %cst_30 = arith.constant 1.000000e+00 : f32
    %80 = vector.broadcast %cst_30 : f32 to vector<8x128xf32>
    %81 = arith.addf %80, %79 : vector<8x128xf32>
    %cst_31 = arith.constant 1.000000e+00 : f32
    %82 = vector.broadcast %cst_31 : f32 to vector<8x128xf32>
    %83 = arith.divf %82, %81 : vector<8x128xf32>
    %84 = arith.mulf %76, %83 : vector<8x128xf32>
    %c0_32 = arith.constant 0 : index
    %c0_33 = arith.constant 0 : index
    %c0_34 = arith.constant 0 : index
    %85 = vector.load %arg10[%c0_32, %c0_33, %c0_34] : memref<2x128x36xf32, #tpu.memory_space<vmem>>, vector<1x128x36xf32>
    %86 = vector.shape_cast %85 : vector<1x128x36xf32> to vector<128x36xf32>
    %cst_35 = arith.constant dense<0.000000e+00> : vector<8x36xf32>
    %87 = tpu.matmul %84, %86, %cst_35 {dimension_numbers = #tpu.dot_dimension_numbers<[1], [0], [0], [1], [0, 0, 1, 1], [], []>} : vector<8x128xf32>, vector<128x36xf32>, vector<8x36xf32> -> vector<8x36xf32>
    %88 = vector.extract_strided_slice %87 {offsets = [0, 0], sizes = [8, 4], strides = [1, 1]} : vector<8x36xf32> to vector<8x4xf32>
    %89 = vector.extract_strided_slice %87 {offsets = [0, 4], sizes = [8, 16], strides = [1, 1]} : vector<8x36xf32> to vector<8x16xf32>
    %90 = tpu.transpose %89, [1, 0] : vector<8x16xf32> -> vector<16x8xf32>
    %91 = vector.extract_strided_slice %87 {offsets = [0, 20], sizes = [8, 16], strides = [1, 1]} : vector<8x36xf32> to vector<8x16xf32>
    %92 = tpu.transpose %91, [1, 0] : vector<8x16xf32> -> vector<16x8xf32>
    %c0_36 = arith.constant 0 : index
    %c0_37 = arith.constant 0 : index
    %c0_38 = arith.constant 0 : index
    %93 = vector.load %arg11[%c0_36, %c0_37, %c0_38] : memref<2x4x128xf32, #tpu.memory_space<vmem>>, vector<1x4x128xf32>
    %94 = vector.shape_cast %93 : vector<1x4x128xf32> to vector<4x128xf32>
    %cst_39 = arith.constant dense<0.000000e+00> : vector<8x128xf32>
    %95 = tpu.matmul %88, %94, %cst_39 {dimension_numbers = #tpu.dot_dimension_numbers<[1], [0], [0], [1], [0, 0, 1, 1], [], []>} : vector<8x4xf32>, vector<4x128xf32>, vector<8x128xf32> -> vector<8x128xf32>
    %c0_40 = arith.constant 0 : index
    %c0_41 = arith.constant 0 : index
    %c0_42 = arith.constant 0 : index
    %96 = vector.load %arg12[%c0_40, %c0_41, %c0_42] : memref<2x1x128xf32, #tpu.memory_space<vmem>>, vector<1x1x128xf32>
    %97 = vector.shape_cast %96 : vector<1x1x128xf32> to vector<1x128xf32>
    %98 = vector.broadcast %97 : vector<1x128xf32> to vector<8x128xf32>
    %99 = arith.addf %95, %98 : vector<8x128xf32>
    %cst_43 = arith.constant 0.000000e+00 : f32
    %100 = vector.broadcast %cst_43 : f32 to vector<8x128xf32>
    %101 = arith.maximumf %99, %100 : vector<8x128xf32>
    %102 = math.absf %99 : vector<8x128xf32>
    %cst_44 = arith.constant 0.000000e+00 : f32
    %103 = vector.broadcast %cst_44 : f32 to vector<8x128xf32>
    %104 = arith.subf %103, %102 : vector<8x128xf32>
    %105 = math.exp %104 : vector<8x128xf32>
    %106 = math.log1p %105 : vector<8x128xf32>
    %107 = arith.addf %101, %106 : vector<8x128xf32>
    %c0_45 = arith.constant 0 : index
    %c0_46 = arith.constant 0 : index
    %c0_47 = arith.constant 0 : index
    %108 = vector.load %arg13[%c0_45, %c0_46, %c0_47] : memref<2x16x128xf32, #tpu.memory_space<vmem>>, vector<1x16x128xf32>
    %109 = vector.shape_cast %108 : vector<1x16x128xf32> to vector<16x128xf32>
    %110 = arith.mulf %107, %84 : vector<8x128xf32>
    %cst_48 = arith.constant 0.000000e+00 : f32
    %111 = vector.broadcast %cst_48 : f32 to vector<16x128xf32>
    %112 = vector.extract_strided_slice %107 {offsets = [0, 0], sizes = [1, 128], strides = [1, 1]} : vector<8x128xf32> to vector<1x128xf32>
    %113 = vector.broadcast %112 : vector<1x128xf32> to vector<16x128xf32>
    %114 = arith.mulf %113, %109 : vector<16x128xf32>
    %115 = math.exp %114 : vector<16x128xf32>
    %116 = arith.mulf %115, %111 : vector<16x128xf32>
    %117 = vector.extract_strided_slice %90 {offsets = [0, 0], sizes = [16, 1], strides = [1, 1]} : vector<16x8xf32> to vector<16x1xf32>
    %118 = vector.extract_strided_slice %110 {offsets = [0, 0], sizes = [1, 128], strides = [1, 1]} : vector<8x128xf32> to vector<1x128xf32>
    %119 = vector.broadcast %117 : vector<16x1xf32> to vector<16x128xf32>
    %120 = vector.broadcast %118 : vector<1x128xf32> to vector<16x128xf32>
    %121 = arith.mulf %119, %120 : vector<16x128xf32>
    %122 = arith.addf %116, %121 : vector<16x128xf32>
    %123 = vector.extract_strided_slice %92 {offsets = [0, 0], sizes = [16, 1], strides = [1, 1]} : vector<16x8xf32> to vector<16x1xf32>
    %124 = vector.broadcast %123 : vector<16x1xf32> to vector<16x128xf32>
    %125 = arith.mulf %122, %124 : vector<16x128xf32>
    %cst_49 = arith.constant dense<0.000000e+00> : vector<128xf32>
    %126 = vector.multi_reduction <add>, %125, %cst_49 [0] : vector<16x128xf32> to vector<128xf32>
    %127 = vector.shape_cast %126 : vector<128xf32> to vector<1x128xf32>
    %128 = vector.extract_strided_slice %107 {offsets = [1, 0], sizes = [1, 128], strides = [1, 1]} : vector<8x128xf32> to vector<1x128xf32>
    %129 = vector.broadcast %128 : vector<1x128xf32> to vector<16x128xf32>
    %130 = arith.mulf %129, %109 : vector<16x128xf32>
    %131 = math.exp %130 : vector<16x128xf32>
    %132 = arith.mulf %131, %122 : vector<16x128xf32>
    %133 = vector.extract_strided_slice %90 {offsets = [0, 1], sizes = [16, 1], strides = [1, 1]} : vector<16x8xf32> to vector<16x1xf32>
    %134 = vector.extract_strided_slice %110 {offsets = [1, 0], sizes = [1, 128], strides = [1, 1]} : vector<8x128xf32> to vector<1x128xf32>
    %135 = vector.broadcast %133 : vector<16x1xf32> to vector<16x128xf32>
    %136 = vector.broadcast %134 : vector<1x128xf32> to vector<16x128xf32>
    %137 = arith.mulf %135, %136 : vector<16x128xf32>
    %138 = arith.addf %132, %137 : vector<16x128xf32>
    %139 = vector.extract_strided_slice %92 {offsets = [0, 1], sizes = [16, 1], strides = [1, 1]} : vector<16x8xf32> to vector<16x1xf32>
    %140 = vector.broadcast %139 : vector<16x1xf32> to vector<16x128xf32>
    %141 = arith.mulf %138, %140 : vector<16x128xf32>
    %cst_50 = arith.constant dense<0.000000e+00> : vector<128xf32>
    %142 = vector.multi_reduction <add>, %141, %cst_50 [0] : vector<16x128xf32> to vector<128xf32>
    %143 = vector.shape_cast %142 : vector<128xf32> to vector<1x128xf32>
    %144 = vector.extract_strided_slice %107 {offsets = [2, 0], sizes = [1, 128], strides = [1, 1]} : vector<8x128xf32> to vector<1x128xf32>
    %145 = vector.broadcast %144 : vector<1x128xf32> to vector<16x128xf32>
    %146 = arith.mulf %145, %109 : vector<16x128xf32>
    %147 = math.exp %146 : vector<16x128xf32>
    %148 = arith.mulf %147, %138 : vector<16x128xf32>
    %149 = vector.extract_strided_slice %90 {offsets = [0, 2], sizes = [16, 1], strides = [1, 1]} : vector<16x8xf32> to vector<16x1xf32>
    %150 = vector.extract_strided_slice %110 {offsets = [2, 0], sizes = [1, 128], strides = [1, 1]} : vector<8x128xf32> to vector<1x128xf32>
    %151 = vector.broadcast %149 : vector<16x1xf32> to vector<16x128xf32>
    %152 = vector.broadcast %150 : vector<1x128xf32> to vector<16x128xf32>
    %153 = arith.mulf %151, %152 : vector<16x128xf32>
    %154 = arith.addf %148, %153 : vector<16x128xf32>
    %155 = vector.extract_strided_slice %92 {offsets = [0, 2], sizes = [16, 1], strides = [1, 1]} : vector<16x8xf32> to vector<16x1xf32>
    %156 = vector.broadcast %155 : vector<16x1xf32> to vector<16x128xf32>
    %157 = arith.mulf %154, %156 : vector<16x128xf32>
    %cst_51 = arith.constant dense<0.000000e+00> : vector<128xf32>
    %158 = vector.multi_reduction <add>, %157, %cst_51 [0] : vector<16x128xf32> to vector<128xf32>
    %159 = vector.shape_cast %158 : vector<128xf32> to vector<1x128xf32>
    %160 = vector.extract_strided_slice %107 {offsets = [3, 0], sizes = [1, 128], strides = [1, 1]} : vector<8x128xf32> to vector<1x128xf32>
    %161 = vector.broadcast %160 : vector<1x128xf32> to vector<16x128xf32>
    %162 = arith.mulf %161, %109 : vector<16x128xf32>
    %163 = math.exp %162 : vector<16x128xf32>
    %164 = arith.mulf %163, %154 : vector<16x128xf32>
    %165 = vector.extract_strided_slice %90 {offsets = [0, 3], sizes = [16, 1], strides = [1, 1]} : vector<16x8xf32> to vector<16x1xf32>
    %166 = vector.extract_strided_slice %110 {offsets = [3, 0], sizes = [1, 128], strides = [1, 1]} : vector<8x128xf32> to vector<1x128xf32>
    %167 = vector.broadcast %165 : vector<16x1xf32> to vector<16x128xf32>
    %168 = vector.broadcast %166 : vector<1x128xf32> to vector<16x128xf32>
    %169 = arith.mulf %167, %168 : vector<16x128xf32>
    %170 = arith.addf %164, %169 : vector<16x128xf32>
    %171 = vector.extract_strided_slice %92 {offsets = [0, 3], sizes = [16, 1], strides = [1, 1]} : vector<16x8xf32> to vector<16x1xf32>
    %172 = vector.broadcast %171 : vector<16x1xf32> to vector<16x128xf32>
    %173 = arith.mulf %170, %172 : vector<16x128xf32>
    %cst_52 = arith.constant dense<0.000000e+00> : vector<128xf32>
    %174 = vector.multi_reduction <add>, %173, %cst_52 [0] : vector<16x128xf32> to vector<128xf32>
    %175 = vector.shape_cast %174 : vector<128xf32> to vector<1x128xf32>
    %176 = vector.extract_strided_slice %107 {offsets = [4, 0], sizes = [1, 128], strides = [1, 1]} : vector<8x128xf32> to vector<1x128xf32>
    %177 = vector.broadcast %176 : vector<1x128xf32> to vector<16x128xf32>
    %178 = arith.mulf %177, %109 : vector<16x128xf32>
    %179 = math.exp %178 : vector<16x128xf32>
    %180 = arith.mulf %179, %170 : vector<16x128xf32>
    %181 = vector.extract_strided_slice %90 {offsets = [0, 4], sizes = [16, 1], strides = [1, 1]} : vector<16x8xf32> to vector<16x1xf32>
    %182 = vector.extract_strided_slice %110 {offsets = [4, 0], sizes = [1, 128], strides = [1, 1]} : vector<8x128xf32> to vector<1x128xf32>
    %183 = vector.broadcast %181 : vector<16x1xf32> to vector<16x128xf32>
    %184 = vector.broadcast %182 : vector<1x128xf32> to vector<16x128xf32>
    %185 = arith.mulf %183, %184 : vector<16x128xf32>
    %186 = arith.addf %180, %185 : vector<16x128xf32>
    %187 = vector.extract_strided_slice %92 {offsets = [0, 4], sizes = [16, 1], strides = [1, 1]} : vector<16x8xf32> to vector<16x1xf32>
    %188 = vector.broadcast %187 : vector<16x1xf32> to vector<16x128xf32>
    %189 = arith.mulf %186, %188 : vector<16x128xf32>
    %cst_53 = arith.constant dense<0.000000e+00> : vector<128xf32>
    %190 = vector.multi_reduction <add>, %189, %cst_53 [0] : vector<16x128xf32> to vector<128xf32>
    %191 = vector.shape_cast %190 : vector<128xf32> to vector<1x128xf32>
    %192 = vector.extract_strided_slice %107 {offsets = [5, 0], sizes = [1, 128], strides = [1, 1]} : vector<8x128xf32> to vector<1x128xf32>
    %193 = vector.broadcast %192 : vector<1x128xf32> to vector<16x128xf32>
    %194 = arith.mulf %193, %109 : vector<16x128xf32>
    %195 = math.exp %194 : vector<16x128xf32>
    %196 = arith.mulf %195, %186 : vector<16x128xf32>
    %197 = vector.extract_strided_slice %90 {offsets = [0, 5], sizes = [16, 1], strides = [1, 1]} : vector<16x8xf32> to vector<16x1xf32>
    %198 = vector.extract_strided_slice %110 {offsets = [5, 0], sizes = [1, 128], strides = [1, 1]} : vector<8x128xf32> to vector<1x128xf32>
    %199 = vector.broadcast %197 : vector<16x1xf32> to vector<16x128xf32>
    %200 = vector.broadcast %198 : vector<1x128xf32> to vector<16x128xf32>
    %201 = arith.mulf %199, %200 : vector<16x128xf32>
    %202 = arith.addf %196, %201 : vector<16x128xf32>
    %203 = vector.extract_strided_slice %92 {offsets = [0, 5], sizes = [16, 1], strides = [1, 1]} : vector<16x8xf32> to vector<16x1xf32>
    %204 = vector.broadcast %203 : vector<16x1xf32> to vector<16x128xf32>
    %205 = arith.mulf %202, %204 : vector<16x128xf32>
    %cst_54 = arith.constant dense<0.000000e+00> : vector<128xf32>
    %206 = vector.multi_reduction <add>, %205, %cst_54 [0] : vector<16x128xf32> to vector<128xf32>
    %207 = vector.shape_cast %206 : vector<128xf32> to vector<1x128xf32>
    %208 = vector.extract_strided_slice %107 {offsets = [6, 0], sizes = [1, 128], strides = [1, 1]} : vector<8x128xf32> to vector<1x128xf32>
    %209 = vector.broadcast %208 : vector<1x128xf32> to vector<16x128xf32>
    %210 = arith.mulf %209, %109 : vector<16x128xf32>
    %211 = math.exp %210 : vector<16x128xf32>
    %212 = arith.mulf %211, %202 : vector<16x128xf32>
    %213 = vector.extract_strided_slice %90 {offsets = [0, 6], sizes = [16, 1], strides = [1, 1]} : vector<16x8xf32> to vector<16x1xf32>
    %214 = vector.extract_strided_slice %110 {offsets = [6, 0], sizes = [1, 128], strides = [1, 1]} : vector<8x128xf32> to vector<1x128xf32>
    %215 = vector.broadcast %213 : vector<16x1xf32> to vector<16x128xf32>
    %216 = vector.broadcast %214 : vector<1x128xf32> to vector<16x128xf32>
    %217 = arith.mulf %215, %216 : vector<16x128xf32>
    %218 = arith.addf %212, %217 : vector<16x128xf32>
    %219 = vector.extract_strided_slice %92 {offsets = [0, 6], sizes = [16, 1], strides = [1, 1]} : vector<16x8xf32> to vector<16x1xf32>
    %220 = vector.broadcast %219 : vector<16x1xf32> to vector<16x128xf32>
    %221 = arith.mulf %218, %220 : vector<16x128xf32>
    %cst_55 = arith.constant dense<0.000000e+00> : vector<128xf32>
    %222 = vector.multi_reduction <add>, %221, %cst_55 [0] : vector<16x128xf32> to vector<128xf32>
    %223 = vector.shape_cast %222 : vector<128xf32> to vector<1x128xf32>
    %224 = vector.extract_strided_slice %107 {offsets = [7, 0], sizes = [1, 128], strides = [1, 1]} : vector<8x128xf32> to vector<1x128xf32>
    %225 = vector.broadcast %224 : vector<1x128xf32> to vector<16x128xf32>
    %226 = arith.mulf %225, %109 : vector<16x128xf32>
    %227 = math.exp %226 : vector<16x128xf32>
    %228 = arith.mulf %227, %218 : vector<16x128xf32>
    %229 = vector.extract_strided_slice %90 {offsets = [0, 7], sizes = [16, 1], strides = [1, 1]} : vector<16x8xf32> to vector<16x1xf32>
    %230 = vector.extract_strided_slice %110 {offsets = [7, 0], sizes = [1, 128], strides = [1, 1]} : vector<8x128xf32> to vector<1x128xf32>
    %231 = vector.broadcast %229 : vector<16x1xf32> to vector<16x128xf32>
    %232 = vector.broadcast %230 : vector<1x128xf32> to vector<16x128xf32>
    %233 = arith.mulf %231, %232 : vector<16x128xf32>
    %234 = arith.addf %228, %233 : vector<16x128xf32>
    %235 = vector.extract_strided_slice %92 {offsets = [0, 7], sizes = [16, 1], strides = [1, 1]} : vector<16x8xf32> to vector<16x1xf32>
    %236 = vector.broadcast %235 : vector<16x1xf32> to vector<16x128xf32>
    %237 = arith.mulf %234, %236 : vector<16x128xf32>
    %cst_56 = arith.constant dense<0.000000e+00> : vector<128xf32>
    %238 = vector.multi_reduction <add>, %237, %cst_56 [0] : vector<16x128xf32> to vector<128xf32>
    %239 = vector.shape_cast %238 : vector<128xf32> to vector<1x128xf32>
    %240 = tpu.concatenate %127, %143, %159, %175, %191, %207, %223, %239 in 0 : vector<1x128xf32>, vector<1x128xf32>, vector<1x128xf32>, vector<1x128xf32>, vector<1x128xf32>, vector<1x128xf32>, vector<1x128xf32>, vector<1x128xf32> -> vector<8x128xf32>
    %c0_57 = arith.constant 0 : index
    %c0_58 = arith.constant 0 : index
    %c0_59 = arith.constant 0 : index
    %241 = vector.load %arg14[%c0_57, %c0_58, %c0_59] : memref<2x1x128xf32, #tpu.memory_space<vmem>>, vector<1x1x128xf32>
    %242 = vector.shape_cast %241 : vector<1x1x128xf32> to vector<1x128xf32>
    %243 = vector.broadcast %242 : vector<1x128xf32> to vector<8x128xf32>
    %244 = arith.mulf %243, %84 : vector<8x128xf32>
    %245 = arith.addf %240, %244 : vector<8x128xf32>
    %246 = arith.addf %23, %245 : vector<8x128xf32>
    %c0_60 = arith.constant 0 : index
    %c0_61 = arith.constant 0 : index
    %c0_62 = arith.constant 0 : index
    %247 = vector.load %arg15[%c0_60, %c0_61, %c0_62] : memref<2x1x128xf32, #tpu.memory_space<vmem>>, vector<1x1x128xf32>
    %248 = vector.shape_cast %247 : vector<1x1x128xf32> to vector<1x128xf32>
    %c0_63 = arith.constant 0 : index
    %c0_64 = arith.constant 0 : index
    %c0_65 = arith.constant 0 : index
    %249 = vector.load %arg16[%c0_63, %c0_64, %c0_65] : memref<2x1x128xf32, #tpu.memory_space<vmem>>, vector<1x1x128xf32>
    %250 = vector.shape_cast %249 : vector<1x1x128xf32> to vector<1x128xf32>
    %cst_66 = arith.constant dense<0.000000e+00> : vector<8xf32>
    %251 = vector.multi_reduction <add>, %246, %cst_66 [1] : vector<8x128xf32> to vector<8xf32>
    %252 = vector.shape_cast %251 : vector<8xf32> to vector<8x1xf32>
    %cst_67 = arith.constant 1.280000e+02 : f32
    %253 = vector.broadcast %cst_67 : f32 to vector<8x1xf32>
    %254 = arith.divf %252, %253 : vector<8x1xf32>
    %255 = vector.broadcast %254 : vector<8x1xf32> to vector<8x128xf32>
    %256 = arith.subf %246, %255 : vector<8x128xf32>
    %257 = arith.mulf %256, %256 : vector<8x128xf32>
    %cst_68 = arith.constant dense<0.000000e+00> : vector<8xf32>
    %258 = vector.multi_reduction <add>, %257, %cst_68 [1] : vector<8x128xf32> to vector<8xf32>
    %259 = vector.shape_cast %258 : vector<8xf32> to vector<8x1xf32>
    %cst_69 = arith.constant 1.280000e+02 : f32
    %260 = vector.broadcast %cst_69 : f32 to vector<8x1xf32>
    %261 = arith.divf %259, %260 : vector<8x1xf32>
    %262 = vector.broadcast %254 : vector<8x1xf32> to vector<8x128xf32>
    %263 = arith.subf %246, %262 : vector<8x128xf32>
    %cst_70 = arith.constant 9.99999974E-6 : f32
    %264 = vector.broadcast %cst_70 : f32 to vector<8x1xf32>
    %265 = arith.addf %261, %264 : vector<8x1xf32>
    %266 = math.rsqrt %265 : vector<8x1xf32>
    %267 = vector.broadcast %266 : vector<8x1xf32> to vector<8x128xf32>
    %268 = arith.mulf %263, %267 : vector<8x128xf32>
    %269 = vector.broadcast %248 : vector<1x128xf32> to vector<8x128xf32>
    %270 = arith.mulf %268, %269 : vector<8x128xf32>
    %271 = vector.broadcast %250 : vector<1x128xf32> to vector<8x128xf32>
    %272 = arith.addf %270, %271 : vector<8x128xf32>
    %c0_71 = arith.constant 0 : index
    %c0_72 = arith.constant 0 : index
    %c0_73 = arith.constant 0 : index
    %273 = vector.load %arg17[%c0_71, %c0_72, %c0_73] : memref<2x128x512xf32, #tpu.memory_space<vmem>>, vector<1x128x512xf32>
    %274 = vector.shape_cast %273 : vector<1x128x512xf32> to vector<128x512xf32>
    %cst_74 = arith.constant dense<0.000000e+00> : vector<8x512xf32>
    %275 = tpu.matmul %272, %274, %cst_74 {dimension_numbers = #tpu.dot_dimension_numbers<[1], [0], [0], [1], [0, 0, 1, 1], [], []>} : vector<8x128xf32>, vector<128x512xf32>, vector<8x512xf32> -> vector<8x512xf32>
    %c0_75 = arith.constant 0 : index
    %c0_76 = arith.constant 0 : index
    %c0_77 = arith.constant 0 : index
    %276 = vector.load %arg18[%c0_75, %c0_76, %c0_77] : memref<2x1x512xf32, #tpu.memory_space<vmem>>, vector<1x1x512xf32>
    %277 = vector.shape_cast %276 : vector<1x1x512xf32> to vector<1x512xf32>
    %278 = vector.broadcast %277 : vector<1x512xf32> to vector<8x512xf32>
    %279 = arith.addf %275, %278 : vector<8x512xf32>
    %cst_78 = arith.constant 5.000000e-01 : f32
    %280 = vector.broadcast %cst_78 : f32 to vector<8x512xf32>
    %281 = arith.mulf %280, %279 : vector<8x512xf32>
    %cst_79 = arith.constant 0.707106769 : f32
    %282 = vector.broadcast %cst_79 : f32 to vector<8x512xf32>
    %283 = arith.mulf %279, %282 : vector<8x512xf32>
    %284 = math.erf %283 : vector<8x512xf32>
    %cst_80 = arith.constant 1.000000e+00 : f32
    %285 = vector.broadcast %cst_80 : f32 to vector<8x512xf32>
    %286 = arith.addf %285, %284 : vector<8x512xf32>
    %287 = arith.mulf %281, %286 : vector<8x512xf32>
    %c0_81 = arith.constant 0 : index
    %c0_82 = arith.constant 0 : index
    %c0_83 = arith.constant 0 : index
    %288 = vector.load %arg19[%c0_81, %c0_82, %c0_83] : memref<2x512x128xf32, #tpu.memory_space<vmem>>, vector<1x512x128xf32>
    %289 = vector.shape_cast %288 : vector<1x512x128xf32> to vector<512x128xf32>
    %cst_84 = arith.constant dense<0.000000e+00> : vector<8x128xf32>
    %290 = tpu.matmul %287, %289, %cst_84 {dimension_numbers = #tpu.dot_dimension_numbers<[1], [0], [0], [1], [0, 0, 1, 1], [], []>} : vector<8x512xf32>, vector<512x128xf32>, vector<8x128xf32> -> vector<8x128xf32>
    %c0_85 = arith.constant 0 : index
    %c0_86 = arith.constant 0 : index
    %c0_87 = arith.constant 0 : index
    %291 = vector.load %arg20[%c0_85, %c0_86, %c0_87] : memref<2x1x128xf32, #tpu.memory_space<vmem>>, vector<1x1x128xf32>
    %292 = vector.shape_cast %291 : vector<1x1x128xf32> to vector<1x128xf32>
    %293 = vector.broadcast %292 : vector<1x128xf32> to vector<8x128xf32>
    %294 = arith.addf %290, %293 : vector<8x128xf32>
    %295 = arith.addf %246, %294 : vector<8x128xf32>
    %c1 = arith.constant 1 : index
    %c0_88 = arith.constant 0 : index
    %c0_89 = arith.constant 0 : index
    %296 = vector.load %arg6[%c1, %c0_88, %c0_89] : memref<2x1x128xf32, #tpu.memory_space<vmem>>, vector<1x1x128xf32>
    %297 = vector.shape_cast %296 : vector<1x1x128xf32> to vector<1x128xf32>
    %c1_90 = arith.constant 1 : index
    %c0_91 = arith.constant 0 : index
    %c0_92 = arith.constant 0 : index
    %298 = vector.load %arg7[%c1_90, %c0_91, %c0_92] : memref<2x1x128xf32, #tpu.memory_space<vmem>>, vector<1x1x128xf32>
    %299 = vector.shape_cast %298 : vector<1x1x128xf32> to vector<1x128xf32>
    %cst_93 = arith.constant dense<0.000000e+00> : vector<8xf32>
    %300 = vector.multi_reduction <add>, %295, %cst_93 [1] : vector<8x128xf32> to vector<8xf32>
    %301 = vector.shape_cast %300 : vector<8xf32> to vector<8x1xf32>
    %cst_94 = arith.constant 1.280000e+02 : f32
    %302 = vector.broadcast %cst_94 : f32 to vector<8x1xf32>
    %303 = arith.divf %301, %302 : vector<8x1xf32>
    %304 = vector.broadcast %303 : vector<8x1xf32> to vector<8x128xf32>
    %305 = arith.subf %295, %304 : vector<8x128xf32>
    %306 = arith.mulf %305, %305 : vector<8x128xf32>
    %cst_95 = arith.constant dense<0.000000e+00> : vector<8xf32>
    %307 = vector.multi_reduction <add>, %306, %cst_95 [1] : vector<8x128xf32> to vector<8xf32>
    %308 = vector.shape_cast %307 : vector<8xf32> to vector<8x1xf32>
    %cst_96 = arith.constant 1.280000e+02 : f32
    %309 = vector.broadcast %cst_96 : f32 to vector<8x1xf32>
    %310 = arith.divf %308, %309 : vector<8x1xf32>
    %311 = vector.broadcast %303 : vector<8x1xf32> to vector<8x128xf32>
    %312 = arith.subf %295, %311 : vector<8x128xf32>
    %cst_97 = arith.constant 9.99999974E-6 : f32
    %313 = vector.broadcast %cst_97 : f32 to vector<8x1xf32>
    %314 = arith.addf %310, %313 : vector<8x1xf32>
    %315 = math.rsqrt %314 : vector<8x1xf32>
    %316 = vector.broadcast %315 : vector<8x1xf32> to vector<8x128xf32>
    %317 = arith.mulf %312, %316 : vector<8x128xf32>
    %318 = vector.broadcast %297 : vector<1x128xf32> to vector<8x128xf32>
    %319 = arith.mulf %317, %318 : vector<8x128xf32>
    %320 = vector.broadcast %299 : vector<1x128xf32> to vector<8x128xf32>
    %321 = arith.addf %319, %320 : vector<8x128xf32>
    %c1_98 = arith.constant 1 : index
    %c0_99 = arith.constant 0 : index
    %c0_100 = arith.constant 0 : index
    %322 = vector.load %arg8[%c1_98, %c0_99, %c0_100] : memref<2x4x128xf32, #tpu.memory_space<vmem>>, vector<1x4x128xf32>
    %323 = vector.shape_cast %322 : vector<1x4x128xf32> to vector<4x128xf32>
    %cst_101 = arith.constant 0.000000e+00 : f32
    %324 = vector.broadcast %cst_101 : f32 to vector<3x128xf32>
    %325 = tpu.concatenate %324, %321 in 0 : vector<3x128xf32>, vector<8x128xf32> -> vector<11x128xf32>
    %c1_102 = arith.constant 1 : index
    %c0_103 = arith.constant 0 : index
    %c0_104 = arith.constant 0 : index
    %326 = vector.load %arg9[%c1_102, %c0_103, %c0_104] : memref<2x1x128xf32, #tpu.memory_space<vmem>>, vector<1x1x128xf32>
    %327 = vector.shape_cast %326 : vector<1x1x128xf32> to vector<1x128xf32>
    %328 = vector.extract_strided_slice %325 {offsets = [0, 0], sizes = [8, 128], strides = [1, 1]} : vector<11x128xf32> to vector<8x128xf32>
    %329 = vector.extract_strided_slice %323 {offsets = [0, 0], sizes = [1, 128], strides = [1, 1]} : vector<4x128xf32> to vector<1x128xf32>
    %330 = vector.broadcast %329 : vector<1x128xf32> to vector<8x128xf32>
    %331 = arith.mulf %328, %330 : vector<8x128xf32>
    %332 = vector.broadcast %327 : vector<1x128xf32> to vector<8x128xf32>
    %333 = arith.addf %332, %331 : vector<8x128xf32>
    %334 = vector.extract_strided_slice %325 {offsets = [1, 0], sizes = [8, 128], strides = [1, 1]} : vector<11x128xf32> to vector<8x128xf32>
    %335 = vector.extract_strided_slice %323 {offsets = [1, 0], sizes = [1, 128], strides = [1, 1]} : vector<4x128xf32> to vector<1x128xf32>
    %336 = vector.broadcast %335 : vector<1x128xf32> to vector<8x128xf32>
    %337 = arith.mulf %334, %336 : vector<8x128xf32>
    %338 = arith.addf %333, %337 : vector<8x128xf32>
    %339 = vector.extract_strided_slice %325 {offsets = [2, 0], sizes = [8, 128], strides = [1, 1]} : vector<11x128xf32> to vector<8x128xf32>
    %340 = vector.extract_strided_slice %323 {offsets = [2, 0], sizes = [1, 128], strides = [1, 1]} : vector<4x128xf32> to vector<1x128xf32>
    %341 = vector.broadcast %340 : vector<1x128xf32> to vector<8x128xf32>
    %342 = arith.mulf %339, %341 : vector<8x128xf32>
    %343 = arith.addf %338, %342 : vector<8x128xf32>
    %344 = vector.extract_strided_slice %325 {offsets = [3, 0], sizes = [8, 128], strides = [1, 1]} : vector<11x128xf32> to vector<8x128xf32>
    %345 = vector.extract_strided_slice %323 {offsets = [3, 0], sizes = [1, 128], strides = [1, 1]} : vector<4x128xf32> to vector<1x128xf32>
    %346 = vector.broadcast %345 : vector<1x128xf32> to vector<8x128xf32>
    %347 = arith.mulf %344, %346 : vector<8x128xf32>
    %348 = arith.addf %343, %347 : vector<8x128xf32>
    %cst_105 = arith.constant 0.000000e+00 : f32
    %349 = vector.broadcast %cst_105 : f32 to vector<8x128xf32>
    %350 = arith.subf %349, %348 : vector<8x128xf32>
    %351 = math.exp %350 : vector<8x128xf32>
    %cst_106 = arith.constant 1.000000e+00 : f32
    %352 = vector.broadcast %cst_106 : f32 to vector<8x128xf32>
    %353 = arith.addf %352, %351 : vector<8x128xf32>
    %cst_107 = arith.constant 1.000000e+00 : f32
    %354 = vector.broadcast %cst_107 : f32 to vector<8x128xf32>
    %355 = arith.divf %354, %353 : vector<8x128xf32>
    %356 = arith.mulf %348, %355 : vector<8x128xf32>
    %c1_108 = arith.constant 1 : index
    %c0_109 = arith.constant 0 : index
    %c0_110 = arith.constant 0 : index
    %357 = vector.load %arg10[%c1_108, %c0_109, %c0_110] : memref<2x128x36xf32, #tpu.memory_space<vmem>>, vector<1x128x36xf32>
    %358 = vector.shape_cast %357 : vector<1x128x36xf32> to vector<128x36xf32>
    %cst_111 = arith.constant dense<0.000000e+00> : vector<8x36xf32>
    %359 = tpu.matmul %356, %358, %cst_111 {dimension_numbers = #tpu.dot_dimension_numbers<[1], [0], [0], [1], [0, 0, 1, 1], [], []>} : vector<8x128xf32>, vector<128x36xf32>, vector<8x36xf32> -> vector<8x36xf32>
    %360 = vector.extract_strided_slice %359 {offsets = [0, 0], sizes = [8, 4], strides = [1, 1]} : vector<8x36xf32> to vector<8x4xf32>
    %361 = vector.extract_strided_slice %359 {offsets = [0, 4], sizes = [8, 16], strides = [1, 1]} : vector<8x36xf32> to vector<8x16xf32>
    %362 = tpu.transpose %361, [1, 0] : vector<8x16xf32> -> vector<16x8xf32>
    %363 = vector.extract_strided_slice %359 {offsets = [0, 20], sizes = [8, 16], strides = [1, 1]} : vector<8x36xf32> to vector<8x16xf32>
    %364 = tpu.transpose %363, [1, 0] : vector<8x16xf32> -> vector<16x8xf32>
    %c1_112 = arith.constant 1 : index
    %c0_113 = arith.constant 0 : index
    %c0_114 = arith.constant 0 : index
    %365 = vector.load %arg11[%c1_112, %c0_113, %c0_114] : memref<2x4x128xf32, #tpu.memory_space<vmem>>, vector<1x4x128xf32>
    %366 = vector.shape_cast %365 : vector<1x4x128xf32> to vector<4x128xf32>
    %cst_115 = arith.constant dense<0.000000e+00> : vector<8x128xf32>
    %367 = tpu.matmul %360, %366, %cst_115 {dimension_numbers = #tpu.dot_dimension_numbers<[1], [0], [0], [1], [0, 0, 1, 1], [], []>} : vector<8x4xf32>, vector<4x128xf32>, vector<8x128xf32> -> vector<8x128xf32>
    %c1_116 = arith.constant 1 : index
    %c0_117 = arith.constant 0 : index
    %c0_118 = arith.constant 0 : index
    %368 = vector.load %arg12[%c1_116, %c0_117, %c0_118] : memref<2x1x128xf32, #tpu.memory_space<vmem>>, vector<1x1x128xf32>
    %369 = vector.shape_cast %368 : vector<1x1x128xf32> to vector<1x128xf32>
    %370 = vector.broadcast %369 : vector<1x128xf32> to vector<8x128xf32>
    %371 = arith.addf %367, %370 : vector<8x128xf32>
    %cst_119 = arith.constant 0.000000e+00 : f32
    %372 = vector.broadcast %cst_119 : f32 to vector<8x128xf32>
    %373 = arith.maximumf %371, %372 : vector<8x128xf32>
    %374 = math.absf %371 : vector<8x128xf32>
    %cst_120 = arith.constant 0.000000e+00 : f32
    %375 = vector.broadcast %cst_120 : f32 to vector<8x128xf32>
    %376 = arith.subf %375, %374 : vector<8x128xf32>
    %377 = math.exp %376 : vector<8x128xf32>
    %378 = math.log1p %377 : vector<8x128xf32>
    %379 = arith.addf %373, %378 : vector<8x128xf32>
    %c1_121 = arith.constant 1 : index
    %c0_122 = arith.constant 0 : index
    %c0_123 = arith.constant 0 : index
    %380 = vector.load %arg13[%c1_121, %c0_122, %c0_123] : memref<2x16x128xf32, #tpu.memory_space<vmem>>, vector<1x16x128xf32>
    %381 = vector.shape_cast %380 : vector<1x16x128xf32> to vector<16x128xf32>
    %382 = arith.mulf %379, %356 : vector<8x128xf32>
    %cst_124 = arith.constant 0.000000e+00 : f32
    %383 = vector.broadcast %cst_124 : f32 to vector<16x128xf32>
    %384 = vector.extract_strided_slice %379 {offsets = [0, 0], sizes = [1, 128], strides = [1, 1]} : vector<8x128xf32> to vector<1x128xf32>
    %385 = vector.broadcast %384 : vector<1x128xf32> to vector<16x128xf32>
    %386 = arith.mulf %385, %381 : vector<16x128xf32>
    %387 = math.exp %386 : vector<16x128xf32>
    %388 = arith.mulf %387, %383 : vector<16x128xf32>
    %389 = vector.extract_strided_slice %362 {offsets = [0, 0], sizes = [16, 1], strides = [1, 1]} : vector<16x8xf32> to vector<16x1xf32>
    %390 = vector.extract_strided_slice %382 {offsets = [0, 0], sizes = [1, 128], strides = [1, 1]} : vector<8x128xf32> to vector<1x128xf32>
    %391 = vector.broadcast %389 : vector<16x1xf32> to vector<16x128xf32>
    %392 = vector.broadcast %390 : vector<1x128xf32> to vector<16x128xf32>
    %393 = arith.mulf %391, %392 : vector<16x128xf32>
    %394 = arith.addf %388, %393 : vector<16x128xf32>
    %395 = vector.extract_strided_slice %364 {offsets = [0, 0], sizes = [16, 1], strides = [1, 1]} : vector<16x8xf32> to vector<16x1xf32>
    %396 = vector.broadcast %395 : vector<16x1xf32> to vector<16x128xf32>
    %397 = arith.mulf %394, %396 : vector<16x128xf32>
    %cst_125 = arith.constant dense<0.000000e+00> : vector<128xf32>
    %398 = vector.multi_reduction <add>, %397, %cst_125 [0] : vector<16x128xf32> to vector<128xf32>
    %399 = vector.shape_cast %398 : vector<128xf32> to vector<1x128xf32>
    %400 = vector.extract_strided_slice %379 {offsets = [1, 0], sizes = [1, 128], strides = [1, 1]} : vector<8x128xf32> to vector<1x128xf32>
    %401 = vector.broadcast %400 : vector<1x128xf32> to vector<16x128xf32>
    %402 = arith.mulf %401, %381 : vector<16x128xf32>
    %403 = math.exp %402 : vector<16x128xf32>
    %404 = arith.mulf %403, %394 : vector<16x128xf32>
    %405 = vector.extract_strided_slice %362 {offsets = [0, 1], sizes = [16, 1], strides = [1, 1]} : vector<16x8xf32> to vector<16x1xf32>
    %406 = vector.extract_strided_slice %382 {offsets = [1, 0], sizes = [1, 128], strides = [1, 1]} : vector<8x128xf32> to vector<1x128xf32>
    %407 = vector.broadcast %405 : vector<16x1xf32> to vector<16x128xf32>
    %408 = vector.broadcast %406 : vector<1x128xf32> to vector<16x128xf32>
    %409 = arith.mulf %407, %408 : vector<16x128xf32>
    %410 = arith.addf %404, %409 : vector<16x128xf32>
    %411 = vector.extract_strided_slice %364 {offsets = [0, 1], sizes = [16, 1], strides = [1, 1]} : vector<16x8xf32> to vector<16x1xf32>
    %412 = vector.broadcast %411 : vector<16x1xf32> to vector<16x128xf32>
    %413 = arith.mulf %410, %412 : vector<16x128xf32>
    %cst_126 = arith.constant dense<0.000000e+00> : vector<128xf32>
    %414 = vector.multi_reduction <add>, %413, %cst_126 [0] : vector<16x128xf32> to vector<128xf32>
    %415 = vector.shape_cast %414 : vector<128xf32> to vector<1x128xf32>
    %416 = vector.extract_strided_slice %379 {offsets = [2, 0], sizes = [1, 128], strides = [1, 1]} : vector<8x128xf32> to vector<1x128xf32>
    %417 = vector.broadcast %416 : vector<1x128xf32> to vector<16x128xf32>
    %418 = arith.mulf %417, %381 : vector<16x128xf32>
    %419 = math.exp %418 : vector<16x128xf32>
    %420 = arith.mulf %419, %410 : vector<16x128xf32>
    %421 = vector.extract_strided_slice %362 {offsets = [0, 2], sizes = [16, 1], strides = [1, 1]} : vector<16x8xf32> to vector<16x1xf32>
    %422 = vector.extract_strided_slice %382 {offsets = [2, 0], sizes = [1, 128], strides = [1, 1]} : vector<8x128xf32> to vector<1x128xf32>
    %423 = vector.broadcast %421 : vector<16x1xf32> to vector<16x128xf32>
    %424 = vector.broadcast %422 : vector<1x128xf32> to vector<16x128xf32>
    %425 = arith.mulf %423, %424 : vector<16x128xf32>
    %426 = arith.addf %420, %425 : vector<16x128xf32>
    %427 = vector.extract_strided_slice %364 {offsets = [0, 2], sizes = [16, 1], strides = [1, 1]} : vector<16x8xf32> to vector<16x1xf32>
    %428 = vector.broadcast %427 : vector<16x1xf32> to vector<16x128xf32>
    %429 = arith.mulf %426, %428 : vector<16x128xf32>
    %cst_127 = arith.constant dense<0.000000e+00> : vector<128xf32>
    %430 = vector.multi_reduction <add>, %429, %cst_127 [0] : vector<16x128xf32> to vector<128xf32>
    %431 = vector.shape_cast %430 : vector<128xf32> to vector<1x128xf32>
    %432 = vector.extract_strided_slice %379 {offsets = [3, 0], sizes = [1, 128], strides = [1, 1]} : vector<8x128xf32> to vector<1x128xf32>
    %433 = vector.broadcast %432 : vector<1x128xf32> to vector<16x128xf32>
    %434 = arith.mulf %433, %381 : vector<16x128xf32>
    %435 = math.exp %434 : vector<16x128xf32>
    %436 = arith.mulf %435, %426 : vector<16x128xf32>
    %437 = vector.extract_strided_slice %362 {offsets = [0, 3], sizes = [16, 1], strides = [1, 1]} : vector<16x8xf32> to vector<16x1xf32>
    %438 = vector.extract_strided_slice %382 {offsets = [3, 0], sizes = [1, 128], strides = [1, 1]} : vector<8x128xf32> to vector<1x128xf32>
    %439 = vector.broadcast %437 : vector<16x1xf32> to vector<16x128xf32>
    %440 = vector.broadcast %438 : vector<1x128xf32> to vector<16x128xf32>
    %441 = arith.mulf %439, %440 : vector<16x128xf32>
    %442 = arith.addf %436, %441 : vector<16x128xf32>
    %443 = vector.extract_strided_slice %364 {offsets = [0, 3], sizes = [16, 1], strides = [1, 1]} : vector<16x8xf32> to vector<16x1xf32>
    %444 = vector.broadcast %443 : vector<16x1xf32> to vector<16x128xf32>
    %445 = arith.mulf %442, %444 : vector<16x128xf32>
    %cst_128 = arith.constant dense<0.000000e+00> : vector<128xf32>
    %446 = vector.multi_reduction <add>, %445, %cst_128 [0] : vector<16x128xf32> to vector<128xf32>
    %447 = vector.shape_cast %446 : vector<128xf32> to vector<1x128xf32>
    %448 = vector.extract_strided_slice %379 {offsets = [4, 0], sizes = [1, 128], strides = [1, 1]} : vector<8x128xf32> to vector<1x128xf32>
    %449 = vector.broadcast %448 : vector<1x128xf32> to vector<16x128xf32>
    %450 = arith.mulf %449, %381 : vector<16x128xf32>
    %451 = math.exp %450 : vector<16x128xf32>
    %452 = arith.mulf %451, %442 : vector<16x128xf32>
    %453 = vector.extract_strided_slice %362 {offsets = [0, 4], sizes = [16, 1], strides = [1, 1]} : vector<16x8xf32> to vector<16x1xf32>
    %454 = vector.extract_strided_slice %382 {offsets = [4, 0], sizes = [1, 128], strides = [1, 1]} : vector<8x128xf32> to vector<1x128xf32>
    %455 = vector.broadcast %453 : vector<16x1xf32> to vector<16x128xf32>
    %456 = vector.broadcast %454 : vector<1x128xf32> to vector<16x128xf32>
    %457 = arith.mulf %455, %456 : vector<16x128xf32>
    %458 = arith.addf %452, %457 : vector<16x128xf32>
    %459 = vector.extract_strided_slice %364 {offsets = [0, 4], sizes = [16, 1], strides = [1, 1]} : vector<16x8xf32> to vector<16x1xf32>
    %460 = vector.broadcast %459 : vector<16x1xf32> to vector<16x128xf32>
    %461 = arith.mulf %458, %460 : vector<16x128xf32>
    %cst_129 = arith.constant dense<0.000000e+00> : vector<128xf32>
    %462 = vector.multi_reduction <add>, %461, %cst_129 [0] : vector<16x128xf32> to vector<128xf32>
    %463 = vector.shape_cast %462 : vector<128xf32> to vector<1x128xf32>
    %464 = vector.extract_strided_slice %379 {offsets = [5, 0], sizes = [1, 128], strides = [1, 1]} : vector<8x128xf32> to vector<1x128xf32>
    %465 = vector.broadcast %464 : vector<1x128xf32> to vector<16x128xf32>
    %466 = arith.mulf %465, %381 : vector<16x128xf32>
    %467 = math.exp %466 : vector<16x128xf32>
    %468 = arith.mulf %467, %458 : vector<16x128xf32>
    %469 = vector.extract_strided_slice %362 {offsets = [0, 5], sizes = [16, 1], strides = [1, 1]} : vector<16x8xf32> to vector<16x1xf32>
    %470 = vector.extract_strided_slice %382 {offsets = [5, 0], sizes = [1, 128], strides = [1, 1]} : vector<8x128xf32> to vector<1x128xf32>
    %471 = vector.broadcast %469 : vector<16x1xf32> to vector<16x128xf32>
    %472 = vector.broadcast %470 : vector<1x128xf32> to vector<16x128xf32>
    %473 = arith.mulf %471, %472 : vector<16x128xf32>
    %474 = arith.addf %468, %473 : vector<16x128xf32>
    %475 = vector.extract_strided_slice %364 {offsets = [0, 5], sizes = [16, 1], strides = [1, 1]} : vector<16x8xf32> to vector<16x1xf32>
    %476 = vector.broadcast %475 : vector<16x1xf32> to vector<16x128xf32>
    %477 = arith.mulf %474, %476 : vector<16x128xf32>
    %cst_130 = arith.constant dense<0.000000e+00> : vector<128xf32>
    %478 = vector.multi_reduction <add>, %477, %cst_130 [0] : vector<16x128xf32> to vector<128xf32>
    %479 = vector.shape_cast %478 : vector<128xf32> to vector<1x128xf32>
    %480 = vector.extract_strided_slice %379 {offsets = [6, 0], sizes = [1, 128], strides = [1, 1]} : vector<8x128xf32> to vector<1x128xf32>
    %481 = vector.broadcast %480 : vector<1x128xf32> to vector<16x128xf32>
    %482 = arith.mulf %481, %381 : vector<16x128xf32>
    %483 = math.exp %482 : vector<16x128xf32>
    %484 = arith.mulf %483, %474 : vector<16x128xf32>
    %485 = vector.extract_strided_slice %362 {offsets = [0, 6], sizes = [16, 1], strides = [1, 1]} : vector<16x8xf32> to vector<16x1xf32>
    %486 = vector.extract_strided_slice %382 {offsets = [6, 0], sizes = [1, 128], strides = [1, 1]} : vector<8x128xf32> to vector<1x128xf32>
    %487 = vector.broadcast %485 : vector<16x1xf32> to vector<16x128xf32>
    %488 = vector.broadcast %486 : vector<1x128xf32> to vector<16x128xf32>
    %489 = arith.mulf %487, %488 : vector<16x128xf32>
    %490 = arith.addf %484, %489 : vector<16x128xf32>
    %491 = vector.extract_strided_slice %364 {offsets = [0, 6], sizes = [16, 1], strides = [1, 1]} : vector<16x8xf32> to vector<16x1xf32>
    %492 = vector.broadcast %491 : vector<16x1xf32> to vector<16x128xf32>
    %493 = arith.mulf %490, %492 : vector<16x128xf32>
    %cst_131 = arith.constant dense<0.000000e+00> : vector<128xf32>
    %494 = vector.multi_reduction <add>, %493, %cst_131 [0] : vector<16x128xf32> to vector<128xf32>
    %495 = vector.shape_cast %494 : vector<128xf32> to vector<1x128xf32>
    %496 = vector.extract_strided_slice %379 {offsets = [7, 0], sizes = [1, 128], strides = [1, 1]} : vector<8x128xf32> to vector<1x128xf32>
    %497 = vector.broadcast %496 : vector<1x128xf32> to vector<16x128xf32>
    %498 = arith.mulf %497, %381 : vector<16x128xf32>
    %499 = math.exp %498 : vector<16x128xf32>
    %500 = arith.mulf %499, %490 : vector<16x128xf32>
    %501 = vector.extract_strided_slice %362 {offsets = [0, 7], sizes = [16, 1], strides = [1, 1]} : vector<16x8xf32> to vector<16x1xf32>
    %502 = vector.extract_strided_slice %382 {offsets = [7, 0], sizes = [1, 128], strides = [1, 1]} : vector<8x128xf32> to vector<1x128xf32>
    %503 = vector.broadcast %501 : vector<16x1xf32> to vector<16x128xf32>
    %504 = vector.broadcast %502 : vector<1x128xf32> to vector<16x128xf32>
    %505 = arith.mulf %503, %504 : vector<16x128xf32>
    %506 = arith.addf %500, %505 : vector<16x128xf32>
    %507 = vector.extract_strided_slice %364 {offsets = [0, 7], sizes = [16, 1], strides = [1, 1]} : vector<16x8xf32> to vector<16x1xf32>
    %508 = vector.broadcast %507 : vector<16x1xf32> to vector<16x128xf32>
    %509 = arith.mulf %506, %508 : vector<16x128xf32>
    %cst_132 = arith.constant dense<0.000000e+00> : vector<128xf32>
    %510 = vector.multi_reduction <add>, %509, %cst_132 [0] : vector<16x128xf32> to vector<128xf32>
    %511 = vector.shape_cast %510 : vector<128xf32> to vector<1x128xf32>
    %512 = tpu.concatenate %399, %415, %431, %447, %463, %479, %495, %511 in 0 : vector<1x128xf32>, vector<1x128xf32>, vector<1x128xf32>, vector<1x128xf32>, vector<1x128xf32>, vector<1x128xf32>, vector<1x128xf32>, vector<1x128xf32> -> vector<8x128xf32>
    %c1_133 = arith.constant 1 : index
    %c0_134 = arith.constant 0 : index
    %c0_135 = arith.constant 0 : index
    %513 = vector.load %arg14[%c1_133, %c0_134, %c0_135] : memref<2x1x128xf32, #tpu.memory_space<vmem>>, vector<1x1x128xf32>
    %514 = vector.shape_cast %513 : vector<1x1x128xf32> to vector<1x128xf32>
    %515 = vector.broadcast %514 : vector<1x128xf32> to vector<8x128xf32>
    %516 = arith.mulf %515, %356 : vector<8x128xf32>
    %517 = arith.addf %512, %516 : vector<8x128xf32>
    %518 = arith.addf %295, %517 : vector<8x128xf32>
    %c1_136 = arith.constant 1 : index
    %c0_137 = arith.constant 0 : index
    %c0_138 = arith.constant 0 : index
    %519 = vector.load %arg15[%c1_136, %c0_137, %c0_138] : memref<2x1x128xf32, #tpu.memory_space<vmem>>, vector<1x1x128xf32>
    %520 = vector.shape_cast %519 : vector<1x1x128xf32> to vector<1x128xf32>
    %c1_139 = arith.constant 1 : index
    %c0_140 = arith.constant 0 : index
    %c0_141 = arith.constant 0 : index
    %521 = vector.load %arg16[%c1_139, %c0_140, %c0_141] : memref<2x1x128xf32, #tpu.memory_space<vmem>>, vector<1x1x128xf32>
    %522 = vector.shape_cast %521 : vector<1x1x128xf32> to vector<1x128xf32>
    %cst_142 = arith.constant dense<0.000000e+00> : vector<8xf32>
    %523 = vector.multi_reduction <add>, %518, %cst_142 [1] : vector<8x128xf32> to vector<8xf32>
    %524 = vector.shape_cast %523 : vector<8xf32> to vector<8x1xf32>
    %cst_143 = arith.constant 1.280000e+02 : f32
    %525 = vector.broadcast %cst_143 : f32 to vector<8x1xf32>
    %526 = arith.divf %524, %525 : vector<8x1xf32>
    %527 = vector.broadcast %526 : vector<8x1xf32> to vector<8x128xf32>
    %528 = arith.subf %518, %527 : vector<8x128xf32>
    %529 = arith.mulf %528, %528 : vector<8x128xf32>
    %cst_144 = arith.constant dense<0.000000e+00> : vector<8xf32>
    %530 = vector.multi_reduction <add>, %529, %cst_144 [1] : vector<8x128xf32> to vector<8xf32>
    %531 = vector.shape_cast %530 : vector<8xf32> to vector<8x1xf32>
    %cst_145 = arith.constant 1.280000e+02 : f32
    %532 = vector.broadcast %cst_145 : f32 to vector<8x1xf32>
    %533 = arith.divf %531, %532 : vector<8x1xf32>
    %534 = vector.broadcast %526 : vector<8x1xf32> to vector<8x128xf32>
    %535 = arith.subf %518, %534 : vector<8x128xf32>
    %cst_146 = arith.constant 9.99999974E-6 : f32
    %536 = vector.broadcast %cst_146 : f32 to vector<8x1xf32>
    %537 = arith.addf %533, %536 : vector<8x1xf32>
    %538 = math.rsqrt %537 : vector<8x1xf32>
    %539 = vector.broadcast %538 : vector<8x1xf32> to vector<8x128xf32>
    %540 = arith.mulf %535, %539 : vector<8x128xf32>
    %541 = vector.broadcast %520 : vector<1x128xf32> to vector<8x128xf32>
    %542 = arith.mulf %540, %541 : vector<8x128xf32>
    %543 = vector.broadcast %522 : vector<1x128xf32> to vector<8x128xf32>
    %544 = arith.addf %542, %543 : vector<8x128xf32>
    %c1_147 = arith.constant 1 : index
    %c0_148 = arith.constant 0 : index
    %c0_149 = arith.constant 0 : index
    %545 = vector.load %arg17[%c1_147, %c0_148, %c0_149] : memref<2x128x512xf32, #tpu.memory_space<vmem>>, vector<1x128x512xf32>
    %546 = vector.shape_cast %545 : vector<1x128x512xf32> to vector<128x512xf32>
    %cst_150 = arith.constant dense<0.000000e+00> : vector<8x512xf32>
    %547 = tpu.matmul %544, %546, %cst_150 {dimension_numbers = #tpu.dot_dimension_numbers<[1], [0], [0], [1], [0, 0, 1, 1], [], []>} : vector<8x128xf32>, vector<128x512xf32>, vector<8x512xf32> -> vector<8x512xf32>
    %c1_151 = arith.constant 1 : index
    %c0_152 = arith.constant 0 : index
    %c0_153 = arith.constant 0 : index
    %548 = vector.load %arg18[%c1_151, %c0_152, %c0_153] : memref<2x1x512xf32, #tpu.memory_space<vmem>>, vector<1x1x512xf32>
    %549 = vector.shape_cast %548 : vector<1x1x512xf32> to vector<1x512xf32>
    %550 = vector.broadcast %549 : vector<1x512xf32> to vector<8x512xf32>
    %551 = arith.addf %547, %550 : vector<8x512xf32>
    %cst_154 = arith.constant 5.000000e-01 : f32
    %552 = vector.broadcast %cst_154 : f32 to vector<8x512xf32>
    %553 = arith.mulf %552, %551 : vector<8x512xf32>
    %cst_155 = arith.constant 0.707106769 : f32
    %554 = vector.broadcast %cst_155 : f32 to vector<8x512xf32>
    %555 = arith.mulf %551, %554 : vector<8x512xf32>
    %556 = math.erf %555 : vector<8x512xf32>
    %cst_156 = arith.constant 1.000000e+00 : f32
    %557 = vector.broadcast %cst_156 : f32 to vector<8x512xf32>
    %558 = arith.addf %557, %556 : vector<8x512xf32>
    %559 = arith.mulf %553, %558 : vector<8x512xf32>
    %c1_157 = arith.constant 1 : index
    %c0_158 = arith.constant 0 : index
    %c0_159 = arith.constant 0 : index
    %560 = vector.load %arg19[%c1_157, %c0_158, %c0_159] : memref<2x512x128xf32, #tpu.memory_space<vmem>>, vector<1x512x128xf32>
    %561 = vector.shape_cast %560 : vector<1x512x128xf32> to vector<512x128xf32>
    %cst_160 = arith.constant dense<0.000000e+00> : vector<8x128xf32>
    %562 = tpu.matmul %559, %561, %cst_160 {dimension_numbers = #tpu.dot_dimension_numbers<[1], [0], [0], [1], [0, 0, 1, 1], [], []>} : vector<8x512xf32>, vector<512x128xf32>, vector<8x128xf32> -> vector<8x128xf32>
    %c1_161 = arith.constant 1 : index
    %c0_162 = arith.constant 0 : index
    %c0_163 = arith.constant 0 : index
    %563 = vector.load %arg20[%c1_161, %c0_162, %c0_163] : memref<2x1x128xf32, #tpu.memory_space<vmem>>, vector<1x1x128xf32>
    %564 = vector.shape_cast %563 : vector<1x1x128xf32> to vector<1x128xf32>
    %565 = vector.broadcast %564 : vector<1x128xf32> to vector<8x128xf32>
    %566 = arith.addf %562, %565 : vector<8x128xf32>
    %567 = arith.addf %518, %566 : vector<8x128xf32>
    %568 = vector.extract_strided_slice %567 {offsets = [1, 0], sizes = [1, 128], strides = [1, 1]} : vector<8x128xf32> to vector<1x128xf32>
    %569 = vector.extract_strided_slice %567 {offsets = [4, 0], sizes = [1, 128], strides = [1, 1]} : vector<8x128xf32> to vector<1x128xf32>
    %570 = vector.extract_strided_slice %567 {offsets = [7, 0], sizes = [1, 128], strides = [1, 1]} : vector<8x128xf32> to vector<1x128xf32>
    %571 = tpu.concatenate %568, %569, %570 in 0 : vector<1x128xf32>, vector<1x128xf32>, vector<1x128xf32> -> vector<3x128xf32>
    %c0_164 = arith.constant 0 : index
    %c0_165 = arith.constant 0 : index
    %572 = vector.load %arg21[%c0_164, %c0_165] : memref<1x128xf32, #tpu.memory_space<vmem>>, vector<1x128xf32>
    %c0_166 = arith.constant 0 : index
    %c0_167 = arith.constant 0 : index
    %573 = vector.load %arg22[%c0_166, %c0_167] : memref<1x128xf32, #tpu.memory_space<vmem>>, vector<1x128xf32>
    %cst_168 = arith.constant dense<0.000000e+00> : vector<3xf32>
    %574 = vector.multi_reduction <add>, %571, %cst_168 [1] : vector<3x128xf32> to vector<3xf32>
    %575 = vector.shape_cast %574 : vector<3xf32> to vector<3x1xf32>
    %cst_169 = arith.constant 1.280000e+02 : f32
    %576 = vector.broadcast %cst_169 : f32 to vector<3x1xf32>
    %577 = arith.divf %575, %576 : vector<3x1xf32>
    %578 = vector.broadcast %577 : vector<3x1xf32> to vector<3x128xf32>
    %579 = arith.subf %571, %578 : vector<3x128xf32>
    %580 = arith.mulf %579, %579 : vector<3x128xf32>
    %cst_170 = arith.constant dense<0.000000e+00> : vector<3xf32>
    %581 = vector.multi_reduction <add>, %580, %cst_170 [1] : vector<3x128xf32> to vector<3xf32>
    %582 = vector.shape_cast %581 : vector<3xf32> to vector<3x1xf32>
    %cst_171 = arith.constant 1.280000e+02 : f32
    %583 = vector.broadcast %cst_171 : f32 to vector<3x1xf32>
    %584 = arith.divf %582, %583 : vector<3x1xf32>
    %585 = vector.broadcast %577 : vector<3x1xf32> to vector<3x128xf32>
    %586 = arith.subf %571, %585 : vector<3x128xf32>
    %cst_172 = arith.constant 9.99999974E-6 : f32
    %587 = vector.broadcast %cst_172 : f32 to vector<3x1xf32>
    %588 = arith.addf %584, %587 : vector<3x1xf32>
    %589 = math.rsqrt %588 : vector<3x1xf32>
    %590 = vector.broadcast %589 : vector<3x1xf32> to vector<3x128xf32>
    %591 = arith.mulf %586, %590 : vector<3x128xf32>
    %592 = vector.broadcast %572 : vector<1x128xf32> to vector<3x128xf32>
    %593 = arith.mulf %591, %592 : vector<3x128xf32>
    %594 = vector.broadcast %573 : vector<1x128xf32> to vector<3x128xf32>
    %595 = arith.addf %593, %594 : vector<3x128xf32>
    %c0_173 = arith.constant 0 : index
    %c0_174 = arith.constant 0 : index
    %596 = vector.load %arg23[%c0_173, %c0_174] : memref<128x128xf32, #tpu.memory_space<vmem>>, vector<128x128xf32>
    %cst_175 = arith.constant dense<0.000000e+00> : vector<3x128xf32>
    %597 = tpu.matmul %595, %596, %cst_175 {dimension_numbers = #tpu.dot_dimension_numbers<[1], [0], [0], [1], [0, 0, 1, 1], [], []>} : vector<3x128xf32>, vector<128x128xf32>, vector<3x128xf32> -> vector<3x128xf32>
    %c0_176 = arith.constant 0 : index
    %c0_177 = arith.constant 0 : index
    %c0_178 = arith.constant 0 : index
    %598 = vector.load %arg24[%c0_176, %c0_177, %c0_178] : memref<1x3x128xf32, #tpu.memory_space<vmem>>, vector<1x3x128xf32>
    %599 = vector.shape_cast %598 : vector<1x3x128xf32> to vector<3x128xf32>
    %600 = vector.shape_cast %597 : vector<3x128xf32> to vector<1x3x128xf32>
    tpu.vector_store %arg24[%c0_176, %c0_177, %c0_178], %600 {strides = array<i32>} : memref<1x3x128xf32, #tpu.memory_space<vmem>>, vector<1x3x128xf32>,
    return
  }
  func.func @transform_0(%arg0: i32) -> (i32, i32, i32) {
    %c0_i32 = arith.constant 0 : i32
    %c0_i32_0 = arith.constant 0 : i32
    %c0_i32_1 = arith.constant 0 : i32
    return %arg0, %c0_i32, %c0_i32_0 : i32, i32, i32
  }
  func.func @transform_1(%arg0: i32) -> (i32, i32, i32) {
    %c0_i32 = arith.constant 0 : i32
    %c0_i32_0 = arith.constant 0 : i32
    %c0_i32_1 = arith.constant 0 : i32
    return %arg0, %c0_i32, %c0_i32_0 : i32, i32, i32
  }
  func.func @transform_2(%arg0: i32) -> (i32, i32, i32) {
    %c0_i32 = arith.constant 0 : i32
    %c0_i32_0 = arith.constant 0 : i32
    %c0_i32_1 = arith.constant 0 : i32
    return %arg0, %c0_i32, %c0_i32_0 : i32, i32, i32
  }
  func.func @transform_3(%arg0: i32) -> (i32, i32) {
    %c0_i32 = arith.constant 0 : i32
    %c0_i32_0 = arith.constant 0 : i32
    %c0_i32_1 = arith.constant 0 : i32
    return %c0_i32, %c0_i32_0 : i32, i32
  }
  func.func @transform_4(%arg0: i32) -> (i32, i32) {
    %c0_i32 = arith.constant 0 : i32
    %c0_i32_0 = arith.constant 0 : i32
    %c0_i32_1 = arith.constant 0 : i32
    return %c0_i32, %c0_i32_0 : i32, i32
  }
  func.func @transform_5(%arg0: i32) -> (i32, i32, i32) {
    %c0_i32 = arith.constant 0 : i32
    %c0_i32_0 = arith.constant 0 : i32
    %c0_i32_1 = arith.constant 0 : i32
    %c0_i32_2 = arith.constant 0 : i32
    return %c0_i32, %c0_i32_0, %c0_i32_1 : i32, i32, i32
  }
  func.func @transform_6(%arg0: i32) -> (i32, i32, i32) {
    %c0_i32 = arith.constant 0 : i32
    %c0_i32_0 = arith.constant 0 : i32
    %c0_i32_1 = arith.constant 0 : i32
    %c0_i32_2 = arith.constant 0 : i32
    return %c0_i32, %c0_i32_0, %c0_i32_1 : i32, i32, i32
  }
  func.func @transform_7(%arg0: i32) -> (i32, i32, i32) {
    %c0_i32 = arith.constant 0 : i32
    %c0_i32_0 = arith.constant 0 : i32
    %c0_i32_1 = arith.constant 0 : i32
    %c0_i32_2 = arith.constant 0 : i32
    return %c0_i32, %c0_i32_0, %c0_i32_1 : i32, i32, i32
  }
  func.func @transform_8(%arg0: i32) -> (i32, i32, i32) {
    %c0_i32 = arith.constant 0 : i32
    %c0_i32_0 = arith.constant 0 : i32
    %c0_i32_1 = arith.constant 0 : i32
    %c0_i32_2 = arith.constant 0 : i32
    return %c0_i32, %c0_i32_0, %c0_i32_1 : i32, i32, i32
  }
  func.func @transform_9(%arg0: i32) -> (i32, i32, i32) {
    %c0_i32 = arith.constant 0 : i32
    %c0_i32_0 = arith.constant 0 : i32
    %c0_i32_1 = arith.constant 0 : i32
    %c0_i32_2 = arith.constant 0 : i32
    return %c0_i32, %c0_i32_0, %c0_i32_1 : i32, i32, i32
  }
  func.func @transform_10(%arg0: i32) -> (i32, i32, i32) {
    %c0_i32 = arith.constant 0 : i32
    %c0_i32_0 = arith.constant 0 : i32
    %c0_i32_1 = arith.constant 0 : i32
    %c0_i32_2 = arith.constant 0 : i32
    return %c0_i32, %c0_i32_0, %c0_i32_1 : i32, i32, i32
  }
  func.func @transform_11(%arg0: i32) -> (i32, i32, i32) {
    %c0_i32 = arith.constant 0 : i32
    %c0_i32_0 = arith.constant 0 : i32
    %c0_i32_1 = arith.constant 0 : i32
    %c0_i32_2 = arith.constant 0 : i32
    return %c0_i32, %c0_i32_0, %c0_i32_1 : i32, i32, i32
  }
  func.func @transform_12(%arg0: i32) -> (i32, i32, i32) {
    %c0_i32 = arith.constant 0 : i32
    %c0_i32_0 = arith.constant 0 : i32
    %c0_i32_1 = arith.constant 0 : i32
    %c0_i32_2 = arith.constant 0 : i32
    return %c0_i32, %c0_i32_0, %c0_i32_1 : i32, i32, i32
  }
  func.func @transform_13(%arg0: i32) -> (i32, i32, i32) {
    %c0_i32 = arith.constant 0 : i32
    %c0_i32_0 = arith.constant 0 : i32
    %c0_i32_1 = arith.constant 0 : i32
    %c0_i32_2 = arith.constant 0 : i32
    return %c0_i32, %c0_i32_0, %c0_i32_1 : i32, i32, i32
  }
  func.func @transform_14(%arg0: i32) -> (i32, i32, i32) {
    %c0_i32 = arith.constant 0 : i32
    %c0_i32_0 = arith.constant 0 : i32
    %c0_i32_1 = arith.constant 0 : i32
    %c0_i32_2 = arith.constant 0 : i32
    return %c0_i32, %c0_i32_0, %c0_i32_1 : i32, i32, i32
  }
  func.func @transform_15(%arg0: i32) -> (i32, i32, i32) {
    %c0_i32 = arith.constant 0 : i32
    %c0_i32_0 = arith.constant 0 : i32
    %c0_i32_1 = arith.constant 0 : i32
    %c0_i32_2 = arith.constant 0 : i32
    return %c0_i32, %c0_i32_0, %c0_i32_1 : i32, i32, i32
  }
  func.func @transform_16(%arg0: i32) -> (i32, i32, i32) {
    %c0_i32 = arith.constant 0 : i32
    %c0_i32_0 = arith.constant 0 : i32
    %c0_i32_1 = arith.constant 0 : i32
    %c0_i32_2 = arith.constant 0 : i32
    return %c0_i32, %c0_i32_0, %c0_i32_1 : i32, i32, i32
  }
  func.func @transform_17(%arg0: i32) -> (i32, i32, i32) {
    %c0_i32 = arith.constant 0 : i32
    %c0_i32_0 = arith.constant 0 : i32
    %c0_i32_1 = arith.constant 0 : i32
    %c0_i32_2 = arith.constant 0 : i32
    return %c0_i32, %c0_i32_0, %c0_i32_1 : i32, i32, i32
  }
  func.func @transform_18(%arg0: i32) -> (i32, i32, i32) {
    %c0_i32 = arith.constant 0 : i32
    %c0_i32_0 = arith.constant 0 : i32
    %c0_i32_1 = arith.constant 0 : i32
    %c0_i32_2 = arith.constant 0 : i32
    return %c0_i32, %c0_i32_0, %c0_i32_1 : i32, i32, i32
  }
  func.func @transform_19(%arg0: i32) -> (i32, i32, i32) {
    %c0_i32 = arith.constant 0 : i32
    %c0_i32_0 = arith.constant 0 : i32
    %c0_i32_1 = arith.constant 0 : i32
    %c0_i32_2 = arith.constant 0 : i32
    return %c0_i32, %c0_i32_0, %c0_i32_1 : i32, i32, i32
  }
  func.func @transform_20(%arg0: i32) -> (i32, i32) {
    %c0_i32 = arith.constant 0 : i32
    %c0_i32_0 = arith.constant 0 : i32
    %c0_i32_1 = arith.constant 0 : i32
    return %c0_i32, %c0_i32_0 : i32, i32
  }
  func.func @transform_21(%arg0: i32) -> (i32, i32) {
    %c0_i32 = arith.constant 0 : i32
    %c0_i32_0 = arith.constant 0 : i32
    %c0_i32_1 = arith.constant 0 : i32
    return %c0_i32, %c0_i32_0 : i32, i32
  }
  func.func @transform_22(%arg0: i32) -> (i32, i32) {
    %c0_i32 = arith.constant 0 : i32
    %c0_i32_0 = arith.constant 0 : i32
    %c0_i32_1 = arith.constant 0 : i32
    return %c0_i32, %c0_i32_0 : i32, i32
  }
  func.func @transform_23(%arg0: i32) -> (i32, i32, i32) {
    %c0_i32 = arith.constant 0 : i32
    %c0_i32_0 = arith.constant 0 : i32
    %c0_i32_1 = arith.constant 0 : i32
    return %arg0, %c0_i32, %c0_i32_0 : i32, i32, i32
  }
}

</mosaic_0001>

<bundles_post_ra>
// kernel: gpt_forward.5
= control target key start
LH: loop header
LB: loop body
LE: loop exit
PB: predicated region body
PF: predicated region fallthrough
CT: control target
= control target key end

     0   :  { %s1008_s12 = smov 0   ;;  %s1466_s0 = inlined_call_operand.vmem [shape: f32[2400,256], index: 0, kind: input, shape index: {}]   ;;  %s1467_s1 = inlined_call_operand.vmem [shape: f32[256,32], index: 1, kind: input, shape index: {}]   ;;  %s1468_s2 = inlined_call_operand.vmem [shape: f32[1,32], index: 2, kind: input, shape index: {}]   ;;  %s1469_s3 = inlined_call_operand.vmem [shape: f32[2400,32], index: 3, kind: output, shape index: {}]  }
   0x1 LB: > { %s878_s13 = sadd.s32 4294967295, %s985_s12   ;;  %p882_p0 = scmp.ge.s32.totalorder %s985_s12, 1  ;;  %s985_s12 = sphi %s1008_s12, %s13_s12  }
   0x2   : > { %p139_p1 = scmp.lt.s32.totalorder %s985_s12, 6 }
   0x4   : > { %p140_p2 = pnand %p882_p0, %p139_p1 }
   0x5   : > { %v297_v0 = vld [vmem:[%s1467_s1] sm:$0xff] (!%p140_p2)  ;;  %v298_v1 = vld [vmem:[%s1467_s1 + $0x8] sm:$0xff] (!%p140_p2)  ;;  %v299_v2 = vld [vmem:[%s1467_s1 + $0x10] sm:$0xff] (!%p140_p2)  ;;  %s164_s20 = smul.u32 (!%p140_p2), 60, %s878_s13  ;;  %v987_v3 = vmov (!%p140_p2), 0.0|0.0   ;;  %vm761_vm0 = vcmask (!%p140_p2), 261120  }
   0x6   : > { %143 = sbr.rel (%p140_p2) target bundleno = 404 (0x194), region = 32  ;;  %890 = vmatprep.subr.bf16.mxu0 (!%p140_p2), %v987_v3  ;;  %938 = vmatprep.subr.bf16.mxu1 (!%p140_p2), %v987_v3  ;;  %v891_v4 = vpack.c.bf16 (!%p140_p2), %v298_v1, %v297_v0  ;;  %v300_v5 = vld [vmem:[%s1467_s1 + $0x18] sm:$0xff] (!%p140_p2)  ;;  %v301_v7 = vld [vmem:[%s1467_s1 + $0x20] sm:$0xff] (!%p140_p2)  ;;  %v302_v8 = vld [vmem:[%s1467_s1 + $0x28] sm:$0xff] (!%p140_p2) }
   0x7   : > { %p165_p3 = scmp.lt.s32.totalorder (!%p140_p2), %s164_s20, 299  ;;  %v894_v6 = vpack.c.bf16 (!%p140_p2), %v300_v5, %v299_v2  ;;  %v897_v9 = vpack.c.bf16 (!%p140_p2), %v302_v8, %v301_v7  ;;  %v303_v10 = vld [vmem:[%s1467_s1 + $0x30] sm:$0xff] (!%p140_p2)  ;;  %v304_v11 = vld [vmem:[%s1467_s1 + $0x38] sm:$0xff] (!%p140_p2)  ;;  %v305_v15 = vld [vmem:[%s1467_s1 + $0x40] sm:$0xff] (!%p140_p2) }
   0x8   : > { %892 = vmatpush1.bf16.msra.mxu0 (!%p140_p2), %v891_v4  ;;  %954 = vmatpush1.bf16.msra.mxu1 (!%p140_p2), %v891_v4  ;;  %v900_v13 = vpack.c.bf16 (!%p140_p2), %v304_v11, %v303_v10  ;;  %v306_v16 = vld [vmem:[%s1467_s1 + $0x48] sm:$0xff] (!%p140_p2)  ;;  %v307_v18 = vld [vmem:[%s1467_s1 + $0x50] sm:$0xff] (!%p140_p2)  ;;  %v308_v19 = vld [vmem:[%s1467_s1 + $0x58] sm:$0xff] (!%p140_p2) }
   0x9   : > { %893 = vmatprep.subr.bf16.mxu0 (!%p140_p2), %v987_v3  ;;  %939 = vmatprep.subr.bf16.mxu1 (!%p140_p2), %v987_v3  ;;  %v903_v17 = vpack.c.bf16 (!%p140_p2), %v306_v16, %v305_v15  ;;  %v906_v20 = vpack.c.bf16 (!%p140_p2), %v308_v19, %v307_v18  ;;  %v309_v21 = vld [vmem:[%s1467_s1 + $0x60] sm:$0xff] (!%p140_p2)  ;;  %v310_v22 = vld [vmem:[%s1467_s1 + $0x68] sm:$0xff] (!%p140_p2)  ;;  %v311_v24 = vld [vmem:[%s1467_s1 + $0x70] sm:$0xff] (!%p140_p2) }
   0xa   : > { %v909_v23 = vpack.c.bf16 (!%p140_p2), %v310_v22, %v309_v21  ;;  %v312_v25 = vld [vmem:[%s1467_s1 + $0x78] sm:$0xff] (!%p140_p2)  ;;  %v313_v27 = vld [vmem:[%s1467_s1 + $0x80] sm:$0xff] (!%p140_p2)  ;;  %v314_v28 = vld [vmem:[%s1467_s1 + $0x88] sm:$0xff] (!%p140_p2) }
   0xb   : > { %v912_v26 = vpack.c.bf16 (!%p140_p2), %v312_v25, %v311_v24  ;;  %v915_v29 = vpack.c.bf16 (!%p140_p2), %v314_v28, %v313_v27  ;;  %v315_v30 = vld [vmem:[%s1467_s1 + $0x90] sm:$0xff] (!%p140_p2)  ;;  %v316_v31 = vld [vmem:[%s1467_s1 + $0x98] sm:$0xff] (!%p140_p2)  ;;  %v317_v33 = vld [vmem:[%s1467_s1 + $0xa0] sm:$0xff] (!%p140_p2) }
   0xc   : > { %895 = vmatpush1.bf16.msra.mxu0 (!%p140_p2), %v894_v6  ;;  %955 = vmatpush1.bf16.msra.mxu1 (!%p140_p2), %v894_v6  ;;  %v918_v32 = vpack.c.bf16 (!%p140_p2), %v316_v31, %v315_v30  ;;  %v318_v34 = vld [vmem:[%s1467_s1 + $0xa8] sm:$0xff] (!%p140_p2)  ;;  %v319_v36 = vld [vmem:[%s1467_s1 + $0xb0] sm:$0xff] (!%p140_p2)  ;;  %v320_v37 = vld [vmem:[%s1467_s1 + $0xb8] sm:$0xff] (!%p140_p2) }
   0xd   : > { %s1471_s20 = smov (!%p165_p3, %s164_s20), 299  ;;  %896 = vmatprep.subr.bf16.mxu0 %v987_v3  ;;  %940 = vmatprep.subr.bf16.mxu1 %v987_v3  ;;  %v921_v35 = vpack.c.bf16 %v318_v34, %v317_v33  ;;  %v924_v38 = vpack.c.bf16 %v320_v37, %v319_v36  ;;  %v321_v39 = vld [vmem:[%s1467_s1 + $0xc0] sm:$0xff]  ;;  %v322_v40 = vld [vmem:[%s1467_s1 + $0xc8] sm:$0xff]  ;;  %v323_v42 = vld [vmem:[%s1467_s1 + $0xd0] sm:$0xff] }
   0xe   : > { %s889_s27 = sshll.u32 %s1471_s20, 4  ;;  %v927_v41 = vpack.c.bf16 %v322_v40, %v321_v39  ;;  %v324_v43 = vld [vmem:[%s1467_s1 + $0xd8] sm:$0xff]  ;;  %v325_v45 = vld [vmem:[%s1467_s1 + $0xe0] sm:$0xff]  ;;  %v326_v46 = vld [vmem:[%s1467_s1 + $0xe8] sm:$0xff]  ;;  %s885_s10 = sshll.u32 %s1471_s20, 3 }
   0xf   : > { %s1044_s30 = scalar_lea.vmem %s1466_s0, %s889_s27  ;;  %v930_v44 = vpack.c.bf16 %v324_v43, %v323_v42  ;;  %v933_v47 = vpack.c.bf16 %v326_v46, %v325_v45  ;;  %v327_v48 = vld [vmem:[%s1467_s1 + $0xf0] sm:$0xff]  ;;  %v328_v49 = vld [vmem:[%s1467_s1 + $0xf8] sm:$0xff] }
  0x10   : > { %v178_v12 = vld [vmem:[%s1044_s30 + $0x8] sm:$0xff]  ;;  %898 = vmatpush1.bf16.msra.mxu0 %v897_v9  ;;  %956 = vmatpush1.bf16.msra.mxu1 %v897_v9  ;;  %v936_v50 = vpack.c.bf16 %v328_v49, %v327_v48  ;;  %v177_v51 = vld [vmem:[%s1044_s30] sm:$0xff]  ;;  %v180_v53 = vld [vmem:[%s1044_s30 + $0x18] sm:$0xff] }
  0x11   : > { %v238_v14 = vld [vmem:[%s1044_s30 + $0x1e8] sm:$0xff]  ;;  %899 = vmatprep.subr.bf16.mxu0 %v987_v3  ;;  %941 = vmatprep.subr.bf16.mxu1 %v987_v3  ;;  %v237_v52 = vld [vmem:[%s1044_s30 + $0x1e0] sm:$0xff]  ;;  %v240_v54 = vld [vmem:[%s1044_s30 + $0x1f8] sm:$0xff] }
  0x12   : > { %400 = vmatprep.mubr.f32.mxu0 %v178_v12  ;;  %550 = vmatprep.mubr.f32.mxu1 %v238_v14  ;;  %v179_v55 = vld [vmem:[%s1044_s30 + $0x10] sm:$0xff]  ;;  %v182_v57 = vld [vmem:[%s1044_s30 + $0x28] sm:$0xff]  ;;  %v181_v59 = vld [vmem:[%s1044_s30 + $0x20] sm:$0xff] }
  0x13   : > { %v239_v56 = vld [vmem:[%s1044_s30 + $0x1f0] sm:$0xff]  ;;  %v242_v58 = vld [vmem:[%s1044_s30 + $0x208] sm:$0xff]  ;;  %v241_v60 = vld [vmem:[%s1044_s30 + $0x200] sm:$0xff] }
  0x14   : > { %901 = vmatpush1.bf16.msra.mxu0 %v900_v13  ;;  %957 = vmatpush1.bf16.msra.mxu1 %v900_v13  ;;  %v184_v61 = vld [vmem:[%s1044_s30 + $0x38] sm:$0xff]  ;;  %v183_v63 = vld [vmem:[%s1044_s30 + $0x30] sm:$0xff]  ;;  %v186_v1 = vld [vmem:[%s1044_s30 + $0x48] sm:$0xff] }
  0x15   : > { %902 = vmatprep.subr.bf16.mxu0 %v987_v3  ;;  %942 = vmatprep.subr.bf16.mxu1 %v987_v3  ;;  %v244_v62 = vld [vmem:[%s1044_s30 + $0x218] sm:$0xff]  ;;  %v243_v0 = vld [vmem:[%s1044_s30 + $0x210] sm:$0xff]  ;;  %v246_v2 = vld [vmem:[%s1044_s30 + $0x228] sm:$0xff] }
  0x16   : > { %v245_v4 = vld [vmem:[%s1044_s30 + $0x220] sm:$0xff]  ;;  %v188_v5 = vld [vmem:[%s1044_s30 + $0x58] sm:$0xff]  ;;  %v187_v7 = vld [vmem:[%s1044_s30 + $0x50] sm:$0xff] }
  0x17   : > { %v248_v6 = vld [vmem:[%s1044_s30 + $0x238] sm:$0xff]  ;;  %v247_v8 = vld [vmem:[%s1044_s30 + $0x230] sm:$0xff]  ;;  %v190_v9 = vld [vmem:[%s1044_s30 + $0x68] sm:$0xff] }
  0x18   : > { %904 = vmatpush1.bf16.msra.mxu0 %v903_v17  ;;  %958 = vmatpush1.bf16.msra.mxu1 %v903_v17  ;;  %v250_v10 = vld [vmem:[%s1044_s30 + $0x248] sm:$0xff]  ;;  %v189_v11 = vld [vmem:[%s1044_s30 + $0x60] sm:$0xff]  ;;  %v192_v13 = vld [vmem:[%s1044_s30 + $0x78] sm:$0xff] }
  0x19   : > { %905 = vmatprep.subr.bf16.mxu0 %v987_v3  ;;  %943 = vmatprep.subr.bf16.mxu1 %v987_v3  ;;  %v249_v12 = vld [vmem:[%s1044_s30 + $0x240] sm:$0xff]  ;;  %v252_v14 = vld [vmem:[%s1044_s30 + $0x258] sm:$0xff]  ;;  %v191_v15 = vld [vmem:[%s1044_s30 + $0x70] sm:$0xff] }
  0x1a   : > { %v251_v16 = vld [vmem:[%s1044_s30 + $0x250] sm:$0xff]  ;;  %v194_v17 = vld [vmem:[%s1044_s30 + $0x88] sm:$0xff]  ;;  %v193_v19 = vld [vmem:[%s1044_s30 + $0x80] sm:$0xff] }
  0x1b   : > { %v254_v18 = vld [vmem:[%s1044_s30 + $0x268] sm:$0xff]  ;;  %v196_v21 = vld [vmem:[%s1044_s30 + $0x98] sm:$0xff]  ;;  %v255_v24 = vld [vmem:[%s1044_s30 + $0x270] sm:$0xff] }
  0x1c   : > { %907 = vmatpush1.bf16.msra.mxu0 %v906_v20  ;;  %959 = vmatpush1.bf16.msra.mxu1 %v906_v20  ;;  %v253_v20 = vld [vmem:[%s1044_s30 + $0x260] sm:$0xff]  ;;  %v256_v22 = vld [vmem:[%s1044_s30 + $0x278] sm:$0xff]  ;;  %v198_v25 = vld [vmem:[%s1044_s30 + $0xa8] sm:$0xff] }
  0x1d   : > { %908 = vmatprep.subr.bf16.mxu0 %v987_v3  ;;  %944 = vmatprep.subr.bf16.mxu1 %v987_v3  ;;  %v197_v27 = vld [vmem:[%s1044_s30 + $0xa0] sm:$0xff]  ;;  %v260_v30 = vld [vmem:[%s1044_s30 + $0x298] sm:$0xff]  ;;  %v199_v31 = vld [vmem:[%s1044_s30 + $0xb0] sm:$0xff] }
  0x1e   : > { %v257_v28 = vld [vmem:[%s1044_s30 + $0x280] sm:$0xff]  ;;  %v202_v33 = vld [vmem:[%s1044_s30 + $0xc8] sm:$0xff]  ;;  %v204_v37 = vld [vmem:[%s1044_s30 + $0xd8] sm:$0xff] }
  0x1f   : > { %v262_v34 = vld [vmem:[%s1044_s30 + $0x2a8] sm:$0xff]  ;;  %v261_v36 = vld [vmem:[%s1044_s30 + $0x2a0] sm:$0xff]  ;;  %v203_v39 = vld [vmem:[%s1044_s30 + $0xd0] sm:$0xff] }
  0x20   : > { %910 = vmatpush1.bf16.msra.mxu0 %v909_v23  ;;  %960 = vmatpush1.bf16.msra.mxu1 %v909_v23  ;;  %v195_v23 = vld [vmem:[%s1044_s30 + $0x90] sm:$0xff]  ;;  %v266_v42 = vld [vmem:[%s1044_s30 + $0x2c8] sm:$0xff]  ;;  %v205_v43 = vld [vmem:[%s1044_s30 + $0xe0] sm:$0xff] }
  0x21   : > { %911 = vmatprep.subr.bf16.mxu0 %v987_v3  ;;  %945 = vmatprep.subr.bf16.mxu1 %v987_v3  ;;  %v263_v40 = vld [vmem:[%s1044_s30 + $0x2b0] sm:$0xff]  ;;  %v208_v45 = vld [vmem:[%s1044_s30 + $0xf8] sm:$0xff]  ;;  %v210_v49 = vld [vmem:[%s1044_s30 + $0x108] sm:$0xff] }
  0x22   : > { %v268_v46 = vld [vmem:[%s1044_s30 + $0x2d8] sm:$0xff]  ;;  %v267_v48 = vld [vmem:[%s1044_s30 + $0x2d0] sm:$0xff] }
  0x24   : > { %913 = vmatpush1.bf16.msra.mxu0 %v912_v26  ;;  %961 = vmatpush1.bf16.msra.mxu1 %v912_v26  ;;  %v258_v26 = vld [vmem:[%s1044_s30 + $0x288] sm:$0xff] }
  0x25   : > { %914 = vmatprep.subr.bf16.mxu0 %v987_v3  ;;  %946 = vmatprep.subr.bf16.mxu1 %v987_v3 }
  0x28   : > { %916 = vmatpush1.bf16.msra.mxu0 %v915_v29  ;;  %962 = vmatpush1.bf16.msra.mxu1 %v915_v29  ;;  %v200_v29 = vld [vmem:[%s1044_s30 + $0xb8] sm:$0xff] }
  0x29   : > { %917 = vmatprep.subr.bf16.mxu0 %v987_v3  ;;  %947 = vmatprep.subr.bf16.mxu1 %v987_v3 }
  0x2c   : > { %919 = vmatpush1.bf16.msra.mxu0 %v918_v32  ;;  %963 = vmatpush1.bf16.msra.mxu1 %v918_v32  ;;  %v259_v32 = vld [vmem:[%s1044_s30 + $0x290] sm:$0xff] }
  0x2d   : > { %920 = vmatprep.subr.bf16.mxu0 %v987_v3  ;;  %948 = vmatprep.subr.bf16.mxu1 %v987_v3 }
  0x30   : > { %922 = vmatpush1.bf16.msra.mxu0 %v921_v35  ;;  %964 = vmatpush1.bf16.msra.mxu1 %v921_v35  ;;  %v201_v35 = vld [vmem:[%s1044_s30 + $0xc0] sm:$0xff] }
  0x31   : > { %923 = vmatprep.subr.bf16.mxu0 %v987_v3  ;;  %949 = vmatprep.subr.bf16.mxu1 %v987_v3 }
  0x34   : > { %925 = vmatpush1.bf16.msra.mxu0 %v924_v38  ;;  %965 = vmatpush1.bf16.msra.mxu1 %v924_v38  ;;  %v264_v38 = vld [vmem:[%s1044_s30 + $0x2b8] sm:$0xff] }
  0x35   : > { %926 = vmatprep.subr.bf16.mxu0 %v987_v3  ;;  %950 = vmatprep.subr.bf16.mxu1 %v987_v3 }
  0x38   : > { %928 = vmatpush1.bf16.msra.mxu0 %v927_v41  ;;  %966 = vmatpush1.bf16.msra.mxu1 %v927_v41  ;;  %v206_v41 = vld [vmem:[%s1044_s30 + $0xe8] sm:$0xff] }
  0x39   : > { %929 = vmatprep.subr.bf16.mxu0 %v987_v3  ;;  %951 = vmatprep.subr.bf16.mxu1 %v987_v3 }
  0x3c   : > { %931 = vmatpush1.bf16.msra.mxu0 %v930_v44  ;;  %967 = vmatpush1.bf16.msra.mxu1 %v930_v44  ;;  %v265_v44 = vld [vmem:[%s1044_s30 + $0x2c0] sm:$0xff] }
  0x3d   : > { %932 = vmatprep.subr.bf16.mxu0 %v987_v3  ;;  %952 = vmatprep.subr.bf16.mxu1 %v987_v3 }
  0x40   : > { %934 = vmatpush1.bf16.msra.mxu0 %v933_v47  ;;  %968 = vmatpush1.bf16.msra.mxu1 %v933_v47  ;;  %v207_v47 = vld [vmem:[%s1044_s30 + $0xf0] sm:$0xff] }
  0x41   : > { %935 = vmatprep.subr.bf16.mxu0 %v987_v3  ;;  %953 = vmatprep.subr.bf16.mxu1 %v987_v3  ;;  %v185_v3 = vld [vmem:[%s1044_s30 + $0x40] sm:$0xff] }
  0x44   : > { %937 = vmatpush1.bf16.msra.mxu0 %v936_v50  ;;  %969 = vmatpush1.bf16.msra.mxu1 %v936_v50  ;;  %v270_v50 = vld [vmem:[%s1044_s30 + $0x2e8] sm:$0xff] }
  0x47   : > { %401 = vmatmul.mubr.f32.vlgmr.msra.gmra.mrb[0].mxu0 %v177_v51  ;;  %551 = vmatmul.mubr.f32.vlgmr.msra.gmra.mrb[0].mxu1 %v237_v52  ;;  %v209_v51 = vld [vmem:[%s1044_s30 + $0x100] sm:$0xff] }
  0x48   : > { %405 = vmatprep.mubr.f32.mxu0 %v180_v53  ;;  %555 = vmatprep.mubr.f32.mxu1 %v240_v54  ;;  %v269_v52 = vld [vmem:[%s1044_s30 + $0x2e0] sm:$0xff]  ;;  %v212_v53 = vld [vmem:[%s1044_s30 + $0x118] sm:$0xff] }
  0x49   : > { %v272_v54 = vld [vmem:[%s1044_s30 + $0x2f8] sm:$0xff] }
  0x4b   : > { %406 = vmatmul.mubr.f32.gmra.mrb[2].mxu0 %v179_v55  ;;  %556 = vmatmul.mubr.f32.gmra.mrb[2].mxu1 %v239_v56  ;;  %v211_v55 = vld [vmem:[%s1044_s30 + $0x110] sm:$0xff] }
  0x4c   : > { %410 = vmatprep.mubr.f32.mxu0 %v182_v57  ;;  %560 = vmatprep.mubr.f32.mxu1 %v242_v58  ;;  %v271_v56 = vld [vmem:[%s1044_s30 + $0x2f0] sm:$0xff]  ;;  %v214_v57 = vld [vmem:[%s1044_s30 + $0x128] sm:$0xff] }
  0x4d   : > { %v274_v58 = vld [vmem:[%s1044_s30 + $0x308] sm:$0xff] }
  0x4f   : > { %411 = vmatmul.mubr.f32.gmra.mrb[4].mxu0 %v181_v59  ;;  %561 = vmatmul.mubr.f32.gmra.mrb[4].mxu1 %v241_v60  ;;  %v213_v59 = vld [vmem:[%s1044_s30 + $0x120] sm:$0xff] }
  0x50   : > { %415 = vmatprep.mubr.f32.mxu0 %v184_v61  ;;  %565 = vmatprep.mubr.f32.mxu1 %v244_v62  ;;  %v273_v60 = vld [vmem:[%s1044_s30 + $0x300] sm:$0xff]  ;;  %v216_v61 = vld [vmem:[%s1044_s30 + $0x138] sm:$0xff] }
  0x51   : > { %v276_v62 = vld [vmem:[%s1044_s30 + $0x318] sm:$0xff] }
  0x53   : > { %416 = vmatmul.mubr.f32.gmra.mrb[6].mxu0 %v183_v63  ;;  %566 = vmatmul.mubr.f32.gmra.mrb[6].mxu1 %v243_v0  ;;  %v215_v63 = vld [vmem:[%s1044_s30 + $0x130] sm:$0xff] }
  0x54   : > { %420 = vmatprep.mubr.f32.mxu0 %v186_v1  ;;  %570 = vmatprep.mubr.f32.mxu1 %v246_v2  ;;  %v275_v0 = vld [vmem:[%s1044_s30 + $0x310] sm:$0xff]  ;;  %v218_v1 = vld [vmem:[%s1044_s30 + $0x148] sm:$0xff] }
  0x55   : > { %v278_v2 = vld [vmem:[%s1044_s30 + $0x328] sm:$0xff] }
  0x57   : > { %421 = vmatmul.mubr.f32.gmra.mrb[8].mxu0 %v185_v3  ;;  %571 = vmatmul.mubr.f32.gmra.mrb[8].mxu1 %v245_v4  ;;  %v217_v3 = vld [vmem:[%s1044_s30 + $0x140] sm:$0xff] }
  0x58   : > { %425 = vmatprep.mubr.f32.mxu0 %v188_v5  ;;  %575 = vmatprep.mubr.f32.mxu1 %v248_v6  ;;  %v277_v4 = vld [vmem:[%s1044_s30 + $0x320] sm:$0xff]  ;;  %v220_v5 = vld [vmem:[%s1044_s30 + $0x158] sm:$0xff] }
  0x59   : > { %v280_v6 = vld [vmem:[%s1044_s30 + $0x338] sm:$0xff] }
  0x5b   : > { %426 = vmatmul.mubr.f32.gmra.mrb[10].mxu0 %v187_v7  ;;  %576 = vmatmul.mubr.f32.gmra.mrb[10].mxu1 %v247_v8  ;;  %v219_v7 = vld [vmem:[%s1044_s30 + $0x150] sm:$0xff] }
  0x5c   : > { %430 = vmatprep.mubr.f32.mxu0 %v190_v9  ;;  %580 = vmatprep.mubr.f32.mxu1 %v250_v10  ;;  %v279_v8 = vld [vmem:[%s1044_s30 + $0x330] sm:$0xff]  ;;  %v222_v9 = vld [vmem:[%s1044_s30 + $0x168] sm:$0xff] }
  0x5d   : > { %v282_v10 = vld [vmem:[%s1044_s30 + $0x348] sm:$0xff] }
  0x5f   : > { %431 = vmatmul.mubr.f32.gmra.mrb[12].mxu0 %v189_v11  ;;  %581 = vmatmul.mubr.f32.gmra.mrb[12].mxu1 %v249_v12  ;;  %v221_v11 = vld [vmem:[%s1044_s30 + $0x160] sm:$0xff] }
  0x60   : > { %435 = vmatprep.mubr.f32.mxu0 %v192_v13  ;;  %585 = vmatprep.mubr.f32.mxu1 %v252_v14  ;;  %v281_v12 = vld [vmem:[%s1044_s30 + $0x340] sm:$0xff]  ;;  %v224_v13 = vld [vmem:[%s1044_s30 + $0x178] sm:$0xff] }
  0x61   : > { %v284_v14 = vld [vmem:[%s1044_s30 + $0x358] sm:$0xff] }
  0x63   : > { %436 = vmatmul.mubr.f32.gmra.mrb[14].mxu0 %v191_v15  ;;  %586 = vmatmul.mubr.f32.gmra.mrb[14].mxu1 %v251_v16  ;;  %v223_v15 = vld [vmem:[%s1044_s30 + $0x170] sm:$0xff] }
  0x64   : > { %440 = vmatprep.mubr.f32.mxu0 %v194_v17  ;;  %590 = vmatprep.mubr.f32.mxu1 %v254_v18  ;;  %v283_v16 = vld [vmem:[%s1044_s30 + $0x350] sm:$0xff]  ;;  %v226_v17 = vld [vmem:[%s1044_s30 + $0x188] sm:$0xff] }
  0x65   : > { %v286_v18 = vld [vmem:[%s1044_s30 + $0x368] sm:$0xff] }
  0x67   : > { %441 = vmatmul.mubr.f32.gmra.mrb[16].mxu0 %v193_v19  ;;  %591 = vmatmul.mubr.f32.gmra.mrb[16].mxu1 %v253_v20  ;;  %v225_v19 = vld [vmem:[%s1044_s30 + $0x180] sm:$0xff] }
  0x68   : > { %445 = vmatprep.mubr.f32.mxu0 %v196_v21  ;;  %595 = vmatprep.mubr.f32.mxu1 %v256_v22  ;;  %v285_v20 = vld [vmem:[%s1044_s30 + $0x360] sm:$0xff]  ;;  %v228_v21 = vld [vmem:[%s1044_s30 + $0x198] sm:$0xff] }
  0x69   : > { %v288_v22 = vld [vmem:[%s1044_s30 + $0x378] sm:$0xff] }
  0x6b   : > { %446 = vmatmul.mubr.f32.gmra.mrb[18].mxu0 %v195_v23  ;;  %596 = vmatmul.mubr.f32.gmra.mrb[18].mxu1 %v255_v24  ;;  %v227_v23 = vld [vmem:[%s1044_s30 + $0x190] sm:$0xff] }
  0x6c   : > { %450 = vmatprep.mubr.f32.mxu0 %v198_v25  ;;  %600 = vmatprep.mubr.f32.mxu1 %v258_v26  ;;  %v287_v24 = vld [vmem:[%s1044_s30 + $0x370] sm:$0xff]  ;;  %v230_v25 = vld [vmem:[%s1044_s30 + $0x1a8] sm:$0xff] }
  0x6d   : > { %v290_v26 = vld [vmem:[%s1044_s30 + $0x388] sm:$0xff] }
  0x6f   : > { %451 = vmatmul.mubr.f32.gmra.mrb[20].mxu0 %v197_v27  ;;  %601 = vmatmul.mubr.f32.gmra.mrb[20].mxu1 %v257_v28  ;;  %v229_v27 = vld [vmem:[%s1044_s30 + $0x1a0] sm:$0xff] }
  0x70   : > { %455 = vmatprep.mubr.f32.mxu0 %v200_v29  ;;  %605 = vmatprep.mubr.f32.mxu1 %v260_v30  ;;  %v289_v28 = vld [vmem:[%s1044_s30 + $0x380] sm:$0xff]  ;;  %v232_v29 = vld [vmem:[%s1044_s30 + $0x1b8] sm:$0xff] }
  0x71   : > { %v292_v30 = vld [vmem:[%s1044_s30 + $0x398] sm:$0xff] }
  0x73   : > { %456 = vmatmul.mubr.f32.gmra.mrb[22].mxu0 %v199_v31  ;;  %606 = vmatmul.mubr.f32.gmra.mrb[22].mxu1 %v259_v32  ;;  %v231_v31 = vld [vmem:[%s1044_s30 + $0x1b0] sm:$0xff] }
  0x74   : > { %460 = vmatprep.mubr.f32.mxu0 %v202_v33  ;;  %610 = vmatprep.mubr.f32.mxu1 %v262_v34  ;;  %v291_v32 = vld [vmem:[%s1044_s30 + $0x390] sm:$0xff]  ;;  %v234_v33 = vld [vmem:[%s1044_s30 + $0x1c8] sm:$0xff] }
  0x75   : > { %v294_v34 = vld [vmem:[%s1044_s30 + $0x3a8] sm:$0xff] }
  0x77   : > { %461 = vmatmul.mubr.f32.gmra.mrb[24].mxu0 %v201_v35  ;;  %611 = vmatmul.mubr.f32.gmra.mrb[24].mxu1 %v261_v36  ;;  %v233_v35 = vld [vmem:[%s1044_s30 + $0x1c0] sm:$0xff] }
  0x78   : > { %465 = vmatprep.mubr.f32.mxu0 %v204_v37  ;;  %615 = vmatprep.mubr.f32.mxu1 %v264_v38  ;;  %v293_v36 = vld [vmem:[%s1044_s30 + $0x3a0] sm:$0xff]  ;;  %v236_v37 = vld [vmem:[%s1044_s30 + $0x1d8] sm:$0xff] }
  0x79   : > { %v296_v38 = vld [vmem:[%s1044_s30 + $0x3b8] sm:$0xff] }
  0x7b   : > { %466 = vmatmul.mubr.f32.gmra.mrb[26].mxu0 %v203_v39  ;;  %616 = vmatmul.mubr.f32.gmra.mrb[26].mxu1 %v263_v40  ;;  %v235_v39 = vld [vmem:[%s1044_s30 + $0x1d0] sm:$0xff] }
  0x7c   : > { %470 = vmatprep.mubr.f32.mxu0 %v206_v41  ;;  %620 = vmatprep.mubr.f32.mxu1 %v266_v42  ;;  %v295_v40 = vld [vmem:[%s1044_s30 + $0x3b0] sm:$0xff]  ;;  %v1275_v41 = vld [vmem:[%s1468_s2] ss:$0 sm:$0xff]  ;;  %s1283_s30 = scalar_lea.vmem %s1469_s3, %s885_s10 }
  0x7f   : > { %471 = vmatmul.mubr.f32.gmra.mrb[28].mxu0 %v205_v43  ;;  %621 = vmatmul.mubr.f32.gmra.mrb[28].mxu1 %v265_v44 }
  0x80   : > { %475 = vmatprep.mubr.f32.mxu0 %v208_v45  ;;  %625 = vmatprep.mubr.f32.mxu1 %v268_v46 }
  0x83   : > { %476 = vmatmul.mubr.f32.gmra.mrb[30].mxu0 %v207_v47  ;;  %626 = vmatmul.mubr.f32.gmra.mrb[30].mxu1 %v267_v48 }
  0x84   : > { %480 = vmatprep.mubr.f32.mxu0 %v210_v49  ;;  %630 = vmatprep.mubr.f32.mxu1 %v270_v50 }
  0x87   : > { %481 = vmatmul.mubr.f32.gmra.mrb[32].mxu0 %v209_v51  ;;  %631 = vmatmul.mubr.f32.gmra.mrb[32].mxu1 %v269_v52 }
  0x88   : > { %485 = vmatprep.mubr.f32.mxu0 %v212_v53  ;;  %635 = vmatprep.mubr.f32.mxu1 %v272_v54 }
  0x8b   : > { %486 = vmatmul.mubr.f32.gmra.mrb[34].mxu0 %v211_v55  ;;  %636 = vmatmul.mubr.f32.gmra.mrb[34].mxu1 %v271_v56 }
  0x8c   : > { %490 = vmatprep.mubr.f32.mxu0 %v214_v57  ;;  %640 = vmatprep.mubr.f32.mxu1 %v274_v58 }
  0x8f   : > { %491 = vmatmul.mubr.f32.gmra.mrb[36].mxu0 %v213_v59  ;;  %641 = vmatmul.mubr.f32.gmra.mrb[36].mxu1 %v273_v60 }
  0x90   : > { %495 = vmatprep.mubr.f32.mxu0 %v216_v61  ;;  %645 = vmatprep.mubr.f32.mxu1 %v276_v62 }
  0x93   : > { %496 = vmatmul.mubr.f32.gmra.mrb[38].mxu0 %v215_v63  ;;  %646 = vmatmul.mubr.f32.gmra.mrb[38].mxu1 %v275_v0 }
  0x94   : > { %500 = vmatprep.mubr.f32.mxu0 %v218_v1  ;;  %650 = vmatprep.mubr.f32.mxu1 %v278_v2 }
  0x97   : > { %501 = vmatmul.mubr.f32.gmra.mrb[40].mxu0 %v217_v3  ;;  %651 = vmatmul.mubr.f32.gmra.mrb[40].mxu1 %v277_v4 }
  0x98   : > { %505 = vmatprep.mubr.f32.mxu0 %v220_v5  ;;  %655 = vmatprep.mubr.f32.mxu1 %v280_v6 }
  0x9b   : > { %506 = vmatmul.mubr.f32.gmra.mrb[42].mxu0 %v219_v7  ;;  %656 = vmatmul.mubr.f32.gmra.mrb[42].mxu1 %v279_v8 }
  0x9c   : > { %510 = vmatprep.mubr.f32.mxu0 %v222_v9  ;;  %660 = vmatprep.mubr.f32.mxu1 %v282_v10 }
  0x9f   : > { %511 = vmatmul.mubr.f32.gmra.mrb[44].mxu0 %v221_v11  ;;  %661 = vmatmul.mubr.f32.gmra.mrb[44].mxu1 %v281_v12 }
  0xa0   : > { %515 = vmatprep.mubr.f32.mxu0 %v224_v13  ;;  %665 = vmatprep.mubr.f32.mxu1 %v284_v14 }
  0xa3   : > { %516 = vmatmul.mubr.f32.gmra.mrb[46].mxu0 %v223_v15  ;;  %666 = vmatmul.mubr.f32.gmra.mrb[46].mxu1 %v283_v16 }
  0xa4   : > { %520 = vmatprep.mubr.f32.mxu0 %v226_v17  ;;  %670 = vmatprep.mubr.f32.mxu1 %v286_v18 }
  0xa7   : > { %521 = vmatmul.mubr.f32.gmra.mrb[48].mxu0 %v225_v19  ;;  %671 = vmatmul.mubr.f32.gmra.mrb[48].mxu1 %v285_v20 }
  0xa8   : > { %525 = vmatprep.mubr.f32.mxu0 %v228_v21  ;;  %675 = vmatprep.mubr.f32.mxu1 %v288_v22 }
  0xab   : > { %526 = vmatmul.mubr.f32.gmra.mrb[50].mxu0 %v227_v23  ;;  %676 = vmatmul.mubr.f32.gmra.mrb[50].mxu1 %v287_v24 }
  0xac   : > { %530 = vmatprep.mubr.f32.mxu0 %v230_v25  ;;  %680 = vmatprep.mubr.f32.mxu1 %v290_v26 }
  0xaf   : > { %531 = vmatmul.mubr.f32.gmra.mrb[52].mxu0 %v229_v27  ;;  %681 = vmatmul.mubr.f32.gmra.mrb[52].mxu1 %v289_v28 }
  0xb0   : > { %535 = vmatprep.mubr.f32.mxu0 %v232_v29  ;;  %685 = vmatprep.mubr.f32.mxu1 %v292_v30 }
  0xb3   : > { %536 = vmatmul.mubr.f32.gmra.mrb[54].mxu0 %v231_v31  ;;  %686 = vmatmul.mubr.f32.gmra.mrb[54].mxu1 %v291_v32 }
  0xb4   : > { %540 = vmatprep.mubr.f32.mxu0 %v234_v33  ;;  %690 = vmatprep.mubr.f32.mxu1 %v294_v34 }
  0xb7   : > { %541 = vmatmul.mubr.f32.gmra.mrb[56].mxu0 %v233_v35  ;;  %691 = vmatmul.mubr.f32.gmra.mrb[56].mxu1 %v293_v36 }
  0xb8   : > { %545 = vmatprep.mubr.f32.mxu0 %v236_v37  ;;  %695 = vmatprep.mubr.f32.mxu1 %v296_v38 }
  0xbb   : > { %546 = vmatmul.mubr.f32.gmra.mrb[58].mxu0 %v235_v39  ;;  %696 = vmatmul.mubr.f32.gmra.mrb[58].mxu1 %v295_v40 }
 0x11a   : > { %v402_v42 = vpop.f32.mrb[0].mxu0  ;;  %v552_v43 = vpop.f32.mrb[0].mxu1 }
 0x11b   : > { %v403_v44 = vadd.f32 %v1275_v41, %v402_v42  ;;  %v553_v45 = vadd.f32 %v1275_v41, %v552_v43  ;;  %v404_v46 = vpop.f32.mrb[1].mxu0  ;;  %v554_v47 = vpop.f32.mrb[1].mxu1 }
 0x11d   : > { %v701_v48 = vmax.f32 %v403_v44, 0.0  ;;  %v731_v49 = vmax.f32 %v553_v45, 0.0 }
 0x11e   : > { %v407_v50 = vpop.f32.mrb[2].mxu0  ;;  %v557_v51 = vpop.f32.mrb[2].mxu1 }
 0x11f   : > { %762 = vst.msk [vmem:[%s1283_s30] sm:$0xff] %vm761_vm0, %v701_v48  ;;  %792 = vst.msk [vmem:[%s1283_s30 + $0xf0] sm:$0xff] %vm761_vm0, %v731_v49  ;;  %v408_v52 = vadd.f32 %v1275_v41, %v407_v50  ;;  %v558_v53 = vadd.f32 %v1275_v41, %v557_v51  ;;  %v409_v54 = vpop.f32.mrb[3].mxu0  ;;  %v559_v55 = vpop.f32.mrb[3].mxu1 }
 0x121   : > { %v702_v56 = vmax.f32 %v408_v52, 0.0  ;;  %v732_v57 = vmax.f32 %v558_v53, 0.0 }
 0x122   : > { %v412_v58 = vpop.f32.mrb[4].mxu0  ;;  %v562_v59 = vpop.f32.mrb[4].mxu1 }
 0x123   : > { %763 = vst.msk [vmem:[%s1283_s30 + $0x8] sm:$0xff] %vm761_vm0, %v702_v56  ;;  %793 = vst.msk [vmem:[%s1283_s30 + $0xf8] sm:$0xff] %vm761_vm0, %v732_v57  ;;  %v413_v60 = vadd.f32 %v1275_v41, %v412_v58  ;;  %v563_v61 = vadd.f32 %v1275_v41, %v562_v59  ;;  %v414_v62 = vpop.f32.mrb[5].mxu0  ;;  %v564_v63 = vpop.f32.mrb[5].mxu1 }
 0x125   : > { %v703_v0 = vmax.f32 %v413_v60, 0.0  ;;  %v733_v1 = vmax.f32 %v563_v61, 0.0 }
 0x126   : > { %v417_v2 = vpop.f32.mrb[6].mxu0  ;;  %v567_v3 = vpop.f32.mrb[6].mxu1 }
 0x127   : > { %764 = vst.msk [vmem:[%s1283_s30 + $0x10] sm:$0xff] %vm761_vm0, %v703_v0  ;;  %794 = vst.msk [vmem:[%s1283_s30 + $0x100] sm:$0xff] %vm761_vm0, %v733_v1  ;;  %v418_v4 = vadd.f32 %v1275_v41, %v417_v2  ;;  %v568_v5 = vadd.f32 %v1275_v41, %v567_v3  ;;  %v419_v6 = vpop.f32.mrb[7].mxu0  ;;  %v569_v7 = vpop.f32.mrb[7].mxu1 }
 0x129   : > { %v704_v8 = vmax.f32 %v418_v4, 0.0  ;;  %v734_v9 = vmax.f32 %v568_v5, 0.0 }
 0x12a   : > { %v422_v10 = vpop.f32.mrb[8].mxu0  ;;  %v572_v11 = vpop.f32.mrb[8].mxu1 }
 0x12b   : > { %765 = vst.msk [vmem:[%s1283_s30 + $0x18] sm:$0xff] %vm761_vm0, %v704_v8  ;;  %795 = vst.msk [vmem:[%s1283_s30 + $0x108] sm:$0xff] %vm761_vm0, %v734_v9  ;;  %v423_v12 = vadd.f32 %v1275_v41, %v422_v10  ;;  %v573_v13 = vadd.f32 %v1275_v41, %v572_v11  ;;  %v424_v14 = vpop.f32.mrb[9].mxu0  ;;  %v574_v15 = vpop.f32.mrb[9].mxu1 }
 0x12d   : > { %v705_v16 = vmax.f32 %v423_v12, 0.0  ;;  %v735_v17 = vmax.f32 %v573_v13, 0.0 }
 0x12e   : > { %v427_v18 = vpop.f32.mrb[10].mxu0  ;;  %v577_v19 = vpop.f32.mrb[10].mxu1 }
 0x12f   : > { %766 = vst.msk [vmem:[%s1283_s30 + $0x20] sm:$0xff] %vm761_vm0, %v705_v16  ;;  %796 = vst.msk [vmem:[%s1283_s30 + $0x110] sm:$0xff] %vm761_vm0, %v735_v17  ;;  %v428_v20 = vadd.f32 %v1275_v41, %v427_v18  ;;  %v578_v21 = vadd.f32 %v1275_v41, %v577_v19  ;;  %v429_v22 = vpop.f32.mrb[11].mxu0  ;;  %v579_v23 = vpop.f32.mrb[11].mxu1 }
 0x131   : > { %v706_v24 = vmax.f32 %v428_v20, 0.0  ;;  %v736_v25 = vmax.f32 %v578_v21, 0.0 }
 0x132   : > { %v432_v26 = vpop.f32.mrb[12].mxu0  ;;  %v582_v27 = vpop.f32.mrb[12].mxu1 }
 0x133   : > { %767 = vst.msk [vmem:[%s1283_s30 + $0x28] sm:$0xff] %vm761_vm0, %v706_v24  ;;  %797 = vst.msk [vmem:[%s1283_s30 + $0x118] sm:$0xff] %vm761_vm0, %v736_v25  ;;  %v433_v28 = vadd.f32 %v1275_v41, %v432_v26  ;;  %v583_v29 = vadd.f32 %v1275_v41, %v582_v27  ;;  %v434_v30 = vpop.f32.mrb[13].mxu0  ;;  %v584_v31 = vpop.f32.mrb[13].mxu1 }
 0x135   : > { %v707_v32 = vmax.f32 %v433_v28, 0.0  ;;  %v737_v33 = vmax.f32 %v583_v29, 0.0 }
 0x136   : > { %v437_v34 = vpop.f32.mrb[14].mxu0  ;;  %v587_v35 = vpop.f32.mrb[14].mxu1 }
 0x137   : > { %768 = vst.msk [vmem:[%s1283_s30 + $0x30] sm:$0xff] %vm761_vm0, %v707_v32  ;;  %798 = vst.msk [vmem:[%s1283_s30 + $0x120] sm:$0xff] %vm761_vm0, %v737_v33  ;;  %v438_v36 = vadd.f32 %v1275_v41, %v437_v34  ;;  %v588_v37 = vadd.f32 %v1275_v41, %v587_v35  ;;  %v439_v38 = vpop.f32.mrb[15].mxu0  ;;  %v589_v39 = vpop.f32.mrb[15].mxu1 }
 0x139   : > { %v708_v40 = vmax.f32 %v438_v36, 0.0  ;;  %v738_v42 = vmax.f32 %v588_v37, 0.0 }
 0x13a   : > { %v442_v43 = vpop.f32.mrb[16].mxu0  ;;  %v592_v44 = vpop.f32.mrb[16].mxu1 }
 0x13b   : > { %769 = vst.msk [vmem:[%s1283_s30 + $0x38] sm:$0xff] %vm761_vm0, %v708_v40  ;;  %799 = vst.msk [vmem:[%s1283_s30 + $0x128] sm:$0xff] %vm761_vm0, %v738_v42  ;;  %v443_v45 = vadd.f32 %v1275_v41, %v442_v43  ;;  %v593_v46 = vadd.f32 %v1275_v41, %v592_v44  ;;  %v444_v47 = vpop.f32.mrb[17].mxu0  ;;  %v594_v48 = vpop.f32.mrb[17].mxu1 }
 0x13d   : > { %v709_v49 = vmax.f32 %v443_v45, 0.0  ;;  %v739_v50 = vmax.f32 %v593_v46, 0.0 }
 0x13e   : > { %v447_v51 = vpop.f32.mrb[18].mxu0  ;;  %v597_v52 = vpop.f32.mrb[18].mxu1 }
 0x13f   : > { %770 = vst.msk [vmem:[%s1283_s30 + $0x40] sm:$0xff] %vm761_vm0, %v709_v49  ;;  %800 = vst.msk [vmem:[%s1283_s30 + $0x130] sm:$0xff] %vm761_vm0, %v739_v50  ;;  %v448_v53 = vadd.f32 %v1275_v41, %v447_v51  ;;  %v598_v54 = vadd.f32 %v1275_v41, %v597_v52  ;;  %v449_v55 = vpop.f32.mrb[19].mxu0  ;;  %v599_v56 = vpop.f32.mrb[19].mxu1 }
 0x141   : > { %v710_v57 = vmax.f32 %v448_v53, 0.0  ;;  %v740_v58 = vmax.f32 %v598_v54, 0.0 }
 0x142   : > { %v452_v59 = vpop.f32.mrb[20].mxu0  ;;  %v602_v60 = vpop.f32.mrb[20].mxu1 }
 0x143   : > { %771 = vst.msk [vmem:[%s1283_s30 + $0x48] sm:$0xff] %vm761_vm0, %v710_v57  ;;  %801 = vst.msk [vmem:[%s1283_s30 + $0x138] sm:$0xff] %vm761_vm0, %v740_v58  ;;  %v453_v61 = vadd.f32 %v1275_v41, %v452_v59  ;;  %v603_v62 = vadd.f32 %v1275_v41, %v602_v60  ;;  %v454_v63 = vpop.f32.mrb[21].mxu0  ;;  %v604_v0 = vpop.f32.mrb[21].mxu1 }
 0x145   : > { %v711_v1 = vmax.f32 %v453_v61, 0.0  ;;  %v741_v2 = vmax.f32 %v603_v62, 0.0 }
 0x146   : > { %v457_v3 = vpop.f32.mrb[22].mxu0  ;;  %v607_v4 = vpop.f32.mrb[22].mxu1 }
 0x147   : > { %772 = vst.msk [vmem:[%s1283_s30 + $0x50] sm:$0xff] %vm761_vm0, %v711_v1  ;;  %802 = vst.msk [vmem:[%s1283_s30 + $0x140] sm:$0xff] %vm761_vm0, %v741_v2  ;;  %v458_v5 = vadd.f32 %v1275_v41, %v457_v3  ;;  %v608_v6 = vadd.f32 %v1275_v41, %v607_v4  ;;  %v459_v7 = vpop.f32.mrb[23].mxu0  ;;  %v609_v8 = vpop.f32.mrb[23].mxu1 }
 0x149   : > { %v712_v9 = vmax.f32 %v458_v5, 0.0  ;;  %v742_v10 = vmax.f32 %v608_v6, 0.0 }
 0x14a   : > { %v462_v11 = vpop.f32.mrb[24].mxu0  ;;  %v612_v12 = vpop.f32.mrb[24].mxu1 }
 0x14b   : > { %773 = vst.msk [vmem:[%s1283_s30 + $0x58] sm:$0xff] %vm761_vm0, %v712_v9  ;;  %803 = vst.msk [vmem:[%s1283_s30 + $0x148] sm:$0xff] %vm761_vm0, %v742_v10  ;;  %v463_v13 = vadd.f32 %v1275_v41, %v462_v11  ;;  %v613_v14 = vadd.f32 %v1275_v41, %v612_v12  ;;  %v464_v15 = vpop.f32.mrb[25].mxu0  ;;  %v614_v16 = vpop.f32.mrb[25].mxu1 }
 0x14d   : > { %v713_v17 = vmax.f32 %v463_v13, 0.0  ;;  %v743_v18 = vmax.f32 %v613_v14, 0.0 }
 0x14e   : > { %v467_v19 = vpop.f32.mrb[26].mxu0  ;;  %v617_v20 = vpop.f32.mrb[26].mxu1 }
 0x14f   : > { %774 = vst.msk [vmem:[%s1283_s30 + $0x60] sm:$0xff] %vm761_vm0, %v713_v17  ;;  %804 = vst.msk [vmem:[%s1283_s30 + $0x150] sm:$0xff] %vm761_vm0, %v743_v18  ;;  %v468_v21 = vadd.f32 %v1275_v41, %v467_v19  ;;  %v618_v22 = vadd.f32 %v1275_v41, %v617_v20  ;;  %v469_v23 = vpop.f32.mrb[27].mxu0  ;;  %v619_v24 = vpop.f32.mrb[27].mxu1 }
 0x151   : > { %v714_v25 = vmax.f32 %v468_v21, 0.0  ;;  %v744_v26 = vmax.f32 %v618_v22, 0.0 }
 0x152   : > { %v472_v27 = vpop.f32.mrb[28].mxu0  ;;  %v622_v28 = vpop.f32.mrb[28].mxu1 }
 0x153   : > { %775 = vst.msk [vmem:[%s1283_s30 + $0x68] sm:$0xff] %vm761_vm0, %v714_v25  ;;  %805 = vst.msk [vmem:[%s1283_s30 + $0x158] sm:$0xff] %vm761_vm0, %v744_v26  ;;  %v473_v29 = vadd.f32 %v1275_v41, %v472_v27  ;;  %v623_v30 = vadd.f32 %v1275_v41, %v622_v28  ;;  %v474_v31 = vpop.f32.mrb[29].mxu0  ;;  %v624_v32 = vpop.f32.mrb[29].mxu1 }
 0x155   : > { %v715_v33 = vmax.f32 %v473_v29, 0.0  ;;  %v745_v34 = vmax.f32 %v623_v30, 0.0 }
 0x156   : > { %v477_v35 = vpop.f32.mrb[30].mxu0  ;;  %v627_v36 = vpop.f32.mrb[30].mxu1 }
 0x157   : > { %776 = vst.msk [vmem:[%s1283_s30 + $0x70] sm:$0xff] %vm761_vm0, %v715_v33  ;;  %806 = vst.msk [vmem:[%s1283_s30 + $0x160] sm:$0xff] %vm761_vm0, %v745_v34  ;;  %v478_v37 = vadd.f32 %v1275_v41, %v477_v35  ;;  %v628_v38 = vadd.f32 %v1275_v41, %v627_v36  ;;  %v479_v39 = vpop.f32.mrb[31].mxu0  ;;  %v629_v40 = vpop.f32.mrb[31].mxu1 }
 0x159   : > { %v716_v42 = vmax.f32 %v478_v37, 0.0  ;;  %v746_v43 = vmax.f32 %v628_v38, 0.0 }
 0x15a   : > { %v482_v44 = vpop.f32.mrb[32].mxu0  ;;  %v632_v45 = vpop.f32.mrb[32].mxu1 }
 0x15b   : > { %777 = vst.msk [vmem:[%s1283_s30 + $0x78] sm:$0xff] %vm761_vm0, %v716_v42  ;;  %807 = vst.msk [vmem:[%s1283_s30 + $0x168] sm:$0xff] %vm761_vm0, %v746_v43  ;;  %v483_v46 = vadd.f32 %v1275_v41, %v482_v44  ;;  %v633_v47 = vadd.f32 %v1275_v41, %v632_v45  ;;  %v484_v48 = vpop.f32.mrb[33].mxu0  ;;  %v634_v49 = vpop.f32.mrb[33].mxu1 }
 0x15d   : > { %v717_v50 = vmax.f32 %v483_v46, 0.0  ;;  %v747_v51 = vmax.f32 %v633_v47, 0.0 }
 0x15e   : > { %v487_v52 = vpop.f32.mrb[34].mxu0  ;;  %v637_v53 = vpop.f32.mrb[34].mxu1 }
 0x15f   : > { %778 = vst.msk [vmem:[%s1283_s30 + $0x80] sm:$0xff] %vm761_vm0, %v717_v50  ;;  %808 = vst.msk [vmem:[%s1283_s30 + $0x170] sm:$0xff] %vm761_vm0, %v747_v51  ;;  %v488_v54 = vadd.f32 %v1275_v41, %v487_v52  ;;  %v638_v55 = vadd.f32 %v1275_v41, %v637_v53  ;;  %v489_v56 = vpop.f32.mrb[35].mxu0  ;;  %v639_v57 = vpop.f32.mrb[35].mxu1 }
 0x161   : > { %v718_v58 = vmax.f32 %v488_v54, 0.0  ;;  %v748_v59 = vmax.f32 %v638_v55, 0.0 }
 0x162   : > { %v492_v60 = vpop.f32.mrb[36].mxu0  ;;  %v642_v61 = vpop.f32.mrb[36].mxu1 }
 0x163   : > { %779 = vst.msk [vmem:[%s1283_s30 + $0x88] sm:$0xff] %vm761_vm0, %v718_v58  ;;  %809 = vst.msk [vmem:[%s1283_s30 + $0x178] sm:$0xff] %vm761_vm0, %v748_v59  ;;  %v493_v62 = vadd.f32 %v1275_v41, %v492_v60  ;;  %v643_v63 = vadd.f32 %v1275_v41, %v642_v61  ;;  %v494_v0 = vpop.f32.mrb[37].mxu0  ;;  %v644_v1 = vpop.f32.mrb[37].mxu1 }
 0x165   : > { %v719_v2 = vmax.f32 %v493_v62, 0.0  ;;  %v749_v3 = vmax.f32 %v643_v63, 0.0 }
 0x166   : > { %v497_v4 = vpop.f32.mrb[38].mxu0  ;;  %v647_v5 = vpop.f32.mrb[38].mxu1 }
 0x167   : > { %780 = vst.msk [vmem:[%s1283_s30 + $0x90] sm:$0xff] %vm761_vm0, %v719_v2  ;;  %810 = vst.msk [vmem:[%s1283_s30 + $0x180] sm:$0xff] %vm761_vm0, %v749_v3  ;;  %v498_v6 = vadd.f32 %v1275_v41, %v497_v4  ;;  %v648_v7 = vadd.f32 %v1275_v41, %v647_v5  ;;  %v499_v8 = vpop.f32.mrb[39].mxu0  ;;  %v649_v9 = vpop.f32.mrb[39].mxu1 }
 0x169   : > { %v720_v10 = vmax.f32 %v498_v6, 0.0  ;;  %v750_v11 = vmax.f32 %v648_v7, 0.0 }
 0x16a   : > { %v502_v12 = vpop.f32.mrb[40].mxu0  ;;  %v652_v13 = vpop.f32.mrb[40].mxu1 }
 0x16b   : > { %781 = vst.msk [vmem:[%s1283_s30 + $0x98] sm:$0xff] %vm761_vm0, %v720_v10  ;;  %811 = vst.msk [vmem:[%s1283_s30 + $0x188] sm:$0xff] %vm761_vm0, %v750_v11  ;;  %v503_v14 = vadd.f32 %v1275_v41, %v502_v12  ;;  %v653_v15 = vadd.f32 %v1275_v41, %v652_v13  ;;  %v504_v16 = vpop.f32.mrb[41].mxu0  ;;  %v654_v17 = vpop.f32.mrb[41].mxu1 }
 0x16d   : > { %v721_v18 = vmax.f32 %v503_v14, 0.0  ;;  %v751_v19 = vmax.f32 %v653_v15, 0.0 }
 0x16e   : > { %v507_v20 = vpop.f32.mrb[42].mxu0  ;;  %v657_v21 = vpop.f32.mrb[42].mxu1 }
 0x16f   : > { %782 = vst.msk [vmem:[%s1283_s30 + $0xa0] sm:$0xff] %vm761_vm0, %v721_v18  ;;  %812 = vst.msk [vmem:[%s1283_s30 + $0x190] sm:$0xff] %vm761_vm0, %v751_v19  ;;  %v508_v22 = vadd.f32 %v1275_v41, %v507_v20  ;;  %v658_v23 = vadd.f32 %v1275_v41, %v657_v21  ;;  %v509_v24 = vpop.f32.mrb[43].mxu0  ;;  %v659_v25 = vpop.f32.mrb[43].mxu1 }
 0x171   : > { %v722_v26 = vmax.f32 %v508_v22, 0.0  ;;  %v752_v27 = vmax.f32 %v658_v23, 0.0 }
 0x172   : > { %v512_v28 = vpop.f32.mrb[44].mxu0  ;;  %v662_v29 = vpop.f32.mrb[44].mxu1 }
 0x173   : > { %783 = vst.msk [vmem:[%s1283_s30 + $0xa8] sm:$0xff] %vm761_vm0, %v722_v26  ;;  %813 = vst.msk [vmem:[%s1283_s30 + $0x198] sm:$0xff] %vm761_vm0, %v752_v27  ;;  %v513_v30 = vadd.f32 %v1275_v41, %v512_v28  ;;  %v663_v31 = vadd.f32 %v1275_v41, %v662_v29  ;;  %v514_v32 = vpop.f32.mrb[45].mxu0  ;;  %v664_v33 = vpop.f32.mrb[45].mxu1 }
 0x175   : > { %v723_v34 = vmax.f32 %v513_v30, 0.0  ;;  %v753_v35 = vmax.f32 %v663_v31, 0.0 }
 0x176   : > { %v517_v36 = vpop.f32.mrb[46].mxu0  ;;  %v667_v37 = vpop.f32.mrb[46].mxu1 }
 0x177   : > { %784 = vst.msk [vmem:[%s1283_s30 + $0xb0] sm:$0xff] %vm761_vm0, %v723_v34  ;;  %814 = vst.msk [vmem:[%s1283_s30 + $0x1a0] sm:$0xff] %vm761_vm0, %v753_v35  ;;  %v518_v38 = vadd.f32 %v1275_v41, %v517_v36  ;;  %v668_v39 = vadd.f32 %v1275_v41, %v667_v37  ;;  %v519_v40 = vpop.f32.mrb[47].mxu0  ;;  %v669_v42 = vpop.f32.mrb[47].mxu1 }
 0x179   : > { %v724_v43 = vmax.f32 %v518_v38, 0.0  ;;  %v754_v44 = vmax.f32 %v668_v39, 0.0 }
 0x17a   : > { %v522_v45 = vpop.f32.mrb[48].mxu0  ;;  %v672_v46 = vpop.f32.mrb[48].mxu1 }
 0x17b   : > { %785 = vst.msk [vmem:[%s1283_s30 + $0xb8] sm:$0xff] %vm761_vm0, %v724_v43  ;;  %815 = vst.msk [vmem:[%s1283_s30 + $0x1a8] sm:$0xff] %vm761_vm0, %v754_v44  ;;  %v523_v47 = vadd.f32 %v1275_v41, %v522_v45  ;;  %v673_v48 = vadd.f32 %v1275_v41, %v672_v46  ;;  %v524_v49 = vpop.f32.mrb[49].mxu0  ;;  %v674_v50 = vpop.f32.mrb[49].mxu1 }
 0x17d   : > { %v725_v51 = vmax.f32 %v523_v47, 0.0  ;;  %v755_v52 = vmax.f32 %v673_v48, 0.0 }
 0x17e   : > { %v527_v53 = vpop.f32.mrb[50].mxu0  ;;  %v677_v54 = vpop.f32.mrb[50].mxu1 }
 0x17f   : > { %786 = vst.msk [vmem:[%s1283_s30 + $0xc0] sm:$0xff] %vm761_vm0, %v725_v51  ;;  %816 = vst.msk [vmem:[%s1283_s30 + $0x1b0] sm:$0xff] %vm761_vm0, %v755_v52  ;;  %v528_v55 = vadd.f32 %v1275_v41, %v527_v53  ;;  %v678_v56 = vadd.f32 %v1275_v41, %v677_v54  ;;  %v529_v57 = vpop.f32.mrb[51].mxu0  ;;  %v679_v58 = vpop.f32.mrb[51].mxu1 }
 0x181   : > { %v726_v59 = vmax.f32 %v528_v55, 0.0  ;;  %v756_v60 = vmax.f32 %v678_v56, 0.0 }
 0x182   : > { %v532_v61 = vpop.f32.mrb[52].mxu0  ;;  %v682_v62 = vpop.f32.mrb[52].mxu1 }
 0x183   : > { %787 = vst.msk [vmem:[%s1283_s30 + $0xc8] sm:$0xff] %vm761_vm0, %v726_v59  ;;  %817 = vst.msk [vmem:[%s1283_s30 + $0x1b8] sm:$0xff] %vm761_vm0, %v756_v60  ;;  %v533_v63 = vadd.f32 %v1275_v41, %v532_v61  ;;  %v683_v0 = vadd.f32 %v1275_v41, %v682_v62  ;;  %v534_v1 = vpop.f32.mrb[53].mxu0  ;;  %v684_v2 = vpop.f32.mrb[53].mxu1 }
 0x185   : > { %v727_v3 = vmax.f32 %v533_v63, 0.0  ;;  %v757_v4 = vmax.f32 %v683_v0, 0.0 }
 0x186   : > { %v537_v5 = vpop.f32.mrb[54].mxu0  ;;  %v687_v6 = vpop.f32.mrb[54].mxu1 }
 0x187   : > { %788 = vst.msk [vmem:[%s1283_s30 + $0xd0] sm:$0xff] %vm761_vm0, %v727_v3  ;;  %818 = vst.msk [vmem:[%s1283_s30 + $0x1c0] sm:$0xff] %vm761_vm0, %v757_v4  ;;  %v538_v7 = vadd.f32 %v1275_v41, %v537_v5  ;;  %v688_v8 = vadd.f32 %v1275_v41, %v687_v6  ;;  %v539_v9 = vpop.f32.mrb[55].mxu0  ;;  %v689_v10 = vpop.f32.mrb[55].mxu1 }
 0x189   : > { %v728_v11 = vmax.f32 %v538_v7, 0.0  ;;  %v758_v12 = vmax.f32 %v688_v8, 0.0 }
 0x18a   : > { %v542_v13 = vpop.f32.mrb[56].mxu0  ;;  %v692_v14 = vpop.f32.mrb[56].mxu1 }
 0x18b   : > { %789 = vst.msk [vmem:[%s1283_s30 + $0xd8] sm:$0xff] %vm761_vm0, %v728_v11  ;;  %819 = vst.msk [vmem:[%s1283_s30 + $0x1c8] sm:$0xff] %vm761_vm0, %v758_v12  ;;  %v543_v15 = vadd.f32 %v1275_v41, %v542_v13  ;;  %v693_v16 = vadd.f32 %v1275_v41, %v692_v14  ;;  %v544_v17 = vpop.f32.mrb[57].mxu0  ;;  %v694_v18 = vpop.f32.mrb[57].mxu1 }
 0x18d   : > { %v729_v19 = vmax.f32 %v543_v15, 0.0  ;;  %v759_v20 = vmax.f32 %v693_v16, 0.0 }
 0x18e   : > { %v547_v21 = vpop.f32.mrb[58].mxu0  ;;  %v697_v22 = vpop.f32.mrb[58].mxu1 }
 0x18f   : > { %790 = vst.msk [vmem:[%s1283_s30 + $0xe0] sm:$0xff] %vm761_vm0, %v729_v19  ;;  %820 = vst.msk [vmem:[%s1283_s30 + $0x1d0] sm:$0xff] %vm761_vm0, %v759_v20  ;;  %v548_v23 = vadd.f32 %v1275_v41, %v547_v21  ;;  %v698_v24 = vadd.f32 %v1275_v41, %v697_v22  ;;  %v549_v25 = vpop.f32.mrb[59].mxu0  ;;  %v699_v26 = vpop.f32.mrb[59].mxu1 }
 0x191   : > { %v730_v27 = vmax.f32 %v548_v23, 0.0  ;;  %v760_v28 = vmax.f32 %v698_v24, 0.0 }
 0x193   : > { %791 = vst.msk [vmem:[%s1283_s30 + $0xe8] sm:$0xff] %vm761_vm0, %v730_v27  ;;  %821 = vst.msk [vmem:[%s1283_s30 + $0x1d8] sm:$0xff] %vm761_vm0, %v760_v28 }
 0x194 PF: > { %s13_s12 = sadd.s32 1, %s985_s12  }
 0x195   : > { %p10_p4 = scmp.ge.s32.totalorder %s13_s12, 7  }
 0x197   :  { %12 = sbr.rel (!%p10_p4) target bundleno = 1 (0x1), region = 62 }

// kernel: gpt_forward.6
= control target key start
LH: loop header
LB: loop body
LE: loop exit
PB: predicated region body
PF: predicated region fallthrough
CT: control target
= control target key end

     0   :  { %v1418_v0 = vmov 0.0|0.0   ;;  %vm1130_vm0 = vcmask 523264   ;;  %vm1191_vm1 = vcmask 521216   ;;  %s2702_s1 = inlined_call_operand.vmem [shape: f32[512,64], index: 1, kind: input, shape index: {}]   ;;  %s2703_s0 = inlined_call_operand.vmem [shape: f32[486,512], index: 0, kind: input, shape index: {}]   ;;  %s2704_s2 = inlined_call_operand.vmem [shape: f32[1,64], index: 2, kind: input, shape index: {}]   ;;  %s2705_s3 = inlined_call_operand.vmem [shape: f32[486,64], index: 3, kind: output, shape index: {}]  }
   0x1   :  { %1198 = vmatprep.subr.bf16.mxu1 %v1418_v0  ;;  %v258_v1 = vld [vmem:[%s2702_s1] sm:$0xff]  ;;  %v259_v2 = vld [vmem:[%s2702_s1 + $0x8] sm:$0xff]  ;;  %1246 = vmatprep.subr.bf16.mxu0 %v1418_v0  ;;  %v260_v6 = vld [vmem:[%s2702_s1 + $0x10] sm:$0xff] }
   0x2   :  { %v290_v3 = vld [vmem:[%s2702_s1 + $0x100] sm:$0xff]  ;;  %v1199_v4 = vpack.c.bf16 %v259_v2, %v258_v1  ;;  %v291_v5 = vld [vmem:[%s2702_s1 + $0x108] sm:$0xff]  ;;  %v261_v7 = vld [vmem:[%s2702_s1 + $0x18] sm:$0xff] }
   0x3   :  { %v1247_v8 = vpack.c.bf16 %v291_v5, %v290_v3  ;;  %v292_v9 = vld [vmem:[%s2702_s1 + $0x110] sm:$0xff]  ;;  %v293_v10 = vld [vmem:[%s2702_s1 + $0x118] sm:$0xff]  ;;  %v1202_v11 = vpack.c.bf16 %v261_v7, %v260_v6  ;;  %v262_v13 = vld [vmem:[%s2702_s1 + $0x20] sm:$0xff] }
   0x4   :  { %1200 = vmatpush1.bf16.msra.mxu1 %v1199_v4  ;;  %v1250_v12 = vpack.c.bf16 %v293_v10, %v292_v9  ;;  %v263_v14 = vld [vmem:[%s2702_s1 + $0x28] sm:$0xff]  ;;  %v294_v15 = vld [vmem:[%s2702_s1 + $0x120] sm:$0xff]  ;;  %v264_v19 = vld [vmem:[%s2702_s1 + $0x30] sm:$0xff] }
   0x5   :  { %1248 = vmatpush1.bf16.msra.mxu0 %v1247_v8  ;;  %1201 = vmatprep.subr.bf16.mxu1 %v1418_v0  ;;  %v295_v16 = vld [vmem:[%s2702_s1 + $0x128] sm:$0xff]  ;;  %v1205_v17 = vpack.c.bf16 %v263_v14, %v262_v13  ;;  %v265_v20 = vld [vmem:[%s2702_s1 + $0x38] sm:$0xff]  ;;  %v296_v21 = vld [vmem:[%s2702_s1 + $0x130] sm:$0xff] }
   0x6   :  { %1249 = vmatprep.subr.bf16.mxu0 %v1418_v0  ;;  %v1253_v18 = vpack.c.bf16 %v295_v16, %v294_v15  ;;  %v297_v22 = vld [vmem:[%s2702_s1 + $0x138] sm:$0xff]  ;;  %v1208_v23 = vpack.c.bf16 %v265_v20, %v264_v19  ;;  %v266_v25 = vld [vmem:[%s2702_s1 + $0x40] sm:$0xff]  ;;  %v267_v26 = vld [vmem:[%s2702_s1 + $0x48] sm:$0xff] }
   0x7   :  { %v1256_v24 = vpack.c.bf16 %v297_v22, %v296_v21  ;;  %v298_v27 = vld [vmem:[%s2702_s1 + $0x140] sm:$0xff]  ;;  %v299_v28 = vld [vmem:[%s2702_s1 + $0x148] sm:$0xff]  ;;  %v1211_v29 = vpack.c.bf16 %v267_v26, %v266_v25  ;;  %v268_v31 = vld [vmem:[%s2702_s1 + $0x50] sm:$0xff] }
   0x8   :  { %1203 = vmatpush1.bf16.msra.mxu1 %v1202_v11  ;;  %v1259_v30 = vpack.c.bf16 %v299_v28, %v298_v27  ;;  %v269_v32 = vld [vmem:[%s2702_s1 + $0x58] sm:$0xff]  ;;  %v300_v33 = vld [vmem:[%s2702_s1 + $0x150] sm:$0xff]  ;;  %v270_v37 = vld [vmem:[%s2702_s1 + $0x60] sm:$0xff] }
   0x9   :  { %1251 = vmatpush1.bf16.msra.mxu0 %v1250_v12  ;;  %1204 = vmatprep.subr.bf16.mxu1 %v1418_v0  ;;  %v301_v34 = vld [vmem:[%s2702_s1 + $0x158] sm:$0xff]  ;;  %v1214_v35 = vpack.c.bf16 %v269_v32, %v268_v31  ;;  %v271_v38 = vld [vmem:[%s2702_s1 + $0x68] sm:$0xff]  ;;  %v302_v39 = vld [vmem:[%s2702_s1 + $0x160] sm:$0xff] }
   0xa   :  { %1252 = vmatprep.subr.bf16.mxu0 %v1418_v0  ;;  %v1262_v36 = vpack.c.bf16 %v301_v34, %v300_v33  ;;  %v303_v40 = vld [vmem:[%s2702_s1 + $0x168] sm:$0xff]  ;;  %v17_v42 = vld [vmem:[%s2703_s0 + $0x18] sm:$0xff]  ;;  %v1217_v43 = vpack.c.bf16 %v271_v38, %v270_v37  ;;  %v272_v45 = vld [vmem:[%s2702_s1 + $0x70] sm:$0xff] }
   0xb   :  { %v15_v41 = vld [vmem:[%s2703_s0 + $0x8] sm:$0xff]  ;;  %763 = vmatprep.mubr.f32.mxu0 %v17_v42  ;;  %v1265_v44 = vpack.c.bf16 %v303_v40, %v302_v39  ;;  %v273_v46 = vld [vmem:[%s2702_s1 + $0x78] sm:$0xff]  ;;  %v304_v47 = vld [vmem:[%s2702_s1 + $0x170] sm:$0xff] }
   0xc   :  { %1206 = vmatpush1.bf16.msra.mxu1 %v1205_v17  ;;  %393 = vmatprep.mubr.f32.mxu1 %v15_v41  ;;  %v305_v48 = vld [vmem:[%s2702_s1 + $0x178] sm:$0xff]  ;;  %v1220_v49 = vpack.c.bf16 %v273_v46, %v272_v45  ;;  %v274_v51 = vld [vmem:[%s2702_s1 + $0x80] sm:$0xff]  ;;  %v275_v52 = vld [vmem:[%s2702_s1 + $0x88] sm:$0xff] }
   0xd   :  { %1254 = vmatpush1.bf16.msra.mxu0 %v1253_v18  ;;  %1207 = vmatprep.subr.bf16.mxu1 %v1418_v0  ;;  %v1268_v50 = vpack.c.bf16 %v305_v48, %v304_v47  ;;  %v306_v53 = vld [vmem:[%s2702_s1 + $0x180] sm:$0xff]  ;;  %v307_v54 = vld [vmem:[%s2702_s1 + $0x188] sm:$0xff]  ;;  %v1223_v55 = vpack.c.bf16 %v275_v52, %v274_v51  ;;  %v276_v57 = vld [vmem:[%s2702_s1 + $0x90] sm:$0xff] }
   0xe   :  { %1255 = vmatprep.subr.bf16.mxu0 %v1418_v0  ;;  %v1271_v56 = vpack.c.bf16 %v307_v54, %v306_v53  ;;  %v277_v58 = vld [vmem:[%s2702_s1 + $0x98] sm:$0xff]  ;;  %v308_v59 = vld [vmem:[%s2702_s1 + $0x190] sm:$0xff]  ;;  %v278_v63 = vld [vmem:[%s2702_s1 + $0xa0] sm:$0xff] }
   0xf   :  { %v309_v60 = vld [vmem:[%s2702_s1 + $0x198] sm:$0xff]  ;;  %v1226_v61 = vpack.c.bf16 %v277_v58, %v276_v57  ;;  %v279_v1 = vld [vmem:[%s2702_s1 + $0xa8] sm:$0xff]  ;;  %v310_v2 = vld [vmem:[%s2702_s1 + $0x1a0] sm:$0xff] }
  0x10   :  { %1209 = vmatpush1.bf16.msra.mxu1 %v1208_v23  ;;  %v1274_v62 = vpack.c.bf16 %v309_v60, %v308_v59  ;;  %v311_v3 = vld [vmem:[%s2702_s1 + $0x1a8] sm:$0xff]  ;;  %v1229_v4 = vpack.c.bf16 %v279_v1, %v278_v63  ;;  %v280_v6 = vld [vmem:[%s2702_s1 + $0xb0] sm:$0xff]  ;;  %v281_v7 = vld [vmem:[%s2702_s1 + $0xb8] sm:$0xff] }
  0x11   :  { %1257 = vmatpush1.bf16.msra.mxu0 %v1256_v24  ;;  %1210 = vmatprep.subr.bf16.mxu1 %v1418_v0  ;;  %v1277_v5 = vpack.c.bf16 %v311_v3, %v310_v2  ;;  %v312_v8 = vld [vmem:[%s2702_s1 + $0x1b0] sm:$0xff]  ;;  %v313_v9 = vld [vmem:[%s2702_s1 + $0x1b8] sm:$0xff]  ;;  %v1232_v10 = vpack.c.bf16 %v281_v7, %v280_v6  ;;  %v282_v12 = vld [vmem:[%s2702_s1 + $0xc0] sm:$0xff] }
  0x12   :  { %1258 = vmatprep.subr.bf16.mxu0 %v1418_v0  ;;  %v1280_v11 = vpack.c.bf16 %v313_v9, %v312_v8  ;;  %v283_v13 = vld [vmem:[%s2702_s1 + $0xc8] sm:$0xff]  ;;  %v314_v14 = vld [vmem:[%s2702_s1 + $0x1c0] sm:$0xff]  ;;  %v284_v18 = vld [vmem:[%s2702_s1 + $0xd0] sm:$0xff] }
  0x13   :  { %v315_v15 = vld [vmem:[%s2702_s1 + $0x1c8] sm:$0xff]  ;;  %v1235_v16 = vpack.c.bf16 %v283_v13, %v282_v12  ;;  %v285_v19 = vld [vmem:[%s2702_s1 + $0xd8] sm:$0xff]  ;;  %v316_v20 = vld [vmem:[%s2702_s1 + $0x1d0] sm:$0xff] }
  0x14   :  { %1212 = vmatpush1.bf16.msra.mxu1 %v1211_v29  ;;  %v1283_v17 = vpack.c.bf16 %v315_v15, %v314_v14  ;;  %v317_v21 = vld [vmem:[%s2702_s1 + $0x1d8] sm:$0xff]  ;;  %v1238_v22 = vpack.c.bf16 %v285_v19, %v284_v18  ;;  %v286_v24 = vld [vmem:[%s2702_s1 + $0xe0] sm:$0xff]  ;;  %v287_v25 = vld [vmem:[%s2702_s1 + $0xe8] sm:$0xff] }
  0x15   :  { %1260 = vmatpush1.bf16.msra.mxu0 %v1259_v30  ;;  %1213 = vmatprep.subr.bf16.mxu1 %v1418_v0  ;;  %v1286_v23 = vpack.c.bf16 %v317_v21, %v316_v20  ;;  %v318_v26 = vld [vmem:[%s2702_s1 + $0x1e0] sm:$0xff]  ;;  %v319_v27 = vld [vmem:[%s2702_s1 + $0x1e8] sm:$0xff]  ;;  %v1241_v28 = vpack.c.bf16 %v287_v25, %v286_v24  ;;  %v288_v30 = vld [vmem:[%s2702_s1 + $0xf0] sm:$0xff] }
  0x16   :  { %1261 = vmatprep.subr.bf16.mxu0 %v1418_v0  ;;  %v1289_v29 = vpack.c.bf16 %v319_v27, %v318_v26  ;;  %v289_v31 = vld [vmem:[%s2702_s1 + $0xf8] sm:$0xff]  ;;  %v320_v32 = vld [vmem:[%s2702_s1 + $0x1f0] sm:$0xff]  ;;  %v19_v38 = vld [vmem:[%s2703_s0 + $0x28] sm:$0xff] }
  0x17   :  { %v321_v33 = vld [vmem:[%s2702_s1 + $0x1f8] sm:$0xff]  ;;  %v1244_v34 = vpack.c.bf16 %v289_v31, %v288_v30  ;;  %v16_v37 = vld [vmem:[%s2703_s0 + $0x10] sm:$0xff]  ;;  %v23_v41 = vld [vmem:[%s2703_s0 + $0x48] sm:$0xff] }
  0x18   :  { %1215 = vmatpush1.bf16.msra.mxu1 %v1214_v35  ;;  %v1292_v35 = vpack.c.bf16 %v321_v33, %v320_v32  ;;  %v21_v39 = vld [vmem:[%s2703_s0 + $0x38] sm:$0xff]  ;;  %v20_v40 = vld [vmem:[%s2703_s0 + $0x30] sm:$0xff]  ;;  %v27_v45 = vld [vmem:[%s2703_s0 + $0x68] sm:$0xff] }
  0x19   :  { %1263 = vmatpush1.bf16.msra.mxu0 %v1262_v36  ;;  %1216 = vmatprep.subr.bf16.mxu1 %v1418_v0  ;;  %v14_v36 = vld [vmem:[%s2703_s0] sm:$0xff]  ;;  %v25_v42 = vld [vmem:[%s2703_s0 + $0x58] sm:$0xff]  ;;  %v28_v48 = vld [vmem:[%s2703_s0 + $0x70] sm:$0xff] }
  0x1a   :  { %1264 = vmatprep.subr.bf16.mxu0 %v1418_v0  ;;  %v29_v46 = vld [vmem:[%s2703_s0 + $0x78] sm:$0xff]  ;;  %v26_v47 = vld [vmem:[%s2703_s0 + $0x60] sm:$0xff]  ;;  %v32_v52 = vld [vmem:[%s2703_s0 + $0x90] sm:$0xff] }
  0x1b   :  { %v30_v51 = vld [vmem:[%s2703_s0 + $0x80] sm:$0xff]  ;;  %v35_v53 = vld [vmem:[%s2703_s0 + $0xa8] sm:$0xff]  ;;  %v37_v54 = vld [vmem:[%s2703_s0 + $0xb8] sm:$0xff] }
  0x1c   :  { %1218 = vmatpush1.bf16.msra.mxu1 %v1217_v43  ;;  %v22_v43 = vld [vmem:[%s2703_s0 + $0x40] sm:$0xff]  ;;  %v39_v57 = vld [vmem:[%s2703_s0 + $0xc8] sm:$0xff]  ;;  %v41_v58 = vld [vmem:[%s2703_s0 + $0xd8] sm:$0xff] }
  0x1d   :  { %1266 = vmatpush1.bf16.msra.mxu0 %v1265_v44  ;;  %1219 = vmatprep.subr.bf16.mxu1 %v1418_v0  ;;  %v24_v44 = vld [vmem:[%s2703_s0 + $0x50] sm:$0xff]  ;;  %v38_v59 = vld [vmem:[%s2703_s0 + $0xc0] sm:$0xff]  ;;  %v47_v2 = vld [vmem:[%s2703_s0 + $0x108] sm:$0xff] }
  0x1e   :  { %1267 = vmatprep.subr.bf16.mxu0 %v1418_v0  ;;  %v40_v60 = vld [vmem:[%s2703_s0 + $0xd0] sm:$0xff]  ;;  %v42_v63 = vld [vmem:[%s2703_s0 + $0xe0] sm:$0xff]  ;;  %v49_v3 = vld [vmem:[%s2703_s0 + $0x118] sm:$0xff] }
  0x1f   :  { %v44_v1 = vld [vmem:[%s2703_s0 + $0xf0] sm:$0xff]  ;;  %v51_v6 = vld [vmem:[%s2703_s0 + $0x128] sm:$0xff]  ;;  %v53_v7 = vld [vmem:[%s2703_s0 + $0x138] sm:$0xff] }
  0x20   :  { %1221 = vmatpush1.bf16.msra.mxu1 %v1220_v49  ;;  %v31_v49 = vld [vmem:[%s2703_s0 + $0x88] sm:$0xff]  ;;  %v50_v8 = vld [vmem:[%s2703_s0 + $0x120] sm:$0xff]  ;;  %v52_v9 = vld [vmem:[%s2703_s0 + $0x130] sm:$0xff] }
  0x21   :  { %1269 = vmatpush1.bf16.msra.mxu0 %v1268_v50  ;;  %1222 = vmatprep.subr.bf16.mxu1 %v1418_v0  ;;  %v33_v50 = vld [vmem:[%s2703_s0 + $0x98] sm:$0xff]  ;;  %v54_v12 = vld [vmem:[%s2703_s0 + $0x140] sm:$0xff]  ;;  %v56_v13 = vld [vmem:[%s2703_s0 + $0x150] sm:$0xff] }
  0x22   :  { %1270 = vmatprep.subr.bf16.mxu0 %v1418_v0  ;;  %v59_v14 = vld [vmem:[%s2703_s0 + $0x168] sm:$0xff]  ;;  %v61_v15 = vld [vmem:[%s2703_s0 + $0x178] sm:$0xff]  ;;  %v62_v20 = vld [vmem:[%s2703_s0 + $0x180] sm:$0xff] }
  0x23   :  { %v63_v18 = vld [vmem:[%s2703_s0 + $0x188] sm:$0xff]  ;;  %v65_v19 = vld [vmem:[%s2703_s0 + $0x198] sm:$0xff]  ;;  %v64_v21 = vld [vmem:[%s2703_s0 + $0x190] sm:$0xff] }
  0x24   :  { %1224 = vmatpush1.bf16.msra.mxu1 %v1223_v55  ;;  %v34_v55 = vld [vmem:[%s2703_s0 + $0xa0] sm:$0xff]  ;;  %v68_v25 = vld [vmem:[%s2703_s0 + $0x1b0] sm:$0xff]  ;;  %v71_v26 = vld [vmem:[%s2703_s0 + $0x1c8] sm:$0xff] }
  0x25   :  { %1272 = vmatpush1.bf16.msra.mxu0 %v1271_v56  ;;  %1225 = vmatprep.subr.bf16.mxu1 %v1418_v0  ;;  %v36_v56 = vld [vmem:[%s2703_s0 + $0xb0] sm:$0xff]  ;;  %v66_v24 = vld [vmem:[%s2703_s0 + $0x1a0] sm:$0xff]  ;;  %v73_v27 = vld [vmem:[%s2703_s0 + $0x1d8] sm:$0xff] }
  0x26   :  { %1273 = vmatprep.subr.bf16.mxu0 %v1418_v0  ;;  %v75_v30 = vld [vmem:[%s2703_s0 + $0x1e8] sm:$0xff]  ;;  %v77_v31 = vld [vmem:[%s2703_s0 + $0x1f8] sm:$0xff]  ;;  %v74_v32 = vld [vmem:[%s2703_s0 + $0x1e0] sm:$0xff] }
  0x27   :  { %v76_v33 = vld [vmem:[%s2703_s0 + $0x1f0] sm:$0xff] }
  0x28   :  { %1227 = vmatpush1.bf16.msra.mxu1 %v1226_v61  ;;  %v43_v61 = vld [vmem:[%s2703_s0 + $0xe8] sm:$0xff] }
  0x29   :  { %1275 = vmatpush1.bf16.msra.mxu0 %v1274_v62  ;;  %1228 = vmatprep.subr.bf16.mxu1 %v1418_v0  ;;  %v45_v62 = vld [vmem:[%s2703_s0 + $0xf8] sm:$0xff] }
  0x2a   :  { %1276 = vmatprep.subr.bf16.mxu0 %v1418_v0 }
  0x2c   :  { %1230 = vmatpush1.bf16.msra.mxu1 %v1229_v4  ;;  %v46_v4 = vld [vmem:[%s2703_s0 + $0x100] sm:$0xff] }
  0x2d   :  { %1278 = vmatpush1.bf16.msra.mxu0 %v1277_v5  ;;  %1231 = vmatprep.subr.bf16.mxu1 %v1418_v0  ;;  %v48_v5 = vld [vmem:[%s2703_s0 + $0x110] sm:$0xff] }
  0x2e   :  { %1279 = vmatprep.subr.bf16.mxu0 %v1418_v0 }
  0x30   :  { %1233 = vmatpush1.bf16.msra.mxu1 %v1232_v10  ;;  %v55_v10 = vld [vmem:[%s2703_s0 + $0x148] sm:$0xff] }
  0x31   :  { %1281 = vmatpush1.bf16.msra.mxu0 %v1280_v11  ;;  %1234 = vmatprep.subr.bf16.mxu1 %v1418_v0  ;;  %v57_v11 = vld [vmem:[%s2703_s0 + $0x158] sm:$0xff] }
  0x32   :  { %1282 = vmatprep.subr.bf16.mxu0 %v1418_v0 }
  0x34   :  { %1236 = vmatpush1.bf16.msra.mxu1 %v1235_v16  ;;  %v58_v16 = vld [vmem:[%s2703_s0 + $0x160] sm:$0xff] }
  0x35   :  { %1284 = vmatpush1.bf16.msra.mxu0 %v1283_v17  ;;  %1237 = vmatprep.subr.bf16.mxu1 %v1418_v0  ;;  %v60_v17 = vld [vmem:[%s2703_s0 + $0x170] sm:$0xff] }
  0x36   :  { %1285 = vmatprep.subr.bf16.mxu0 %v1418_v0 }
  0x38   :  { %1239 = vmatpush1.bf16.msra.mxu1 %v1238_v22  ;;  %v67_v22 = vld [vmem:[%s2703_s0 + $0x1a8] sm:$0xff] }
  0x39   :  { %1287 = vmatpush1.bf16.msra.mxu0 %v1286_v23  ;;  %1240 = vmatprep.subr.bf16.mxu1 %v1418_v0  ;;  %v69_v23 = vld [vmem:[%s2703_s0 + $0x1b8] sm:$0xff] }
  0x3a   :  { %1288 = vmatprep.subr.bf16.mxu0 %v1418_v0 }
  0x3c   :  { %1242 = vmatpush1.bf16.msra.mxu1 %v1241_v28  ;;  %v70_v28 = vld [vmem:[%s2703_s0 + $0x1c0] sm:$0xff] }
  0x3d   :  { %1290 = vmatpush1.bf16.msra.mxu0 %v1289_v29  ;;  %1243 = vmatprep.subr.bf16.mxu1 %v1418_v0  ;;  %v72_v29 = vld [vmem:[%s2703_s0 + $0x1d0] sm:$0xff] }
  0x3e   :  { %1291 = vmatprep.subr.bf16.mxu0 %v1418_v0  ;;  %v18_v0 = vld [vmem:[%s2703_s0 + $0x20] sm:$0xff] }
  0x40   :  { %1245 = vmatpush1.bf16.msra.mxu1 %v1244_v34  ;;  %v79_v34 = vld [vmem:[%s2703_s0 + $0x208] sm:$0xff] }
  0x41   :  { %1293 = vmatpush1.bf16.msra.mxu0 %v1292_v35  ;;  %v81_v35 = vld [vmem:[%s2703_s0 + $0x218] sm:$0xff] }
  0x43   :  { %394 = vmatmul.mubr.f32.vlgmr.msra.gmra.mrb[0].mxu1 %v14_v36  ;;  %v78_v36 = vld [vmem:[%s2703_s0 + $0x200] sm:$0xff] }
  0x44   :  { %764 = vmatmul.mubr.f32.vlgmr.msra.gmra.mrb[0].mxu0 %v16_v37  ;;  %398 = vmatprep.mubr.f32.mxu1 %v19_v38  ;;  %v80_v37 = vld [vmem:[%s2703_s0 + $0x210] sm:$0xff]  ;;  %v83_v38 = vld [vmem:[%s2703_s0 + $0x228] sm:$0xff] }
  0x45   :  { %768 = vmatprep.mubr.f32.mxu0 %v21_v39  ;;  %v85_v39 = vld [vmem:[%s2703_s0 + $0x238] sm:$0xff] }
  0x47   :  { %399 = vmatmul.mubr.f32.gmra.mrb[2].mxu1 %v18_v0  ;;  %v82_v0 = vld [vmem:[%s2703_s0 + $0x220] sm:$0xff] }
  0x48   :  { %769 = vmatmul.mubr.f32.gmra.mrb[2].mxu0 %v20_v40  ;;  %403 = vmatprep.mubr.f32.mxu1 %v23_v41  ;;  %v84_v40 = vld [vmem:[%s2703_s0 + $0x230] sm:$0xff]  ;;  %v87_v41 = vld [vmem:[%s2703_s0 + $0x248] sm:$0xff] }
  0x49   :  { %773 = vmatprep.mubr.f32.mxu0 %v25_v42  ;;  %v89_v42 = vld [vmem:[%s2703_s0 + $0x258] sm:$0xff] }
  0x4b   :  { %404 = vmatmul.mubr.f32.gmra.mrb[4].mxu1 %v22_v43  ;;  %v86_v43 = vld [vmem:[%s2703_s0 + $0x240] sm:$0xff] }
  0x4c   :  { %774 = vmatmul.mubr.f32.gmra.mrb[4].mxu0 %v24_v44  ;;  %408 = vmatprep.mubr.f32.mxu1 %v27_v45  ;;  %v88_v44 = vld [vmem:[%s2703_s0 + $0x250] sm:$0xff]  ;;  %v91_v45 = vld [vmem:[%s2703_s0 + $0x268] sm:$0xff] }
  0x4d   :  { %778 = vmatprep.mubr.f32.mxu0 %v29_v46  ;;  %v93_v46 = vld [vmem:[%s2703_s0 + $0x278] sm:$0xff] }
  0x4f   :  { %409 = vmatmul.mubr.f32.gmra.mrb[6].mxu1 %v26_v47  ;;  %v90_v47 = vld [vmem:[%s2703_s0 + $0x260] sm:$0xff] }
  0x50   :  { %779 = vmatmul.mubr.f32.gmra.mrb[6].mxu0 %v28_v48  ;;  %413 = vmatprep.mubr.f32.mxu1 %v31_v49  ;;  %v92_v48 = vld [vmem:[%s2703_s0 + $0x270] sm:$0xff]  ;;  %v95_v49 = vld [vmem:[%s2703_s0 + $0x288] sm:$0xff] }
  0x51   :  { %783 = vmatprep.mubr.f32.mxu0 %v33_v50  ;;  %v97_v50 = vld [vmem:[%s2703_s0 + $0x298] sm:$0xff] }
  0x53   :  { %414 = vmatmul.mubr.f32.gmra.mrb[8].mxu1 %v30_v51  ;;  %v94_v51 = vld [vmem:[%s2703_s0 + $0x280] sm:$0xff] }
  0x54   :  { %784 = vmatmul.mubr.f32.gmra.mrb[8].mxu0 %v32_v52  ;;  %418 = vmatprep.mubr.f32.mxu1 %v35_v53  ;;  %v96_v52 = vld [vmem:[%s2703_s0 + $0x290] sm:$0xff]  ;;  %v99_v53 = vld [vmem:[%s2703_s0 + $0x2a8] sm:$0xff] }
  0x55   :  { %788 = vmatprep.mubr.f32.mxu0 %v37_v54  ;;  %v101_v54 = vld [vmem:[%s2703_s0 + $0x2b8] sm:$0xff] }
  0x57   :  { %419 = vmatmul.mubr.f32.gmra.mrb[10].mxu1 %v34_v55  ;;  %v98_v55 = vld [vmem:[%s2703_s0 + $0x2a0] sm:$0xff] }
  0x58   :  { %789 = vmatmul.mubr.f32.gmra.mrb[10].mxu0 %v36_v56  ;;  %423 = vmatprep.mubr.f32.mxu1 %v39_v57  ;;  %v100_v56 = vld [vmem:[%s2703_s0 + $0x2b0] sm:$0xff]  ;;  %v103_v57 = vld [vmem:[%s2703_s0 + $0x2c8] sm:$0xff] }
  0x59   :  { %793 = vmatprep.mubr.f32.mxu0 %v41_v58  ;;  %v105_v58 = vld [vmem:[%s2703_s0 + $0x2d8] sm:$0xff] }
  0x5b   :  { %424 = vmatmul.mubr.f32.gmra.mrb[12].mxu1 %v38_v59  ;;  %v102_v59 = vld [vmem:[%s2703_s0 + $0x2c0] sm:$0xff] }
  0x5c   :  { %794 = vmatmul.mubr.f32.gmra.mrb[12].mxu0 %v40_v60  ;;  %428 = vmatprep.mubr.f32.mxu1 %v43_v61  ;;  %v104_v60 = vld [vmem:[%s2703_s0 + $0x2d0] sm:$0xff]  ;;  %v107_v61 = vld [vmem:[%s2703_s0 + $0x2e8] sm:$0xff] }
  0x5d   :  { %798 = vmatprep.mubr.f32.mxu0 %v45_v62  ;;  %v109_v62 = vld [vmem:[%s2703_s0 + $0x2f8] sm:$0xff] }
  0x5f   :  { %429 = vmatmul.mubr.f32.gmra.mrb[14].mxu1 %v42_v63  ;;  %v106_v63 = vld [vmem:[%s2703_s0 + $0x2e0] sm:$0xff] }
  0x60   :  { %799 = vmatmul.mubr.f32.gmra.mrb[14].mxu0 %v44_v1  ;;  %433 = vmatprep.mubr.f32.mxu1 %v47_v2  ;;  %v108_v1 = vld [vmem:[%s2703_s0 + $0x2f0] sm:$0xff]  ;;  %v111_v2 = vld [vmem:[%s2703_s0 + $0x308] sm:$0xff] }
  0x61   :  { %803 = vmatprep.mubr.f32.mxu0 %v49_v3  ;;  %v113_v3 = vld [vmem:[%s2703_s0 + $0x318] sm:$0xff] }
  0x63   :  { %434 = vmatmul.mubr.f32.gmra.mrb[16].mxu1 %v46_v4  ;;  %v110_v4 = vld [vmem:[%s2703_s0 + $0x300] sm:$0xff] }
  0x64   :  { %804 = vmatmul.mubr.f32.gmra.mrb[16].mxu0 %v48_v5  ;;  %438 = vmatprep.mubr.f32.mxu1 %v51_v6  ;;  %v112_v5 = vld [vmem:[%s2703_s0 + $0x310] sm:$0xff]  ;;  %v115_v6 = vld [vmem:[%s2703_s0 + $0x328] sm:$0xff] }
  0x65   :  { %808 = vmatprep.mubr.f32.mxu0 %v53_v7  ;;  %v117_v7 = vld [vmem:[%s2703_s0 + $0x338] sm:$0xff] }
  0x67   :  { %439 = vmatmul.mubr.f32.gmra.mrb[18].mxu1 %v50_v8  ;;  %v114_v8 = vld [vmem:[%s2703_s0 + $0x320] sm:$0xff] }
  0x68   :  { %809 = vmatmul.mubr.f32.gmra.mrb[18].mxu0 %v52_v9  ;;  %443 = vmatprep.mubr.f32.mxu1 %v55_v10  ;;  %v116_v9 = vld [vmem:[%s2703_s0 + $0x330] sm:$0xff]  ;;  %v119_v10 = vld [vmem:[%s2703_s0 + $0x348] sm:$0xff] }
  0x69   :  { %813 = vmatprep.mubr.f32.mxu0 %v57_v11  ;;  %v121_v11 = vld [vmem:[%s2703_s0 + $0x358] sm:$0xff] }
  0x6b   :  { %444 = vmatmul.mubr.f32.gmra.mrb[20].mxu1 %v54_v12  ;;  %v118_v12 = vld [vmem:[%s2703_s0 + $0x340] sm:$0xff] }
  0x6c   :  { %814 = vmatmul.mubr.f32.gmra.mrb[20].mxu0 %v56_v13  ;;  %448 = vmatprep.mubr.f32.mxu1 %v59_v14  ;;  %v120_v13 = vld [vmem:[%s2703_s0 + $0x350] sm:$0xff]  ;;  %v123_v14 = vld [vmem:[%s2703_s0 + $0x368] sm:$0xff] }
  0x6d   :  { %818 = vmatprep.mubr.f32.mxu0 %v61_v15  ;;  %v125_v15 = vld [vmem:[%s2703_s0 + $0x378] sm:$0xff] }
  0x6f   :  { %449 = vmatmul.mubr.f32.gmra.mrb[22].mxu1 %v58_v16  ;;  %v122_v16 = vld [vmem:[%s2703_s0 + $0x360] sm:$0xff] }
  0x70   :  { %819 = vmatmul.mubr.f32.gmra.mrb[22].mxu0 %v60_v17  ;;  %453 = vmatprep.mubr.f32.mxu1 %v63_v18  ;;  %v124_v17 = vld [vmem:[%s2703_s0 + $0x370] sm:$0xff]  ;;  %v127_v18 = vld [vmem:[%s2703_s0 + $0x388] sm:$0xff] }
  0x71   :  { %823 = vmatprep.mubr.f32.mxu0 %v65_v19  ;;  %v129_v19 = vld [vmem:[%s2703_s0 + $0x398] sm:$0xff] }
  0x73   :  { %454 = vmatmul.mubr.f32.gmra.mrb[24].mxu1 %v62_v20  ;;  %v126_v20 = vld [vmem:[%s2703_s0 + $0x380] sm:$0xff] }
  0x74   :  { %824 = vmatmul.mubr.f32.gmra.mrb[24].mxu0 %v64_v21  ;;  %458 = vmatprep.mubr.f32.mxu1 %v67_v22  ;;  %v128_v21 = vld [vmem:[%s2703_s0 + $0x390] sm:$0xff]  ;;  %v131_v22 = vld [vmem:[%s2703_s0 + $0x3a8] sm:$0xff] }
  0x75   :  { %828 = vmatprep.mubr.f32.mxu0 %v69_v23  ;;  %v133_v23 = vld [vmem:[%s2703_s0 + $0x3b8] sm:$0xff] }
  0x77   :  { %459 = vmatmul.mubr.f32.gmra.mrb[26].mxu1 %v66_v24  ;;  %v130_v24 = vld [vmem:[%s2703_s0 + $0x3a0] sm:$0xff] }
  0x78   :  { %829 = vmatmul.mubr.f32.gmra.mrb[26].mxu0 %v68_v25  ;;  %463 = vmatprep.mubr.f32.mxu1 %v71_v26  ;;  %v132_v25 = vld [vmem:[%s2703_s0 + $0x3b0] sm:$0xff]  ;;  %v135_v26 = vld [vmem:[%s2703_s0 + $0x3c8] sm:$0xff] }
  0x79   :  { %833 = vmatprep.mubr.f32.mxu0 %v73_v27  ;;  %v137_v27 = vld [vmem:[%s2703_s0 + $0x3d8] sm:$0xff] }
  0x7b   :  { %464 = vmatmul.mubr.f32.gmra.mrb[28].mxu1 %v70_v28  ;;  %v134_v28 = vld [vmem:[%s2703_s0 + $0x3c0] sm:$0xff] }
  0x7c   :  { %834 = vmatmul.mubr.f32.gmra.mrb[28].mxu0 %v72_v29  ;;  %468 = vmatprep.mubr.f32.mxu1 %v75_v30  ;;  %v136_v29 = vld [vmem:[%s2703_s0 + $0x3d0] sm:$0xff]  ;;  %v139_v30 = vld [vmem:[%s2703_s0 + $0x3e8] sm:$0xff] }
  0x7d   :  { %838 = vmatprep.mubr.f32.mxu0 %v77_v31  ;;  %v141_v31 = vld [vmem:[%s2703_s0 + $0x3f8] sm:$0xff] }
  0x7f   :  { %469 = vmatmul.mubr.f32.gmra.mrb[30].mxu1 %v74_v32  ;;  %v138_v32 = vld [vmem:[%s2703_s0 + $0x3e0] sm:$0xff] }
  0x80   :  { %839 = vmatmul.mubr.f32.gmra.mrb[30].mxu0 %v76_v33  ;;  %473 = vmatprep.mubr.f32.mxu1 %v79_v34  ;;  %v140_v33 = vld [vmem:[%s2703_s0 + $0x3f0] sm:$0xff]  ;;  %v143_v34 = vld [vmem:[%s2703_s0 + $0x408] sm:$0xff] }
  0x81   :  { %843 = vmatprep.mubr.f32.mxu0 %v81_v35  ;;  %v145_v35 = vld [vmem:[%s2703_s0 + $0x418] sm:$0xff] }
  0x83   :  { %474 = vmatmul.mubr.f32.gmra.mrb[32].mxu1 %v78_v36  ;;  %v142_v36 = vld [vmem:[%s2703_s0 + $0x400] sm:$0xff] }
  0x84   :  { %844 = vmatmul.mubr.f32.gmra.mrb[32].mxu0 %v80_v37  ;;  %478 = vmatprep.mubr.f32.mxu1 %v83_v38  ;;  %v144_v37 = vld [vmem:[%s2703_s0 + $0x410] sm:$0xff]  ;;  %v147_v38 = vld [vmem:[%s2703_s0 + $0x428] sm:$0xff] }
  0x85   :  { %848 = vmatprep.mubr.f32.mxu0 %v85_v39  ;;  %v149_v39 = vld [vmem:[%s2703_s0 + $0x438] sm:$0xff] }
  0x87   :  { %479 = vmatmul.mubr.f32.gmra.mrb[34].mxu1 %v82_v0  ;;  %v146_v0 = vld [vmem:[%s2703_s0 + $0x420] sm:$0xff] }
  0x88   :  { %849 = vmatmul.mubr.f32.gmra.mrb[34].mxu0 %v84_v40  ;;  %483 = vmatprep.mubr.f32.mxu1 %v87_v41  ;;  %v148_v40 = vld [vmem:[%s2703_s0 + $0x430] sm:$0xff]  ;;  %v151_v41 = vld [vmem:[%s2703_s0 + $0x448] sm:$0xff] }
  0x89   :  { %853 = vmatprep.mubr.f32.mxu0 %v89_v42  ;;  %v153_v42 = vld [vmem:[%s2703_s0 + $0x458] sm:$0xff] }
  0x8b   :  { %484 = vmatmul.mubr.f32.gmra.mrb[36].mxu1 %v86_v43  ;;  %v150_v43 = vld [vmem:[%s2703_s0 + $0x440] sm:$0xff] }
  0x8c   :  { %854 = vmatmul.mubr.f32.gmra.mrb[36].mxu0 %v88_v44  ;;  %488 = vmatprep.mubr.f32.mxu1 %v91_v45  ;;  %v152_v44 = vld [vmem:[%s2703_s0 + $0x450] sm:$0xff]  ;;  %v155_v45 = vld [vmem:[%s2703_s0 + $0x468] sm:$0xff] }
  0x8d   :  { %858 = vmatprep.mubr.f32.mxu0 %v93_v46  ;;  %v157_v46 = vld [vmem:[%s2703_s0 + $0x478] sm:$0xff] }
  0x8f   :  { %489 = vmatmul.mubr.f32.gmra.mrb[38].mxu1 %v90_v47  ;;  %v154_v47 = vld [vmem:[%s2703_s0 + $0x460] sm:$0xff] }
  0x90   :  { %859 = vmatmul.mubr.f32.gmra.mrb[38].mxu0 %v92_v48  ;;  %493 = vmatprep.mubr.f32.mxu1 %v95_v49  ;;  %v156_v48 = vld [vmem:[%s2703_s0 + $0x470] sm:$0xff]  ;;  %v159_v49 = vld [vmem:[%s2703_s0 + $0x488] sm:$0xff] }
  0x91   :  { %863 = vmatprep.mubr.f32.mxu0 %v97_v50  ;;  %v161_v50 = vld [vmem:[%s2703_s0 + $0x498] sm:$0xff] }
  0x93   :  { %494 = vmatmul.mubr.f32.gmra.mrb[40].mxu1 %v94_v51  ;;  %v158_v51 = vld [vmem:[%s2703_s0 + $0x480] sm:$0xff] }
  0x94   :  { %864 = vmatmul.mubr.f32.gmra.mrb[40].mxu0 %v96_v52  ;;  %498 = vmatprep.mubr.f32.mxu1 %v99_v53  ;;  %v160_v52 = vld [vmem:[%s2703_s0 + $0x490] sm:$0xff]  ;;  %v163_v53 = vld [vmem:[%s2703_s0 + $0x4a8] sm:$0xff] }
  0x95   :  { %868 = vmatprep.mubr.f32.mxu0 %v101_v54  ;;  %v165_v54 = vld [vmem:[%s2703_s0 + $0x4b8] sm:$0xff] }
  0x97   :  { %499 = vmatmul.mubr.f32.gmra.mrb[42].mxu1 %v98_v55  ;;  %v162_v55 = vld [vmem:[%s2703_s0 + $0x4a0] sm:$0xff] }
  0x98   :  { %869 = vmatmul.mubr.f32.gmra.mrb[42].mxu0 %v100_v56  ;;  %503 = vmatprep.mubr.f32.mxu1 %v103_v57  ;;  %v164_v56 = vld [vmem:[%s2703_s0 + $0x4b0] sm:$0xff]  ;;  %v167_v57 = vld [vmem:[%s2703_s0 + $0x4c8] sm:$0xff] }
  0x99   :  { %873 = vmatprep.mubr.f32.mxu0 %v105_v58  ;;  %v169_v58 = vld [vmem:[%s2703_s0 + $0x4d8] sm:$0xff] }
  0x9b   :  { %504 = vmatmul.mubr.f32.gmra.mrb[44].mxu1 %v102_v59  ;;  %v166_v59 = vld [vmem:[%s2703_s0 + $0x4c0] sm:$0xff] }
  0x9c   :  { %874 = vmatmul.mubr.f32.gmra.mrb[44].mxu0 %v104_v60  ;;  %508 = vmatprep.mubr.f32.mxu1 %v107_v61  ;;  %v168_v60 = vld [vmem:[%s2703_s0 + $0x4d0] sm:$0xff]  ;;  %v171_v61 = vld [vmem:[%s2703_s0 + $0x4e8] sm:$0xff] }
  0x9d   :  { %878 = vmatprep.mubr.f32.mxu0 %v109_v62  ;;  %v173_v62 = vld [vmem:[%s2703_s0 + $0x4f8] sm:$0xff] }
  0x9f   :  { %509 = vmatmul.mubr.f32.gmra.mrb[46].mxu1 %v106_v63  ;;  %v170_v63 = vld [vmem:[%s2703_s0 + $0x4e0] sm:$0xff] }
  0xa0   :  { %879 = vmatmul.mubr.f32.gmra.mrb[46].mxu0 %v108_v1  ;;  %513 = vmatprep.mubr.f32.mxu1 %v111_v2  ;;  %v172_v1 = vld [vmem:[%s2703_s0 + $0x4f0] sm:$0xff]  ;;  %v175_v2 = vld [vmem:[%s2703_s0 + $0x508] sm:$0xff] }
  0xa1   :  { %883 = vmatprep.mubr.f32.mxu0 %v113_v3  ;;  %v177_v3 = vld [vmem:[%s2703_s0 + $0x518] sm:$0xff] }
  0xa3   :  { %514 = vmatmul.mubr.f32.gmra.mrb[48].mxu1 %v110_v4  ;;  %v174_v4 = vld [vmem:[%s2703_s0 + $0x500] sm:$0xff] }
  0xa4   :  { %884 = vmatmul.mubr.f32.gmra.mrb[48].mxu0 %v112_v5  ;;  %518 = vmatprep.mubr.f32.mxu1 %v115_v6  ;;  %v176_v5 = vld [vmem:[%s2703_s0 + $0x510] sm:$0xff]  ;;  %v179_v6 = vld [vmem:[%s2703_s0 + $0x528] sm:$0xff] }
  0xa5   :  { %888 = vmatprep.mubr.f32.mxu0 %v117_v7  ;;  %v181_v7 = vld [vmem:[%s2703_s0 + $0x538] sm:$0xff] }
  0xa7   :  { %519 = vmatmul.mubr.f32.gmra.mrb[50].mxu1 %v114_v8  ;;  %v178_v8 = vld [vmem:[%s2703_s0 + $0x520] sm:$0xff] }
  0xa8   :  { %889 = vmatmul.mubr.f32.gmra.mrb[50].mxu0 %v116_v9  ;;  %523 = vmatprep.mubr.f32.mxu1 %v119_v10  ;;  %v180_v9 = vld [vmem:[%s2703_s0 + $0x530] sm:$0xff]  ;;  %v183_v10 = vld [vmem:[%s2703_s0 + $0x548] sm:$0xff] }
  0xa9   :  { %893 = vmatprep.mubr.f32.mxu0 %v121_v11  ;;  %v185_v11 = vld [vmem:[%s2703_s0 + $0x558] sm:$0xff] }
  0xab   :  { %524 = vmatmul.mubr.f32.gmra.mrb[52].mxu1 %v118_v12  ;;  %v182_v12 = vld [vmem:[%s2703_s0 + $0x540] sm:$0xff] }
  0xac   :  { %894 = vmatmul.mubr.f32.gmra.mrb[52].mxu0 %v120_v13  ;;  %528 = vmatprep.mubr.f32.mxu1 %v123_v14  ;;  %v184_v13 = vld [vmem:[%s2703_s0 + $0x550] sm:$0xff]  ;;  %v187_v14 = vld [vmem:[%s2703_s0 + $0x568] sm:$0xff] }
  0xad   :  { %898 = vmatprep.mubr.f32.mxu0 %v125_v15  ;;  %v189_v15 = vld [vmem:[%s2703_s0 + $0x578] sm:$0xff] }
  0xaf   :  { %529 = vmatmul.mubr.f32.gmra.mrb[54].mxu1 %v122_v16  ;;  %v186_v16 = vld [vmem:[%s2703_s0 + $0x560] sm:$0xff] }
  0xb0   :  { %899 = vmatmul.mubr.f32.gmra.mrb[54].mxu0 %v124_v17  ;;  %533 = vmatprep.mubr.f32.mxu1 %v127_v18  ;;  %v188_v17 = vld [vmem:[%s2703_s0 + $0x570] sm:$0xff]  ;;  %v191_v18 = vld [vmem:[%s2703_s0 + $0x588] sm:$0xff] }
  0xb1   :  { %903 = vmatprep.mubr.f32.mxu0 %v129_v19  ;;  %v193_v19 = vld [vmem:[%s2703_s0 + $0x598] sm:$0xff] }
  0xb3   :  { %534 = vmatmul.mubr.f32.gmra.mrb[56].mxu1 %v126_v20  ;;  %v190_v20 = vld [vmem:[%s2703_s0 + $0x580] sm:$0xff] }
  0xb4   :  { %904 = vmatmul.mubr.f32.gmra.mrb[56].mxu0 %v128_v21  ;;  %538 = vmatprep.mubr.f32.mxu1 %v131_v22  ;;  %v192_v21 = vld [vmem:[%s2703_s0 + $0x590] sm:$0xff]  ;;  %v195_v22 = vld [vmem:[%s2703_s0 + $0x5a8] sm:$0xff] }
  0xb5   :  { %908 = vmatprep.mubr.f32.mxu0 %v133_v23  ;;  %v197_v23 = vld [vmem:[%s2703_s0 + $0x5b8] sm:$0xff] }
  0xb7   :  { %539 = vmatmul.mubr.f32.gmra.mrb[58].mxu1 %v130_v24  ;;  %v194_v24 = vld [vmem:[%s2703_s0 + $0x5a0] sm:$0xff] }
  0xb8   :  { %909 = vmatmul.mubr.f32.gmra.mrb[58].mxu0 %v132_v25  ;;  %543 = vmatprep.mubr.f32.mxu1 %v135_v26  ;;  %v196_v25 = vld [vmem:[%s2703_s0 + $0x5b0] sm:$0xff]  ;;  %v199_v26 = vld [vmem:[%s2703_s0 + $0x5c8] sm:$0xff] }
  0xb9   :  { %913 = vmatprep.mubr.f32.mxu0 %v137_v27  ;;  %v201_v27 = vld [vmem:[%s2703_s0 + $0x5d8] sm:$0xff] }
  0xbb   :  { %544 = vmatmul.mubr.f32.gmra.mrb[60].mxu1 %v134_v28  ;;  %v198_v28 = vld [vmem:[%s2703_s0 + $0x5c0] sm:$0xff] }
  0xbc   :  { %914 = vmatmul.mubr.f32.gmra.mrb[60].mxu0 %v136_v29  ;;  %548 = vmatprep.mubr.f32.mxu1 %v139_v30  ;;  %v200_v29 = vld [vmem:[%s2703_s0 + $0x5d0] sm:$0xff]  ;;  %v203_v30 = vld [vmem:[%s2703_s0 + $0x5e8] sm:$0xff] }
  0xbd   :  { %918 = vmatprep.mubr.f32.mxu0 %v141_v31  ;;  %v205_v31 = vld [vmem:[%s2703_s0 + $0x5f8] sm:$0xff] }
  0xbf   :  { %549 = vmatmul.mubr.f32.gmra.mrb[62].mxu1 %v138_v32  ;;  %v202_v32 = vld [vmem:[%s2703_s0 + $0x5e0] sm:$0xff] }
  0xc0   :  { %919 = vmatmul.mubr.f32.gmra.mrb[62].mxu0 %v140_v33  ;;  %553 = vmatprep.mubr.f32.mxu1 %v143_v34  ;;  %v204_v33 = vld [vmem:[%s2703_s0 + $0x5f0] sm:$0xff]  ;;  %v207_v34 = vld [vmem:[%s2703_s0 + $0x608] sm:$0xff] }
  0xc1   :  { %923 = vmatprep.mubr.f32.mxu0 %v145_v35  ;;  %v209_v35 = vld [vmem:[%s2703_s0 + $0x618] sm:$0xff] }
  0xc3   :  { %554 = vmatmul.mubr.f32.gmra.mrb[64].mxu1 %v142_v36  ;;  %v206_v36 = vld [vmem:[%s2703_s0 + $0x600] sm:$0xff] }
  0xc4   :  { %924 = vmatmul.mubr.f32.gmra.mrb[64].mxu0 %v144_v37  ;;  %558 = vmatprep.mubr.f32.mxu1 %v147_v38  ;;  %v208_v37 = vld [vmem:[%s2703_s0 + $0x610] sm:$0xff]  ;;  %v211_v38 = vld [vmem:[%s2703_s0 + $0x628] sm:$0xff] }
  0xc5   :  { %928 = vmatprep.mubr.f32.mxu0 %v149_v39  ;;  %v213_v39 = vld [vmem:[%s2703_s0 + $0x638] sm:$0xff] }
  0xc7   :  { %559 = vmatmul.mubr.f32.gmra.mrb[66].mxu1 %v146_v0  ;;  %v210_v0 = vld [vmem:[%s2703_s0 + $0x620] sm:$0xff] }
  0xc8   :  { %929 = vmatmul.mubr.f32.gmra.mrb[66].mxu0 %v148_v40  ;;  %563 = vmatprep.mubr.f32.mxu1 %v151_v41  ;;  %v212_v40 = vld [vmem:[%s2703_s0 + $0x630] sm:$0xff]  ;;  %v215_v41 = vld [vmem:[%s2703_s0 + $0x648] sm:$0xff] }
  0xc9   :  { %933 = vmatprep.mubr.f32.mxu0 %v153_v42  ;;  %v217_v42 = vld [vmem:[%s2703_s0 + $0x658] sm:$0xff] }
  0xcb   :  { %564 = vmatmul.mubr.f32.gmra.mrb[68].mxu1 %v150_v43  ;;  %v214_v43 = vld [vmem:[%s2703_s0 + $0x640] sm:$0xff] }
  0xcc   :  { %934 = vmatmul.mubr.f32.gmra.mrb[68].mxu0 %v152_v44  ;;  %568 = vmatprep.mubr.f32.mxu1 %v155_v45  ;;  %v216_v44 = vld [vmem:[%s2703_s0 + $0x650] sm:$0xff]  ;;  %v219_v45 = vld [vmem:[%s2703_s0 + $0x668] sm:$0xff] }
  0xcd   :  { %938 = vmatprep.mubr.f32.mxu0 %v157_v46  ;;  %v221_v46 = vld [vmem:[%s2703_s0 + $0x678] sm:$0xff] }
  0xcf   :  { %569 = vmatmul.mubr.f32.gmra.mrb[70].mxu1 %v154_v47  ;;  %v218_v47 = vld [vmem:[%s2703_s0 + $0x660] sm:$0xff] }
  0xd0   :  { %939 = vmatmul.mubr.f32.gmra.mrb[70].mxu0 %v156_v48  ;;  %573 = vmatprep.mubr.f32.mxu1 %v159_v49  ;;  %v220_v48 = vld [vmem:[%s2703_s0 + $0x670] sm:$0xff]  ;;  %v223_v49 = vld [vmem:[%s2703_s0 + $0x688] sm:$0xff] }
  0xd1   :  { %943 = vmatprep.mubr.f32.mxu0 %v161_v50  ;;  %v225_v50 = vld [vmem:[%s2703_s0 + $0x698] sm:$0xff] }
  0xd3   :  { %574 = vmatmul.mubr.f32.gmra.mrb[72].mxu1 %v158_v51  ;;  %v222_v51 = vld [vmem:[%s2703_s0 + $0x680] sm:$0xff] }
  0xd4   :  { %944 = vmatmul.mubr.f32.gmra.mrb[72].mxu0 %v160_v52  ;;  %578 = vmatprep.mubr.f32.mxu1 %v163_v53  ;;  %v224_v52 = vld [vmem:[%s2703_s0 + $0x690] sm:$0xff]  ;;  %v227_v53 = vld [vmem:[%s2703_s0 + $0x6a8] sm:$0xff] }
  0xd5   :  { %948 = vmatprep.mubr.f32.mxu0 %v165_v54  ;;  %v229_v54 = vld [vmem:[%s2703_s0 + $0x6b8] sm:$0xff] }
  0xd7   :  { %579 = vmatmul.mubr.f32.gmra.mrb[74].mxu1 %v162_v55  ;;  %v2308_v55 = vld [vmem:[%s2704_s2] ss:$0 sm:$0xff] }
  0xd8   :  { %949 = vmatmul.mubr.f32.gmra.mrb[74].mxu0 %v164_v56  ;;  %583 = vmatprep.mubr.f32.mxu1 %v167_v57  ;;  %v226_v56 = vld [vmem:[%s2703_s0 + $0x6a0] sm:$0xff]  ;;  %v228_v57 = vld [vmem:[%s2703_s0 + $0x6b0] sm:$0xff] }
  0xd9   :  { %953 = vmatprep.mubr.f32.mxu0 %v169_v58  ;;  %v231_v58 = vld [vmem:[%s2703_s0 + $0x6c8] sm:$0xff] }
  0xdb   :  { %584 = vmatmul.mubr.f32.gmra.mrb[76].mxu1 %v166_v59 }
  0xdc   :  { %954 = vmatmul.mubr.f32.gmra.mrb[76].mxu0 %v168_v60  ;;  %588 = vmatprep.mubr.f32.mxu1 %v171_v61  ;;  %v233_v60 = vld [vmem:[%s2703_s0 + $0x6d8] sm:$0xff] }
  0xdd   :  { %958 = vmatprep.mubr.f32.mxu0 %v173_v62 }
  0xdf   :  { %589 = vmatmul.mubr.f32.gmra.mrb[78].mxu1 %v170_v63 }
  0xe0   :  { %959 = vmatmul.mubr.f32.gmra.mrb[78].mxu0 %v172_v1  ;;  %593 = vmatprep.mubr.f32.mxu1 %v175_v2  ;;  %v230_v2 = vld [vmem:[%s2703_s0 + $0x6c0] sm:$0xff] }
  0xe1   :  { %963 = vmatprep.mubr.f32.mxu0 %v177_v3 }
  0xe3   :  { %594 = vmatmul.mubr.f32.gmra.mrb[80].mxu1 %v174_v4  ;;  %v232_v4 = vld [vmem:[%s2703_s0 + $0x6d0] sm:$0xff] }
  0xe4   :  { %964 = vmatmul.mubr.f32.gmra.mrb[80].mxu0 %v176_v5  ;;  %598 = vmatprep.mubr.f32.mxu1 %v179_v6  ;;  %v235_v5 = vld [vmem:[%s2703_s0 + $0x6e8] sm:$0xff] }
  0xe5   :  { %968 = vmatprep.mubr.f32.mxu0 %v181_v7  ;;  %v237_v7 = vld [vmem:[%s2703_s0 + $0x6f8] sm:$0xff] }
  0xe7   :  { %599 = vmatmul.mubr.f32.gmra.mrb[82].mxu1 %v178_v8 }
  0xe8   :  { %969 = vmatmul.mubr.f32.gmra.mrb[82].mxu0 %v180_v9  ;;  %603 = vmatprep.mubr.f32.mxu1 %v183_v10 }
  0xe9   :  { %973 = vmatprep.mubr.f32.mxu0 %v185_v11 }
  0xeb   :  { %604 = vmatmul.mubr.f32.gmra.mrb[84].mxu1 %v182_v12 }
  0xec   :  { %974 = vmatmul.mubr.f32.gmra.mrb[84].mxu0 %v184_v13  ;;  %608 = vmatprep.mubr.f32.mxu1 %v187_v14  ;;  %v234_v13 = vld [vmem:[%s2703_s0 + $0x6e0] sm:$0xff] }
  0xed   :  { %978 = vmatprep.mubr.f32.mxu0 %v189_v15  ;;  %v236_v15 = vld [vmem:[%s2703_s0 + $0x6f0] sm:$0xff] }
  0xef   :  { %609 = vmatmul.mubr.f32.gmra.mrb[86].mxu1 %v186_v16  ;;  %v239_v16 = vld [vmem:[%s2703_s0 + $0x708] sm:$0xff] }
  0xf0   :  { %979 = vmatmul.mubr.f32.gmra.mrb[86].mxu0 %v188_v17  ;;  %613 = vmatprep.mubr.f32.mxu1 %v191_v18  ;;  %v241_v18 = vld [vmem:[%s2703_s0 + $0x718] sm:$0xff] }
  0xf1   :  { %983 = vmatprep.mubr.f32.mxu0 %v193_v19 }
  0xf3   :  { %614 = vmatmul.mubr.f32.gmra.mrb[88].mxu1 %v190_v20 }
  0xf4   :  { %984 = vmatmul.mubr.f32.gmra.mrb[88].mxu0 %v192_v21  ;;  %618 = vmatprep.mubr.f32.mxu1 %v195_v22 }
  0xf5   :  { %988 = vmatprep.mubr.f32.mxu0 %v197_v23 }
  0xf7   :  { %619 = vmatmul.mubr.f32.gmra.mrb[90].mxu1 %v194_v24  ;;  %v238_v24 = vld [vmem:[%s2703_s0 + $0x700] sm:$0xff] }
  0xf8   :  { %989 = vmatmul.mubr.f32.gmra.mrb[90].mxu0 %v196_v25  ;;  %623 = vmatprep.mubr.f32.mxu1 %v199_v26  ;;  %v240_v26 = vld [vmem:[%s2703_s0 + $0x710] sm:$0xff] }
  0xf9   :  { %993 = vmatprep.mubr.f32.mxu0 %v201_v27  ;;  %v243_v27 = vld [vmem:[%s2703_s0 + $0x728] sm:$0xff] }
  0xfb   :  { %624 = vmatmul.mubr.f32.gmra.mrb[92].mxu1 %v198_v28 }
  0xfc   :  { %994 = vmatmul.mubr.f32.gmra.mrb[92].mxu0 %v200_v29  ;;  %628 = vmatprep.mubr.f32.mxu1 %v203_v30  ;;  %v245_v29 = vld [vmem:[%s2703_s0 + $0x738] sm:$0xff] }
  0xfd   :  { %998 = vmatprep.mubr.f32.mxu0 %v205_v31 }
  0xff   :  { %629 = vmatmul.mubr.f32.gmra.mrb[94].mxu1 %v202_v32 }
 0x100   :  { %999 = vmatmul.mubr.f32.gmra.mrb[94].mxu0 %v204_v33  ;;  %633 = vmatprep.mubr.f32.mxu1 %v207_v34 }
 0x101   :  { %1003 = vmatprep.mubr.f32.mxu0 %v209_v35  ;;  %v242_v35 = vld [vmem:[%s2703_s0 + $0x720] sm:$0xff] }
 0x103   :  { %634 = vmatmul.mubr.f32.gmra.mrb[96].mxu1 %v206_v36 }
 0x104   :  { %1004 = vmatmul.mubr.f32.gmra.mrb[96].mxu0 %v208_v37  ;;  %638 = vmatprep.mubr.f32.mxu1 %v211_v38  ;;  %v244_v37 = vld [vmem:[%s2703_s0 + $0x730] sm:$0xff]  ;;  %v247_v38 = vld [vmem:[%s2703_s0 + $0x748] sm:$0xff] }
 0x105   :  { %1008 = vmatprep.mubr.f32.mxu0 %v213_v39 }
 0x107   :  { %639 = vmatmul.mubr.f32.gmra.mrb[98].mxu1 %v210_v0  ;;  %v249_v0 = vld [vmem:[%s2703_s0 + $0x758] sm:$0xff] }
 0x108   :  { %1009 = vmatmul.mubr.f32.gmra.mrb[98].mxu0 %v212_v40  ;;  %643 = vmatprep.mubr.f32.mxu1 %v215_v41 }
 0x109   :  { %1013 = vmatprep.mubr.f32.mxu0 %v217_v42 }
 0x10b   :  { %644 = vmatmul.mubr.f32.gmra.mrb[100].mxu1 %v214_v43 }
 0x10c   :  { %1014 = vmatmul.mubr.f32.gmra.mrb[100].mxu0 %v216_v44  ;;  %648 = vmatprep.mubr.f32.mxu1 %v219_v45  ;;  %v246_v45 = vld [vmem:[%s2703_s0 + $0x740] sm:$0xff] }
 0x10d   :  { %1018 = vmatprep.mubr.f32.mxu0 %v221_v46 }
 0x10f   :  { %649 = vmatmul.mubr.f32.gmra.mrb[102].mxu1 %v218_v47  ;;  %v248_v47 = vld [vmem:[%s2703_s0 + $0x750] sm:$0xff] }
 0x110   :  { %1019 = vmatmul.mubr.f32.gmra.mrb[102].mxu0 %v220_v48  ;;  %653 = vmatprep.mubr.f32.mxu1 %v223_v49  ;;  %v251_v48 = vld [vmem:[%s2703_s0 + $0x768] sm:$0xff] }
 0x111   :  { %1023 = vmatprep.mubr.f32.mxu0 %v225_v50  ;;  %v253_v50 = vld [vmem:[%s2703_s0 + $0x778] sm:$0xff] }
 0x113   :  { %654 = vmatmul.mubr.f32.gmra.mrb[104].mxu1 %v222_v51 }
 0x114   :  { %1024 = vmatmul.mubr.f32.gmra.mrb[104].mxu0 %v224_v52  ;;  %658 = vmatprep.mubr.f32.mxu1 %v227_v53 }
 0x115   :  { %1028 = vmatprep.mubr.f32.mxu0 %v229_v54 }
 0x116   :  { %v395_v59 = vpop.f32.mrb[0].mxu1 }
 0x117   :  { %v396_v61 = vadd.f32 %v2308_v55, %v395_v59  ;;  %v397_v62 = vpop.f32.mrb[1].mxu1  ;;  %659 = vmatmul.mubr.f32.gmra.mrb[106].mxu1 %v226_v56  ;;  %v765_v63 = vpop.f32.mrb[0].mxu0  ;;  %v252_v59 = vld [vmem:[%s2703_s0 + $0x770] sm:$0xff] }
 0x118   :  { %v767_v1 = vpop.f32.mrb[1].mxu0  ;;  %1029 = vmatmul.mubr.f32.gmra.mrb[106].mxu0 %v228_v57  ;;  %663 = vmatprep.mubr.f32.mxu1 %v231_v58  ;;  %v250_v57 = vld [vmem:[%s2703_s0 + $0x760] sm:$0xff]  ;;  %v257_v62 = vld [vmem:[%s2703_s0 + $0x798] sm:$0x3f] }
 0x119   :  { %v766_v3 = vadd.f32 %v765_v63, %v396_v61  ;;  %1033 = vmatprep.mubr.f32.mxu0 %v233_v60  ;;  %v255_v60 = vld [vmem:[%s2703_s0 + $0x788] sm:$0x3f] }
 0x11a   :  { %v400_v6 = vpop.f32.mrb[2].mxu1 }
 0x11b   :  { %v1069_v8 = vmax.f32 %v766_v3, 0.0  ;;  %v401_v9 = vadd.f32 %v2308_v55, %v400_v6  ;;  %v402_v10 = vpop.f32.mrb[3].mxu1  ;;  %664 = vmatmul.mubr.f32.gmra.mrb[108].mxu1 %v230_v2  ;;  %v770_v11 = vpop.f32.mrb[2].mxu0 }
 0x11c   :  { %v772_v12 = vpop.f32.mrb[3].mxu0  ;;  %1034 = vmatmul.mubr.f32.gmra.mrb[108].mxu0 %v232_v4  ;;  %668 = vmatprep.mubr.f32.mxu1 %v235_v5  ;;  %v254_v5 = vld [vmem:[%s2703_s0 + $0x780] sm:$0x3f] }
 0x11d   :  { %1131 = vst.msk [vmem:[%s2705_s3] sm:$0xff] %vm1130_vm0, %v1069_v8  ;;  %v771_v14 = vadd.f32 %v770_v11, %v401_v9  ;;  %1038 = vmatprep.mubr.f32.mxu0 %v237_v7  ;;  %v256_v7 = vld [vmem:[%s2703_s0 + $0x790] sm:$0x3f] }
 0x11e   :  { %v405_v17 = vpop.f32.mrb[4].mxu1 }
 0x11f   :  { %v1070_v19 = vmax.f32 %v771_v14, 0.0  ;;  %v406_v20 = vadd.f32 %v2308_v55, %v405_v17  ;;  %v407_v21 = vpop.f32.mrb[5].mxu1  ;;  %669 = vmatmul.mubr.f32.gmra.mrb[110].mxu1 %v234_v13  ;;  %v775_v22 = vpop.f32.mrb[4].mxu0 }
 0x120   :  { %v777_v23 = vpop.f32.mrb[5].mxu0  ;;  %1039 = vmatmul.mubr.f32.gmra.mrb[110].mxu0 %v236_v15  ;;  %673 = vmatprep.mubr.f32.mxu1 %v239_v16 }
 0x121   :  { %1132 = vst.msk [vmem:[%s2705_s3 + $0x8] sm:$0xff] %vm1130_vm0, %v1070_v19  ;;  %v776_v25 = vadd.f32 %v775_v22, %v406_v20  ;;  %1043 = vmatprep.mubr.f32.mxu0 %v241_v18 }
 0x122   :  { %v410_v28 = vpop.f32.mrb[6].mxu1 }
 0x123   :  { %v1071_v30 = vmax.f32 %v776_v25, 0.0  ;;  %v411_v31 = vadd.f32 %v2308_v55, %v410_v28  ;;  %v412_v32 = vpop.f32.mrb[7].mxu1  ;;  %674 = vmatmul.mubr.f32.gmra.mrb[112].mxu1 %v238_v24  ;;  %v780_v33 = vpop.f32.mrb[6].mxu0 }
 0x124   :  { %v782_v34 = vpop.f32.mrb[7].mxu0  ;;  %1044 = vmatmul.mubr.f32.gmra.mrb[112].mxu0 %v240_v26  ;;  %678 = vmatprep.mubr.f32.mxu1 %v243_v27 }
 0x125   :  { %1133 = vst.msk [vmem:[%s2705_s3 + $0x10] sm:$0xff] %vm1130_vm0, %v1071_v30  ;;  %v781_v36 = vadd.f32 %v780_v33, %v411_v31  ;;  %1048 = vmatprep.mubr.f32.mxu0 %v245_v29 }
 0x126   :  { %v415_v39 = vpop.f32.mrb[8].mxu1 }
 0x127   :  { %v1072_v40 = vmax.f32 %v781_v36, 0.0  ;;  %v416_v41 = vadd.f32 %v2308_v55, %v415_v39  ;;  %v417_v42 = vpop.f32.mrb[9].mxu1  ;;  %679 = vmatmul.mubr.f32.gmra.mrb[114].mxu1 %v242_v35  ;;  %v785_v43 = vpop.f32.mrb[8].mxu0 }
 0x128   :  { %v787_v44 = vpop.f32.mrb[9].mxu0  ;;  %1049 = vmatmul.mubr.f32.gmra.mrb[114].mxu0 %v244_v37  ;;  %683 = vmatprep.mubr.f32.mxu1 %v247_v38 }
 0x129   :  { %1134 = vst.msk [vmem:[%s2705_s3 + $0x18] sm:$0xff] %vm1130_vm0, %v1072_v40  ;;  %v786_v46 = vadd.f32 %v785_v43, %v416_v41  ;;  %1053 = vmatprep.mubr.f32.mxu0 %v249_v0 }
 0x12a   :  { %v420_v49 = vpop.f32.mrb[10].mxu1 }
 0x12b   :  { %v1073_v51 = vmax.f32 %v786_v46, 0.0  ;;  %v421_v52 = vadd.f32 %v2308_v55, %v420_v49  ;;  %v422_v53 = vpop.f32.mrb[11].mxu1  ;;  %684 = vmatmul.mubr.f32.gmra.mrb[116].mxu1 %v246_v45  ;;  %v790_v54 = vpop.f32.mrb[10].mxu0 }
 0x12c   :  { %v792_v56 = vpop.f32.mrb[11].mxu0  ;;  %1054 = vmatmul.mubr.f32.gmra.mrb[116].mxu0 %v248_v47  ;;  %688 = vmatprep.mubr.f32.mxu1 %v251_v48 }
 0x12d   :  { %1135 = vst.msk [vmem:[%s2705_s3 + $0x20] sm:$0xff] %vm1130_vm0, %v1073_v51  ;;  %v791_v58 = vadd.f32 %v790_v54, %v421_v52  ;;  %1058 = vmatprep.mubr.f32.mxu0 %v253_v50 }
 0x12e   :  { %v425_v61 = vpop.f32.mrb[12].mxu1 }
 0x12f   :  { %v1074_v63 = vmax.f32 %v791_v58, 0.0  ;;  %v426_v1 = vadd.f32 %v2308_v55, %v425_v61  ;;  %v427_v2 = vpop.f32.mrb[13].mxu1  ;;  %689 = vmatmul.mubr.f32.gmra.mrb[118].mxu1 %v250_v57  ;;  %v795_v3 = vpop.f32.mrb[12].mxu0 }
 0x130   :  { %v797_v4 = vpop.f32.mrb[13].mxu0  ;;  %1059 = vmatmul.mubr.f32.gmra.mrb[118].mxu0 %v252_v59  ;;  %693 = vmatprep.mubr.f32.mxu1 %v255_v60 }
 0x131   :  { %1136 = vst.msk [vmem:[%s2705_s3 + $0x28] sm:$0xff] %vm1130_vm0, %v1074_v63  ;;  %v796_v6 = vadd.f32 %v795_v3, %v426_v1  ;;  %1063 = vmatprep.mubr.f32.mxu0 %v257_v62 }
 0x132   :  { %v430_v8 = vpop.f32.mrb[14].mxu1 }
 0x133   :  { %v1075_v9 = vmax.f32 %v796_v6, 0.0  ;;  %v431_v10 = vadd.f32 %v2308_v55, %v430_v8  ;;  %v432_v11 = vpop.f32.mrb[15].mxu1  ;;  %694 = vmatmul.mubr.f32.gmra.mrb[120].mxu1 %v254_v5  ;;  %v800_v12 = vpop.f32.mrb[14].mxu0 }
 0x134   :  { %v802_v13 = vpop.f32.mrb[15].mxu0  ;;  %1064 = vmatmul.mubr.f32.gmra.mrb[120].mxu0 %v256_v7 }
 0x135   :  { %1137 = vst.msk [vmem:[%s2705_s3 + $0x30] sm:$0xff] %vm1130_vm0, %v1075_v9  ;;  %v801_v14 = vadd.f32 %v800_v12, %v431_v10 }
 0x136   :  { %v435_v15 = vpop.f32.mrb[16].mxu1 }
 0x137   :  { %v1076_v16 = vmax.f32 %v801_v14, 0.0  ;;  %v436_v17 = vadd.f32 %v2308_v55, %v435_v15  ;;  %v437_v18 = vpop.f32.mrb[17].mxu1  ;;  %v805_v19 = vpop.f32.mrb[16].mxu0 }
 0x138   :  { %v807_v20 = vpop.f32.mrb[17].mxu0 }
 0x139   :  { %1138 = vst.msk [vmem:[%s2705_s3 + $0x38] sm:$0xff] %vm1130_vm0, %v1076_v16  ;;  %v806_v21 = vadd.f32 %v805_v19, %v436_v17 }
 0x13a   :  { %v440_v22 = vpop.f32.mrb[18].mxu1 }
 0x13b   :  { %v1077_v23 = vmax.f32 %v806_v21, 0.0  ;;  %v441_v24 = vadd.f32 %v2308_v55, %v440_v22  ;;  %v442_v25 = vpop.f32.mrb[19].mxu1  ;;  %v810_v26 = vpop.f32.mrb[18].mxu0 }
 0x13c   :  { %v812_v27 = vpop.f32.mrb[19].mxu0 }
 0x13d   :  { %1139 = vst.msk [vmem:[%s2705_s3 + $0x40] sm:$0xff] %vm1130_vm0, %v1077_v23  ;;  %v811_v28 = vadd.f32 %v810_v26, %v441_v24 }
 0x13e   :  { %v445_v29 = vpop.f32.mrb[20].mxu1 }
 0x13f   :  { %v1078_v30 = vmax.f32 %v811_v28, 0.0  ;;  %v446_v31 = vadd.f32 %v2308_v55, %v445_v29  ;;  %v447_v32 = vpop.f32.mrb[21].mxu1  ;;  %v815_v33 = vpop.f32.mrb[20].mxu0 }
 0x140   :  { %v817_v34 = vpop.f32.mrb[21].mxu0 }
 0x141   :  { %1140 = vst.msk [vmem:[%s2705_s3 + $0x48] sm:$0xff] %vm1130_vm0, %v1078_v30  ;;  %v816_v35 = vadd.f32 %v815_v33, %v446_v31 }
 0x142   :  { %v450_v36 = vpop.f32.mrb[22].mxu1 }
 0x143   :  { %v1079_v37 = vmax.f32 %v816_v35, 0.0  ;;  %v451_v38 = vadd.f32 %v2308_v55, %v450_v36  ;;  %v452_v39 = vpop.f32.mrb[23].mxu1  ;;  %v820_v0 = vpop.f32.mrb[22].mxu0 }
 0x144   :  { %v822_v40 = vpop.f32.mrb[23].mxu0 }
 0x145   :  { %1141 = vst.msk [vmem:[%s2705_s3 + $0x50] sm:$0xff] %vm1130_vm0, %v1079_v37  ;;  %v821_v41 = vadd.f32 %v820_v0, %v451_v38 }
 0x146   :  { %v455_v42 = vpop.f32.mrb[24].mxu1 }
 0x147   :  { %v1080_v43 = vmax.f32 %v821_v41, 0.0  ;;  %v456_v44 = vadd.f32 %v2308_v55, %v455_v42  ;;  %v457_v45 = vpop.f32.mrb[25].mxu1  ;;  %v825_v46 = vpop.f32.mrb[24].mxu0 }
 0x148   :  { %v827_v47 = vpop.f32.mrb[25].mxu0 }
 0x149   :  { %1142 = vst.msk [vmem:[%s2705_s3 + $0x58] sm:$0xff] %vm1130_vm0, %v1080_v43  ;;  %v826_v48 = vadd.f32 %v825_v46, %v456_v44 }
 0x14a   :  { %v460_v49 = vpop.f32.mrb[26].mxu1 }
 0x14b   :  { %v1081_v50 = vmax.f32 %v826_v48, 0.0  ;;  %v461_v51 = vadd.f32 %v2308_v55, %v460_v49  ;;  %v462_v52 = vpop.f32.mrb[27].mxu1  ;;  %v830_v53 = vpop.f32.mrb[26].mxu0 }
 0x14c   :  { %v832_v54 = vpop.f32.mrb[27].mxu0 }
 0x14d   :  { %1143 = vst.msk [vmem:[%s2705_s3 + $0x60] sm:$0xff] %vm1130_vm0, %v1081_v50  ;;  %v831_v56 = vadd.f32 %v830_v53, %v461_v51 }
 0x14e   :  { %v465_v57 = vpop.f32.mrb[28].mxu1 }
 0x14f   :  { %v1082_v58 = vmax.f32 %v831_v56, 0.0  ;;  %v466_v59 = vadd.f32 %v2308_v55, %v465_v57  ;;  %v467_v60 = vpop.f32.mrb[29].mxu1  ;;  %v835_v61 = vpop.f32.mrb[28].mxu0 }
 0x150   :  { %v837_v62 = vpop.f32.mrb[29].mxu0 }
 0x151   :  { %1144 = vst.msk [vmem:[%s2705_s3 + $0x68] sm:$0xff] %vm1130_vm0, %v1082_v58  ;;  %v836_v63 = vadd.f32 %v835_v61, %v466_v59 }
 0x152   :  { %v470_v1 = vpop.f32.mrb[30].mxu1 }
 0x153   :  { %v1083_v2 = vmax.f32 %v836_v63, 0.0  ;;  %v471_v3 = vadd.f32 %v2308_v55, %v470_v1  ;;  %v472_v4 = vpop.f32.mrb[31].mxu1  ;;  %v840_v5 = vpop.f32.mrb[30].mxu0 }
 0x154   :  { %v842_v6 = vpop.f32.mrb[31].mxu0 }
 0x155   :  { %1145 = vst.msk [vmem:[%s2705_s3 + $0x70] sm:$0xff] %vm1130_vm0, %v1083_v2  ;;  %v841_v7 = vadd.f32 %v840_v5, %v471_v3 }
 0x156   :  { %v475_v8 = vpop.f32.mrb[32].mxu1 }
 0x157   :  { %v1084_v9 = vmax.f32 %v841_v7, 0.0  ;;  %v476_v10 = vadd.f32 %v2308_v55, %v475_v8  ;;  %v477_v11 = vpop.f32.mrb[33].mxu1  ;;  %v845_v12 = vpop.f32.mrb[32].mxu0 }
 0x158   :  { %v847_v13 = vpop.f32.mrb[33].mxu0 }
 0x159   :  { %1146 = vst.msk [vmem:[%s2705_s3 + $0x78] sm:$0xff] %vm1130_vm0, %v1084_v9  ;;  %v846_v14 = vadd.f32 %v845_v12, %v476_v10 }
 0x15a   :  { %v480_v15 = vpop.f32.mrb[34].mxu1 }
 0x15b   :  { %v1085_v16 = vmax.f32 %v846_v14, 0.0  ;;  %v481_v17 = vadd.f32 %v2308_v55, %v480_v15  ;;  %v482_v18 = vpop.f32.mrb[35].mxu1  ;;  %v850_v19 = vpop.f32.mrb[34].mxu0 }
 0x15c   :  { %v852_v20 = vpop.f32.mrb[35].mxu0 }
 0x15d   :  { %1147 = vst.msk [vmem:[%s2705_s3 + $0x80] sm:$0xff] %vm1130_vm0, %v1085_v16  ;;  %v851_v21 = vadd.f32 %v850_v19, %v481_v17 }
 0x15e   :  { %v485_v22 = vpop.f32.mrb[36].mxu1 }
 0x15f   :  { %v1086_v23 = vmax.f32 %v851_v21, 0.0  ;;  %v486_v24 = vadd.f32 %v2308_v55, %v485_v22  ;;  %v487_v25 = vpop.f32.mrb[37].mxu1  ;;  %v855_v26 = vpop.f32.mrb[36].mxu0 }
 0x160   :  { %v857_v27 = vpop.f32.mrb[37].mxu0 }
 0x161   :  { %1148 = vst.msk [vmem:[%s2705_s3 + $0x88] sm:$0xff] %vm1130_vm0, %v1086_v23  ;;  %v856_v28 = vadd.f32 %v855_v26, %v486_v24 }
 0x162   :  { %v490_v29 = vpop.f32.mrb[38].mxu1 }
 0x163   :  { %v1087_v30 = vmax.f32 %v856_v28, 0.0  ;;  %v491_v31 = vadd.f32 %v2308_v55, %v490_v29  ;;  %v492_v32 = vpop.f32.mrb[39].mxu1  ;;  %v860_v33 = vpop.f32.mrb[38].mxu0 }
 0x164   :  { %v862_v34 = vpop.f32.mrb[39].mxu0 }
 0x165   :  { %1149 = vst.msk [vmem:[%s2705_s3 + $0x90] sm:$0xff] %vm1130_vm0, %v1087_v30  ;;  %v861_v35 = vadd.f32 %v860_v33, %v491_v31 }
 0x166   :  { %v495_v36 = vpop.f32.mrb[40].mxu1 }
 0x167   :  { %v1088_v37 = vmax.f32 %v861_v35, 0.0  ;;  %v496_v38 = vadd.f32 %v2308_v55, %v495_v36  ;;  %v497_v39 = vpop.f32.mrb[41].mxu1  ;;  %v865_v0 = vpop.f32.mrb[40].mxu0 }
 0x168   :  { %v867_v40 = vpop.f32.mrb[41].mxu0 }
 0x169   :  { %1150 = vst.msk [vmem:[%s2705_s3 + $0x98] sm:$0xff] %vm1130_vm0, %v1088_v37  ;;  %v866_v41 = vadd.f32 %v865_v0, %v496_v38 }
 0x16a   :  { %v500_v42 = vpop.f32.mrb[42].mxu1 }
 0x16b   :  { %v1089_v43 = vmax.f32 %v866_v41, 0.0  ;;  %v501_v44 = vadd.f32 %v2308_v55, %v500_v42  ;;  %v502_v45 = vpop.f32.mrb[43].mxu1  ;;  %v870_v46 = vpop.f32.mrb[42].mxu0 }
 0x16c   :  { %v872_v47 = vpop.f32.mrb[43].mxu0 }
 0x16d   :  { %1151 = vst.msk [vmem:[%s2705_s3 + $0xa0] sm:$0xff] %vm1130_vm0, %v1089_v43  ;;  %v871_v48 = vadd.f32 %v870_v46, %v501_v44 }
 0x16e   :  { %v505_v49 = vpop.f32.mrb[44].mxu1 }
 0x16f   :  { %v1090_v50 = vmax.f32 %v871_v48, 0.0  ;;  %v506_v51 = vadd.f32 %v2308_v55, %v505_v49  ;;  %v507_v52 = vpop.f32.mrb[45].mxu1  ;;  %v875_v53 = vpop.f32.mrb[44].mxu0 }
 0x170   :  { %v877_v54 = vpop.f32.mrb[45].mxu0 }
 0x171   :  { %1152 = vst.msk [vmem:[%s2705_s3 + $0xa8] sm:$0xff] %vm1130_vm0, %v1090_v50  ;;  %v876_v56 = vadd.f32 %v875_v53, %v506_v51 }
 0x172   :  { %v510_v57 = vpop.f32.mrb[46].mxu1 }
 0x173   :  { %v1091_v58 = vmax.f32 %v876_v56, 0.0  ;;  %v511_v59 = vadd.f32 %v2308_v55, %v510_v57  ;;  %v512_v60 = vpop.f32.mrb[47].mxu1  ;;  %v880_v61 = vpop.f32.mrb[46].mxu0 }
 0x174   :  { %v882_v62 = vpop.f32.mrb[47].mxu0 }
 0x175   :  { %1153 = vst.msk [vmem:[%s2705_s3 + $0xb0] sm:$0xff] %vm1130_vm0, %v1091_v58  ;;  %v881_v63 = vadd.f32 %v880_v61, %v511_v59 }
 0x176   :  { %v515_v1 = vpop.f32.mrb[48].mxu1 }
 0x177   :  { %v1092_v2 = vmax.f32 %v881_v63, 0.0  ;;  %v516_v3 = vadd.f32 %v2308_v55, %v515_v1  ;;  %v517_v4 = vpop.f32.mrb[49].mxu1  ;;  %v885_v5 = vpop.f32.mrb[48].mxu0 }
 0x178   :  { %v887_v6 = vpop.f32.mrb[49].mxu0 }
 0x179   :  { %1154 = vst.msk [vmem:[%s2705_s3 + $0xb8] sm:$0xff] %vm1130_vm0, %v1092_v2  ;;  %v886_v7 = vadd.f32 %v885_v5, %v516_v3 }
 0x17a   :  { %v520_v8 = vpop.f32.mrb[50].mxu1 }
 0x17b   :  { %v1093_v9 = vmax.f32 %v886_v7, 0.0  ;;  %v521_v10 = vadd.f32 %v2308_v55, %v520_v8  ;;  %v522_v11 = vpop.f32.mrb[51].mxu1  ;;  %v890_v12 = vpop.f32.mrb[50].mxu0 }
 0x17c   :  { %v892_v13 = vpop.f32.mrb[51].mxu0 }
 0x17d   :  { %1155 = vst.msk [vmem:[%s2705_s3 + $0xc0] sm:$0xff] %vm1130_vm0, %v1093_v9  ;;  %v891_v14 = vadd.f32 %v890_v12, %v521_v10 }
 0x17e   :  { %v525_v15 = vpop.f32.mrb[52].mxu1 }
 0x17f   :  { %v1094_v16 = vmax.f32 %v891_v14, 0.0  ;;  %v526_v17 = vadd.f32 %v2308_v55, %v525_v15  ;;  %v527_v18 = vpop.f32.mrb[53].mxu1  ;;  %v895_v19 = vpop.f32.mrb[52].mxu0 }
 0x180   :  { %v897_v20 = vpop.f32.mrb[53].mxu0 }
 0x181   :  { %1156 = vst.msk [vmem:[%s2705_s3 + $0xc8] sm:$0xff] %vm1130_vm0, %v1094_v16  ;;  %v896_v21 = vadd.f32 %v895_v19, %v526_v17 }
 0x182   :  { %v530_v22 = vpop.f32.mrb[54].mxu1 }
 0x183   :  { %v1095_v23 = vmax.f32 %v896_v21, 0.0  ;;  %v531_v24 = vadd.f32 %v2308_v55, %v530_v22  ;;  %v532_v25 = vpop.f32.mrb[55].mxu1  ;;  %v900_v26 = vpop.f32.mrb[54].mxu0 }
 0x184   :  { %v902_v27 = vpop.f32.mrb[55].mxu0 }
 0x185   :  { %1157 = vst.msk [vmem:[%s2705_s3 + $0xd0] sm:$0xff] %vm1130_vm0, %v1095_v23  ;;  %v901_v28 = vadd.f32 %v900_v26, %v531_v24 }
 0x186   :  { %v535_v29 = vpop.f32.mrb[56].mxu1 }
 0x187   :  { %v1096_v30 = vmax.f32 %v901_v28, 0.0  ;;  %v536_v31 = vadd.f32 %v2308_v55, %v535_v29  ;;  %v537_v32 = vpop.f32.mrb[57].mxu1  ;;  %v905_v33 = vpop.f32.mrb[56].mxu0 }
 0x188   :  { %v907_v34 = vpop.f32.mrb[57].mxu0 }
 0x189   :  { %1158 = vst.msk [vmem:[%s2705_s3 + $0xd8] sm:$0xff] %vm1130_vm0, %v1096_v30  ;;  %v906_v35 = vadd.f32 %v905_v33, %v536_v31 }
 0x18a   :  { %v540_v36 = vpop.f32.mrb[58].mxu1 }
 0x18b   :  { %v1097_v37 = vmax.f32 %v906_v35, 0.0  ;;  %v541_v38 = vadd.f32 %v2308_v55, %v540_v36  ;;  %v542_v39 = vpop.f32.mrb[59].mxu1  ;;  %v910_v0 = vpop.f32.mrb[58].mxu0 }
 0x18c   :  { %v912_v40 = vpop.f32.mrb[59].mxu0 }
 0x18d   :  { %1159 = vst.msk [vmem:[%s2705_s3 + $0xe0] sm:$0xff] %vm1130_vm0, %v1097_v37  ;;  %v911_v41 = vadd.f32 %v910_v0, %v541_v38 }
 0x18e   :  { %v545_v42 = vpop.f32.mrb[60].mxu1 }
 0x18f   :  { %v1098_v43 = vmax.f32 %v911_v41, 0.0  ;;  %v546_v44 = vadd.f32 %v2308_v55, %v545_v42  ;;  %v547_v45 = vpop.f32.mrb[61].mxu1  ;;  %v915_v46 = vpop.f32.mrb[60].mxu0 }
 0x190   :  { %v917_v47 = vpop.f32.mrb[61].mxu0 }
 0x191   :  { %1160 = vst.msk [vmem:[%s2705_s3 + $0xe8] sm:$0xff] %vm1130_vm0, %v1098_v43  ;;  %v916_v48 = vadd.f32 %v915_v46, %v546_v44 }
 0x192   :  { %v550_v49 = vpop.f32.mrb[62].mxu1 }
 0x193   :  { %v1099_v50 = vmax.f32 %v916_v48, 0.0  ;;  %v551_v51 = vadd.f32 %v2308_v55, %v550_v49  ;;  %v552_v52 = vpop.f32.mrb[63].mxu1  ;;  %v920_v53 = vpop.f32.mrb[62].mxu0 }
 0x194   :  { %v922_v54 = vpop.f32.mrb[63].mxu0 }
 0x195   :  { %1161 = vst.msk [vmem:[%s2705_s3 + $0xf0] sm:$0xff] %vm1130_vm0, %v1099_v50  ;;  %v921_v56 = vadd.f32 %v920_v53, %v551_v51 }
 0x196   :  { %v555_v57 = vpop.f32.mrb[64].mxu1 }
 0x197   :  { %v1100_v58 = vmax.f32 %v921_v56, 0.0  ;;  %v556_v59 = vadd.f32 %v2308_v55, %v555_v57  ;;  %v557_v60 = vpop.f32.mrb[65].mxu1  ;;  %v925_v61 = vpop.f32.mrb[64].mxu0 }
 0x198   :  { %v927_v62 = vpop.f32.mrb[65].mxu0 }
 0x199   :  { %1162 = vst.msk [vmem:[%s2705_s3 + $0xf8] sm:$0xff] %vm1130_vm0, %v1100_v58  ;;  %v926_v63 = vadd.f32 %v925_v61, %v556_v59 }
 0x19a   :  { %v560_v1 = vpop.f32.mrb[66].mxu1 }
 0x19b   :  { %v1101_v2 = vmax.f32 %v926_v63, 0.0  ;;  %v561_v3 = vadd.f32 %v2308_v55, %v560_v1  ;;  %v562_v4 = vpop.f32.mrb[67].mxu1  ;;  %v930_v5 = vpop.f32.mrb[66].mxu0 }
 0x19c   :  { %v932_v6 = vpop.f32.mrb[67].mxu0 }
 0x19d   :  { %1163 = vst.msk [vmem:[%s2705_s3 + $0x100] sm:$0xff] %vm1130_vm0, %v1101_v2  ;;  %v931_v7 = vadd.f32 %v930_v5, %v561_v3 }
 0x19e   :  { %v565_v8 = vpop.f32.mrb[68].mxu1 }
 0x19f   :  { %v1102_v9 = vmax.f32 %v931_v7, 0.0  ;;  %v566_v10 = vadd.f32 %v2308_v55, %v565_v8  ;;  %v567_v11 = vpop.f32.mrb[69].mxu1  ;;  %v935_v12 = vpop.f32.mrb[68].mxu0 }
 0x1a0   :  { %v937_v13 = vpop.f32.mrb[69].mxu0 }
 0x1a1   :  { %1164 = vst.msk [vmem:[%s2705_s3 + $0x108] sm:$0xff] %vm1130_vm0, %v1102_v9  ;;  %v936_v14 = vadd.f32 %v935_v12, %v566_v10 }
 0x1a2   :  { %v570_v15 = vpop.f32.mrb[70].mxu1 }
 0x1a3   :  { %v1103_v16 = vmax.f32 %v936_v14, 0.0  ;;  %v571_v17 = vadd.f32 %v2308_v55, %v570_v15  ;;  %v572_v18 = vpop.f32.mrb[71].mxu1  ;;  %v940_v19 = vpop.f32.mrb[70].mxu0 }
 0x1a4   :  { %v942_v20 = vpop.f32.mrb[71].mxu0 }
 0x1a5   :  { %1165 = vst.msk [vmem:[%s2705_s3 + $0x110] sm:$0xff] %vm1130_vm0, %v1103_v16  ;;  %v941_v21 = vadd.f32 %v940_v19, %v571_v17 }
 0x1a6   :  { %v575_v22 = vpop.f32.mrb[72].mxu1 }
 0x1a7   :  { %v1104_v23 = vmax.f32 %v941_v21, 0.0  ;;  %v576_v24 = vadd.f32 %v2308_v55, %v575_v22  ;;  %v577_v25 = vpop.f32.mrb[73].mxu1  ;;  %v945_v26 = vpop.f32.mrb[72].mxu0 }
 0x1a8   :  { %v947_v27 = vpop.f32.mrb[73].mxu0 }
 0x1a9   :  { %1166 = vst.msk [vmem:[%s2705_s3 + $0x118] sm:$0xff] %vm1130_vm0, %v1104_v23  ;;  %v946_v28 = vadd.f32 %v945_v26, %v576_v24 }
 0x1aa   :  { %v580_v29 = vpop.f32.mrb[74].mxu1 }
 0x1ab   :  { %v1105_v30 = vmax.f32 %v946_v28, 0.0  ;;  %v581_v31 = vadd.f32 %v2308_v55, %v580_v29  ;;  %v582_v32 = vpop.f32.mrb[75].mxu1  ;;  %v950_v33 = vpop.f32.mrb[74].mxu0 }
 0x1ac   :  { %v952_v34 = vpop.f32.mrb[75].mxu0 }
 0x1ad   :  { %1167 = vst.msk [vmem:[%s2705_s3 + $0x120] sm:$0xff] %vm1130_vm0, %v1105_v30  ;;  %v951_v35 = vadd.f32 %v950_v33, %v581_v31 }
 0x1ae   :  { %v585_v36 = vpop.f32.mrb[76].mxu1 }
 0x1af   :  { %v1106_v37 = vmax.f32 %v951_v35, 0.0  ;;  %v586_v38 = vadd.f32 %v2308_v55, %v585_v36  ;;  %v587_v39 = vpop.f32.mrb[77].mxu1  ;;  %v955_v0 = vpop.f32.mrb[76].mxu0 }
 0x1b0   :  { %v957_v40 = vpop.f32.mrb[77].mxu0 }
 0x1b1   :  { %1168 = vst.msk [vmem:[%s2705_s3 + $0x128] sm:$0xff] %vm1130_vm0, %v1106_v37  ;;  %v956_v41 = vadd.f32 %v955_v0, %v586_v38 }
 0x1b2   :  { %v590_v42 = vpop.f32.mrb[78].mxu1 }
 0x1b3   :  { %v1107_v43 = vmax.f32 %v956_v41, 0.0  ;;  %v591_v44 = vadd.f32 %v2308_v55, %v590_v42  ;;  %v592_v45 = vpop.f32.mrb[79].mxu1  ;;  %v960_v46 = vpop.f32.mrb[78].mxu0 }
 0x1b4   :  { %v962_v47 = vpop.f32.mrb[79].mxu0 }
 0x1b5   :  { %1169 = vst.msk [vmem:[%s2705_s3 + $0x130] sm:$0xff] %vm1130_vm0, %v1107_v43  ;;  %v961_v48 = vadd.f32 %v960_v46, %v591_v44 }
 0x1b6   :  { %v595_v49 = vpop.f32.mrb[80].mxu1 }
 0x1b7   :  { %v1108_v50 = vmax.f32 %v961_v48, 0.0  ;;  %v596_v51 = vadd.f32 %v2308_v55, %v595_v49  ;;  %v597_v52 = vpop.f32.mrb[81].mxu1  ;;  %v965_v53 = vpop.f32.mrb[80].mxu0 }
 0x1b8   :  { %v967_v54 = vpop.f32.mrb[81].mxu0 }
 0x1b9   :  { %1170 = vst.msk [vmem:[%s2705_s3 + $0x138] sm:$0xff] %vm1130_vm0, %v1108_v50  ;;  %v966_v56 = vadd.f32 %v965_v53, %v596_v51 }
 0x1ba   :  { %v600_v57 = vpop.f32.mrb[82].mxu1 }
 0x1bb   :  { %v1109_v58 = vmax.f32 %v966_v56, 0.0  ;;  %v601_v59 = vadd.f32 %v2308_v55, %v600_v57  ;;  %v602_v60 = vpop.f32.mrb[83].mxu1  ;;  %v970_v61 = vpop.f32.mrb[82].mxu0 }
 0x1bc   :  { %v972_v62 = vpop.f32.mrb[83].mxu0 }
 0x1bd   :  { %1171 = vst.msk [vmem:[%s2705_s3 + $0x140] sm:$0xff] %vm1130_vm0, %v1109_v58  ;;  %v971_v63 = vadd.f32 %v970_v61, %v601_v59 }
 0x1be   :  { %v605_v1 = vpop.f32.mrb[84].mxu1 }
 0x1bf   :  { %v1110_v2 = vmax.f32 %v971_v63, 0.0  ;;  %v606_v3 = vadd.f32 %v2308_v55, %v605_v1  ;;  %v607_v4 = vpop.f32.mrb[85].mxu1  ;;  %v975_v5 = vpop.f32.mrb[84].mxu0 }
 0x1c0   :  { %v977_v6 = vpop.f32.mrb[85].mxu0 }
 0x1c1   :  { %1172 = vst.msk [vmem:[%s2705_s3 + $0x148] sm:$0xff] %vm1130_vm0, %v1110_v2  ;;  %v976_v7 = vadd.f32 %v975_v5, %v606_v3 }
 0x1c2   :  { %v610_v8 = vpop.f32.mrb[86].mxu1 }
 0x1c3   :  { %v1111_v9 = vmax.f32 %v976_v7, 0.0  ;;  %v611_v10 = vadd.f32 %v2308_v55, %v610_v8  ;;  %v612_v11 = vpop.f32.mrb[87].mxu1  ;;  %v980_v12 = vpop.f32.mrb[86].mxu0 }
 0x1c4   :  { %v982_v13 = vpop.f32.mrb[87].mxu0 }
 0x1c5   :  { %1173 = vst.msk [vmem:[%s2705_s3 + $0x150] sm:$0xff] %vm1130_vm0, %v1111_v9  ;;  %v981_v14 = vadd.f32 %v980_v12, %v611_v10 }
 0x1c6   :  { %v615_v15 = vpop.f32.mrb[88].mxu1 }
 0x1c7   :  { %v1112_v16 = vmax.f32 %v981_v14, 0.0  ;;  %v616_v17 = vadd.f32 %v2308_v55, %v615_v15  ;;  %v617_v18 = vpop.f32.mrb[89].mxu1  ;;  %v985_v19 = vpop.f32.mrb[88].mxu0 }
 0x1c8   :  { %v987_v20 = vpop.f32.mrb[89].mxu0 }
 0x1c9   :  { %1174 = vst.msk [vmem:[%s2705_s3 + $0x158] sm:$0xff] %vm1130_vm0, %v1112_v16  ;;  %v986_v21 = vadd.f32 %v985_v19, %v616_v17 }
 0x1ca   :  { %v620_v22 = vpop.f32.mrb[90].mxu1 }
 0x1cb   :  { %v1113_v23 = vmax.f32 %v986_v21, 0.0  ;;  %v621_v24 = vadd.f32 %v2308_v55, %v620_v22  ;;  %v622_v25 = vpop.f32.mrb[91].mxu1  ;;  %v990_v26 = vpop.f32.mrb[90].mxu0 }
 0x1cc   :  { %v992_v27 = vpop.f32.mrb[91].mxu0 }
 0x1cd   :  { %1175 = vst.msk [vmem:[%s2705_s3 + $0x160] sm:$0xff] %vm1130_vm0, %v1113_v23  ;;  %v991_v28 = vadd.f32 %v990_v26, %v621_v24 }
 0x1ce   :  { %v625_v29 = vpop.f32.mrb[92].mxu1 }
 0x1cf   :  { %v1114_v30 = vmax.f32 %v991_v28, 0.0  ;;  %v626_v31 = vadd.f32 %v2308_v55, %v625_v29  ;;  %v627_v32 = vpop.f32.mrb[93].mxu1  ;;  %v995_v33 = vpop.f32.mrb[92].mxu0 }
 0x1d0   :  { %v997_v34 = vpop.f32.mrb[93].mxu0 }
 0x1d1   :  { %1176 = vst.msk [vmem:[%s2705_s3 + $0x168] sm:$0xff] %vm1130_vm0, %v1114_v30  ;;  %v996_v35 = vadd.f32 %v995_v33, %v626_v31 }
 0x1d2   :  { %v630_v36 = vpop.f32.mrb[94].mxu1 }
 0x1d3   :  { %v1115_v37 = vmax.f32 %v996_v35, 0.0  ;;  %v631_v38 = vadd.f32 %v2308_v55, %v630_v36  ;;  %v632_v39 = vpop.f32.mrb[95].mxu1  ;;  %v1000_v0 = vpop.f32.mrb[94].mxu0 }
 0x1d4   :  { %v1002_v40 = vpop.f32.mrb[95].mxu0 }
 0x1d5   :  { %1177 = vst.msk [vmem:[%s2705_s3 + $0x170] sm:$0xff] %vm1130_vm0, %v1115_v37  ;;  %v1001_v41 = vadd.f32 %v1000_v0, %v631_v38  ;;  %v1417_v38 = vld [vmem:[%s2704_s2] ss:$0 sm:$0xff] }
 0x1d6   :  { %v635_v42 = vpop.f32.mrb[96].mxu1 }
 0x1d7   :  { %v1116_v43 = vmax.f32 %v1001_v41, 0.0  ;;  %v636_v44 = vadd.f32 %v2308_v55, %v635_v42  ;;  %v637_v45 = vpop.f32.mrb[97].mxu1  ;;  %v1005_v46 = vpop.f32.mrb[96].mxu0 }
 0x1d8   :  { %v1007_v47 = vpop.f32.mrb[97].mxu0 }
 0x1d9   :  { %1178 = vst.msk [vmem:[%s2705_s3 + $0x178] sm:$0xff] %vm1130_vm0, %v1116_v43  ;;  %v1006_v48 = vadd.f32 %v1005_v46, %v636_v44 }
 0x1da   :  { %v640_v49 = vpop.f32.mrb[98].mxu1 }
 0x1db   :  { %v1117_v50 = vmax.f32 %v1006_v48, 0.0  ;;  %v641_v51 = vadd.f32 %v2308_v55, %v640_v49  ;;  %v642_v52 = vpop.f32.mrb[99].mxu1  ;;  %v1010_v53 = vpop.f32.mrb[98].mxu0 }
 0x1dc   :  { %v1012_v54 = vpop.f32.mrb[99].mxu0 }
 0x1dd   :  { %1179 = vst.msk [vmem:[%s2705_s3 + $0x180] sm:$0xff] %vm1130_vm0, %v1117_v50  ;;  %v1011_v56 = vadd.f32 %v1010_v53, %v641_v51 }
 0x1de   :  { %v645_v57 = vpop.f32.mrb[100].mxu1 }
 0x1df   :  { %v1118_v58 = vmax.f32 %v1011_v56, 0.0  ;;  %v646_v59 = vadd.f32 %v2308_v55, %v645_v57  ;;  %v647_v60 = vpop.f32.mrb[101].mxu1  ;;  %v1015_v61 = vpop.f32.mrb[100].mxu0 }
 0x1e0   :  { %v1017_v62 = vpop.f32.mrb[101].mxu0 }
 0x1e1   :  { %1180 = vst.msk [vmem:[%s2705_s3 + $0x188] sm:$0xff] %vm1130_vm0, %v1118_v58  ;;  %v1016_v63 = vadd.f32 %v1015_v61, %v646_v59 }
 0x1e2   :  { %v650_v1 = vpop.f32.mrb[102].mxu1 }
 0x1e3   :  { %v1119_v2 = vmax.f32 %v1016_v63, 0.0  ;;  %v651_v3 = vadd.f32 %v2308_v55, %v650_v1  ;;  %v652_v4 = vpop.f32.mrb[103].mxu1  ;;  %v1020_v5 = vpop.f32.mrb[102].mxu0 }
 0x1e4   :  { %v1022_v6 = vpop.f32.mrb[103].mxu0 }
 0x1e5   :  { %1181 = vst.msk [vmem:[%s2705_s3 + $0x190] sm:$0xff] %vm1130_vm0, %v1119_v2  ;;  %v1021_v7 = vadd.f32 %v1020_v5, %v651_v3 }
 0x1e6   :  { %v655_v8 = vpop.f32.mrb[104].mxu1 }
 0x1e7   :  { %v1120_v9 = vmax.f32 %v1021_v7, 0.0  ;;  %v656_v10 = vadd.f32 %v2308_v55, %v655_v8  ;;  %v657_v11 = vpop.f32.mrb[105].mxu1  ;;  %v1025_v12 = vpop.f32.mrb[104].mxu0 }
 0x1e8   :  { %v1027_v13 = vpop.f32.mrb[105].mxu0 }
 0x1e9   :  { %1182 = vst.msk [vmem:[%s2705_s3 + $0x198] sm:$0xff] %vm1130_vm0, %v1120_v9  ;;  %v1026_v14 = vadd.f32 %v1025_v12, %v656_v10 }
 0x1ea   :  { %v660_v15 = vpop.f32.mrb[106].mxu1 }
 0x1eb   :  { %v1121_v16 = vmax.f32 %v1026_v14, 0.0  ;;  %v661_v17 = vadd.f32 %v2308_v55, %v660_v15  ;;  %v662_v18 = vpop.f32.mrb[107].mxu1  ;;  %v1030_v19 = vpop.f32.mrb[106].mxu0 }
 0x1ec   :  { %v1032_v20 = vpop.f32.mrb[107].mxu0 }
 0x1ed   :  { %1183 = vst.msk [vmem:[%s2705_s3 + $0x1a0] sm:$0xff] %vm1130_vm0, %v1121_v16  ;;  %v1031_v21 = vadd.f32 %v1030_v19, %v661_v17 }
 0x1ee   :  { %v665_v22 = vpop.f32.mrb[108].mxu1 }
 0x1ef   :  { %v1122_v23 = vmax.f32 %v1031_v21, 0.0  ;;  %v666_v24 = vadd.f32 %v2308_v55, %v665_v22  ;;  %v667_v25 = vpop.f32.mrb[109].mxu1  ;;  %v1035_v26 = vpop.f32.mrb[108].mxu0 }
 0x1f0   :  { %v1037_v27 = vpop.f32.mrb[109].mxu0 }
 0x1f1   :  { %1184 = vst.msk [vmem:[%s2705_s3 + $0x1a8] sm:$0xff] %vm1130_vm0, %v1122_v23  ;;  %v1036_v28 = vadd.f32 %v1035_v26, %v666_v24 }
 0x1f2   :  { %v670_v29 = vpop.f32.mrb[110].mxu1 }
 0x1f3   :  { %v1123_v30 = vmax.f32 %v1036_v28, 0.0  ;;  %v671_v31 = vadd.f32 %v2308_v55, %v670_v29  ;;  %v672_v32 = vpop.f32.mrb[111].mxu1  ;;  %v1040_v33 = vpop.f32.mrb[110].mxu0 }
 0x1f4   :  { %v1042_v34 = vpop.f32.mrb[111].mxu0 }
 0x1f5   :  { %1185 = vst.msk [vmem:[%s2705_s3 + $0x1b0] sm:$0xff] %vm1130_vm0, %v1123_v30  ;;  %v1041_v35 = vadd.f32 %v1040_v33, %v671_v31 }
 0x1f6   :  { %v675_v36 = vpop.f32.mrb[112].mxu1 }
 0x1f7   :  { %v1124_v37 = vmax.f32 %v1041_v35, 0.0  ;;  %v676_v39 = vadd.f32 %v1417_v38, %v675_v36  ;;  %v677_v0 = vpop.f32.mrb[113].mxu1  ;;  %v1045_v40 = vpop.f32.mrb[112].mxu0 }
 0x1f8   :  { %v1047_v41 = vpop.f32.mrb[113].mxu0 }
 0x1f9   :  { %1186 = vst.msk [vmem:[%s2705_s3 + $0x1b8] sm:$0xff] %vm1130_vm0, %v1124_v37  ;;  %v1046_v55 = vadd.f32 %v1045_v40, %v676_v39 }
 0x1fa   :  { %v680_v42 = vpop.f32.mrb[114].mxu1 }
 0x1fb   :  { %v1125_v43 = vmax.f32 %v1046_v55, 0.0  ;;  %v681_v44 = vadd.f32 %v1417_v38, %v680_v42  ;;  %v682_v45 = vpop.f32.mrb[115].mxu1  ;;  %v1050_v46 = vpop.f32.mrb[114].mxu0 }
 0x1fc   :  { %v1052_v47 = vpop.f32.mrb[115].mxu0 }
 0x1fd   :  { %1187 = vst.msk [vmem:[%s2705_s3 + $0x1c0] sm:$0xff] %vm1130_vm0, %v1125_v43  ;;  %v1051_v48 = vadd.f32 %v1050_v46, %v681_v44 }
 0x1fe   :  { %v685_v49 = vpop.f32.mrb[116].mxu1 }
 0x1ff   :  { %v1126_v50 = vmax.f32 %v1051_v48, 0.0  ;;  %v686_v51 = vadd.f32 %v1417_v38, %v685_v49  ;;  %v687_v52 = vpop.f32.mrb[117].mxu1  ;;  %v1055_v53 = vpop.f32.mrb[116].mxu0 }
 0x200   :  { %v1057_v54 = vpop.f32.mrb[117].mxu0 }
 0x201   :  { %1188 = vst.msk [vmem:[%s2705_s3 + $0x1c8] sm:$0xff] %vm1130_vm0, %v1126_v50  ;;  %v1056_v56 = vadd.f32 %v1055_v53, %v686_v51 }
 0x202   :  { %v690_v57 = vpop.f32.mrb[118].mxu1 }
 0x203   :  { %v1127_v58 = vmax.f32 %v1056_v56, 0.0  ;;  %v691_v59 = vadd.f32 %v1417_v38, %v690_v57  ;;  %v692_v60 = vpop.f32.mrb[119].mxu1  ;;  %v1060_v61 = vpop.f32.mrb[118].mxu0 }
 0x204   :  { %v1062_v62 = vpop.f32.mrb[119].mxu0 }
 0x205   :  { %1189 = vst.msk [vmem:[%s2705_s3 + $0x1d0] sm:$0xff] %vm1130_vm0, %v1127_v58  ;;  %v1061_v63 = vadd.f32 %v1060_v61, %v691_v59 }
 0x206   :  { %v695_v1 = vpop.f32.mrb[120].mxu1 }
 0x207   :  { %v1128_v2 = vmax.f32 %v1061_v63, 0.0  ;;  %v696_v3 = vadd.f32 %v1417_v38, %v695_v1  ;;  %v697_v4 = vpop.f32.mrb[121].mxu1  ;;  %v1065_v5 = vpop.f32.mrb[120].mxu0 }
 0x208   :  { %v1067_v6 = vpop.f32.mrb[121].mxu0 }
 0x209   :  { %1190 = vst.msk [vmem:[%s2705_s3 + $0x1d8] sm:$0xff] %vm1130_vm0, %v1128_v2  ;;  %v1066_v7 = vadd.f32 %v1065_v5, %v696_v3 }
 0x20b   :  { %v1129_v8 = vmax.f32 %v1066_v7, 0.0 }
 0x20d   :  { %1192 = vst.msk [vmem:[%s2705_s3 + $0x1e0] sm:$0x3f] %vm1191_vm1, %v1129_v8 }

// kernel: gpt_forward.7
= control target key start
LH: loop header
LB: loop body
LE: loop exit
PB: predicated region body
PF: predicated region fallthrough
CT: control target
= control target key end

     0   :  { %v1720_v0 = vmov 0.0|0.0   ;;  %vm1721_vm0 = vmmov 0   ;;  %vm278_vm1 = vcmask 523264   ;;  %vm1213_vm2 = vcmask 521216   ;;  %s2969_s1 = inlined_call_operand.vmem [shape: f32[576,64], index: 1, kind: input, shape index: {}]   ;;  %s2970_s0 = inlined_call_operand.vmem [shape: f32[294,576], index: 0, kind: input, shape index: {}]   ;;  %s2971_s2 = inlined_call_operand.vmem [shape: f32[1,64], index: 2, kind: input, shape index: {}]   ;;  %s2972_s3 = inlined_call_operand.vmem [shape: f32[294,64], index: 3, kind: output, shape index: {}]  }
   0x1   :  { %1429 = vmatprep.subr.bf16.mxu1 %v1720_v0  ;;  %1477 = vmatprep.subr.bf16.mxu0 %v1720_v0  ;;  %v199_v1 = vld [vmem:[%s2969_s1] sm:$0xff]  ;;  %v200_v2 = vld [vmem:[%s2969_s1 + $0x8] sm:$0xff]  ;;  %v201_v6 = vld [vmem:[%s2969_s1 + $0x10] sm:$0xff] }
   0x2   :  { %v231_v3 = vld [vmem:[%s2969_s1 + $0x100] sm:$0xff]  ;;  %v1430_v4 = vpack.c.bf16 %v200_v2, %v199_v1  ;;  %v232_v5 = vld [vmem:[%s2969_s1 + $0x108] sm:$0xff]  ;;  %v202_v7 = vld [vmem:[%s2969_s1 + $0x18] sm:$0xff] }
   0x3   :  { %v1763_v8 = vpack.c.bf16 %v232_v5, %v231_v3  ;;  %v233_v9 = vld [vmem:[%s2969_s1 + $0x110] sm:$0xff]  ;;  %v234_v10 = vld [vmem:[%s2969_s1 + $0x118] sm:$0xff]  ;;  %v1433_v11 = vpack.c.bf16 %v202_v7, %v201_v6  ;;  %v203_v13 = vld [vmem:[%s2969_s1 + $0x20] sm:$0xff] }
   0x4   :  { %1431 = vmatpush1.bf16.msra.mxu1 %v1430_v4  ;;  %v1773_v12 = vpack.c.bf16 %v234_v10, %v233_v9  ;;  %v204_v14 = vld [vmem:[%s2969_s1 + $0x28] sm:$0xff]  ;;  %v235_v15 = vld [vmem:[%s2969_s1 + $0x120] sm:$0xff]  ;;  %v205_v19 = vld [vmem:[%s2969_s1 + $0x30] sm:$0xff] }
   0x5   :  { %1479 = vmatpush1.bf16.msra.mxu0 %v1763_v8  ;;  %1432 = vmatprep.subr.bf16.mxu1 %v1720_v0  ;;  %v236_v16 = vld [vmem:[%s2969_s1 + $0x128] sm:$0xff]  ;;  %v1436_v17 = vpack.c.bf16 %v204_v14, %v203_v13  ;;  %v206_v20 = vld [vmem:[%s2969_s1 + $0x38] sm:$0xff]  ;;  %v237_v21 = vld [vmem:[%s2969_s1 + $0x130] sm:$0xff] }
   0x6   :  { %1480 = vmatprep.subr.bf16.mxu0 %v1720_v0  ;;  %v1790_v18 = vpack.c.bf16 %v236_v16, %v235_v15  ;;  %v238_v22 = vld [vmem:[%s2969_s1 + $0x138] sm:$0xff]  ;;  %v1439_v23 = vpack.c.bf16 %v206_v20, %v205_v19  ;;  %v207_v25 = vld [vmem:[%s2969_s1 + $0x40] sm:$0xff]  ;;  %v208_v26 = vld [vmem:[%s2969_s1 + $0x48] sm:$0xff] }
   0x7   :  { %v1807_v24 = vpack.c.bf16 %v238_v22, %v237_v21  ;;  %v239_v27 = vld [vmem:[%s2969_s1 + $0x140] sm:$0xff]  ;;  %v240_v28 = vld [vmem:[%s2969_s1 + $0x148] sm:$0xff]  ;;  %v1442_v29 = vpack.c.bf16 %v208_v26, %v207_v25  ;;  %v209_v31 = vld [vmem:[%s2969_s1 + $0x50] sm:$0xff] }
   0x8   :  { %1434 = vmatpush1.bf16.msra.mxu1 %v1433_v11  ;;  %v1824_v30 = vpack.c.bf16 %v240_v28, %v239_v27  ;;  %v210_v32 = vld [vmem:[%s2969_s1 + $0x58] sm:$0xff]  ;;  %v241_v33 = vld [vmem:[%s2969_s1 + $0x150] sm:$0xff]  ;;  %v211_v37 = vld [vmem:[%s2969_s1 + $0x60] sm:$0xff] }
   0x9   :  { %1482 = vmatpush1.bf16.msra.mxu0 %v1773_v12  ;;  %1435 = vmatprep.subr.bf16.mxu1 %v1720_v0  ;;  %v242_v34 = vld [vmem:[%s2969_s1 + $0x158] sm:$0xff]  ;;  %v1445_v35 = vpack.c.bf16 %v210_v32, %v209_v31  ;;  %v212_v38 = vld [vmem:[%s2969_s1 + $0x68] sm:$0xff]  ;;  %v243_v39 = vld [vmem:[%s2969_s1 + $0x160] sm:$0xff] }
   0xa   :  { %1483 = vmatprep.subr.bf16.mxu0 %v1720_v0  ;;  %v1841_v36 = vpack.c.bf16 %v242_v34, %v241_v33  ;;  %v244_v40 = vld [vmem:[%s2969_s1 + $0x168] sm:$0xff]  ;;  %v17_v42 = vld [vmem:[%s2970_s0 + $0x18] sm:$0xff]  ;;  %v1448_v43 = vpack.c.bf16 %v212_v38, %v211_v37  ;;  %v213_v45 = vld [vmem:[%s2969_s1 + $0x70] sm:$0xff] }
   0xb   :  { %v15_v41 = vld [vmem:[%s2970_s0 + $0x8] sm:$0xff]  ;;  %704 = vmatprep.mubr.f32.mxu0 %v17_v42  ;;  %v1864_v44 = vpack.c.bf16 %v244_v40, %v243_v39  ;;  %v214_v46 = vld [vmem:[%s2969_s1 + $0x78] sm:$0xff]  ;;  %v245_v47 = vld [vmem:[%s2969_s1 + $0x170] sm:$0xff] }
   0xc   :  { %1437 = vmatpush1.bf16.msra.mxu1 %v1436_v17  ;;  %454 = vmatprep.mubr.f32.mxu1 %v15_v41  ;;  %v246_v48 = vld [vmem:[%s2969_s1 + $0x178] sm:$0xff]  ;;  %v1451_v49 = vpack.c.bf16 %v214_v46, %v213_v45  ;;  %v215_v51 = vld [vmem:[%s2969_s1 + $0x80] sm:$0xff]  ;;  %v216_v52 = vld [vmem:[%s2969_s1 + $0x88] sm:$0xff] }
   0xd   :  { %1485 = vmatpush1.bf16.msra.mxu0 %v1790_v18  ;;  %1438 = vmatprep.subr.bf16.mxu1 %v1720_v0  ;;  %v1881_v50 = vpack.c.bf16 %v246_v48, %v245_v47  ;;  %v247_v53 = vld [vmem:[%s2969_s1 + $0x180] sm:$0xff]  ;;  %v248_v54 = vld [vmem:[%s2969_s1 + $0x188] sm:$0xff]  ;;  %v1454_v55 = vpack.c.bf16 %v216_v52, %v215_v51  ;;  %v217_v57 = vld [vmem:[%s2969_s1 + $0x90] sm:$0xff] }
   0xe   :  { %1486 = vmatprep.subr.bf16.mxu0 %v1720_v0  ;;  %v1898_v56 = vpack.c.bf16 %v248_v54, %v247_v53  ;;  %v218_v58 = vld [vmem:[%s2969_s1 + $0x98] sm:$0xff]  ;;  %v249_v59 = vld [vmem:[%s2969_s1 + $0x190] sm:$0xff]  ;;  %v219_v63 = vld [vmem:[%s2969_s1 + $0xa0] sm:$0xff] }
   0xf   :  { %v250_v60 = vld [vmem:[%s2969_s1 + $0x198] sm:$0xff]  ;;  %v1457_v61 = vpack.c.bf16 %v218_v58, %v217_v57  ;;  %v220_v1 = vld [vmem:[%s2969_s1 + $0xa8] sm:$0xff]  ;;  %v251_v2 = vld [vmem:[%s2969_s1 + $0x1a0] sm:$0xff] }
  0x10   :  { %1440 = vmatpush1.bf16.msra.mxu1 %v1439_v23  ;;  %v1915_v62 = vpack.c.bf16 %v250_v60, %v249_v59  ;;  %v252_v3 = vld [vmem:[%s2969_s1 + $0x1a8] sm:$0xff]  ;;  %v1460_v4 = vpack.c.bf16 %v220_v1, %v219_v63  ;;  %v221_v6 = vld [vmem:[%s2969_s1 + $0xb0] sm:$0xff]  ;;  %v222_v7 = vld [vmem:[%s2969_s1 + $0xb8] sm:$0xff] }
  0x11   :  { %1488 = vmatpush1.bf16.msra.mxu0 %v1807_v24  ;;  %1441 = vmatprep.subr.bf16.mxu1 %v1720_v0  ;;  %v1932_v5 = vpack.c.bf16 %v252_v3, %v251_v2  ;;  %v253_v9 = vld [vmem:[%s2969_s1 + $0x1b0] sm:$0xff]  ;;  %v254_v10 = vld [vmem:[%s2969_s1 + $0x1b8] sm:$0xff]  ;;  %v1463_v11 = vpack.c.bf16 %v222_v7, %v221_v6  ;;  %v223_v14 = vld [vmem:[%s2969_s1 + $0xc0] sm:$0xff] }
  0x12   :  { %1489 = vmatprep.subr.bf16.mxu0 %v1720_v0  ;;  %v1949_v13 = vpack.c.bf16 %v254_v10, %v253_v9  ;;  %v224_v15 = vld [vmem:[%s2969_s1 + $0xc8] sm:$0xff]  ;;  %v255_v16 = vld [vmem:[%s2969_s1 + $0x1c0] sm:$0xff]  ;;  %v225_v21 = vld [vmem:[%s2969_s1 + $0xd0] sm:$0xff] }
  0x13   :  { %v256_v17 = vld [vmem:[%s2969_s1 + $0x1c8] sm:$0xff]  ;;  %v1466_v19 = vpack.c.bf16 %v224_v15, %v223_v14  ;;  %v226_v22 = vld [vmem:[%s2969_s1 + $0xd8] sm:$0xff]  ;;  %v257_v23 = vld [vmem:[%s2969_s1 + $0x1d0] sm:$0xff] }
  0x14   :  { %1443 = vmatpush1.bf16.msra.mxu1 %v1442_v29  ;;  %v1966_v20 = vpack.c.bf16 %v256_v17, %v255_v16  ;;  %v258_v25 = vld [vmem:[%s2969_s1 + $0x1d8] sm:$0xff]  ;;  %v1469_v26 = vpack.c.bf16 %v226_v22, %v225_v21  ;;  %v227_v28 = vld [vmem:[%s2969_s1 + $0xe0] sm:$0xff]  ;;  %v228_v29 = vld [vmem:[%s2969_s1 + $0xe8] sm:$0xff] }
  0x15   :  { %1491 = vmatpush1.bf16.msra.mxu0 %v1824_v30  ;;  %1444 = vmatprep.subr.bf16.mxu1 %v1720_v0  ;;  %v1983_v27 = vpack.c.bf16 %v258_v25, %v257_v23  ;;  %v259_v31 = vld [vmem:[%s2969_s1 + $0x1e0] sm:$0xff]  ;;  %v260_v32 = vld [vmem:[%s2969_s1 + $0x1e8] sm:$0xff]  ;;  %v1472_v33 = vpack.c.bf16 %v228_v29, %v227_v28  ;;  %v230_v37 = vld [vmem:[%s2969_s1 + $0xf8] sm:$0xff] }
  0x16   :  { %1492 = vmatprep.subr.bf16.mxu0 %v1720_v0  ;;  %v2000_v34 = vpack.c.bf16 %v260_v32, %v259_v31  ;;  %v261_v38 = vld [vmem:[%s2969_s1 + $0x1f0] sm:$0xff]  ;;  %v262_v39 = vld [vmem:[%s2969_s1 + $0x1f8] sm:$0xff]  ;;  %v263_v42 = vld [vmem:[%s2969_s1 + $0x200] sm:$0xff] }
  0x17   :  { %v2017_v41 = vpack.c.bf16 %v262_v39, %v261_v38  ;;  %v14_v45 = vld [vmem:[%s2970_s0] sm:$0xff]  ;;  %v16_v46 = vld [vmem:[%s2970_s0 + $0x10] sm:$0xff]  ;;  %v266_v52 = vld [vmem:[%s2969_s1 + $0x218] sm:$0xff] }
  0x18   :  { %1446 = vmatpush1.bf16.msra.mxu1 %v1445_v35  ;;  %v229_v35 = vld [vmem:[%s2969_s1 + $0xf0] sm:$0xff]  ;;  %v19_v53 = vld [vmem:[%s2970_s0 + $0x28] sm:$0xff]  ;;  %v21_v54 = vld [vmem:[%s2970_s0 + $0x38] sm:$0xff] }
  0x19   :  { %1494 = vmatpush1.bf16.msra.mxu0 %v1841_v36  ;;  %1447 = vmatprep.subr.bf16.mxu1 %v1720_v0  ;;  %v1475_v40 = vpack.c.bf16 %v230_v37, %v229_v35  ;;  %v20_v48 = vld [vmem:[%s2970_s0 + $0x30] sm:$0xff]  ;;  %v27_v57 = vld [vmem:[%s2970_s0 + $0x68] sm:$0xff]  ;;  %v30_v63 = vld [vmem:[%s2970_s0 + $0x80] sm:$0xff] }
  0x1a   :  { %1495 = vmatprep.subr.bf16.mxu0 %v1720_v0  ;;  %v265_v51 = vld [vmem:[%s2969_s1 + $0x210] sm:$0xff]  ;;  %v268_v59 = vld [vmem:[%s2969_s1 + $0x228] sm:$0xff]  ;;  %v37_v9 = vld [vmem:[%s2970_s0 + $0xb8] sm:$0xff] }
  0x1b   :  { %v1529_v58 = vpack.c.bf16 %v266_v52, %v265_v51  ;;  %v24_v60 = vld [vmem:[%s2970_s0 + $0x50] sm:$0xff]  ;;  %v31_v6 = vld [vmem:[%s2970_s0 + $0x88] sm:$0xff]  ;;  %v42_v15 = vld [vmem:[%s2970_s0 + $0xe0] sm:$0xff] }
  0x1c   :  { %1449 = vmatpush1.bf16.msra.mxu1 %v1448_v43  ;;  %v264_v43 = vld [vmem:[%s2969_s1 + $0x208] sm:$0xff]  ;;  %v32_v1 = vld [vmem:[%s2970_s0 + $0x90] sm:$0xff]  ;;  %v41_v17 = vld [vmem:[%s2970_s0 + $0xd8] sm:$0xff] }
  0x1d   :  { %1497 = vmatpush1.bf16.msra.mxu0 %v1864_v44  ;;  %1450 = vmatprep.subr.bf16.mxu1 %v1720_v0  ;;  %v1526_v47 = vpack.c.bf16 %v264_v43, %v263_v42  ;;  %v269_v3 = vld [vmem:[%s2969_s1 + $0x230] sm:$0xff]  ;;  %v35_v7 = vld [vmem:[%s2970_s0 + $0xa8] sm:$0xff]  ;;  %v46_v22 = vld [vmem:[%s2970_s0 + $0x100] sm:$0xff] }
  0x1e   :  { %1498 = vmatprep.subr.bf16.mxu0 %v1720_v0  ;;  %v40_v14 = vld [vmem:[%s2970_s0 + $0xd0] sm:$0xff]  ;;  %v39_v16 = vld [vmem:[%s2970_s0 + $0xc8] sm:$0xff]  ;;  %v49_v25 = vld [vmem:[%s2970_s0 + $0x118] sm:$0xff] }
  0x1f   :  { %v44_v21 = vld [vmem:[%s2970_s0 + $0xf0] sm:$0xff]  ;;  %v57_v28 = vld [vmem:[%s2970_s0 + $0x158] sm:$0xff]  ;;  %v54_v29 = vld [vmem:[%s2970_s0 + $0x140] sm:$0xff] }
  0x20   :  { %1452 = vmatpush1.bf16.msra.mxu1 %v1451_v49  ;;  %v22_v49 = vld [vmem:[%s2970_s0 + $0x40] sm:$0xff]  ;;  %v52_v23 = vld [vmem:[%s2970_s0 + $0x130] sm:$0xff]  ;;  %v61_v35 = vld [vmem:[%s2970_s0 + $0x178] sm:$0xff] }
  0x21   :  { %1500 = vmatpush1.bf16.msra.mxu0 %v1881_v50  ;;  %1453 = vmatprep.subr.bf16.mxu1 %v1720_v0  ;;  %v56_v31 = vld [vmem:[%s2970_s0 + $0x150] sm:$0xff]  ;;  %v62_v32 = vld [vmem:[%s2970_s0 + $0x180] sm:$0xff]  ;;  %v67_v37 = vld [vmem:[%s2970_s0 + $0x1a8] sm:$0xff] }
  0x22   :  { %1501 = vmatprep.subr.bf16.mxu0 %v1720_v0  ;;  %v64_v38 = vld [vmem:[%s2970_s0 + $0x190] sm:$0xff]  ;;  %v66_v39 = vld [vmem:[%s2970_s0 + $0x1a0] sm:$0xff]  ;;  %v69_v42 = vld [vmem:[%s2970_s0 + $0x1b8] sm:$0xff] }
  0x23   :  { %v71_v43 = vld [vmem:[%s2970_s0 + $0x1c8] sm:$0xff]  ;;  %v81_v51 = vld [vmem:[%s2970_s0 + $0x218] sm:$0xff] }
  0x24   :  { %1455 = vmatpush1.bf16.msra.mxu1 %v1454_v55  ;;  %v25_v55 = vld [vmem:[%s2970_s0 + $0x58] sm:$0xff]  ;;  %v87_v52 = vld [vmem:[%s2970_s0 + $0x248] sm:$0xff] }
  0x25   :  { %1503 = vmatpush1.bf16.msra.mxu0 %v1898_v56  ;;  %1456 = vmatprep.subr.bf16.mxu1 %v1720_v0 }
  0x26   :  { %1504 = vmatprep.subr.bf16.mxu0 %v1720_v0 }
  0x28   :  { %1458 = vmatpush1.bf16.msra.mxu1 %v1457_v61  ;;  %v26_v61 = vld [vmem:[%s2970_s0 + $0x60] sm:$0xff] }
  0x29   :  { %1506 = vmatpush1.bf16.msra.mxu0 %v1915_v62  ;;  %1459 = vmatprep.subr.bf16.mxu1 %v1720_v0 }
  0x2a   :  { %1507 = vmatprep.subr.bf16.mxu0 %v1720_v0 }
  0x2c   :  { %1461 = vmatpush1.bf16.msra.mxu1 %v1460_v4  ;;  %v270_v4 = vld [vmem:[%s2969_s1 + $0x238] sm:$0xff] }
  0x2d   :  { %1509 = vmatpush1.bf16.msra.mxu0 %v1932_v5  ;;  %1462 = vmatprep.subr.bf16.mxu1 %v1720_v0  ;;  %v1535_v10 = vpack.c.bf16 %v270_v4, %v269_v3  ;;  %v106_v3 = vld [vmem:[%s2970_s0 + $0x2e0] sm:$0xff] }
  0x2e   :  { %1510 = vmatprep.subr.bf16.mxu0 %v1720_v0  ;;  %v110_v4 = vld [vmem:[%s2970_s0 + $0x300] sm:$0xff] }
  0x30   :  { %1464 = vmatpush1.bf16.msra.mxu1 %v1463_v11  ;;  %v34_v11 = vld [vmem:[%s2970_s0 + $0xa0] sm:$0xff] }
  0x31   :  { %1512 = vmatpush1.bf16.msra.mxu0 %v1949_v13  ;;  %1465 = vmatprep.subr.bf16.mxu1 %v1720_v0 }
  0x32   :  { %1513 = vmatprep.subr.bf16.mxu0 %v1720_v0 }
  0x34   :  { %1467 = vmatpush1.bf16.msra.mxu1 %v1466_v19  ;;  %v47_v19 = vld [vmem:[%s2970_s0 + $0x108] sm:$0xff] }
  0x35   :  { %1515 = vmatpush1.bf16.msra.mxu0 %v1966_v20  ;;  %1468 = vmatprep.subr.bf16.mxu1 %v1720_v0 }
  0x36   :  { %1516 = vmatprep.subr.bf16.mxu0 %v1720_v0 }
  0x38   :  { %1470 = vmatpush1.bf16.msra.mxu1 %v1469_v26  ;;  %v51_v26 = vld [vmem:[%s2970_s0 + $0x128] sm:$0xff] }
  0x39   :  { %1518 = vmatpush1.bf16.msra.mxu0 %v1983_v27  ;;  %1471 = vmatprep.subr.bf16.mxu1 %v1720_v0 }
  0x3a   :  { %1519 = vmatprep.subr.bf16.mxu0 %v1720_v0 }
  0x3c   :  { %1473 = vmatpush1.bf16.msra.mxu1 %v1472_v33  ;;  %v59_v33 = vld [vmem:[%s2970_s0 + $0x168] sm:$0xff] }
  0x3d   :  { %1521 = vmatpush1.bf16.msra.mxu0 %v2000_v34  ;;  %1474 = vmatprep.subr.bf16.mxu1 %v1720_v0 }
  0x3e   :  { %1522 = vmatprep.subr.bf16.mxu0 %v1720_v0 }
  0x40   :  { %1476 = vmatpush1.bf16.msra.mxu1 %v1475_v40  ;;  %v72_v40 = vld [vmem:[%s2970_s0 + $0x1d0] sm:$0xff] }
  0x41   :  { %1524 = vmatpush1.bf16.msra.mxu0 %v2017_v41  ;;  %1537 = vmatprep.subr.bf16.mxu1 %v1720_v0 }
  0x42   :  { %1525 = vmatprep.subr.bf16.mxu0 %v1720_v0 }
  0x43   :  { %455 = vmatmul.mubr.f32.vlgmr.msra.gmra.mrb[0].mxu1 %v14_v45  ;;  %v77_v45 = vld [vmem:[%s2970_s0 + $0x1f8] sm:$0xff] }
  0x44   :  { %705 = vmatmul.mubr.f32.vlgmr.msra.gmra.mrb[0].mxu0 %v16_v46  ;;  %459 = vmatprep.mubr.f32.mxu1 %v20_v48  ;;  %v74_v46 = vld [vmem:[%s2970_s0 + $0x1e0] sm:$0xff] }
  0x45   :  { %1527 = vmatpush3.bf16.msra.mxu0 %v1526_v47  ;;  %1553 = vmatpush1.bf16.msra.mxu1 %v1763_v8  ;;  %v267_v8 = vld [vmem:[%s2969_s1 + $0x220] sm:$0xff]  ;;  %v76_v47 = vld [vmem:[%s2970_s0 + $0x1f0] sm:$0xff] }
  0x46   :  { %709 = vmatprep.mubr.f32.mxu0 %v22_v49  ;;  %1538 = vmatprep.subr.bf16.mxu1 %v1720_v0  ;;  %v1532_v2 = vpack.c.bf16 %v268_v59, %v267_v8  ;;  %v82_v48 = vld [vmem:[%s2970_s0 + $0x220] sm:$0xff]  ;;  %v79_v49 = vld [vmem:[%s2970_s0 + $0x208] sm:$0xff]  ;;  %v97_v8 = vld [vmem:[%s2970_s0 + $0x298] sm:$0xff] }
  0x47   :  { %460 = vmatmul.mubr.f32.gmra.mrb[2].mxu1 %v19_v53  ;;  %1528 = vmatprep.subr.bf16.mxu0 %v1720_v0  ;;  %v84_v53 = vld [vmem:[%s2970_s0 + $0x230] sm:$0xff]  ;;  %v94_v59 = vld [vmem:[%s2970_s0 + $0x280] sm:$0xff] }
  0x48   :  { %710 = vmatmul.mubr.f32.gmra.mrb[2].mxu0 %v21_v54  ;;  %464 = vmatprep.mubr.f32.mxu1 %v25_v55  ;;  %v86_v54 = vld [vmem:[%s2970_s0 + $0x240] sm:$0xff]  ;;  %v92_v55 = vld [vmem:[%s2970_s0 + $0x270] sm:$0xff] }
  0x49   :  { %714 = vmatprep.mubr.f32.mxu0 %v27_v57  ;;  %1554 = vmatpush1.bf16.msra.mxu1 %v1773_v12  ;;  %v29_v12 = vld [vmem:[%s2970_s0 + $0x78] sm:$0xff] }
  0x4a   :  { %1530 = vmatpush3.bf16.msra.mxu0 %v1529_v58  ;;  %1539 = vmatprep.subr.bf16.mxu1 %v1720_v0  ;;  %v89_v57 = vld [vmem:[%s2970_s0 + $0x258] sm:$0xff]  ;;  %v91_v58 = vld [vmem:[%s2970_s0 + $0x268] sm:$0xff] }
  0x4b   :  { %465 = vmatmul.mubr.f32.gmra.mrb[4].mxu1 %v24_v60  ;;  %1531 = vmatprep.subr.bf16.mxu0 %v1720_v0  ;;  %v96_v60 = vld [vmem:[%s2970_s0 + $0x290] sm:$0xff] }
  0x4c   :  { %715 = vmatmul.mubr.f32.gmra.mrb[4].mxu0 %v26_v61  ;;  %469 = vmatprep.mubr.f32.mxu1 %v30_v63  ;;  %v99_v61 = vld [vmem:[%s2970_s0 + $0x2a8] sm:$0xff]  ;;  %v101_v63 = vld [vmem:[%s2970_s0 + $0x2b8] sm:$0xff] }
  0x4d   :  { %719 = vmatprep.mubr.f32.mxu0 %v32_v1  ;;  %1555 = vmatpush1.bf16.msra.mxu1 %v1790_v18  ;;  %v36_v18 = vld [vmem:[%s2970_s0 + $0xb0] sm:$0xff]  ;;  %v107_v1 = vld [vmem:[%s2970_s0 + $0x2e8] sm:$0xff] }
  0x4e   :  { %1540 = vmatprep.subr.bf16.mxu1 %v1720_v0  ;;  %1533 = vmatpush3.bf16.msra.mxu0 %v1532_v2  ;;  %v104_v2 = vld [vmem:[%s2970_s0 + $0x2d0] sm:$0xff] }
  0x4f   :  { %470 = vmatmul.mubr.f32.gmra.mrb[6].mxu1 %v29_v12  ;;  %1534 = vmatprep.subr.bf16.mxu0 %v1720_v0  ;;  %v109_v12 = vld [vmem:[%s2970_s0 + $0x2f8] sm:$0xff] }
  0x50   :  { %720 = vmatmul.mubr.f32.gmra.mrb[6].mxu0 %v31_v6  ;;  %474 = vmatprep.mubr.f32.mxu1 %v35_v7  ;;  %v1722_v6 = vmov 0.0   ;;  %v18_v7 = vld [vmem:[%s2970_s0 + $0x20] sm:$0xff] }
  0x51   :  { %724 = vmatprep.mubr.f32.mxu0 %v37_v9  ;;  %1556 = vmatpush1.bf16.msra.mxu1 %v1807_v24  ;;  %v45_v24 = vld [vmem:[%s2970_s0 + $0xf8] sm:$0xff]  ;;  %v115_v9 = vld [vmem:[%s2970_s0 + $0x328] sm:$0xff] }
  0x52   :  { %1541 = vmatprep.subr.bf16.mxu1 %v1720_v0  ;;  %1536 = vmatpush3.bf16.msra.mxu0 %v1535_v10  ;;  %v114_v10 = vld [vmem:[%s2970_s0 + $0x320] sm:$0xff] }
  0x53   :  { %475 = vmatmul.mubr.f32.gmra.mrb[8].mxu1 %v34_v11  ;;  %v23_v11 = vld [vmem:[%s2970_s0 + $0x48] sm:$0xff] }
  0x54   :  { %725 = vmatmul.mubr.f32.gmra.mrb[8].mxu0 %v36_v18  ;;  %479 = vmatprep.mubr.f32.mxu1 %v40_v14  ;;  %v120_v18 = vld [vmem:[%s2970_s0 + $0x350] sm:$0xff]  ;;  %v119_v14 = vld [vmem:[%s2970_s0 + $0x348] sm:$0xff] }
  0x55   :  { %729 = vmatprep.mubr.f32.mxu0 %v42_v15  ;;  %1557 = vmatpush1.bf16.msra.mxu1 %v1824_v30  ;;  %v50_v30 = vld [vmem:[%s2970_s0 + $0x120] sm:$0xff]  ;;  %v28_v15 = vld [vmem:[%s2970_s0 + $0x70] sm:$0xff] }
  0x56   :  { %1542 = vmatprep.subr.bf16.mxu1 %v1720_v0 }
  0x57   :  { %480 = vmatmul.mubr.f32.gmra.mrb[10].mxu1 %v39_v16  ;;  %v125_v16 = vld [vmem:[%s2970_s0 + $0x378] sm:$0xff] }
  0x58   :  { %730 = vmatmul.mubr.f32.gmra.mrb[10].mxu0 %v41_v17  ;;  %484 = vmatprep.mubr.f32.mxu1 %v45_v24  ;;  %v124_v17 = vld [vmem:[%s2970_s0 + $0x370] sm:$0xff]  ;;  %v33_v24 = vld [vmem:[%s2970_s0 + $0x98] sm:$0xff] }
  0x59   :  { %734 = vmatprep.mubr.f32.mxu0 %v47_v19  ;;  %1558 = vmatpush1.bf16.msra.mxu1 %v1841_v36  ;;  %v55_v36 = vld [vmem:[%s2970_s0 + $0x148] sm:$0xff]  ;;  %v130_v19 = vld [vmem:[%s2970_s0 + $0x3a0] sm:$0xff] }
  0x5a   :  { %1543 = vmatprep.subr.bf16.mxu1 %v1720_v0 }
  0x5b   :  { %485 = vmatmul.mubr.f32.gmra.mrb[12].mxu1 %v44_v21  ;;  %v129_v21 = vld [vmem:[%s2970_s0 + $0x398] sm:$0xff] }
  0x5c   :  { %735 = vmatmul.mubr.f32.gmra.mrb[12].mxu0 %v46_v22  ;;  %489 = vmatprep.mubr.f32.mxu1 %v50_v30  ;;  %v38_v22 = vld [vmem:[%s2970_s0 + $0xc0] sm:$0xff]  ;;  %v135_v30 = vld [vmem:[%s2970_s0 + $0x3c8] sm:$0xff] }
  0x5d   :  { %739 = vmatprep.mubr.f32.mxu0 %v52_v23  ;;  %1559 = vmatpush1.bf16.msra.mxu1 %v1864_v44  ;;  %v60_v44 = vld [vmem:[%s2970_s0 + $0x170] sm:$0xff]  ;;  %v134_v23 = vld [vmem:[%s2970_s0 + $0x3c0] sm:$0xff] }
  0x5e   :  { %1544 = vmatprep.subr.bf16.mxu1 %v1720_v0 }
  0x5f   :  { %490 = vmatmul.mubr.f32.gmra.mrb[14].mxu1 %v49_v25  ;;  %v43_v25 = vld [vmem:[%s2970_s0 + $0xe8] sm:$0xff] }
  0x60   :  { %740 = vmatmul.mubr.f32.gmra.mrb[14].mxu0 %v51_v26  ;;  %494 = vmatprep.mubr.f32.mxu1 %v55_v36  ;;  %v140_v26 = vld [vmem:[%s2970_s0 + $0x3f0] sm:$0xff]  ;;  %v139_v36 = vld [vmem:[%s2970_s0 + $0x3e8] sm:$0xff] }
  0x61   :  { %744 = vmatprep.mubr.f32.mxu0 %v57_v28  ;;  %1560 = vmatpush1.bf16.msra.mxu1 %v1881_v50  ;;  %v65_v50 = vld [vmem:[%s2970_s0 + $0x198] sm:$0xff]  ;;  %v48_v28 = vld [vmem:[%s2970_s0 + $0x110] sm:$0xff] }
  0x62   :  { %1545 = vmatprep.subr.bf16.mxu1 %v1720_v0 }
  0x63   :  { %495 = vmatmul.mubr.f32.gmra.mrb[16].mxu1 %v54_v29  ;;  %v145_v29 = vld [vmem:[%s2970_s0 + $0x418] sm:$0xff] }
  0x64   :  { %745 = vmatmul.mubr.f32.gmra.mrb[16].mxu0 %v56_v31  ;;  %499 = vmatprep.mubr.f32.mxu1 %v60_v44  ;;  %v144_v31 = vld [vmem:[%s2970_s0 + $0x410] sm:$0xff]  ;;  %v53_v44 = vld [vmem:[%s2970_s0 + $0x138] sm:$0xff] }
  0x65   :  { %749 = vmatprep.mubr.f32.mxu0 %v62_v32  ;;  %1561 = vmatpush1.bf16.msra.mxu1 %v1898_v56  ;;  %v70_v56 = vld [vmem:[%s2970_s0 + $0x1c0] sm:$0xff] }
  0x66   :  { %1546 = vmatprep.subr.bf16.mxu1 %v1720_v0  ;;  %v150_v32 = vld [vmem:[%s2970_s0 + $0x440] sm:$0xff] }
  0x67   :  { %500 = vmatmul.mubr.f32.gmra.mrb[18].mxu1 %v59_v33  ;;  %v149_v33 = vld [vmem:[%s2970_s0 + $0x438] sm:$0xff] }
  0x68   :  { %750 = vmatmul.mubr.f32.gmra.mrb[18].mxu0 %v61_v35  ;;  %504 = vmatprep.mubr.f32.mxu1 %v65_v50  ;;  %v58_v35 = vld [vmem:[%s2970_s0 + $0x160] sm:$0xff]  ;;  %v155_v50 = vld [vmem:[%s2970_s0 + $0x468] sm:$0xff] }
  0x69   :  { %754 = vmatprep.mubr.f32.mxu0 %v67_v37  ;;  %1562 = vmatpush1.bf16.msra.mxu1 %v1915_v62  ;;  %v75_v62 = vld [vmem:[%s2970_s0 + $0x1e8] sm:$0xff]  ;;  %v154_v37 = vld [vmem:[%s2970_s0 + $0x460] sm:$0xff] }
  0x6a   :  { %1547 = vmatprep.subr.bf16.mxu1 %v1720_v0 }
  0x6b   :  { %505 = vmatmul.mubr.f32.gmra.mrb[20].mxu1 %v64_v38  ;;  %v63_v38 = vld [vmem:[%s2970_s0 + $0x188] sm:$0xff] }
  0x6c   :  { %755 = vmatmul.mubr.f32.gmra.mrb[20].mxu0 %v66_v39  ;;  %509 = vmatprep.mubr.f32.mxu1 %v70_v56  ;;  %v160_v39 = vld [vmem:[%s2970_s0 + $0x490] sm:$0xff]  ;;  %v159_v56 = vld [vmem:[%s2970_s0 + $0x488] sm:$0xff] }
  0x6d   :  { %759 = vmatprep.mubr.f32.mxu0 %v72_v40  ;;  %1563 = vmatpush1.bf16.msra.mxu1 %v1932_v5  ;;  %v80_v5 = vld [vmem:[%s2970_s0 + $0x210] sm:$0xff] }
  0x6e   :  { %1548 = vmatprep.subr.bf16.mxu1 %v1720_v0  ;;  %v68_v40 = vld [vmem:[%s2970_s0 + $0x1b0] sm:$0xff] }
  0x6f   :  { %510 = vmatmul.mubr.f32.gmra.mrb[22].mxu1 %v69_v42  ;;  %v165_v42 = vld [vmem:[%s2970_s0 + $0x4b8] sm:$0xff] }
  0x70   :  { %760 = vmatmul.mubr.f32.gmra.mrb[22].mxu0 %v71_v43  ;;  %514 = vmatprep.mubr.f32.mxu1 %v75_v62  ;;  %v164_v43 = vld [vmem:[%s2970_s0 + $0x4b0] sm:$0xff]  ;;  %v73_v62 = vld [vmem:[%s2970_s0 + $0x1d8] sm:$0xff] }
  0x71   :  { %764 = vmatprep.mubr.f32.mxu0 %v77_v45  ;;  %1564 = vmatpush1.bf16.msra.mxu1 %v1949_v13  ;;  %v85_v13 = vld [vmem:[%s2970_s0 + $0x238] sm:$0xff]  ;;  %v170_v45 = vld [vmem:[%s2970_s0 + $0x4e0] sm:$0xff] }
  0x72   :  { %1549 = vmatprep.subr.bf16.mxu1 %v1720_v0 }
  0x73   :  { %515 = vmatmul.mubr.f32.gmra.mrb[24].mxu1 %v74_v46  ;;  %v169_v46 = vld [vmem:[%s2970_s0 + $0x4d8] sm:$0xff] }
  0x74   :  { %765 = vmatmul.mubr.f32.gmra.mrb[24].mxu0 %v76_v47  ;;  %519 = vmatprep.mubr.f32.mxu1 %v80_v5  ;;  %v78_v47 = vld [vmem:[%s2970_s0 + $0x200] sm:$0xff]  ;;  %v175_v5 = vld [vmem:[%s2970_s0 + $0x508] sm:$0xff] }
  0x75   :  { %769 = vmatprep.mubr.f32.mxu0 %v82_v48  ;;  %1565 = vmatpush1.bf16.msra.mxu1 %v1966_v20  ;;  %v90_v20 = vld [vmem:[%s2970_s0 + $0x260] sm:$0xff] }
  0x76   :  { %1550 = vmatprep.subr.bf16.mxu1 %v1720_v0  ;;  %v174_v48 = vld [vmem:[%s2970_s0 + $0x500] sm:$0xff] }
  0x77   :  { %520 = vmatmul.mubr.f32.gmra.mrb[26].mxu1 %v79_v49  ;;  %v83_v49 = vld [vmem:[%s2970_s0 + $0x228] sm:$0xff] }
  0x78   :  { %770 = vmatmul.mubr.f32.gmra.mrb[26].mxu0 %v81_v51  ;;  %524 = vmatprep.mubr.f32.mxu1 %v85_v13  ;;  %v180_v51 = vld [vmem:[%s2970_s0 + $0x530] sm:$0xff]  ;;  %v179_v13 = vld [vmem:[%s2970_s0 + $0x528] sm:$0xff] }
  0x79   :  { %774 = vmatprep.mubr.f32.mxu0 %v87_v52  ;;  %1566 = vmatpush1.bf16.msra.mxu1 %v1983_v27  ;;  %v95_v27 = vld [vmem:[%s2970_s0 + $0x288] sm:$0xff]  ;;  %v88_v52 = vld [vmem:[%s2970_s0 + $0x250] sm:$0xff] }
  0x7a   :  { %1551 = vmatprep.subr.bf16.mxu1 %v1720_v0 }
  0x7b   :  { %525 = vmatmul.mubr.f32.gmra.mrb[28].mxu1 %v84_v53  ;;  %v185_v53 = vld [vmem:[%s2970_s0 + $0x558] sm:$0xff] }
  0x7c   :  { %775 = vmatmul.mubr.f32.gmra.mrb[28].mxu0 %v86_v54  ;;  %529 = vmatprep.mubr.f32.mxu1 %v90_v20  ;;  %v184_v54 = vld [vmem:[%s2970_s0 + $0x550] sm:$0xff]  ;;  %v93_v20 = vld [vmem:[%s2970_s0 + $0x278] sm:$0xff] }
  0x7d   :  { %779 = vmatprep.mubr.f32.mxu0 %v92_v55  ;;  %1567 = vmatpush1.bf16.msra.mxu1 %v2000_v34  ;;  %v100_v34 = vld [vmem:[%s2970_s0 + $0x2b0] sm:$0xff]  ;;  %v190_v55 = vld [vmem:[%s2970_s0 + $0x580] sm:$0xff] }
  0x7e   :  { %1552 = vmatprep.subr.bf16.mxu1 %v1720_v0  ;;  %v102_v0 = vld [vmem:[%s2970_s0 + $0x2c0] sm:$0xff] }
  0x7f   :  { %530 = vmatmul.mubr.f32.gmra.mrb[30].mxu1 %v89_v57  ;;  %v189_v57 = vld [vmem:[%s2970_s0 + $0x578] sm:$0xff] }
  0x80   :  { %780 = vmatmul.mubr.f32.gmra.mrb[30].mxu0 %v91_v58  ;;  %534 = vmatprep.mubr.f32.mxu1 %v95_v27  ;;  %v98_v58 = vld [vmem:[%s2970_s0 + $0x2a0] sm:$0xff]  ;;  %v195_v27 = vld [vmem:[%s2970_s0 + $0x5a8] sm:$0x3f] }
  0x81   :  { %784 = vmatprep.mubr.f32.mxu0 %v97_v8  ;;  %1568 = vmatpush1.bf16.msra.mxu1 %v2017_v41  ;;  %v105_v41 = vld [vmem:[%s2970_s0 + $0x2d8] sm:$0xff]  ;;  %v194_v8 = vld [vmem:[%s2970_s0 + $0x5a0] sm:$0x3f] }
  0x83   :  { %535 = vmatmul.mubr.f32.gmra.mrb[32].mxu1 %v94_v59  ;;  %v103_v59 = vld [vmem:[%s2970_s0 + $0x2c8] sm:$0xff] }
  0x84   :  { %785 = vmatmul.mubr.f32.gmra.mrb[32].mxu0 %v96_v60  ;;  %539 = vmatprep.mubr.f32.mxu1 %v100_v34  ;;  %v112_v60 = vld [vmem:[%s2970_s0 + $0x310] sm:$0xff]  ;;  %v111_v34 = vld [vmem:[%s2970_s0 + $0x308] sm:$0xff] }
  0x85   :  { %789 = vmatprep.mubr.f32.mxu0 %v102_v0  ;;  %v108_v0 = vld [vmem:[%s2970_s0 + $0x2f0] sm:$0xff] }
  0x87   :  { %540 = vmatmul.mubr.f32.gmra.mrb[34].mxu1 %v99_v61  ;;  %v117_v61 = vld [vmem:[%s2970_s0 + $0x338] sm:$0xff] }
  0x88   :  { %790 = vmatmul.mubr.f32.gmra.mrb[34].mxu0 %v101_v63  ;;  %544 = vmatprep.mubr.f32.mxu1 %v105_v41  ;;  %v116_v63 = vld [vmem:[%s2970_s0 + $0x330] sm:$0xff]  ;;  %v113_v41 = vld [vmem:[%s2970_s0 + $0x318] sm:$0xff] }
  0x89   :  { %794 = vmatprep.mubr.f32.mxu0 %v107_v1  ;;  %v122_v1 = vld [vmem:[%s2970_s0 + $0x360] sm:$0xff] }
  0x8b   :  { %545 = vmatmul.mubr.f32.gmra.mrb[36].mxu1 %v104_v2  ;;  %v121_v2 = vld [vmem:[%s2970_s0 + $0x358] sm:$0xff] }
  0x8c   :  { %795 = vmatmul.mubr.f32.gmra.mrb[36].mxu0 %v106_v3  ;;  %549 = vmatprep.mubr.f32.mxu1 %v110_v4  ;;  %v118_v3 = vld [vmem:[%s2970_s0 + $0x340] sm:$0xff]  ;;  %v127_v4 = vld [vmem:[%s2970_s0 + $0x388] sm:$0xff] }
  0x8d   :  { %1318 = vmatprep.mubr.msk.f32.mxu0 %vm1721_vm0, %v1722_v6 }
  0x8f   :  { %550 = vmatmul.mubr.f32.gmra.mrb[38].mxu1 %v109_v12  ;;  %v126_v12 = vld [vmem:[%s2970_s0 + $0x380] sm:$0xff] }
  0x90   :  { %1319 = vmatmul.mubr.msk.f32.vlgmr.msra.gmra.mrb[0].mxu0 %vm278_vm1, %v18_v7  ;;  %554 = vmatprep.mubr.f32.mxu1 %v115_v9  ;;  %v123_v7 = vld [vmem:[%s2970_s0 + $0x368] sm:$0xff]  ;;  %v132_v9 = vld [vmem:[%s2970_s0 + $0x3b0] sm:$0xff] }
  0x91   :  { %1321 = vmatprep.mubr.msk.f32.mxu0 %vm1721_vm0, %v1722_v6 }
  0x93   :  { %555 = vmatmul.mubr.f32.gmra.mrb[40].mxu1 %v114_v10  ;;  %v131_v10 = vld [vmem:[%s2970_s0 + $0x3a8] sm:$0xff] }
  0x94   :  { %1322 = vmatmul.mubr.msk.f32.gmra.mrb[2].mxu0 %vm278_vm1, %v23_v11  ;;  %559 = vmatprep.mubr.f32.mxu1 %v120_v18  ;;  %v128_v11 = vld [vmem:[%s2970_s0 + $0x390] sm:$0xff]  ;;  %v137_v18 = vld [vmem:[%s2970_s0 + $0x3d8] sm:$0xff] }
  0x95   :  { %1324 = vmatprep.mubr.msk.f32.mxu0 %vm1721_vm0, %v1722_v6 }
  0x97   :  { %560 = vmatmul.mubr.f32.gmra.mrb[42].mxu1 %v119_v14  ;;  %v136_v14 = vld [vmem:[%s2970_s0 + $0x3d0] sm:$0xff] }
  0x98   :  { %1325 = vmatmul.mubr.msk.f32.gmra.mrb[4].mxu0 %vm278_vm1, %v28_v15  ;;  %564 = vmatprep.mubr.f32.mxu1 %v125_v16  ;;  %v133_v15 = vld [vmem:[%s2970_s0 + $0x3b8] sm:$0xff]  ;;  %v142_v16 = vld [vmem:[%s2970_s0 + $0x400] sm:$0xff] }
  0x99   :  { %1327 = vmatprep.mubr.msk.f32.mxu0 %vm1721_vm0, %v1722_v6 }
  0x9b   :  { %565 = vmatmul.mubr.f32.gmra.mrb[44].mxu1 %v124_v17  ;;  %v141_v17 = vld [vmem:[%s2970_s0 + $0x3f8] sm:$0xff] }
  0x9c   :  { %1328 = vmatmul.mubr.msk.f32.gmra.mrb[6].mxu0 %vm278_vm1, %v33_v24  ;;  %569 = vmatprep.mubr.f32.mxu1 %v130_v19  ;;  %v138_v24 = vld [vmem:[%s2970_s0 + $0x3e0] sm:$0xff]  ;;  %v147_v19 = vld [vmem:[%s2970_s0 + $0x428] sm:$0xff] }
  0x9d   :  { %1330 = vmatprep.mubr.msk.f32.mxu0 %vm1721_vm0, %v1722_v6 }
  0x9f   :  { %570 = vmatmul.mubr.f32.gmra.mrb[46].mxu1 %v129_v21  ;;  %v146_v21 = vld [vmem:[%s2970_s0 + $0x420] sm:$0xff] }
  0xa0   :  { %1331 = vmatmul.mubr.msk.f32.gmra.mrb[8].mxu0 %vm278_vm1, %v38_v22  ;;  %574 = vmatprep.mubr.f32.mxu1 %v135_v30  ;;  %v143_v22 = vld [vmem:[%s2970_s0 + $0x408] sm:$0xff]  ;;  %v152_v30 = vld [vmem:[%s2970_s0 + $0x450] sm:$0xff] }
  0xa1   :  { %1333 = vmatprep.mubr.msk.f32.mxu0 %vm1721_vm0, %v1722_v6 }
  0xa3   :  { %575 = vmatmul.mubr.f32.gmra.mrb[48].mxu1 %v134_v23  ;;  %v151_v23 = vld [vmem:[%s2970_s0 + $0x448] sm:$0xff] }
  0xa4   :  { %1334 = vmatmul.mubr.msk.f32.gmra.mrb[10].mxu0 %vm278_vm1, %v43_v25  ;;  %579 = vmatprep.mubr.f32.mxu1 %v140_v26  ;;  %v148_v25 = vld [vmem:[%s2970_s0 + $0x430] sm:$0xff]  ;;  %v157_v26 = vld [vmem:[%s2970_s0 + $0x478] sm:$0xff] }
  0xa5   :  { %1336 = vmatprep.mubr.msk.f32.mxu0 %vm1721_vm0, %v1722_v6 }
  0xa7   :  { %580 = vmatmul.mubr.f32.gmra.mrb[50].mxu1 %v139_v36  ;;  %v156_v36 = vld [vmem:[%s2970_s0 + $0x470] sm:$0xff] }
  0xa8   :  { %1337 = vmatmul.mubr.msk.f32.gmra.mrb[12].mxu0 %vm278_vm1, %v48_v28  ;;  %584 = vmatprep.mubr.f32.mxu1 %v145_v29  ;;  %v153_v28 = vld [vmem:[%s2970_s0 + $0x458] sm:$0xff]  ;;  %v162_v29 = vld [vmem:[%s2970_s0 + $0x4a0] sm:$0xff] }
  0xa9   :  { %1339 = vmatprep.mubr.msk.f32.mxu0 %vm1721_vm0, %v1722_v6 }
  0xab   :  { %585 = vmatmul.mubr.f32.gmra.mrb[52].mxu1 %v144_v31  ;;  %v161_v31 = vld [vmem:[%s2970_s0 + $0x498] sm:$0xff] }
  0xac   :  { %1340 = vmatmul.mubr.msk.f32.gmra.mrb[14].mxu0 %vm278_vm1, %v53_v44  ;;  %589 = vmatprep.mubr.f32.mxu1 %v150_v32  ;;  %v158_v44 = vld [vmem:[%s2970_s0 + $0x480] sm:$0xff]  ;;  %v167_v32 = vld [vmem:[%s2970_s0 + $0x4c8] sm:$0xff] }
  0xad   :  { %1342 = vmatprep.mubr.msk.f32.mxu0 %vm1721_vm0, %v1722_v6 }
  0xaf   :  { %590 = vmatmul.mubr.f32.gmra.mrb[54].mxu1 %v149_v33  ;;  %v166_v33 = vld [vmem:[%s2970_s0 + $0x4c0] sm:$0xff] }
  0xb0   :  { %1343 = vmatmul.mubr.msk.f32.gmra.mrb[16].mxu0 %vm278_vm1, %v58_v35  ;;  %594 = vmatprep.mubr.f32.mxu1 %v155_v50  ;;  %v163_v35 = vld [vmem:[%s2970_s0 + $0x4a8] sm:$0xff]  ;;  %v172_v50 = vld [vmem:[%s2970_s0 + $0x4f0] sm:$0xff] }
  0xb1   :  { %1345 = vmatprep.mubr.msk.f32.mxu0 %vm1721_vm0, %v1722_v6 }
  0xb3   :  { %595 = vmatmul.mubr.f32.gmra.mrb[56].mxu1 %v154_v37  ;;  %v171_v37 = vld [vmem:[%s2970_s0 + $0x4e8] sm:$0xff] }
  0xb4   :  { %1346 = vmatmul.mubr.msk.f32.gmra.mrb[18].mxu0 %vm278_vm1, %v63_v38  ;;  %599 = vmatprep.mubr.f32.mxu1 %v160_v39  ;;  %v168_v38 = vld [vmem:[%s2970_s0 + $0x4d0] sm:$0xff]  ;;  %v177_v39 = vld [vmem:[%s2970_s0 + $0x518] sm:$0xff] }
  0xb5   :  { %1348 = vmatprep.mubr.msk.f32.mxu0 %vm1721_vm0, %v1722_v6 }
  0xb7   :  { %600 = vmatmul.mubr.f32.gmra.mrb[58].mxu1 %v159_v56  ;;  %v176_v56 = vld [vmem:[%s2970_s0 + $0x510] sm:$0xff] }
  0xb8   :  { %1349 = vmatmul.mubr.msk.f32.gmra.mrb[20].mxu0 %vm278_vm1, %v68_v40  ;;  %604 = vmatprep.mubr.f32.mxu1 %v165_v42  ;;  %v173_v40 = vld [vmem:[%s2970_s0 + $0x4f8] sm:$0xff]  ;;  %v182_v42 = vld [vmem:[%s2970_s0 + $0x540] sm:$0xff] }
  0xb9   :  { %1351 = vmatprep.mubr.msk.f32.mxu0 %vm1721_vm0, %v1722_v6 }
  0xbb   :  { %605 = vmatmul.mubr.f32.gmra.mrb[60].mxu1 %v164_v43  ;;  %v181_v43 = vld [vmem:[%s2970_s0 + $0x538] sm:$0xff] }
  0xbc   :  { %1352 = vmatmul.mubr.msk.f32.gmra.mrb[22].mxu0 %vm278_vm1, %v73_v62  ;;  %609 = vmatprep.mubr.f32.mxu1 %v170_v45  ;;  %v178_v62 = vld [vmem:[%s2970_s0 + $0x520] sm:$0xff]  ;;  %v187_v45 = vld [vmem:[%s2970_s0 + $0x568] sm:$0xff] }
  0xbd   :  { %1354 = vmatprep.mubr.msk.f32.mxu0 %vm1721_vm0, %v1722_v6 }
  0xbf   :  { %610 = vmatmul.mubr.f32.gmra.mrb[62].mxu1 %v169_v46  ;;  %v186_v46 = vld [vmem:[%s2970_s0 + $0x560] sm:$0xff] }
  0xc0   :  { %1355 = vmatmul.mubr.msk.f32.gmra.mrb[24].mxu0 %vm278_vm1, %v78_v47  ;;  %614 = vmatprep.mubr.f32.mxu1 %v175_v5  ;;  %v183_v47 = vld [vmem:[%s2970_s0 + $0x548] sm:$0xff]  ;;  %v192_v5 = vld [vmem:[%s2970_s0 + $0x590] sm:$0xff] }
  0xc1   :  { %1357 = vmatprep.mubr.msk.f32.mxu0 %vm1721_vm0, %v1722_v6 }
  0xc3   :  { %615 = vmatmul.mubr.f32.gmra.mrb[64].mxu1 %v174_v48  ;;  %v191_v48 = vld [vmem:[%s2970_s0 + $0x588] sm:$0xff] }
  0xc4   :  { %1358 = vmatmul.mubr.msk.f32.gmra.mrb[26].mxu0 %vm278_vm1, %v83_v49  ;;  %619 = vmatprep.mubr.f32.mxu1 %v180_v51  ;;  %v188_v49 = vld [vmem:[%s2970_s0 + $0x570] sm:$0xff]  ;;  %v197_v51 = vld [vmem:[%s2970_s0 + $0x5b8] sm:$0x3f] }
  0xc5   :  { %1360 = vmatprep.mubr.msk.f32.mxu0 %vm1721_vm0, %v1722_v6 }
  0xc7   :  { %620 = vmatmul.mubr.f32.gmra.mrb[66].mxu1 %v179_v13 }
  0xc8   :  { %1361 = vmatmul.mubr.msk.f32.gmra.mrb[28].mxu0 %vm278_vm1, %v88_v52  ;;  %624 = vmatprep.mubr.f32.mxu1 %v185_v53  ;;  %v196_v53 = vld [vmem:[%s2970_s0 + $0x5b0] sm:$0x3f] }
  0xc9   :  { %1363 = vmatprep.mubr.msk.f32.mxu0 %vm1721_vm0, %v1722_v6 }
  0xcb   :  { %625 = vmatmul.mubr.f32.gmra.mrb[68].mxu1 %v184_v54  ;;  %v193_v54 = vld [vmem:[%s2970_s0 + $0x598] sm:$0xff] }
  0xcc   :  { %1364 = vmatmul.mubr.msk.f32.gmra.mrb[30].mxu0 %vm278_vm1, %v93_v20  ;;  %629 = vmatprep.mubr.f32.mxu1 %v190_v55 }
  0xcd   :  { %1366 = vmatprep.mubr.msk.f32.mxu0 %vm1721_vm0, %v1722_v6 }
  0xcf   :  { %630 = vmatmul.mubr.f32.gmra.mrb[70].mxu1 %v189_v57  ;;  %v198_v57 = vld [vmem:[%s2970_s0 + $0x5c0] sm:$0x3f] }
  0xd0   :  { %1367 = vmatmul.mubr.msk.f32.gmra.mrb[32].mxu0 %vm278_vm1, %v98_v58  ;;  %634 = vmatprep.mubr.f32.mxu1 %v195_v27 }
  0xd1   :  { %1369 = vmatprep.mubr.msk.f32.mxu0 %vm1721_vm0, %v1722_v6 }
  0xd3   :  { %635 = vmatmul.mubr.f32.gmra.mrb[72].mxu1 %v194_v8 }
  0xd4   :  { %1370 = vmatmul.mubr.msk.f32.gmra.mrb[34].mxu0 %vm278_vm1, %v103_v59  ;;  %799 = vmatprep.mubr.f32.mxu1 %v112_v60 }
  0xd5   :  { %1372 = vmatprep.mubr.msk.f32.mxu0 %vm1721_vm0, %v1722_v6 }
  0xd7   :  { %800 = vmatmul.mubr.f32.vlgmr.msra.gmra.mrb[38].mxu1 %v111_v34 }
  0xd8   :  { %1373 = vmatmul.mubr.msk.f32.gmra.mrb[36].mxu0 %vm278_vm1, %v108_v0  ;;  %804 = vmatprep.mubr.f32.mxu1 %v117_v61 }
  0xd9   :  { %1375 = vmatprep.mubr.msk.f32.mxu0 %vm1721_vm0, %v1722_v6 }
  0xdb   :  { %805 = vmatmul.mubr.f32.gmra.mrb[40].mxu1 %v116_v63 }
  0xdc   :  { %1376 = vmatmul.mubr.msk.f32.gmra.mrb[38].mxu0 %vm278_vm1, %v113_v41  ;;  %809 = vmatprep.mubr.f32.mxu1 %v122_v1 }
  0xdd   :  { %1378 = vmatprep.mubr.msk.f32.mxu0 %vm1721_vm0, %v1722_v6 }
  0xdf   :  { %810 = vmatmul.mubr.f32.gmra.mrb[42].mxu1 %v121_v2 }
  0xe0   :  { %1379 = vmatmul.mubr.msk.f32.gmra.mrb[40].mxu0 %vm278_vm1, %v118_v3  ;;  %814 = vmatprep.mubr.f32.mxu1 %v127_v4 }
  0xe1   :  { %1381 = vmatprep.mubr.msk.f32.mxu0 %vm1721_vm0, %v1722_v6 }
  0xe3   :  { %815 = vmatmul.mubr.f32.gmra.mrb[44].mxu1 %v126_v12 }
  0xe4   :  { %1382 = vmatmul.mubr.msk.f32.gmra.mrb[42].mxu0 %vm278_vm1, %v123_v7  ;;  %819 = vmatprep.mubr.f32.mxu1 %v132_v9 }
  0xe5   :  { %1384 = vmatprep.mubr.msk.f32.mxu0 %vm1721_vm0, %v1722_v6 }
  0xe7   :  { %820 = vmatmul.mubr.f32.gmra.mrb[46].mxu1 %v131_v10 }
  0xe8   :  { %1385 = vmatmul.mubr.msk.f32.gmra.mrb[44].mxu0 %vm278_vm1, %v128_v11  ;;  %824 = vmatprep.mubr.f32.mxu1 %v137_v18 }
  0xe9   :  { %1387 = vmatprep.mubr.msk.f32.mxu0 %vm1721_vm0, %v1722_v6 }
  0xeb   :  { %825 = vmatmul.mubr.f32.gmra.mrb[48].mxu1 %v136_v14 }
  0xec   :  { %1388 = vmatmul.mubr.msk.f32.gmra.mrb[46].mxu0 %vm278_vm1, %v133_v15  ;;  %829 = vmatprep.mubr.f32.mxu1 %v142_v16 }
  0xed   :  { %1390 = vmatprep.mubr.msk.f32.mxu0 %vm1721_vm0, %v1722_v6 }
  0xef   :  { %830 = vmatmul.mubr.f32.gmra.mrb[50].mxu1 %v141_v17 }
  0xf0   :  { %1391 = vmatmul.mubr.msk.f32.gmra.mrb[48].mxu0 %vm278_vm1, %v138_v24  ;;  %834 = vmatprep.mubr.f32.mxu1 %v147_v19 }
  0xf1   :  { %1393 = vmatprep.mubr.msk.f32.mxu0 %vm1721_vm0, %v1722_v6 }
  0xf3   :  { %835 = vmatmul.mubr.f32.gmra.mrb[52].mxu1 %v146_v21 }
  0xf4   :  { %1394 = vmatmul.mubr.msk.f32.gmra.mrb[50].mxu0 %vm278_vm1, %v143_v22  ;;  %839 = vmatprep.mubr.f32.mxu1 %v152_v30 }
  0xf5   :  { %1396 = vmatprep.mubr.msk.f32.mxu0 %vm1721_vm0, %v1722_v6 }
  0xf7   :  { %840 = vmatmul.mubr.f32.gmra.mrb[54].mxu1 %v151_v23 }
  0xf8   :  { %1397 = vmatmul.mubr.msk.f32.gmra.mrb[52].mxu0 %vm278_vm1, %v148_v25  ;;  %844 = vmatprep.mubr.f32.mxu1 %v157_v26 }
  0xf9   :  { %1399 = vmatprep.mubr.msk.f32.mxu0 %vm1721_vm0, %v1722_v6 }
  0xfb   :  { %845 = vmatmul.mubr.f32.gmra.mrb[56].mxu1 %v156_v36  ;;  %v2770_v36 = vld [vmem:[%s2971_s2] ss:$0 sm:$0xff] }
  0xfc   :  { %1400 = vmatmul.mubr.msk.f32.gmra.mrb[54].mxu0 %vm278_vm1, %v153_v28  ;;  %849 = vmatprep.mubr.f32.mxu1 %v162_v29 }
  0xfd   :  { %1402 = vmatprep.mubr.msk.f32.mxu0 %vm1721_vm0, %v1722_v6 }
  0xff   :  { %850 = vmatmul.mubr.f32.gmra.mrb[58].mxu1 %v161_v31 }
 0x100   :  { %1403 = vmatmul.mubr.msk.f32.gmra.mrb[56].mxu0 %vm278_vm1, %v158_v44  ;;  %854 = vmatprep.mubr.f32.mxu1 %v167_v32 }
 0x101   :  { %1405 = vmatprep.mubr.msk.f32.mxu0 %vm1721_vm0, %v1722_v6 }
 0x103   :  { %855 = vmatmul.mubr.f32.gmra.mrb[60].mxu1 %v166_v33 }
 0x104   :  { %1406 = vmatmul.mubr.msk.f32.gmra.mrb[58].mxu0 %vm278_vm1, %v163_v35  ;;  %859 = vmatprep.mubr.f32.mxu1 %v172_v50 }
 0x105   :  { %1408 = vmatprep.mubr.msk.f32.mxu0 %vm1721_vm0, %v1722_v6 }
 0x107   :  { %860 = vmatmul.mubr.f32.gmra.mrb[62].mxu1 %v171_v37 }
 0x108   :  { %1409 = vmatmul.mubr.msk.f32.gmra.mrb[60].mxu0 %vm278_vm1, %v168_v38  ;;  %864 = vmatprep.mubr.f32.mxu1 %v177_v39 }
 0x109   :  { %1411 = vmatprep.mubr.msk.f32.mxu0 %vm1721_vm0, %v1722_v6 }
 0x10b   :  { %865 = vmatmul.mubr.f32.gmra.mrb[64].mxu1 %v176_v56 }
 0x10c   :  { %1412 = vmatmul.mubr.msk.f32.gmra.mrb[62].mxu0 %vm278_vm1, %v173_v40  ;;  %869 = vmatprep.mubr.f32.mxu1 %v182_v42 }
 0x10d   :  { %1414 = vmatprep.mubr.msk.f32.mxu0 %vm1721_vm0, %v1722_v6 }
 0x10f   :  { %870 = vmatmul.mubr.f32.gmra.mrb[66].mxu1 %v181_v43 }
 0x110   :  { %1415 = vmatmul.mubr.msk.f32.gmra.mrb[64].mxu0 %vm278_vm1, %v178_v62  ;;  %874 = vmatprep.mubr.f32.mxu1 %v187_v45 }
 0x111   :  { %1417 = vmatprep.mubr.msk.f32.mxu0 %vm1721_vm0, %v1722_v6 }
 0x113   :  { %875 = vmatmul.mubr.f32.gmra.mrb[68].mxu1 %v186_v46 }
 0x114   :  { %1418 = vmatmul.mubr.msk.f32.gmra.mrb[66].mxu0 %vm278_vm1, %v183_v47  ;;  %879 = vmatprep.mubr.f32.mxu1 %v192_v5 }
 0x115   :  { %1420 = vmatprep.mubr.msk.f32.mxu0 %vm1721_vm0, %v1722_v6 }
 0x116   :  { %v456_v13 = vpop.f32.mrb[0].mxu1 }
 0x117   :  { %880 = vmatmul.mubr.f32.gmra.mrb[70].mxu1 %v191_v48  ;;  %v458_v52 = vpop.f32.mrb[1].mxu1  ;;  %v457_v29 = vadd.f32 %v2770_v36, %v456_v13 }
 0x118   :  { %1421 = vmatmul.mubr.msk.f32.gmra.mrb[68].mxu0 %vm278_vm1, %v188_v49  ;;  %884 = vmatprep.mubr.f32.mxu1 %v197_v51 }
 0x119   :  { %1423 = vmatprep.mubr.msk.f32.mxu0 %vm1721_vm0, %v1722_v6 }
 0x11a   :  { %v461_v20 = vpop.f32.mrb[2].mxu1 }
 0x11b   :  { %885 = vmatmul.mubr.f32.gmra.mrb[72].mxu1 %v196_v53  ;;  %v463_v55 = vpop.f32.mrb[3].mxu1  ;;  %v462_v33 = vadd.f32 %v2770_v36, %v461_v20 }
 0x11c   :  { %1424 = vmatmul.mubr.msk.f32.gmra.mrb[70].mxu0 %vm278_vm1, %v193_v54 }
 0x11d   :  { %1426 = vmatprep.mubr.msk.f32.mxu0 %vm1721_vm0, %v1722_v6 }
 0x11e   :  { %v466_v58 = vpop.f32.mrb[4].mxu1 }
 0x11f   :  { %v468_v27 = vpop.f32.mrb[5].mxu1  ;;  %v467_v39 = vadd.f32 %v2770_v36, %v466_v58 }
 0x120   :  { %1427 = vmatmul.mubr.msk.f32.gmra.mrb[72].mxu0 %vm278_vm1, %v198_v57 }
 0x122   :  { %v471_v8 = vpop.f32.mrb[6].mxu1 }
 0x123   :  { %v473_v59 = vpop.f32.mrb[7].mxu1  ;;  %v472_v62 = vadd.f32 %v2770_v36, %v471_v8 }
 0x126   :  { %v476_v60 = vpop.f32.mrb[8].mxu1 }
 0x127   :  { %v478_v34 = vpop.f32.mrb[9].mxu1  ;;  %v477_v48 = vadd.f32 %v2770_v36, %v476_v60 }
 0x12a   :  { %v481_v0 = vpop.f32.mrb[10].mxu1 }
 0x12b   :  { %v483_v61 = vpop.f32.mrb[11].mxu1  ;;  %v482_v53 = vadd.f32 %v2770_v36, %v481_v0 }
 0x12e   :  { %v2741_v63 = vpop.f32.mrb[12].mxu1 }
 0x12f   :  { %v488_v41 = vpop.f32.mrb[13].mxu1  ;;  %v487_v58 = vadd.f32 %v2770_v36, %v2741_v63 }
 0x132   :  { %v2743_v1 = vpop.f32.mrb[14].mxu1 }
 0x133   :  { %v493_v6 = vpop.f32.mrb[15].mxu1  ;;  %v492_v34 = vadd.f32 %v2770_v36, %v2743_v1 }
 0x136   :  { %v2745_v2 = vpop.f32.mrb[16].mxu1 }
 0x137   :  { %v498_v3 = vpop.f32.mrb[17].mxu1  ;;  %v497_v6 = vadd.f32 %v2770_v36, %v2745_v2 }
 0x13a   :  { %v2747_v4 = vpop.f32.mrb[18].mxu1 }
 0x13b   :  { %v503_v12 = vpop.f32.mrb[19].mxu1 }
 0x13e   :  { %v2749_v7 = vpop.f32.mrb[20].mxu1 }
 0x13f   :  { %v508_v9 = vpop.f32.mrb[21].mxu1 }
 0x142   :  { %v2751_v10 = vpop.f32.mrb[22].mxu1 }
 0x143   :  { %v513_v11 = vpop.f32.mrb[23].mxu1 }
 0x144   :  { %v502_v11 = vadd.f32 %v2770_v36, %v2747_v4 }
 0x146   :  { %v2753_v18 = vpop.f32.mrb[24].mxu1 }
 0x147   :  { %v518_v14 = vpop.f32.mrb[25].mxu1 }
 0x14a   :  { %v2755_v15 = vpop.f32.mrb[26].mxu1 }
 0x14b   :  { %v523_v16 = vpop.f32.mrb[27].mxu1 }
 0x14e   :  { %v2757_v17 = vpop.f32.mrb[28].mxu1 }
 0x14f   :  { %v528_v24 = vpop.f32.mrb[29].mxu1 }
 0x152   :  { %v2759_v19 = vpop.f32.mrb[30].mxu1 }
 0x153   :  { %v533_v21 = vpop.f32.mrb[31].mxu1 }
 0x154   :  { %v507_v21 = vadd.f32 %v2770_v36, %v2749_v7 }
 0x156   :  { %v2761_v22 = vpop.f32.mrb[32].mxu1 }
 0x157   :  { %v538_v30 = vpop.f32.mrb[33].mxu1 }
 0x15a   :  { %v2763_v23 = vpop.f32.mrb[34].mxu1 }
 0x15b   :  { %v543_v25 = vpop.f32.mrb[35].mxu1 }
 0x15e   :  { %v2765_v26 = vpop.f32.mrb[36].mxu1 }
 0x15f   :  { %v548_v28 = vpop.f32.mrb[37].mxu1 }
 0x163   :  { %v956_v31 = vpop.f32.mrb[0].mxu0 }
 0x164   :  { %v1570_v44 = vadd.f32 %v956_v31, %v457_v29  ;;  %v1320_v32 = vpop.f32.mrb[1].mxu0  ;;  %v512_v29 = vadd.f32 %v2770_v36, %v2751_v10 }
 0x166   :  { %v1140_v35 = vmax.f32 %v1570_v44, 0.0 }
 0x167   :  { %v961_v50 = vpop.f32.mrb[2].mxu0 }
 0x168   :  { %1177 = vst.msk [vmem:[%s2972_s3] sm:$0xff] %vm278_vm1, %v1140_v35  ;;  %v1572_v37 = vadd.f32 %v961_v50, %v462_v33  ;;  %v1323_v38 = vpop.f32.mrb[3].mxu0  ;;  %v517_v33 = vadd.f32 %v2770_v36, %v2753_v18 }
 0x169   :  { %v522_v38 = vadd.f32 %v2770_v36, %v2755_v15 }
 0x16a   :  { %v1141_v56 = vmax.f32 %v1572_v37, 0.0 }
 0x16b   :  { %v966_v40 = vpop.f32.mrb[4].mxu0 }
 0x16c   :  { %1178 = vst.msk [vmem:[%s2972_s3 + $0x8] sm:$0xff] %vm278_vm1, %v1141_v56  ;;  %v1574_v42 = vadd.f32 %v966_v40, %v467_v39  ;;  %v1326_v43 = vpop.f32.mrb[5].mxu0 }
 0x16e   :  { %v1142_v45 = vmax.f32 %v1574_v42, 0.0  ;;  %v527_v42 = vadd.f32 %v2770_v36, %v2757_v17 }
 0x16f   :  { %v971_v46 = vpop.f32.mrb[6].mxu0 }
 0x170   :  { %1179 = vst.msk [vmem:[%s2972_s3 + $0x10] sm:$0xff] %vm278_vm1, %v1142_v45  ;;  %v1576_v47 = vadd.f32 %v971_v46, %v472_v62  ;;  %v1329_v5 = vpop.f32.mrb[7].mxu0  ;;  %v532_v46 = vadd.f32 %v2770_v36, %v2759_v19 }
 0x172   :  { %v1143_v49 = vmax.f32 %v1576_v47, 0.0 }
 0x173   :  { %v976_v51 = vpop.f32.mrb[8].mxu0 }
 0x174   :  { %1180 = vst.msk [vmem:[%s2972_s3 + $0x18] sm:$0xff] %vm278_vm1, %v1143_v49  ;;  %v1578_v13 = vadd.f32 %v976_v51, %v477_v48  ;;  %v1332_v52 = vpop.f32.mrb[9].mxu0  ;;  %v537_v49 = vadd.f32 %v2770_v36, %v2761_v22 }
 0x176   :  { %v1144_v54 = vmax.f32 %v1578_v13, 0.0 }
 0x177   :  { %v981_v20 = vpop.f32.mrb[10].mxu0 }
 0x178   :  { %1181 = vst.msk [vmem:[%s2972_s3 + $0x20] sm:$0xff] %vm278_vm1, %v1144_v54  ;;  %v1580_v55 = vadd.f32 %v981_v20, %v482_v53  ;;  %v1335_v57 = vpop.f32.mrb[11].mxu0  ;;  %v542_v53 = vadd.f32 %v2770_v36, %v2763_v23 }
 0x179   :  { %v547_v57 = vadd.f32 %v2770_v36, %v2765_v26 }
 0x17a   :  { %v1145_v27 = vmax.f32 %v1580_v55, 0.0 }
 0x17b   :  { %v986_v8 = vpop.f32.mrb[12].mxu0 }
 0x17c   :  { %1182 = vst.msk [vmem:[%s2972_s3 + $0x28] sm:$0xff] %vm278_vm1, %v1145_v27  ;;  %v1582_v59 = vadd.f32 %v986_v8, %v487_v58  ;;  %v1338_v60 = vpop.f32.mrb[13].mxu0 }
 0x17e   :  { %v1146_v0 = vmax.f32 %v1582_v59, 0.0 }
 0x17f   :  { %v991_v61 = vpop.f32.mrb[14].mxu0 }
 0x180   :  { %1183 = vst.msk [vmem:[%s2972_s3 + $0x30] sm:$0xff] %vm278_vm1, %v1146_v0  ;;  %v1584_v63 = vadd.f32 %v991_v61, %v492_v34  ;;  %v1341_v41 = vpop.f32.mrb[15].mxu0 }
 0x182   :  { %v1147_v3 = vmax.f32 %v1584_v63, 0.0 }
 0x183   :  { %v996_v12 = vpop.f32.mrb[16].mxu0 }
 0x184   :  { %1184 = vst.msk [vmem:[%s2972_s3 + $0x38] sm:$0xff] %vm278_vm1, %v1147_v3  ;;  %v1586_v1 = vadd.f32 %v996_v12, %v497_v6  ;;  %v1344_v9 = vpop.f32.mrb[17].mxu0 }
 0x186   :  { %v1148_v14 = vmax.f32 %v1586_v1, 0.0 }
 0x187   :  { %v1001_v16 = vpop.f32.mrb[18].mxu0 }
 0x188   :  { %1185 = vst.msk [vmem:[%s2972_s3 + $0x40] sm:$0xff] %vm278_vm1, %v1148_v14  ;;  %v1588_v2 = vadd.f32 %v1001_v16, %v502_v11  ;;  %v1347_v24 = vpop.f32.mrb[19].mxu0 }
 0x18a   :  { %v1149_v30 = vmax.f32 %v1588_v2, 0.0 }
 0x18b   :  { %v1006_v25 = vpop.f32.mrb[20].mxu0 }
 0x18c   :  { %1186 = vst.msk [vmem:[%s2972_s3 + $0x48] sm:$0xff] %vm278_vm1, %v1149_v30  ;;  %v1590_v4 = vadd.f32 %v1006_v25, %v507_v21  ;;  %v1350_v28 = vpop.f32.mrb[21].mxu0 }
 0x18e   :  { %v1150_v31 = vmax.f32 %v1590_v4, 0.0 }
 0x18f   :  { %v1011_v44 = vpop.f32.mrb[22].mxu0 }
 0x190   :  { %1187 = vst.msk [vmem:[%s2972_s3 + $0x50] sm:$0xff] %vm278_vm1, %v1150_v31  ;;  %v1592_v7 = vadd.f32 %v1011_v44, %v512_v29  ;;  %v1353_v32 = vpop.f32.mrb[23].mxu0 }
 0x192   :  { %v1151_v35 = vmax.f32 %v1592_v7, 0.0 }
 0x193   :  { %v1016_v50 = vpop.f32.mrb[24].mxu0 }
 0x194   :  { %1188 = vst.msk [vmem:[%s2972_s3 + $0x58] sm:$0xff] %vm278_vm1, %v1151_v35  ;;  %v1594_v10 = vadd.f32 %v1016_v50, %v517_v33  ;;  %v1356_v37 = vpop.f32.mrb[25].mxu0 }
 0x196   :  { %v1152_v39 = vmax.f32 %v1594_v10, 0.0 }
 0x197   :  { %v1021_v56 = vpop.f32.mrb[26].mxu0 }
 0x198   :  { %1189 = vst.msk [vmem:[%s2972_s3 + $0x60] sm:$0xff] %vm278_vm1, %v1152_v39  ;;  %v1596_v18 = vadd.f32 %v1021_v56, %v522_v38  ;;  %v1359_v40 = vpop.f32.mrb[27].mxu0 }
 0x19a   :  { %v1153_v43 = vmax.f32 %v1596_v18, 0.0 }
 0x19b   :  { %v1026_v62 = vpop.f32.mrb[28].mxu0 }
 0x19c   :  { %1190 = vst.msk [vmem:[%s2972_s3 + $0x68] sm:$0xff] %vm278_vm1, %v1153_v43  ;;  %v1598_v15 = vadd.f32 %v1026_v62, %v527_v42  ;;  %v1362_v45 = vpop.f32.mrb[29].mxu0 }
 0x19e   :  { %v1154_v47 = vmax.f32 %v1598_v15, 0.0 }
 0x19f   :  { %v1031_v5 = vpop.f32.mrb[30].mxu0 }
 0x1a0   :  { %1191 = vst.msk [vmem:[%s2972_s3 + $0x70] sm:$0xff] %vm278_vm1, %v1154_v47  ;;  %v1600_v17 = vadd.f32 %v1031_v5, %v532_v46  ;;  %v1365_v48 = vpop.f32.mrb[31].mxu0 }
 0x1a2   :  { %v1155_v51 = vmax.f32 %v1600_v17, 0.0 }
 0x1a3   :  { %v1036_v13 = vpop.f32.mrb[32].mxu0 }
 0x1a4   :  { %1192 = vst.msk [vmem:[%s2972_s3 + $0x78] sm:$0xff] %vm278_vm1, %v1155_v51  ;;  %v1602_v19 = vadd.f32 %v1036_v13, %v537_v49  ;;  %v1368_v52 = vpop.f32.mrb[33].mxu0 }
 0x1a6   :  { %v1156_v54 = vmax.f32 %v1602_v19, 0.0 }
 0x1a7   :  { %v1041_v20 = vpop.f32.mrb[34].mxu0 }
 0x1a8   :  { %1193 = vst.msk [vmem:[%s2972_s3 + $0x80] sm:$0xff] %vm278_vm1, %v1156_v54  ;;  %v1604_v22 = vadd.f32 %v1041_v20, %v542_v53  ;;  %v1371_v55 = vpop.f32.mrb[35].mxu0 }
 0x1aa   :  { %v1157_v58 = vmax.f32 %v1604_v22, 0.0  ;;  %v801_v27 = vpop.f32.mrb[38].mxu1 }
 0x1ab   :  { %v1046_v8 = vpop.f32.mrb[36].mxu0  ;;  %v803_v59 = vpop.f32.mrb[39].mxu1  ;;  %v1607_v34 = vadd.f32 %v2770_v36, %v801_v27 }
 0x1ac   :  { %1194 = vst.msk [vmem:[%s2972_s3 + $0x88] sm:$0xff] %vm278_vm1, %v1157_v58  ;;  %v1606_v23 = vadd.f32 %v1046_v8, %v547_v57  ;;  %v1374_v60 = vpop.f32.mrb[37].mxu0 }
 0x1ae   :  { %v1158_v0 = vmax.f32 %v1606_v23, 0.0  ;;  %v806_v61 = vpop.f32.mrb[40].mxu1 }
 0x1af   :  { %v1051_v63 = vpop.f32.mrb[38].mxu0  ;;  %v808_v41 = vpop.f32.mrb[41].mxu1  ;;  %v1609_v3 = vadd.f32 %v2770_v36, %v806_v61 }
 0x1b0   :  { %1195 = vst.msk [vmem:[%s2972_s3 + $0x90] sm:$0xff] %vm278_vm1, %v1158_v0  ;;  %v1608_v26 = vadd.f32 %v1607_v34, %v1051_v63  ;;  %v1377_v6 = vpop.f32.mrb[39].mxu0 }
 0x1b2   :  { %v1159_v12 = vmax.f32 %v1608_v26, 0.0  ;;  %v811_v1 = vpop.f32.mrb[42].mxu1 }
 0x1b3   :  { %v1056_v9 = vpop.f32.mrb[40].mxu0  ;;  %v813_v11 = vpop.f32.mrb[43].mxu1  ;;  %v1611_v2 = vadd.f32 %v2770_v36, %v811_v1 }
 0x1b4   :  { %1196 = vst.msk [vmem:[%s2972_s3 + $0x98] sm:$0xff] %vm278_vm1, %v1159_v12  ;;  %v1610_v14 = vadd.f32 %v1609_v3, %v1056_v9  ;;  %v1380_v16 = vpop.f32.mrb[41].mxu0 }
 0x1b6   :  { %v1160_v24 = vmax.f32 %v1610_v14, 0.0  ;;  %v816_v21 = vpop.f32.mrb[44].mxu1 }
 0x1b7   :  { %v1061_v30 = vpop.f32.mrb[42].mxu0  ;;  %v818_v25 = vpop.f32.mrb[45].mxu1  ;;  %v1613_v29 = vadd.f32 %v2770_v36, %v816_v21 }
 0x1b8   :  { %1197 = vst.msk [vmem:[%s2972_s3 + $0xa0] sm:$0xff] %vm278_vm1, %v1160_v24  ;;  %v1612_v4 = vadd.f32 %v1611_v2, %v1061_v30  ;;  %v1383_v28 = vpop.f32.mrb[43].mxu0 }
 0x1ba   :  { %v1161_v31 = vmax.f32 %v1612_v4, 0.0  ;;  %v821_v44 = vpop.f32.mrb[46].mxu1 }
 0x1bb   :  { %v1066_v7 = vpop.f32.mrb[44].mxu0  ;;  %v823_v32 = vpop.f32.mrb[47].mxu1  ;;  %v1615_v50 = vadd.f32 %v2770_v36, %v821_v44 }
 0x1bc   :  { %1198 = vst.msk [vmem:[%s2972_s3 + $0xa8] sm:$0xff] %vm278_vm1, %v1161_v31  ;;  %v1614_v33 = vadd.f32 %v1613_v29, %v1066_v7  ;;  %v1386_v35 = vpop.f32.mrb[45].mxu0 }
 0x1be   :  { %v1162_v10 = vmax.f32 %v1614_v33, 0.0  ;;  %v826_v37 = vpop.f32.mrb[48].mxu1 }
 0x1bf   :  { %v1071_v38 = vpop.f32.mrb[46].mxu0  ;;  %v828_v39 = vpop.f32.mrb[49].mxu1  ;;  %v1617_v40 = vadd.f32 %v2770_v36, %v826_v37 }
 0x1c0   :  { %1199 = vst.msk [vmem:[%s2972_s3 + $0xb0] sm:$0xff] %vm278_vm1, %v1162_v10  ;;  %v1616_v56 = vadd.f32 %v1615_v50, %v1071_v38  ;;  %v1389_v18 = vpop.f32.mrb[47].mxu0 }
 0x1c2   :  { %v1163_v42 = vmax.f32 %v1616_v56, 0.0  ;;  %v831_v43 = vpop.f32.mrb[50].mxu1 }
 0x1c3   :  { %v1076_v62 = vpop.f32.mrb[48].mxu0  ;;  %v833_v15 = vpop.f32.mrb[51].mxu1  ;;  %v1619_v47 = vadd.f32 %v2770_v36, %v831_v43 }
 0x1c4   :  { %1200 = vst.msk [vmem:[%s2972_s3 + $0xb8] sm:$0xff] %vm278_vm1, %v1163_v42  ;;  %v1618_v45 = vadd.f32 %v1617_v40, %v1076_v62  ;;  %v1392_v46 = vpop.f32.mrb[49].mxu0 }
 0x1c6   :  { %v1164_v5 = vmax.f32 %v1618_v45, 0.0  ;;  %v836_v17 = vpop.f32.mrb[52].mxu1 }
 0x1c7   :  { %v1081_v48 = vpop.f32.mrb[50].mxu0  ;;  %v838_v49 = vpop.f32.mrb[53].mxu1  ;;  %v1621_v19 = vadd.f32 %v2770_v36, %v836_v17 }
 0x1c8   :  { %1201 = vst.msk [vmem:[%s2972_s3 + $0xc0] sm:$0xff] %vm278_vm1, %v1164_v5  ;;  %v1620_v51 = vadd.f32 %v1619_v47, %v1081_v48  ;;  %v1395_v13 = vpop.f32.mrb[51].mxu0 }
 0x1ca   :  { %v1165_v52 = vmax.f32 %v1620_v51, 0.0  ;;  %v841_v53 = vpop.f32.mrb[54].mxu1 }
 0x1cb   :  { %v1086_v54 = vpop.f32.mrb[52].mxu0  ;;  %v843_v20 = vpop.f32.mrb[55].mxu1  ;;  %v1623_v57 = vadd.f32 %v2770_v36, %v841_v53 }
 0x1cc   :  { %1202 = vst.msk [vmem:[%s2972_s3 + $0xc8] sm:$0xff] %vm278_vm1, %v1165_v52  ;;  %v1622_v22 = vadd.f32 %v1621_v19, %v1086_v54  ;;  %v1398_v55 = vpop.f32.mrb[53].mxu0 }
 0x1ce   :  { %v1166_v58 = vmax.f32 %v1622_v22, 0.0  ;;  %v846_v27 = vpop.f32.mrb[56].mxu1 }
 0x1cf   :  { %v1091_v8 = vpop.f32.mrb[54].mxu0  ;;  %v848_v59 = vpop.f32.mrb[57].mxu1  ;;  %v1625_v34 = vadd.f32 %v2770_v36, %v846_v27 }
 0x1d0   :  { %1203 = vst.msk [vmem:[%s2972_s3 + $0xd0] sm:$0xff] %vm278_vm1, %v1166_v58  ;;  %v1624_v23 = vadd.f32 %v1623_v57, %v1091_v8  ;;  %v1401_v60 = vpop.f32.mrb[55].mxu0 }
 0x1d2   :  { %v1167_v0 = vmax.f32 %v1624_v23, 0.0  ;;  %v851_v61 = vpop.f32.mrb[58].mxu1 }
 0x1d3   :  { %v1096_v63 = vpop.f32.mrb[56].mxu0  ;;  %v853_v41 = vpop.f32.mrb[59].mxu1  ;;  %v1627_v3 = vadd.f32 %v2770_v36, %v851_v61 }
 0x1d4   :  { %1204 = vst.msk [vmem:[%s2972_s3 + $0xd8] sm:$0xff] %vm278_vm1, %v1167_v0  ;;  %v1626_v26 = vadd.f32 %v1625_v34, %v1096_v63  ;;  %v1404_v6 = vpop.f32.mrb[57].mxu0 }
 0x1d6   :  { %v1168_v12 = vmax.f32 %v1626_v26, 0.0  ;;  %v856_v1 = vpop.f32.mrb[60].mxu1 }
 0x1d7   :  { %v1101_v9 = vpop.f32.mrb[58].mxu0  ;;  %v858_v11 = vpop.f32.mrb[61].mxu1  ;;  %v1629_v2 = vadd.f32 %v2770_v36, %v856_v1 }
 0x1d8   :  { %1205 = vst.msk [vmem:[%s2972_s3 + $0xe0] sm:$0xff] %vm278_vm1, %v1168_v12  ;;  %v1628_v14 = vadd.f32 %v1627_v3, %v1101_v9  ;;  %v1407_v16 = vpop.f32.mrb[59].mxu0 }
 0x1da   :  { %v1169_v24 = vmax.f32 %v1628_v14, 0.0  ;;  %v861_v21 = vpop.f32.mrb[62].mxu1 }
 0x1db   :  { %v1106_v30 = vpop.f32.mrb[60].mxu0  ;;  %v863_v25 = vpop.f32.mrb[63].mxu1  ;;  %v1631_v29 = vadd.f32 %v2770_v36, %v861_v21 }
 0x1dc   :  { %1206 = vst.msk [vmem:[%s2972_s3 + $0xe8] sm:$0xff] %vm278_vm1, %v1169_v24  ;;  %v1630_v4 = vadd.f32 %v1629_v2, %v1106_v30  ;;  %v1410_v28 = vpop.f32.mrb[61].mxu0 }
 0x1de   :  { %v1170_v31 = vmax.f32 %v1630_v4, 0.0  ;;  %v866_v44 = vpop.f32.mrb[64].mxu1 }
 0x1df   :  { %v1111_v7 = vpop.f32.mrb[62].mxu0  ;;  %v868_v32 = vpop.f32.mrb[65].mxu1  ;;  %v1633_v50 = vadd.f32 %v2770_v36, %v866_v44 }
 0x1e0   :  { %1207 = vst.msk [vmem:[%s2972_s3 + $0xf0] sm:$0xff] %vm278_vm1, %v1170_v31  ;;  %v1632_v33 = vadd.f32 %v1631_v29, %v1111_v7  ;;  %v1413_v35 = vpop.f32.mrb[63].mxu0 }
 0x1e2   :  { %v1171_v10 = vmax.f32 %v1632_v33, 0.0  ;;  %v871_v37 = vpop.f32.mrb[66].mxu1 }
 0x1e3   :  { %v1116_v38 = vpop.f32.mrb[64].mxu0  ;;  %v873_v39 = vpop.f32.mrb[67].mxu1  ;;  %v1635_v40 = vadd.f32 %v2770_v36, %v871_v37 }
 0x1e4   :  { %1208 = vst.msk [vmem:[%s2972_s3 + $0xf8] sm:$0xff] %vm278_vm1, %v1171_v10  ;;  %v1634_v56 = vadd.f32 %v1633_v50, %v1116_v38  ;;  %v1416_v18 = vpop.f32.mrb[65].mxu0 }
 0x1e6   :  { %v1172_v42 = vmax.f32 %v1634_v56, 0.0  ;;  %v876_v43 = vpop.f32.mrb[68].mxu1 }
 0x1e7   :  { %v1121_v62 = vpop.f32.mrb[66].mxu0  ;;  %v878_v15 = vpop.f32.mrb[69].mxu1  ;;  %v1637_v47 = vadd.f32 %v2770_v36, %v876_v43 }
 0x1e8   :  { %1209 = vst.msk [vmem:[%s2972_s3 + $0x100] sm:$0xff] %vm278_vm1, %v1172_v42  ;;  %v1636_v45 = vadd.f32 %v1635_v40, %v1121_v62  ;;  %v1419_v46 = vpop.f32.mrb[67].mxu0 }
 0x1ea   :  { %v1173_v5 = vmax.f32 %v1636_v45, 0.0  ;;  %v881_v17 = vpop.f32.mrb[70].mxu1 }
 0x1eb   :  { %v1126_v48 = vpop.f32.mrb[68].mxu0  ;;  %v883_v49 = vpop.f32.mrb[71].mxu1  ;;  %v1639_v19 = vadd.f32 %v2770_v36, %v881_v17 }
 0x1ec   :  { %1210 = vst.msk [vmem:[%s2972_s3 + $0x108] sm:$0xff] %vm278_vm1, %v1173_v5  ;;  %v1638_v51 = vadd.f32 %v1637_v47, %v1126_v48  ;;  %v1422_v13 = vpop.f32.mrb[69].mxu0 }
 0x1ee   :  { %v1174_v52 = vmax.f32 %v1638_v51, 0.0  ;;  %v886_v53 = vpop.f32.mrb[72].mxu1 }
 0x1ef   :  { %v1131_v54 = vpop.f32.mrb[70].mxu0  ;;  %v888_v20 = vpop.f32.mrb[73].mxu1  ;;  %v1641_v57 = vadd.f32 %v2770_v36, %v886_v53 }
 0x1f0   :  { %1211 = vst.msk [vmem:[%s2972_s3 + $0x110] sm:$0xff] %vm278_vm1, %v1174_v52  ;;  %v1640_v22 = vadd.f32 %v1639_v19, %v1131_v54  ;;  %v1425_v55 = vpop.f32.mrb[71].mxu0 }
 0x1f2   :  { %v1175_v58 = vmax.f32 %v1640_v22, 0.0 }
 0x1f3   :  { %v1136_v27 = vpop.f32.mrb[72].mxu0 }
 0x1f4   :  { %1212 = vst.msk [vmem:[%s2972_s3 + $0x118] sm:$0xff] %vm278_vm1, %v1175_v58  ;;  %v1642_v8 = vadd.f32 %v1641_v57, %v1136_v27  ;;  %v1428_v59 = vpop.f32.mrb[73].mxu0 }
 0x1f6   :  { %v1176_v23 = vmax.f32 %v1642_v8, 0.0 }
 0x1f8   :  { %1214 = vst.msk [vmem:[%s2972_s3 + $0x120] sm:$0x3f] %vm1213_vm2, %v1176_v23 }

// kernel: gpt_forward.8
= control target key start
LH: loop header
LB: loop body
LE: loop exit
PB: predicated region body
PF: predicated region fallthrough
CT: control target
= control target key end

     0   :  { %vm2210_vm0 = vmmov 0   ;;  %vm438_vm1 = vcmask 523264   ;;  %s3489_s1 = inlined_call_operand.vmem [shape: f32[3136,128], index: 1, kind: input, shape index: {}]   ;;  %s3490_s0 = inlined_call_operand.vmem [shape: f32[6,3136], index: 0, kind: input, shape index: {}]   ;;  %s3491_s2 = inlined_call_operand.vmem [shape: f32[1,128], index: 2, kind: input, shape index: {}]   ;;  %s3492_s3 = inlined_call_operand.vmem [shape: f32[6,128], index: 3, kind: output, shape index: {}]  }
   0x1   :  { %v55_v0 = vld [vmem:[%s3489_s1 + $0x80] sm:$0xff]  ;;  %v56_v1 = vld [vmem:[%s3489_s1 + $0x88] sm:$0xff]  ;;  %v57_v11 = vld [vmem:[%s3489_s1 + $0x90] sm:$0xff] }
   0x2   :  { %v39_v2 = vld [vmem:[%s3489_s1] sm:$0xff]  ;;  %v1808_v3 = vpack.c.bf16 %v56_v1, %v55_v0  ;;  %v40_v4 = vld [vmem:[%s3489_s1 + $0x8] sm:$0xff]  ;;  %v58_v13 = vld [vmem:[%s3489_s1 + $0x98] sm:$0xff] }
   0x3   :  { %v87_v5 = vld [vmem:[%s3489_s1 + $0x180] sm:$0xff]  ;;  %v88_v6 = vld [vmem:[%s3489_s1 + $0x188] sm:$0xff]  ;;  %v1810_v7 = vpack.c.bf16 %v40_v4, %v39_v2  ;;  %v41_v14 = vld [vmem:[%s3489_s1 + $0x10] sm:$0xff]  ;;  %v1812_v16 = vpack.c.bf16 %v58_v13, %v57_v11 }
   0x4   :  { %v1840_v8 = vpack.c.bf16 %v88_v6, %v87_v5  ;;  %v71_v9 = vld [vmem:[%s3489_s1 + $0x100] sm:$0xff]  ;;  %v72_v10 = vld [vmem:[%s3489_s1 + $0x108] sm:$0xff]  ;;  %1809 = vmatprep.subr.bf16.mxu0 %v1808_v3  ;;  %v42_v15 = vld [vmem:[%s3489_s1 + $0x18] sm:$0xff] }
   0x5   :  { %v1842_v12 = vpack.c.bf16 %v72_v10, %v71_v9  ;;  %1811 = vmatpush3.bf16.msra.mxu0 %v1810_v7  ;;  %v1814_v17 = vpack.c.bf16 %v42_v15, %v41_v14  ;;  %v89_v18 = vld [vmem:[%s3489_s1 + $0x190] sm:$0xff]  ;;  %v90_v19 = vld [vmem:[%s3489_s1 + $0x198] sm:$0xff]  ;;  %v59_v23 = vld [vmem:[%s3489_s1 + $0xa0] sm:$0xff] }
   0x6   :  { %1841 = vmatprep.subr.bf16.mxu1 %v1840_v8  ;;  %v73_v20 = vld [vmem:[%s3489_s1 + $0x110] sm:$0xff]  ;;  %v1844_v21 = vpack.c.bf16 %v90_v19, %v89_v18  ;;  %v74_v22 = vld [vmem:[%s3489_s1 + $0x118] sm:$0xff]  ;;  %v60_v24 = vld [vmem:[%s3489_s1 + $0xa8] sm:$0xff]  ;;  %1813 = vmatprep.subr.bf16.mxu0 %v1812_v16 }
   0x7   :  { %1843 = vmatpush3.bf16.msra.mxu1 %v1842_v12  ;;  %v1846_v25 = vpack.c.bf16 %v74_v22, %v73_v20  ;;  %v1816_v26 = vpack.c.bf16 %v60_v24, %v59_v23  ;;  %v43_v27 = vld [vmem:[%s3489_s1 + $0x20] sm:$0xff]  ;;  %v44_v28 = vld [vmem:[%s3489_s1 + $0x28] sm:$0xff]  ;;  %v61_v35 = vld [vmem:[%s3489_s1 + $0xb0] sm:$0xff] }
   0x8   :  { %v91_v29 = vld [vmem:[%s3489_s1 + $0x1a0] sm:$0xff]  ;;  %1845 = vmatprep.subr.bf16.mxu1 %v1844_v21  ;;  %v92_v30 = vld [vmem:[%s3489_s1 + $0x1a8] sm:$0xff]  ;;  %v1818_v33 = vpack.c.bf16 %v44_v28, %v43_v27  ;;  %v62_v36 = vld [vmem:[%s3489_s1 + $0xb8] sm:$0xff] }
   0x9   :  { %v75_v31 = vld [vmem:[%s3489_s1 + $0x120] sm:$0xff]  ;;  %v76_v32 = vld [vmem:[%s3489_s1 + $0x128] sm:$0xff]  ;;  %1815 = vmatpush3.bf16.msra.mxu0 %v1814_v17  ;;  %v1848_v34 = vpack.c.bf16 %v92_v30, %v91_v29  ;;  %v45_v37 = vld [vmem:[%s3489_s1 + $0x30] sm:$0xff]  ;;  %v1820_v39 = vpack.c.bf16 %v62_v36, %v61_v35 }
   0xa   :  { %1817 = vmatprep.subr.bf16.mxu0 %v1816_v26  ;;  %v1850_v38 = vpack.c.bf16 %v76_v32, %v75_v31  ;;  %v46_v40 = vld [vmem:[%s3489_s1 + $0x38] sm:$0xff]  ;;  %v93_v41 = vld [vmem:[%s3489_s1 + $0x1b0] sm:$0xff]  ;;  %v63_v46 = vld [vmem:[%s3489_s1 + $0xc0] sm:$0xff] }
   0xb   :  { %1847 = vmatpush3.bf16.msra.mxu1 %v1846_v25  ;;  %v94_v42 = vld [vmem:[%s3489_s1 + $0x1b8] sm:$0xff]  ;;  %v77_v44 = vld [vmem:[%s3489_s1 + $0x130] sm:$0xff]  ;;  %v64_v47 = vld [vmem:[%s3489_s1 + $0xc8] sm:$0xff]  ;;  %v1822_v48 = vpack.c.bf16 %v46_v40, %v45_v37 }
   0xc   :  { %1849 = vmatprep.subr.bf16.mxu1 %v1848_v34  ;;  %v1852_v43 = vpack.c.bf16 %v94_v42, %v93_v41  ;;  %v78_v45 = vld [vmem:[%s3489_s1 + $0x138] sm:$0xff]  ;;  %v95_v49 = vld [vmem:[%s3489_s1 + $0x1c0] sm:$0xff]  ;;  %v96_v50 = vld [vmem:[%s3489_s1 + $0x1c8] sm:$0xff]  ;;  %v1824_v52 = vpack.c.bf16 %v64_v47, %v63_v46 }
   0xd   :  { %1819 = vmatpush3.bf16.msra.mxu0 %v1818_v33  ;;  %v1854_v51 = vpack.c.bf16 %v78_v45, %v77_v44  ;;  %v47_v53 = vld [vmem:[%s3489_s1 + $0x40] sm:$0xff]  ;;  %v48_v54 = vld [vmem:[%s3489_s1 + $0x48] sm:$0xff]  ;;  %v1856_v56 = vpack.c.bf16 %v96_v50, %v95_v49  ;;  %v65_v58 = vld [vmem:[%s3489_s1 + $0xd0] sm:$0xff] }
   0xe   :  { %1821 = vmatprep.subr.bf16.mxu0 %v1820_v39  ;;  %v79_v55 = vld [vmem:[%s3489_s1 + $0x140] sm:$0xff]  ;;  %v80_v57 = vld [vmem:[%s3489_s1 + $0x148] sm:$0xff]  ;;  %v66_v59 = vld [vmem:[%s3489_s1 + $0xd8] sm:$0xff]  ;;  %v1826_v62 = vpack.c.bf16 %v48_v54, %v47_v53 }
   0xf   :  { %1851 = vmatpush3.bf16.msra.mxu1 %v1850_v38  ;;  %v97_v60 = vld [vmem:[%s3489_s1 + $0x1d0] sm:$0xff]  ;;  %v98_v61 = vld [vmem:[%s3489_s1 + $0x1d8] sm:$0xff]  ;;  %v1858_v63 = vpack.c.bf16 %v80_v57, %v79_v55  ;;  %v1828_v0 = vpack.c.bf16 %v66_v59, %v65_v58  ;;  %v67_v6 = vld [vmem:[%s3489_s1 + $0xe0] sm:$0xff] }
  0x10   :  { %1853 = vmatprep.subr.bf16.mxu1 %v1852_v43  ;;  %v49_v1 = vld [vmem:[%s3489_s1 + $0x50] sm:$0xff]  ;;  %v50_v2 = vld [vmem:[%s3489_s1 + $0x58] sm:$0xff]  ;;  %v1860_v4 = vpack.c.bf16 %v98_v61, %v97_v60  ;;  %v68_v7 = vld [vmem:[%s3489_s1 + $0xe8] sm:$0xff] }
  0x11   :  { %1823 = vmatpush3.bf16.msra.mxu0 %v1822_v48  ;;  %v81_v3 = vld [vmem:[%s3489_s1 + $0x150] sm:$0xff]  ;;  %v82_v5 = vld [vmem:[%s3489_s1 + $0x158] sm:$0xff]  ;;  %v99_v8 = vld [vmem:[%s3489_s1 + $0x1e0] sm:$0xff]  ;;  %v1830_v10 = vpack.c.bf16 %v50_v2, %v49_v1  ;;  %v1832_v14 = vpack.c.bf16 %v68_v7, %v67_v6 }
  0x12   :  { %1825 = vmatprep.subr.bf16.mxu0 %v1824_v52  ;;  %v100_v9 = vld [vmem:[%s3489_s1 + $0x1e8] sm:$0xff]  ;;  %v51_v11 = vld [vmem:[%s3489_s1 + $0x60] sm:$0xff]  ;;  %v1862_v13 = vpack.c.bf16 %v82_v5, %v81_v3  ;;  %v69_v19 = vld [vmem:[%s3489_s1 + $0xf0] sm:$0xff] }
  0x13   :  { %1855 = vmatpush3.bf16.msra.mxu1 %v1854_v51  ;;  %v15_v12 = vld [vmem:[%s3490_s0 + $0x8] sm:$0x3f]  ;;  %v83_v16 = vld [vmem:[%s3489_s1 + $0x160] sm:$0xff]  ;;  %v1864_v18 = vpack.c.bf16 %v100_v9, %v99_v8  ;;  %v70_v20 = vld [vmem:[%s3489_s1 + $0xf8] sm:$0xff] }
  0x14   :  { %1857 = vmatprep.subr.bf16.mxu1 %v1856_v56  ;;  %v52_v15 = vld [vmem:[%s3489_s1 + $0x68] sm:$0xff]  ;;  %506 = vmatprep.mubr.f32.mxu0 %v15_v12  ;;  %v17_v21 = vld [vmem:[%s3490_s0 + $0x18] sm:$0x3f]  ;;  %v101_v22 = vld [vmem:[%s3489_s1 + $0x1f0] sm:$0xff]  ;;  %v1836_v26 = vpack.c.bf16 %v70_v20, %v69_v19 }
  0x15   :  { %1827 = vmatpush3.bf16.msra.mxu0 %v1826_v62  ;;  %v84_v17 = vld [vmem:[%s3489_s1 + $0x168] sm:$0xff]  ;;  %v102_v23 = vld [vmem:[%s3489_s1 + $0x1f8] sm:$0xff]  ;;  %576 = vmatprep.mubr.f32.mxu1 %v17_v21  ;;  %v1834_v24 = vpack.c.bf16 %v52_v15, %v51_v11  ;;  %v53_v27 = vld [vmem:[%s3489_s1 + $0x70] sm:$0xff] }
  0x16   :  { %1829 = vmatprep.subr.bf16.mxu0 %v1828_v0  ;;  %v1866_v25 = vpack.c.bf16 %v84_v17, %v83_v16  ;;  %v54_v28 = vld [vmem:[%s3489_s1 + $0x78] sm:$0xff]  ;;  %v85_v29 = vld [vmem:[%s3489_s1 + $0x170] sm:$0xff]  ;;  %v1868_v30 = vpack.c.bf16 %v102_v23, %v101_v22  ;;  %v119_v32 = vld [vmem:[%s3489_s1 + $0x280] sm:$0xff] }
  0x17   :  { %1859 = vmatpush3.bf16.msra.mxu1 %v1858_v63  ;;  %v86_v31 = vld [vmem:[%s3489_s1 + $0x178] sm:$0xff]  ;;  %v120_v33 = vld [vmem:[%s3489_s1 + $0x288] sm:$0xff]  ;;  %v151_v34 = vld [vmem:[%s3489_s1 + $0x380] sm:$0xff]  ;;  %v1838_v36 = vpack.c.bf16 %v54_v28, %v53_v27 }
  0x18   :  { %1861 = vmatprep.subr.bf16.mxu1 %v1860_v4  ;;  %v152_v35 = vld [vmem:[%s3489_s1 + $0x388] sm:$0xff]  ;;  %v1870_v37 = vpack.c.bf16 %v86_v31, %v85_v29  ;;  %v1872_v38 = vpack.c.bf16 %v120_v33, %v119_v32  ;;  %v103_v39 = vld [vmem:[%s3489_s1 + $0x200] sm:$0xff]  ;;  %v121_v44 = vld [vmem:[%s3489_s1 + $0x290] sm:$0xff] }
  0x19   :  { %1831 = vmatpush3.bf16.msra.mxu0 %v1830_v10  ;;  %v104_v40 = vld [vmem:[%s3489_s1 + $0x208] sm:$0xff]  ;;  %v135_v41 = vld [vmem:[%s3489_s1 + $0x300] sm:$0xff]  ;;  %v1904_v42 = vpack.c.bf16 %v152_v35, %v151_v34  ;;  %v122_v45 = vld [vmem:[%s3489_s1 + $0x298] sm:$0xff] }
  0x1a   :  { %1833 = vmatprep.subr.bf16.mxu0 %v1832_v14  ;;  %v136_v43 = vld [vmem:[%s3489_s1 + $0x308] sm:$0xff]  ;;  %v153_v46 = vld [vmem:[%s3489_s1 + $0x390] sm:$0xff]  ;;  %v154_v47 = vld [vmem:[%s3489_s1 + $0x398] sm:$0xff]  ;;  %v1874_v49 = vpack.c.bf16 %v104_v40, %v103_v39  ;;  %v1876_v52 = vpack.c.bf16 %v122_v45, %v121_v44 }
  0x1b   :  { %1863 = vmatpush3.bf16.msra.mxu1 %v1862_v13  ;;  %v14_v48 = vld [vmem:[%s3490_s0] sm:$0x3f]  ;;  %v16_v50 = vld [vmem:[%s3490_s0 + $0x10] sm:$0x3f]  ;;  %v1906_v51 = vpack.c.bf16 %v136_v43, %v135_v41  ;;  %v106_v54 = vld [vmem:[%s3489_s1 + $0x218] sm:$0xff]  ;;  %v1908_v56 = vpack.c.bf16 %v154_v47, %v153_v46 }
  0x1c   :  { %1865 = vmatprep.subr.bf16.mxu1 %v1864_v18  ;;  %v105_v53 = vld [vmem:[%s3489_s1 + $0x210] sm:$0xff]  ;;  %v138_v57 = vld [vmem:[%s3489_s1 + $0x318] sm:$0xff]  ;;  %v123_v58 = vld [vmem:[%s3489_s1 + $0x2a0] sm:$0xff] }
  0x1d   :  { %1835 = vmatpush3.bf16.msra.mxu0 %v1834_v24  ;;  %v137_v55 = vld [vmem:[%s3489_s1 + $0x310] sm:$0xff]  ;;  %v124_v59 = vld [vmem:[%s3489_s1 + $0x2a8] sm:$0xff]  ;;  %v155_v60 = vld [vmem:[%s3489_s1 + $0x3a0] sm:$0xff]  ;;  %v1878_v62 = vpack.c.bf16 %v106_v54, %v105_v53 }
  0x1e   :  { %1837 = vmatprep.subr.bf16.mxu0 %v1836_v26  ;;  %v156_v61 = vld [vmem:[%s3489_s1 + $0x3a8] sm:$0xff]  ;;  %v1910_v63 = vpack.c.bf16 %v138_v57, %v137_v55  ;;  %v1880_v0 = vpack.c.bf16 %v124_v59, %v123_v58  ;;  %v107_v1 = vld [vmem:[%s3489_s1 + $0x220] sm:$0xff]  ;;  %v125_v6 = vld [vmem:[%s3489_s1 + $0x2b0] sm:$0xff] }
  0x1f   :  { %1867 = vmatpush3.bf16.msra.mxu1 %v1866_v25  ;;  %v108_v2 = vld [vmem:[%s3489_s1 + $0x228] sm:$0xff]  ;;  %v139_v3 = vld [vmem:[%s3489_s1 + $0x320] sm:$0xff]  ;;  %v1912_v4 = vpack.c.bf16 %v156_v61, %v155_v60  ;;  %v126_v7 = vld [vmem:[%s3489_s1 + $0x2b8] sm:$0xff] }
  0x20   :  { %1869 = vmatprep.subr.bf16.mxu1 %v1868_v30  ;;  %v140_v5 = vld [vmem:[%s3489_s1 + $0x328] sm:$0xff]  ;;  %v157_v8 = vld [vmem:[%s3489_s1 + $0x3b0] sm:$0xff]  ;;  %v158_v9 = vld [vmem:[%s3489_s1 + $0x3b8] sm:$0xff]  ;;  %v1882_v10 = vpack.c.bf16 %v108_v2, %v107_v1  ;;  %v1884_v12 = vpack.c.bf16 %v126_v7, %v125_v6 }
  0x21   :  { %1839 = vmatpush3.bf16.msra.mxu0 %v1838_v36  ;;  %v1914_v11 = vpack.c.bf16 %v140_v5, %v139_v3  ;;  %v109_v13 = vld [vmem:[%s3489_s1 + $0x230] sm:$0xff]  ;;  %v110_v14 = vld [vmem:[%s3489_s1 + $0x238] sm:$0xff]  ;;  %v1916_v16 = vpack.c.bf16 %v158_v9, %v157_v8  ;;  %v127_v18 = vld [vmem:[%s3489_s1 + $0x2c0] sm:$0xff] }
  0x22   :  { %1873 = vmatprep.subr.bf16.mxu0 %v1872_v38  ;;  %v141_v15 = vld [vmem:[%s3489_s1 + $0x330] sm:$0xff]  ;;  %v142_v17 = vld [vmem:[%s3489_s1 + $0x338] sm:$0xff]  ;;  %v128_v19 = vld [vmem:[%s3489_s1 + $0x2c8] sm:$0xff]  ;;  %v1886_v23 = vpack.c.bf16 %v110_v14, %v109_v13 }
  0x23   :  { %1871 = vmatpush3.bf16.msra.mxu1 %v1870_v37  ;;  %v159_v20 = vld [vmem:[%s3489_s1 + $0x3c0] sm:$0xff]  ;;  %v160_v21 = vld [vmem:[%s3489_s1 + $0x3c8] sm:$0xff]  ;;  %v1918_v25 = vpack.c.bf16 %v142_v17, %v141_v15  ;;  %v1888_v26 = vpack.c.bf16 %v128_v19, %v127_v18  ;;  %v21_v29 = vld [vmem:[%s3490_s0 + $0x38] sm:$0x3f] }
  0x24   :  { %1905 = vmatprep.subr.bf16.mxu1 %v1904_v42  ;;  %507 = vmatmul.mubr.f32.vlgmr.msra.gmra.mrb[0].mxu0 %v14_v48  ;;  %v19_v22 = vld [vmem:[%s3490_s0 + $0x28] sm:$0x3f]  ;;  %v111_v24 = vld [vmem:[%s3489_s1 + $0x240] sm:$0xff]  ;;  %v1920_v30 = vpack.c.bf16 %v160_v21, %v159_v20  ;;  %v129_v32 = vld [vmem:[%s3489_s1 + $0x2d0] sm:$0xff] }
  0x25   :  { %1875 = vmatpush3.bf16.msra.mxu0 %v1874_v49  ;;  %646 = vmatprep.mubr.f32.mxu0 %v19_v22  ;;  %v112_v27 = vld [vmem:[%s3489_s1 + $0x248] sm:$0xff]  ;;  %v143_v28 = vld [vmem:[%s3489_s1 + $0x340] sm:$0xff]  ;;  %v130_v33 = vld [vmem:[%s3489_s1 + $0x2d8] sm:$0xff] }
  0x26   :  { %577 = vmatmul.mubr.f32.vlgmr.msra.gmra.mrb[0].mxu1 %v16_v50  ;;  %1877 = vmatprep.subr.bf16.mxu0 %v1876_v52  ;;  %v144_v31 = vld [vmem:[%s3489_s1 + $0x348] sm:$0xff]  ;;  %v161_v34 = vld [vmem:[%s3489_s1 + $0x3d0] sm:$0xff]  ;;  %v162_v35 = vld [vmem:[%s3489_s1 + $0x3d8] sm:$0xff]  ;;  %v1890_v36 = vpack.c.bf16 %v112_v27, %v111_v24  ;;  %v1892_v38 = vpack.c.bf16 %v130_v33, %v129_v32 }
  0x27   :  { %1907 = vmatpush3.bf16.msra.mxu1 %v1906_v51  ;;  %716 = vmatprep.mubr.f32.mxu1 %v21_v29  ;;  %v1922_v37 = vpack.c.bf16 %v144_v31, %v143_v28  ;;  %v113_v39 = vld [vmem:[%s3489_s1 + $0x250] sm:$0xff]  ;;  %v114_v40 = vld [vmem:[%s3489_s1 + $0x258] sm:$0xff]  ;;  %v1924_v42 = vpack.c.bf16 %v162_v35, %v161_v34  ;;  %v131_v44 = vld [vmem:[%s3489_s1 + $0x2e0] sm:$0xff] }
  0x28   :  { %1909 = vmatprep.subr.bf16.mxu1 %v1908_v56  ;;  %v145_v41 = vld [vmem:[%s3489_s1 + $0x350] sm:$0xff]  ;;  %v146_v43 = vld [vmem:[%s3489_s1 + $0x358] sm:$0xff]  ;;  %v132_v45 = vld [vmem:[%s3489_s1 + $0x2e8] sm:$0xff]  ;;  %v1894_v48 = vpack.c.bf16 %v114_v40, %v113_v39 }
  0x29   :  { %1879 = vmatpush3.bf16.msra.mxu0 %v1878_v62  ;;  %v163_v46 = vld [vmem:[%s3489_s1 + $0x3e0] sm:$0xff]  ;;  %v164_v47 = vld [vmem:[%s3489_s1 + $0x3e8] sm:$0xff]  ;;  %v1926_v49 = vpack.c.bf16 %v146_v43, %v145_v41  ;;  %v1896_v50 = vpack.c.bf16 %v132_v45, %v131_v44  ;;  %v133_v56 = vld [vmem:[%s3489_s1 + $0x2f0] sm:$0xff] }
  0x2a   :  { %1881 = vmatprep.subr.bf16.mxu0 %v1880_v0  ;;  %v115_v51 = vld [vmem:[%s3489_s1 + $0x260] sm:$0xff]  ;;  %v116_v52 = vld [vmem:[%s3489_s1 + $0x268] sm:$0xff]  ;;  %v1928_v54 = vpack.c.bf16 %v164_v47, %v163_v46  ;;  %v134_v57 = vld [vmem:[%s3489_s1 + $0x2f8] sm:$0xff] }
  0x2b   :  { %1911 = vmatpush3.bf16.msra.mxu1 %v1910_v63  ;;  %v147_v53 = vld [vmem:[%s3489_s1 + $0x360] sm:$0xff]  ;;  %v148_v55 = vld [vmem:[%s3489_s1 + $0x368] sm:$0xff]  ;;  %v165_v58 = vld [vmem:[%s3489_s1 + $0x3f0] sm:$0xff]  ;;  %v1898_v60 = vpack.c.bf16 %v116_v52, %v115_v51  ;;  %v1900_v62 = vpack.c.bf16 %v134_v57, %v133_v56 }
  0x2c   :  { %1913 = vmatprep.subr.bf16.mxu1 %v1912_v4  ;;  %v166_v59 = vld [vmem:[%s3489_s1 + $0x3f8] sm:$0xff]  ;;  %v1930_v61 = vpack.c.bf16 %v148_v55, %v147_v53  ;;  %v117_v63 = vld [vmem:[%s3489_s1 + $0x270] sm:$0xff]  ;;  %v183_v4 = vld [vmem:[%s3489_s1 + $0x480] sm:$0xff] }
  0x2d   :  { %1883 = vmatpush3.bf16.msra.mxu0 %v1882_v10  ;;  %v118_v0 = vld [vmem:[%s3489_s1 + $0x278] sm:$0xff]  ;;  %v149_v1 = vld [vmem:[%s3489_s1 + $0x370] sm:$0xff]  ;;  %v1932_v2 = vpack.c.bf16 %v166_v59, %v165_v58  ;;  %v184_v5 = vld [vmem:[%s3489_s1 + $0x488] sm:$0xff] }
  0x2e   :  { %1885 = vmatprep.subr.bf16.mxu0 %v1884_v12  ;;  %v150_v3 = vld [vmem:[%s3489_s1 + $0x378] sm:$0xff]  ;;  %v215_v6 = vld [vmem:[%s3489_s1 + $0x580] sm:$0xff]  ;;  %v216_v7 = vld [vmem:[%s3489_s1 + $0x588] sm:$0xff]  ;;  %v1902_v8 = vpack.c.bf16 %v118_v0, %v117_v63  ;;  %v1936_v10 = vpack.c.bf16 %v184_v5, %v183_v4 }
  0x2f   :  { %1915 = vmatpush3.bf16.msra.mxu1 %v1914_v11  ;;  %v1934_v9 = vpack.c.bf16 %v150_v3, %v149_v1  ;;  %v167_v11 = vld [vmem:[%s3489_s1 + $0x400] sm:$0xff]  ;;  %v168_v12 = vld [vmem:[%s3489_s1 + $0x408] sm:$0xff]  ;;  %v1968_v14 = vpack.c.bf16 %v216_v7, %v215_v6  ;;  %v186_v17 = vld [vmem:[%s3489_s1 + $0x498] sm:$0xff] }
  0x30   :  { %1917 = vmatprep.subr.bf16.mxu1 %v1916_v16  ;;  %v199_v13 = vld [vmem:[%s3489_s1 + $0x500] sm:$0xff]  ;;  %v200_v15 = vld [vmem:[%s3489_s1 + $0x508] sm:$0xff]  ;;  %v185_v16 = vld [vmem:[%s3489_s1 + $0x490] sm:$0xff]  ;;  %v1938_v21 = vpack.c.bf16 %v168_v12, %v167_v11 }
  0x31   :  { %1887 = vmatpush3.bf16.msra.mxu0 %v1886_v23  ;;  %v217_v18 = vld [vmem:[%s3489_s1 + $0x590] sm:$0xff]  ;;  %v218_v19 = vld [vmem:[%s3489_s1 + $0x598] sm:$0xff]  ;;  %v18_v20 = vld [vmem:[%s3490_s0 + $0x20] sm:$0x3f]  ;;  %v1970_v23 = vpack.c.bf16 %v200_v15, %v199_v13  ;;  %v1940_v24 = vpack.c.bf16 %v186_v17, %v185_v16 }
  0x32   :  { %1889 = vmatprep.subr.bf16.mxu0 %v1888_v26  ;;  %v20_v22 = vld [vmem:[%s3490_s0 + $0x30] sm:$0x3f]  ;;  %v170_v26 = vld [vmem:[%s3489_s1 + $0x418] sm:$0xff]  ;;  %v1972_v28 = vpack.c.bf16 %v218_v19, %v217_v18  ;;  %v188_v31 = vld [vmem:[%s3489_s1 + $0x4a8] sm:$0xff] }
  0x33   :  { %1919 = vmatpush3.bf16.msra.mxu1 %v1918_v25  ;;  %v169_v25 = vld [vmem:[%s3489_s1 + $0x410] sm:$0xff]  ;;  %v202_v29 = vld [vmem:[%s3489_s1 + $0x518] sm:$0xff]  ;;  %v219_v32 = vld [vmem:[%s3489_s1 + $0x5a0] sm:$0xff] }
  0x34   :  { %1921 = vmatprep.subr.bf16.mxu1 %v1920_v30  ;;  %v201_v27 = vld [vmem:[%s3489_s1 + $0x510] sm:$0xff]  ;;  %v187_v30 = vld [vmem:[%s3489_s1 + $0x4a0] sm:$0xff]  ;;  %v220_v33 = vld [vmem:[%s3489_s1 + $0x5a8] sm:$0xff]  ;;  %v1942_v35 = vpack.c.bf16 %v170_v26, %v169_v25 }
  0x35   :  { %1891 = vmatpush3.bf16.msra.mxu0 %v1890_v36  ;;  %v23_v34 = vld [vmem:[%s3490_s0 + $0x48] sm:$0x3f]  ;;  %v25_v36 = vld [vmem:[%s3490_s0 + $0x58] sm:$0x3f]  ;;  %v171_v39 = vld [vmem:[%s3489_s1 + $0x420] sm:$0xff] }
  0x36   :  { %1893 = vmatprep.subr.bf16.mxu0 %v1892_v38  ;;  %v1944_v38 = vpack.c.bf16 %v188_v31, %v187_v30  ;;  %v172_v40 = vld [vmem:[%s3489_s1 + $0x428] sm:$0xff]  ;;  %v203_v41 = vld [vmem:[%s3489_s1 + $0x520] sm:$0xff]  ;;  %v189_v44 = vld [vmem:[%s3489_s1 + $0x4b0] sm:$0xff] }
  0x37   :  { %1923 = vmatpush3.bf16.msra.mxu1 %v1922_v37  ;;  %v1974_v37 = vpack.c.bf16 %v202_v29, %v201_v27  ;;  %v204_v43 = vld [vmem:[%s3489_s1 + $0x528] sm:$0xff]  ;;  %v190_v45 = vld [vmem:[%s3489_s1 + $0x4b8] sm:$0xff]  ;;  %v221_v46 = vld [vmem:[%s3489_s1 + $0x5b0] sm:$0xff] }
  0x38   :  { %1925 = vmatprep.subr.bf16.mxu1 %v1924_v42  ;;  %v1976_v42 = vpack.c.bf16 %v220_v33, %v219_v32  ;;  %v222_v47 = vld [vmem:[%s3489_s1 + $0x5b8] sm:$0xff]  ;;  %v173_v51 = vld [vmem:[%s3489_s1 + $0x430] sm:$0xff]  ;;  %v191_v56 = vld [vmem:[%s3489_s1 + $0x4c0] sm:$0xff] }
  0x39   :  { %1895 = vmatpush3.bf16.msra.mxu0 %v1894_v48  ;;  %v1946_v48 = vpack.c.bf16 %v172_v40, %v171_v39  ;;  %v174_v52 = vld [vmem:[%s3489_s1 + $0x438] sm:$0xff]  ;;  %v205_v53 = vld [vmem:[%s3489_s1 + $0x530] sm:$0xff]  ;;  %v192_v57 = vld [vmem:[%s3489_s1 + $0x4c8] sm:$0xff] }
  0x3a   :  { %1897 = vmatprep.subr.bf16.mxu0 %v1896_v50  ;;  %v1948_v50 = vpack.c.bf16 %v190_v45, %v189_v44  ;;  %v206_v55 = vld [vmem:[%s3489_s1 + $0x538] sm:$0xff]  ;;  %v223_v58 = vld [vmem:[%s3489_s1 + $0x5c0] sm:$0xff]  ;;  %v224_v59 = vld [vmem:[%s3489_s1 + $0x5c8] sm:$0xff] }
  0x3b   :  { %1927 = vmatpush3.bf16.msra.mxu1 %v1926_v49  ;;  %v1978_v49 = vpack.c.bf16 %v204_v43, %v203_v41  ;;  %v175_v63 = vld [vmem:[%s3489_s1 + $0x440] sm:$0xff]  ;;  %v176_v0 = vld [vmem:[%s3489_s1 + $0x448] sm:$0xff]  ;;  %v193_v4 = vld [vmem:[%s3489_s1 + $0x4d0] sm:$0xff] }
  0x3c   :  { %1929 = vmatprep.subr.bf16.mxu1 %v1928_v54  ;;  %v1980_v54 = vpack.c.bf16 %v222_v47, %v221_v46  ;;  %v207_v1 = vld [vmem:[%s3489_s1 + $0x540] sm:$0xff]  ;;  %v208_v3 = vld [vmem:[%s3489_s1 + $0x548] sm:$0xff]  ;;  %v194_v5 = vld [vmem:[%s3489_s1 + $0x4d8] sm:$0xff] }
  0x3d   :  { %1899 = vmatpush3.bf16.msra.mxu0 %v1898_v60  ;;  %v1950_v60 = vpack.c.bf16 %v174_v52, %v173_v51  ;;  %v225_v6 = vld [vmem:[%s3489_s1 + $0x5d0] sm:$0xff]  ;;  %v226_v7 = vld [vmem:[%s3489_s1 + $0x5d8] sm:$0xff]  ;;  %v195_v16 = vld [vmem:[%s3489_s1 + $0x4e0] sm:$0xff] }
  0x3e   :  { %1901 = vmatprep.subr.bf16.mxu0 %v1900_v62  ;;  %v1952_v62 = vpack.c.bf16 %v192_v57, %v191_v56  ;;  %v177_v11 = vld [vmem:[%s3489_s1 + $0x450] sm:$0xff]  ;;  %v178_v12 = vld [vmem:[%s3489_s1 + $0x458] sm:$0xff]  ;;  %v196_v17 = vld [vmem:[%s3489_s1 + $0x4e8] sm:$0xff] }
  0x3f   :  { %1931 = vmatpush3.bf16.msra.mxu1 %v1930_v61  ;;  %v1982_v61 = vpack.c.bf16 %v206_v55, %v205_v53  ;;  %v209_v13 = vld [vmem:[%s3489_s1 + $0x550] sm:$0xff]  ;;  %v210_v15 = vld [vmem:[%s3489_s1 + $0x558] sm:$0xff]  ;;  %v227_v18 = vld [vmem:[%s3489_s1 + $0x5e0] sm:$0xff] }
  0x40   :  { %1933 = vmatprep.subr.bf16.mxu1 %v1932_v2  ;;  %v1984_v2 = vpack.c.bf16 %v224_v59, %v223_v58  ;;  %v228_v19 = vld [vmem:[%s3489_s1 + $0x5e8] sm:$0xff]  ;;  %v211_v25 = vld [vmem:[%s3489_s1 + $0x560] sm:$0xff]  ;;  %v198_v29 = vld [vmem:[%s3489_s1 + $0x4f8] sm:$0xff] }
  0x41   :  { %1903 = vmatpush3.bf16.msra.mxu0 %v1902_v8  ;;  %v1954_v8 = vpack.c.bf16 %v176_v0, %v175_v63  ;;  %v1992_v26 = vpack.c.bf16 %v228_v19, %v227_v18  ;;  %v212_v27 = vld [vmem:[%s3489_s1 + $0x568] sm:$0xff]  ;;  %v229_v30 = vld [vmem:[%s3489_s1 + $0x5f0] sm:$0xff]  ;;  %v230_v31 = vld [vmem:[%s3489_s1 + $0x5f8] sm:$0xff] }
  0x42   :  { %1937 = vmatprep.subr.bf16.mxu0 %v1936_v10  ;;  %v1956_v10 = vpack.c.bf16 %v194_v5, %v193_v4  ;;  %v1994_v33 = vpack.c.bf16 %v212_v27, %v211_v25  ;;  %v214_v39 = vld [vmem:[%s3489_s1 + $0x578] sm:$0xff]  ;;  %v247_v40 = vld [vmem:[%s3489_s1 + $0x680] sm:$0xff]  ;;  %v248_v41 = vld [vmem:[%s3489_s1 + $0x688] sm:$0xff] }
  0x43   :  { %1935 = vmatpush3.bf16.msra.mxu1 %v1934_v9  ;;  %v1986_v9 = vpack.c.bf16 %v208_v3, %v207_v1  ;;  %v280_v43 = vld [vmem:[%s3489_s1 + $0x788] sm:$0xff]  ;;  %v2000_v46 = vpack.c.bf16 %v248_v41, %v247_v40  ;;  %v231_v47 = vld [vmem:[%s3489_s1 + $0x600] sm:$0xff]  ;;  %v249_v52 = vld [vmem:[%s3489_s1 + $0x690] sm:$0xff] }
  0x44   :  { %1969 = vmatprep.subr.bf16.mxu1 %v1968_v14  ;;  %647 = vmatmul.mubr.f32.vlgmr.msra.gmra.mrb[2].mxu0 %v18_v20  ;;  %v1988_v14 = vpack.c.bf16 %v226_v7, %v225_v6  ;;  %v1958_v20 = vpack.c.bf16 %v178_v12, %v177_v11  ;;  %v264_v51 = vld [vmem:[%s3489_s1 + $0x708] sm:$0xff]  ;;  %v250_v53 = vld [vmem:[%s3489_s1 + $0x698] sm:$0xff]  ;;  %v22_v56 = vld [vmem:[%s3490_s0 + $0x40] sm:$0x3f] }
  0x45   :  { %1939 = vmatpush3.bf16.msra.mxu0 %v1938_v21  ;;  %786 = vmatprep.mubr.f32.mxu0 %v23_v34  ;;  %v1990_v21 = vpack.c.bf16 %v210_v15, %v209_v13  ;;  %v282_v55 = vld [vmem:[%s3489_s1 + $0x798] sm:$0xff]  ;;  %v24_v58 = vld [vmem:[%s3490_s0 + $0x50] sm:$0x3f]  ;;  %v252_v3 = vld [vmem:[%s3489_s1 + $0x6a8] sm:$0xff] }
  0x46   :  { %717 = vmatmul.mubr.f32.vlgmr.msra.gmra.mrb[2].mxu1 %v20_v22  ;;  %1941 = vmatprep.subr.bf16.mxu0 %v1940_v24  ;;  %v1960_v22 = vpack.c.bf16 %v196_v17, %v195_v16  ;;  %v180_v24 = vld [vmem:[%s3489_s1 + $0x468] sm:$0xff]  ;;  %v265_v63 = vld [vmem:[%s3489_s1 + $0x710] sm:$0xff]  ;;  %v266_v1 = vld [vmem:[%s3489_s1 + $0x718] sm:$0xff] }
  0x47   :  { %1971 = vmatpush3.bf16.msra.mxu1 %v1970_v23  ;;  %856 = vmatprep.mubr.f32.mxu1 %v25_v36  ;;  %v179_v23 = vld [vmem:[%s3489_s1 + $0x460] sm:$0xff]  ;;  %v182_v36 = vld [vmem:[%s3489_s1 + $0x478] sm:$0xff]  ;;  %v284_v5 = vld [vmem:[%s3489_s1 + $0x7a8] sm:$0xff] }
  0x48   :  { %1973 = vmatprep.subr.bf16.mxu1 %v1972_v28  ;;  %v197_v28 = vld [vmem:[%s3489_s1 + $0x4f0] sm:$0xff]  ;;  %v1962_v32 = vpack.c.bf16 %v180_v24, %v179_v23  ;;  %v283_v4 = vld [vmem:[%s3489_s1 + $0x7a0] sm:$0xff]  ;;  %v27_v6 = vld [vmem:[%s3490_s0 + $0x68] sm:$0x3f] }
  0x49   :  { %1943 = vmatpush3.bf16.msra.mxu0 %v1942_v35  ;;  %v1964_v34 = vpack.c.bf16 %v198_v29, %v197_v28  ;;  %v181_v35 = vld [vmem:[%s3489_s1 + $0x470] sm:$0xff]  ;;  %v235_v11 = vld [vmem:[%s3489_s1 + $0x620] sm:$0xff]  ;;  %v236_v12 = vld [vmem:[%s3489_s1 + $0x628] sm:$0xff] }
  0x4a   :  { %1945 = vmatprep.subr.bf16.mxu0 %v1944_v38  ;;  %v1996_v38 = vpack.c.bf16 %v230_v31, %v229_v30  ;;  %v1966_v44 = vpack.c.bf16 %v182_v36, %v181_v35  ;;  %v267_v13 = vld [vmem:[%s3489_s1 + $0x720] sm:$0xff]  ;;  %v268_v15 = vld [vmem:[%s3489_s1 + $0x728] sm:$0xff]  ;;  %v253_v16 = vld [vmem:[%s3489_s1 + $0x6b0] sm:$0xff] }
  0x4b   :  { %1975 = vmatpush3.bf16.msra.mxu1 %v1974_v37  ;;  %v213_v37 = vld [vmem:[%s3489_s1 + $0x570] sm:$0xff]  ;;  %v254_v17 = vld [vmem:[%s3489_s1 + $0x6b8] sm:$0xff]  ;;  %v255_v28 = vld [vmem:[%s3489_s1 + $0x6c0] sm:$0xff] }
  0x4c   :  { %1977 = vmatprep.subr.bf16.mxu1 %v1976_v42  ;;  %v279_v42 = vld [vmem:[%s3489_s1 + $0x780] sm:$0xff]  ;;  %v1998_v45 = vpack.c.bf16 %v214_v39, %v213_v37  ;;  %v285_v18 = vld [vmem:[%s3489_s1 + $0x7b0] sm:$0xff]  ;;  %v286_v19 = vld [vmem:[%s3489_s1 + $0x7b8] sm:$0xff] }
  0x4d   :  { %1947 = vmatpush3.bf16.msra.mxu0 %v1946_v48  ;;  %v232_v48 = vld [vmem:[%s3489_s1 + $0x608] sm:$0xff]  ;;  %v237_v23 = vld [vmem:[%s3489_s1 + $0x630] sm:$0xff]  ;;  %v238_v24 = vld [vmem:[%s3489_s1 + $0x638] sm:$0xff] }
  0x4e   :  { %1949 = vmatprep.subr.bf16.mxu0 %v1948_v50  ;;  %v2032_v50 = vpack.c.bf16 %v280_v43, %v279_v42  ;;  %v2002_v57 = vpack.c.bf16 %v232_v48, %v231_v47  ;;  %v269_v25 = vld [vmem:[%s3489_s1 + $0x730] sm:$0xff]  ;;  %v270_v27 = vld [vmem:[%s3489_s1 + $0x738] sm:$0xff]  ;;  %v256_v29 = vld [vmem:[%s3489_s1 + $0x6c8] sm:$0xff] }
  0x4f   :  { %1979 = vmatpush3.bf16.msra.mxu1 %v1978_v49  ;;  %v263_v49 = vld [vmem:[%s3489_s1 + $0x700] sm:$0xff]  ;;  %v288_v31 = vld [vmem:[%s3489_s1 + $0x7c8] sm:$0xff]  ;;  %v257_v40 = vld [vmem:[%s3489_s1 + $0x6d0] sm:$0xff] }
  0x50   :  { %1981 = vmatprep.subr.bf16.mxu1 %v1980_v54  ;;  %v281_v54 = vld [vmem:[%s3489_s1 + $0x790] sm:$0xff]  ;;  %v2034_v59 = vpack.c.bf16 %v264_v51, %v263_v49  ;;  %v287_v30 = vld [vmem:[%s3489_s1 + $0x7c0] sm:$0xff]  ;;  %v240_v36 = vld [vmem:[%s3489_s1 + $0x648] sm:$0xff] }
  0x51   :  { %1951 = vmatpush3.bf16.msra.mxu0 %v1950_v60  ;;  %v2004_v60 = vpack.c.bf16 %v250_v53, %v249_v52  ;;  %v2036_v0 = vpack.c.bf16 %v282_v55, %v281_v54  ;;  %v239_v35 = vld [vmem:[%s3489_s1 + $0x640] sm:$0xff]  ;;  %v272_v39 = vld [vmem:[%s3489_s1 + $0x748] sm:$0xff]  ;;  %v258_v41 = vld [vmem:[%s3489_s1 + $0x6d8] sm:$0xff] }
  0x52   :  { %1953 = vmatprep.subr.bf16.mxu0 %v1952_v62  ;;  %v234_v62 = vld [vmem:[%s3489_s1 + $0x618] sm:$0xff]  ;;  %v271_v37 = vld [vmem:[%s3489_s1 + $0x740] sm:$0xff]  ;;  %v289_v42 = vld [vmem:[%s3489_s1 + $0x7d0] sm:$0xff] }
  0x53   :  { %1983 = vmatpush3.bf16.msra.mxu1 %v1982_v61  ;;  %v233_v61 = vld [vmem:[%s3489_s1 + $0x610] sm:$0xff]  ;;  %v290_v43 = vld [vmem:[%s3489_s1 + $0x7d8] sm:$0xff]  ;;  %v259_v52 = vld [vmem:[%s3489_s1 + $0x6e0] sm:$0xff] }
  0x54   :  { %1985 = vmatprep.subr.bf16.mxu1 %v1984_v2  ;;  %v251_v2 = vld [vmem:[%s3489_s1 + $0x6a0] sm:$0xff]  ;;  %v2006_v7 = vpack.c.bf16 %v234_v62, %v233_v61  ;;  %v241_v47 = vld [vmem:[%s3489_s1 + $0x650] sm:$0xff]  ;;  %v242_v48 = vld [vmem:[%s3489_s1 + $0x658] sm:$0xff] }
  0x55   :  { %1955 = vmatpush3.bf16.msra.mxu0 %v1954_v8  ;;  %v29_v8 = vld [vmem:[%s3490_s0 + $0x78] sm:$0x3f]  ;;  %v273_v49 = vld [vmem:[%s3489_s1 + $0x750] sm:$0xff]  ;;  %v260_v53 = vld [vmem:[%s3489_s1 + $0x6e8] sm:$0xff] }
  0x56   :  { %1957 = vmatprep.subr.bf16.mxu0 %v1956_v10  ;;  %v2008_v10 = vpack.c.bf16 %v252_v3, %v251_v2  ;;  %v274_v51 = vld [vmem:[%s3489_s1 + $0x758] sm:$0xff]  ;;  %v291_v54 = vld [vmem:[%s3489_s1 + $0x7e0] sm:$0xff]  ;;  %v292_v55 = vld [vmem:[%s3489_s1 + $0x7e8] sm:$0xff] }
  0x57   :  { %1987 = vmatpush3.bf16.msra.mxu1 %v1986_v9  ;;  %v2038_v9 = vpack.c.bf16 %v266_v1, %v265_v63  ;;  %v275_v61 = vld [vmem:[%s3489_s1 + $0x760] sm:$0xff]  ;;  %v2056_v62 = vpack.c.bf16 %v292_v55, %v291_v54  ;;  %v276_v63 = vld [vmem:[%s3489_s1 + $0x768] sm:$0xff]  ;;  %v262_v1 = vld [vmem:[%s3489_s1 + $0x6f8] sm:$0xff] }
  0x58   :  { %1989 = vmatprep.subr.bf16.mxu1 %v1988_v14  ;;  %v2040_v14 = vpack.c.bf16 %v284_v5, %v283_v4  ;;  %v293_v2 = vld [vmem:[%s3489_s1 + $0x7f0] sm:$0xff]  ;;  %v294_v3 = vld [vmem:[%s3489_s1 + $0x7f8] sm:$0xff]  ;;  %v2058_v5 = vpack.c.bf16 %v276_v63, %v275_v61 }
  0x59   :  { %1959 = vmatpush3.bf16.msra.mxu0 %v1958_v20  ;;  %v2010_v20 = vpack.c.bf16 %v236_v12, %v235_v11  ;;  %v278_v11 = vld [vmem:[%s3489_s1 + $0x778] sm:$0xff]  ;;  %v311_v12 = vld [vmem:[%s3489_s1 + $0x880] sm:$0xff]  ;;  %v349_v54 = vld [vmem:[%s3489_s1 + $0x9b0] sm:$0xff] }
  0x5a   :  { %1961 = vmatprep.subr.bf16.mxu0 %v1960_v22  ;;  %v2012_v22 = vpack.c.bf16 %v254_v17, %v253_v16  ;;  %v350_v55 = vld [vmem:[%s3489_s1 + $0x9b8] sm:$0xff]  ;;  %v333_v61 = vld [vmem:[%s3489_s1 + $0x930] sm:$0xff] }
  0x5b   :  { %1991 = vmatpush3.bf16.msra.mxu1 %v1990_v21  ;;  %v2042_v21 = vpack.c.bf16 %v268_v15, %v267_v13  ;;  %v312_v13 = vld [vmem:[%s3489_s1 + $0x888] sm:$0xff]  ;;  %v334_v63 = vld [vmem:[%s3489_s1 + $0x938] sm:$0xff] }
  0x5c   :  { %1993 = vmatprep.subr.bf16.mxu1 %v1992_v26  ;;  %v2044_v26 = vpack.c.bf16 %v286_v19, %v285_v18  ;;  %v344_v15 = vld [vmem:[%s3489_s1 + $0x988] sm:$0xff]  ;;  %v2064_v18 = vpack.c.bf16 %v312_v13, %v311_v12  ;;  %v295_v19 = vld [vmem:[%s3489_s1 + $0x800] sm:$0xff]  ;;  %v321_v12 = vld [vmem:[%s3489_s1 + $0x8d0] sm:$0xff] }
  0x5d   :  { %1963 = vmatpush3.bf16.msra.mxu0 %v1962_v32  ;;  %v2014_v32 = vpack.c.bf16 %v238_v24, %v237_v23  ;;  %v328_v23 = vld [vmem:[%s3489_s1 + $0x908] sm:$0xff]  ;;  %v313_v24 = vld [vmem:[%s3489_s1 + $0x890] sm:$0xff]  ;;  %v322_v13 = vld [vmem:[%s3489_s1 + $0x8d8] sm:$0xff] }
  0x5e   :  { %1965 = vmatprep.subr.bf16.mxu0 %v1964_v34  ;;  %v2016_v34 = vpack.c.bf16 %v256_v29, %v255_v28  ;;  %v26_v28 = vld [vmem:[%s3490_s0 + $0x60] sm:$0x3f] }
  0x5f   :  { %1995 = vmatpush3.bf16.msra.mxu1 %v1994_v33  ;;  %v2046_v33 = vpack.c.bf16 %v270_v27, %v269_v25  ;;  %v314_v25 = vld [vmem:[%s3489_s1 + $0x898] sm:$0xff] }
  0x60   :  { %1997 = vmatprep.subr.bf16.mxu1 %v1996_v38  ;;  %v2048_v38 = vpack.c.bf16 %v288_v31, %v287_v30  ;;  %v346_v27 = vld [vmem:[%s3489_s1 + $0x998] sm:$0xff]  ;;  %v28_v30 = vld [vmem:[%s3490_s0 + $0x70] sm:$0x3f] }
  0x61   :  { %1967 = vmatpush3.bf16.msra.mxu0 %v1966_v44  ;;  %v2018_v44 = vpack.c.bf16 %v240_v36, %v239_v35  ;;  %v329_v35 = vld [vmem:[%s3489_s1 + $0x910] sm:$0xff] }
  0x62   :  { %2001 = vmatprep.subr.bf16.mxu0 %v2000_v46  ;;  %v2020_v46 = vpack.c.bf16 %v258_v41, %v257_v40  ;;  %v347_v40 = vld [vmem:[%s3489_s1 + $0x9a0] sm:$0xff]  ;;  %v348_v41 = vld [vmem:[%s3489_s1 + $0x9a8] sm:$0xff] }
  0x63   :  { %1999 = vmatpush3.bf16.msra.mxu1 %v1998_v45  ;;  %v2050_v45 = vpack.c.bf16 %v272_v39, %v271_v37  ;;  %v330_v37 = vld [vmem:[%s3489_s1 + $0x918] sm:$0xff]  ;;  %v316_v39 = vld [vmem:[%s3489_s1 + $0x8a8] sm:$0xff] }
  0x64   :  { %2033 = vmatprep.subr.bf16.mxu1 %v2032_v50  ;;  %787 = vmatmul.mubr.f32.vlgmr.msra.gmra.mrb[4].mxu0 %v22_v56  ;;  %v2052_v50 = vpack.c.bf16 %v290_v43, %v289_v42  ;;  %v2022_v56 = vpack.c.bf16 %v242_v48, %v241_v47  ;;  %v31_v42 = vld [vmem:[%s3490_s0 + $0x88] sm:$0x3f]  ;;  %v299_v47 = vld [vmem:[%s3489_s1 + $0x820] sm:$0xff] }
  0x65   :  { %2003 = vmatpush3.bf16.msra.mxu0 %v2002_v57  ;;  %926 = vmatprep.mubr.f32.mxu0 %v27_v6  ;;  %v2054_v57 = vpack.c.bf16 %v274_v51, %v273_v49  ;;  %v300_v48 = vld [vmem:[%s3489_s1 + $0x828] sm:$0xff]  ;;  %v331_v49 = vld [vmem:[%s3489_s1 + $0x920] sm:$0xff] }
  0x66   :  { %857 = vmatmul.mubr.f32.vlgmr.msra.gmra.mrb[4].mxu1 %v24_v58  ;;  %2005 = vmatprep.subr.bf16.mxu0 %v2004_v60  ;;  %v2024_v58 = vpack.c.bf16 %v260_v53, %v259_v52  ;;  %v244_v60 = vld [vmem:[%s3489_s1 + $0x668] sm:$0xff]  ;;  %v317_v52 = vld [vmem:[%s3489_s1 + $0x8b0] sm:$0xff]  ;;  %v318_v53 = vld [vmem:[%s3489_s1 + $0x8b8] sm:$0xff] }
  0x67   :  { %2035 = vmatpush3.bf16.msra.mxu1 %v2034_v59  ;;  %996 = vmatprep.mubr.f32.mxu1 %v29_v8  ;;  %v243_v59 = vld [vmem:[%s3489_s1 + $0x660] sm:$0xff]  ;;  %v246_v8 = vld [vmem:[%s3489_s1 + $0x678] sm:$0xff]  ;;  %v332_v51 = vld [vmem:[%s3489_s1 + $0x928] sm:$0xff] }
  0x68   :  { %2037 = vmatprep.subr.bf16.mxu1 %v2036_v0  ;;  %v261_v0 = vld [vmem:[%s3489_s1 + $0x6f0] sm:$0xff]  ;;  %v2026_v4 = vpack.c.bf16 %v244_v60, %v243_v59  ;;  %v302_v60 = vld [vmem:[%s3489_s1 + $0x838] sm:$0xff] }
  0x69   :  { %2007 = vmatpush3.bf16.msra.mxu0 %v2006_v7  ;;  %v2028_v6 = vpack.c.bf16 %v262_v1, %v261_v0  ;;  %v245_v7 = vld [vmem:[%s3489_s1 + $0x670] sm:$0xff]  ;;  %v319_v0 = vld [vmem:[%s3489_s1 + $0x8c0] sm:$0xff]  ;;  %v320_v1 = vld [vmem:[%s3489_s1 + $0x8c8] sm:$0xff] }
  0x6a   :  { %2009 = vmatprep.subr.bf16.mxu0 %v2008_v10  ;;  %v2060_v10 = vpack.c.bf16 %v294_v3, %v293_v2  ;;  %v2030_v16 = vpack.c.bf16 %v246_v8, %v245_v7  ;;  %v301_v59 = vld [vmem:[%s3489_s1 + $0x830] sm:$0xff]  ;;  %v351_v2 = vld [vmem:[%s3489_s1 + $0x9c0] sm:$0xff]  ;;  %v352_v3 = vld [vmem:[%s3489_s1 + $0x9c8] sm:$0xff] }
  0x6b   :  { %2039 = vmatpush3.bf16.msra.mxu1 %v2038_v9  ;;  %v277_v9 = vld [vmem:[%s3489_s1 + $0x770] sm:$0xff]  ;;  %v303_v7 = vld [vmem:[%s3489_s1 + $0x840] sm:$0xff]  ;;  %v304_v8 = vld [vmem:[%s3489_s1 + $0x848] sm:$0xff] }
  0x6c   :  { %2041 = vmatprep.subr.bf16.mxu1 %v2040_v14  ;;  %v343_v14 = vld [vmem:[%s3489_s1 + $0x980] sm:$0xff]  ;;  %v2062_v17 = vpack.c.bf16 %v278_v11, %v277_v9  ;;  %v336_v11 = vld [vmem:[%s3489_s1 + $0x948] sm:$0xff] }
  0x6d   :  { %2011 = vmatpush3.bf16.msra.mxu0 %v2010_v20  ;;  %v296_v20 = vld [vmem:[%s3489_s1 + $0x808] sm:$0xff]  ;;  %v335_v9 = vld [vmem:[%s3489_s1 + $0x940] sm:$0xff] }
  0x6e   :  { %2013 = vmatprep.subr.bf16.mxu0 %v2012_v22  ;;  %v2096_v22 = vpack.c.bf16 %v344_v15, %v343_v14  ;;  %v2066_v29 = vpack.c.bf16 %v296_v20, %v295_v19  ;;  %v353_v14 = vld [vmem:[%s3489_s1 + $0x9d0] sm:$0xff]  ;;  %v354_v15 = vld [vmem:[%s3489_s1 + $0x9d8] sm:$0xff] }
  0x6f   :  { %2043 = vmatpush3.bf16.msra.mxu1 %v2042_v21  ;;  %v327_v21 = vld [vmem:[%s3489_s1 + $0x900] sm:$0xff]  ;;  %v305_v19 = vld [vmem:[%s3489_s1 + $0x850] sm:$0xff]  ;;  %v306_v20 = vld [vmem:[%s3489_s1 + $0x858] sm:$0xff] }
  0x70   :  { %2045 = vmatprep.subr.bf16.mxu1 %v2044_v26  ;;  %v345_v26 = vld [vmem:[%s3489_s1 + $0x990] sm:$0xff]  ;;  %v2098_v31 = vpack.c.bf16 %v328_v23, %v327_v21  ;;  %v338_v23 = vld [vmem:[%s3489_s1 + $0x958] sm:$0xff] }
  0x71   :  { %2015 = vmatpush3.bf16.msra.mxu0 %v2014_v32  ;;  %v2068_v32 = vpack.c.bf16 %v314_v25, %v313_v24  ;;  %v2100_v36 = vpack.c.bf16 %v346_v27, %v345_v26  ;;  %v337_v21 = vld [vmem:[%s3489_s1 + $0x950] sm:$0xff]  ;;  %v323_v24 = vld [vmem:[%s3489_s1 + $0x8e0] sm:$0xff]  ;;  %v324_v25 = vld [vmem:[%s3489_s1 + $0x8e8] sm:$0xff] }
  0x72   :  { %2017 = vmatprep.subr.bf16.mxu0 %v2016_v34  ;;  %v298_v34 = vld [vmem:[%s3489_s1 + $0x818] sm:$0xff]  ;;  %v355_v26 = vld [vmem:[%s3489_s1 + $0x9e0] sm:$0xff]  ;;  %v356_v27 = vld [vmem:[%s3489_s1 + $0x9e8] sm:$0xff] }
  0x73   :  { %2047 = vmatpush3.bf16.msra.mxu1 %v2046_v33  ;;  %v297_v33 = vld [vmem:[%s3489_s1 + $0x810] sm:$0xff] }
  0x74   :  { %2049 = vmatprep.subr.bf16.mxu1 %v2048_v38  ;;  %v315_v38 = vld [vmem:[%s3489_s1 + $0x8a0] sm:$0xff]  ;;  %v2070_v43 = vpack.c.bf16 %v298_v34, %v297_v33  ;;  %v2120_v34 = vpack.c.bf16 %v356_v27, %v355_v26  ;;  %v413_v26 = vld [vmem:[%s3489_s1 + $0xbb0] sm:$0xff]  ;;  %v414_v27 = vld [vmem:[%s3489_s1 + $0xbb8] sm:$0xff] }
  0x75   :  { %2019 = vmatpush3.bf16.msra.mxu0 %v2018_v44  ;;  %v33_v44 = vld [vmem:[%s3490_s0 + $0x98] sm:$0x3f]  ;;  %v339_v33 = vld [vmem:[%s3489_s1 + $0x960] sm:$0xff] }
  0x76   :  { %2021 = vmatprep.subr.bf16.mxu0 %v2020_v46  ;;  %v2072_v46 = vpack.c.bf16 %v316_v39, %v315_v38  ;;  %v357_v38 = vld [vmem:[%s3489_s1 + $0x9f0] sm:$0xff]  ;;  %v358_v39 = vld [vmem:[%s3489_s1 + $0x9f8] sm:$0xff] }
  0x77   :  { %2051 = vmatpush3.bf16.msra.mxu1 %v2050_v45  ;;  %v2102_v45 = vpack.c.bf16 %v330_v37, %v329_v35  ;;  %v340_v35 = vld [vmem:[%s3489_s1 + $0x968] sm:$0xff]  ;;  %v326_v37 = vld [vmem:[%s3489_s1 + $0x8f8] sm:$0xff] }
  0x78   :  { %2053 = vmatprep.subr.bf16.mxu1 %v2052_v50  ;;  %v2104_v50 = vpack.c.bf16 %v348_v41, %v347_v40  ;;  %v2122_v41 = vpack.c.bf16 %v340_v35, %v339_v33  ;;  %v397_v33 = vld [vmem:[%s3489_s1 + $0xb30] sm:$0xff]  ;;  %v398_v35 = vld [vmem:[%s3489_s1 + $0xb38] sm:$0xff] }
  0x79   :  { %2023 = vmatpush3.bf16.msra.mxu0 %v2022_v56  ;;  %v2074_v56 = vpack.c.bf16 %v300_v48, %v299_v47  ;;  %v342_v47 = vld [vmem:[%s3489_s1 + $0x978] sm:$0xff]  ;;  %v375_v48 = vld [vmem:[%s3489_s1 + $0xa80] sm:$0xff] }
  0x7a   :  { %2025 = vmatprep.subr.bf16.mxu0 %v2024_v58  ;;  %v2076_v58 = vpack.c.bf16 %v318_v53, %v317_v52 }
  0x7b   :  { %2055 = vmatpush3.bf16.msra.mxu1 %v2054_v57  ;;  %v2106_v57 = vpack.c.bf16 %v332_v51, %v331_v49  ;;  %v376_v49 = vld [vmem:[%s3489_s1 + $0xa88] sm:$0xff] }
  0x7c   :  { %2057 = vmatprep.subr.bf16.mxu1 %v2056_v62  ;;  %v2108_v62 = vpack.c.bf16 %v350_v55, %v349_v54  ;;  %v408_v51 = vld [vmem:[%s3489_s1 + $0xb88] sm:$0xff]  ;;  %v2128_v54 = vpack.c.bf16 %v376_v49, %v375_v48  ;;  %v359_v55 = vld [vmem:[%s3489_s1 + $0xa00] sm:$0xff]  ;;  %v385_v48 = vld [vmem:[%s3489_s1 + $0xad0] sm:$0xff] }
  0x7d   :  { %2027 = vmatpush3.bf16.msra.mxu0 %v2026_v4  ;;  %v2078_v4 = vpack.c.bf16 %v302_v60, %v301_v59  ;;  %v392_v59 = vld [vmem:[%s3489_s1 + $0xb08] sm:$0xff]  ;;  %v377_v60 = vld [vmem:[%s3489_s1 + $0xa90] sm:$0xff]  ;;  %v386_v49 = vld [vmem:[%s3489_s1 + $0xad8] sm:$0xff] }
  0x7e   :  { %2029 = vmatprep.subr.bf16.mxu0 %v2028_v6  ;;  %v2080_v6 = vpack.c.bf16 %v320_v1, %v319_v0  ;;  %v30_v0 = vld [vmem:[%s3490_s0 + $0x80] sm:$0x3f] }
  0x7f   :  { %2059 = vmatpush3.bf16.msra.mxu1 %v2058_v5  ;;  %v2110_v5 = vpack.c.bf16 %v334_v63, %v333_v61  ;;  %v378_v61 = vld [vmem:[%s3489_s1 + $0xa98] sm:$0xff] }
  0x80   :  { %2061 = vmatprep.subr.bf16.mxu1 %v2060_v10  ;;  %v2112_v10 = vpack.c.bf16 %v352_v3, %v351_v2  ;;  %v410_v63 = vld [vmem:[%s3489_s1 + $0xb98] sm:$0xff]  ;;  %v32_v2 = vld [vmem:[%s3490_s0 + $0x90] sm:$0x3f] }
  0x81   :  { %2031 = vmatpush3.bf16.msra.mxu0 %v2030_v16  ;;  %v2082_v16 = vpack.c.bf16 %v304_v8, %v303_v7  ;;  %v393_v7 = vld [vmem:[%s3489_s1 + $0xb10] sm:$0xff] }
  0x82   :  { %2065 = vmatprep.subr.bf16.mxu0 %v2064_v18  ;;  %v2084_v18 = vpack.c.bf16 %v322_v13, %v321_v12  ;;  %v411_v12 = vld [vmem:[%s3489_s1 + $0xba0] sm:$0xff]  ;;  %v412_v13 = vld [vmem:[%s3489_s1 + $0xba8] sm:$0xff] }
  0x83   :  { %2063 = vmatpush3.bf16.msra.mxu1 %v2062_v17  ;;  %v2114_v17 = vpack.c.bf16 %v336_v11, %v335_v9  ;;  %v394_v9 = vld [vmem:[%s3489_s1 + $0xb18] sm:$0xff]  ;;  %v380_v11 = vld [vmem:[%s3489_s1 + $0xaa8] sm:$0xff] }
  0x84   :  { %2097 = vmatprep.subr.bf16.mxu1 %v2096_v22  ;;  %927 = vmatmul.mubr.f32.vlgmr.msra.gmra.mrb[6].mxu0 %v26_v28  ;;  %v2116_v22 = vpack.c.bf16 %v354_v15, %v353_v14  ;;  %v2086_v28 = vpack.c.bf16 %v306_v20, %v305_v19  ;;  %v35_v14 = vld [vmem:[%s3490_s0 + $0xa8] sm:$0x3f]  ;;  %v363_v19 = vld [vmem:[%s3489_s1 + $0xa20] sm:$0xff] }
  0x85   :  { %2067 = vmatpush3.bf16.msra.mxu0 %v2066_v29  ;;  %1066 = vmatprep.mubr.f32.mxu0 %v31_v42  ;;  %v2118_v29 = vpack.c.bf16 %v338_v23, %v337_v21  ;;  %v364_v20 = vld [vmem:[%s3489_s1 + $0xa28] sm:$0xff]  ;;  %v395_v21 = vld [vmem:[%s3489_s1 + $0xb20] sm:$0xff] }
  0x86   :  { %997 = vmatmul.mubr.f32.vlgmr.msra.gmra.mrb[6].mxu1 %v28_v30  ;;  %2069 = vmatprep.subr.bf16.mxu0 %v2068_v32  ;;  %v2088_v30 = vpack.c.bf16 %v324_v25, %v323_v24  ;;  %v308_v32 = vld [vmem:[%s3489_s1 + $0x868] sm:$0xff]  ;;  %v381_v24 = vld [vmem:[%s3489_s1 + $0xab0] sm:$0xff]  ;;  %v382_v25 = vld [vmem:[%s3489_s1 + $0xab8] sm:$0xff] }
  0x87   :  { %2099 = vmatpush3.bf16.msra.mxu1 %v2098_v31  ;;  %1136 = vmatprep.mubr.f32.mxu1 %v33_v44  ;;  %v307_v31 = vld [vmem:[%s3489_s1 + $0x860] sm:$0xff]  ;;  %v310_v44 = vld [vmem:[%s3489_s1 + $0x878] sm:$0xff]  ;;  %v396_v23 = vld [vmem:[%s3489_s1 + $0xb28] sm:$0xff] }
  0x88   :  { %2101 = vmatprep.subr.bf16.mxu1 %v2100_v36  ;;  %v325_v36 = vld [vmem:[%s3489_s1 + $0x8f0] sm:$0xff]  ;;  %v2090_v40 = vpack.c.bf16 %v308_v32, %v307_v31  ;;  %v366_v32 = vld [vmem:[%s3489_s1 + $0xa38] sm:$0xff] }
  0x89   :  { %2071 = vmatpush3.bf16.msra.mxu0 %v2070_v43  ;;  %v2092_v42 = vpack.c.bf16 %v326_v37, %v325_v36  ;;  %v309_v43 = vld [vmem:[%s3489_s1 + $0x870] sm:$0xff]  ;;  %v383_v36 = vld [vmem:[%s3489_s1 + $0xac0] sm:$0xff]  ;;  %v384_v37 = vld [vmem:[%s3489_s1 + $0xac8] sm:$0xff] }
  0x8a   :  { %2073 = vmatprep.subr.bf16.mxu0 %v2072_v46  ;;  %v2124_v46 = vpack.c.bf16 %v358_v39, %v357_v38  ;;  %v2094_v52 = vpack.c.bf16 %v310_v44, %v309_v43  ;;  %v365_v31 = vld [vmem:[%s3489_s1 + $0xa30] sm:$0xff]  ;;  %v415_v38 = vld [vmem:[%s3489_s1 + $0xbc0] sm:$0xff]  ;;  %v416_v39 = vld [vmem:[%s3489_s1 + $0xbc8] sm:$0xff] }
  0x8b   :  { %2103 = vmatpush3.bf16.msra.mxu1 %v2102_v45  ;;  %v341_v45 = vld [vmem:[%s3489_s1 + $0x970] sm:$0xff]  ;;  %v367_v43 = vld [vmem:[%s3489_s1 + $0xa40] sm:$0xff]  ;;  %v368_v44 = vld [vmem:[%s3489_s1 + $0xa48] sm:$0xff] }
  0x8c   :  { %2105 = vmatprep.subr.bf16.mxu1 %v2104_v50  ;;  %v407_v50 = vld [vmem:[%s3489_s1 + $0xb80] sm:$0xff]  ;;  %v2126_v53 = vpack.c.bf16 %v342_v47, %v341_v45  ;;  %v400_v47 = vld [vmem:[%s3489_s1 + $0xb48] sm:$0xff] }
  0x8d   :  { %2075 = vmatpush3.bf16.msra.mxu0 %v2074_v56  ;;  %v360_v56 = vld [vmem:[%s3489_s1 + $0xa08] sm:$0xff]  ;;  %v399_v45 = vld [vmem:[%s3489_s1 + $0xb40] sm:$0xff] }
  0x8e   :  { %2077 = vmatprep.subr.bf16.mxu0 %v2076_v58  ;;  %v2160_v58 = vpack.c.bf16 %v408_v51, %v407_v50  ;;  %v2130_v1 = vpack.c.bf16 %v360_v56, %v359_v55  ;;  %v417_v50 = vld [vmem:[%s3489_s1 + $0xbd0] sm:$0xff]  ;;  %v418_v51 = vld [vmem:[%s3489_s1 + $0xbd8] sm:$0xff] }
  0x8f   :  { %2107 = vmatpush3.bf16.msra.mxu1 %v2106_v57  ;;  %v391_v57 = vld [vmem:[%s3489_s1 + $0xb00] sm:$0xff]  ;;  %v369_v55 = vld [vmem:[%s3489_s1 + $0xa50] sm:$0xff]  ;;  %v370_v56 = vld [vmem:[%s3489_s1 + $0xa58] sm:$0xff] }
  0x90   :  { %2109 = vmatprep.subr.bf16.mxu1 %v2108_v62  ;;  %v409_v62 = vld [vmem:[%s3489_s1 + $0xb90] sm:$0xff]  ;;  %v2162_v3 = vpack.c.bf16 %v392_v59, %v391_v57  ;;  %v402_v59 = vld [vmem:[%s3489_s1 + $0xb58] sm:$0xff] }
  0x91   :  { %2079 = vmatpush3.bf16.msra.mxu0 %v2078_v4  ;;  %v2132_v4 = vpack.c.bf16 %v378_v61, %v377_v60  ;;  %v2164_v8 = vpack.c.bf16 %v410_v63, %v409_v62  ;;  %v401_v57 = vld [vmem:[%s3489_s1 + $0xb50] sm:$0xff]  ;;  %v387_v60 = vld [vmem:[%s3489_s1 + $0xae0] sm:$0xff]  ;;  %v388_v61 = vld [vmem:[%s3489_s1 + $0xae8] sm:$0xff] }
  0x92   :  { %2081 = vmatprep.subr.bf16.mxu0 %v2080_v6  ;;  %v362_v6 = vld [vmem:[%s3489_s1 + $0xa18] sm:$0xff]  ;;  %v419_v62 = vld [vmem:[%s3489_s1 + $0xbe0] sm:$0xff]  ;;  %v420_v63 = vld [vmem:[%s3489_s1 + $0xbe8] sm:$0xff] }
  0x93   :  { %2111 = vmatpush3.bf16.msra.mxu1 %v2110_v5  ;;  %v361_v5 = vld [vmem:[%s3489_s1 + $0xa10] sm:$0xff] }
  0x94   :  { %2113 = vmatprep.subr.bf16.mxu1 %v2112_v10  ;;  %v379_v10 = vld [vmem:[%s3489_s1 + $0xaa0] sm:$0xff]  ;;  %v2134_v15 = vpack.c.bf16 %v362_v6, %v361_v5  ;;  %v2184_v6 = vpack.c.bf16 %v420_v63, %v419_v62 }
  0x95   :  { %2083 = vmatpush3.bf16.msra.mxu0 %v2082_v16  ;;  %v37_v16 = vld [vmem:[%s3490_s0 + $0xb8] sm:$0x3f]  ;;  %v403_v5 = vld [vmem:[%s3489_s1 + $0xb60] sm:$0xff] }
  0x96   :  { %2085 = vmatprep.subr.bf16.mxu0 %v2084_v18  ;;  %v2136_v18 = vpack.c.bf16 %v380_v11, %v379_v10  ;;  %v421_v10 = vld [vmem:[%s3489_s1 + $0xbf0] sm:$0xff]  ;;  %v422_v11 = vld [vmem:[%s3489_s1 + $0xbf8] sm:$0xff] }
  0x97   :  { %2115 = vmatpush3.bf16.msra.mxu1 %v2114_v17  ;;  %v2166_v17 = vpack.c.bf16 %v394_v9, %v393_v7  ;;  %v404_v7 = vld [vmem:[%s3489_s1 + $0xb68] sm:$0xff]  ;;  %v390_v9 = vld [vmem:[%s3489_s1 + $0xaf8] sm:$0xff] }
  0x98   :  { %2117 = vmatprep.subr.bf16.mxu1 %v2116_v22  ;;  %v2168_v22 = vpack.c.bf16 %v412_v13, %v411_v12  ;;  %v2186_v13 = vpack.c.bf16 %v404_v7, %v403_v5 }
  0x99   :  { %2087 = vmatpush3.bf16.msra.mxu0 %v2086_v28  ;;  %v2138_v28 = vpack.c.bf16 %v364_v20, %v363_v19  ;;  %v406_v19 = vld [vmem:[%s3489_s1 + $0xb78] sm:$0xff] }
  0x9a   :  { %2089 = vmatprep.subr.bf16.mxu0 %v2088_v30  ;;  %v2140_v30 = vpack.c.bf16 %v382_v25, %v381_v24  ;;  %v34_v24 = vld [vmem:[%s3490_s0 + $0xa0] sm:$0x3f] }
  0x9b   :  { %2119 = vmatpush3.bf16.msra.mxu1 %v2118_v29  ;;  %v2170_v29 = vpack.c.bf16 %v396_v23, %v395_v21  ;;  %v424_v23 = vld [vmem:[%s3489_s1 + $0xc08] sm:$0xff] }
  0x9c   :  { %2121 = vmatprep.subr.bf16.mxu1 %v2120_v34  ;;  %v2172_v34 = vpack.c.bf16 %v414_v27, %v413_v26  ;;  %v2209_v26 = vmov 0.0|0.0   ;;  %v36_v27 = vld [vmem:[%s3490_s0 + $0xb0] sm:$0x3f] }
  0x9d   :  { %2091 = vmatpush3.bf16.msra.mxu0 %v2090_v40  ;;  %v2142_v40 = vpack.c.bf16 %v366_v32, %v365_v31  ;;  %v427_v31 = vld [vmem:[%s3489_s1 + $0xc20] sm:$0xff]  ;;  %v428_v32 = vld [vmem:[%s3489_s1 + $0xc28] sm:$0xff] }
  0x9e   :  { %2093 = vmatprep.subr.bf16.mxu0 %v2092_v42  ;;  %v2144_v42 = vpack.c.bf16 %v384_v37, %v383_v36  ;;  %v430_v36 = vld [vmem:[%s3489_s1 + $0xc38] sm:$0xff] }
  0x9f   :  { %2123 = vmatpush3.bf16.msra.mxu1 %v2122_v41  ;;  %v2174_v41 = vpack.c.bf16 %v398_v35, %v397_v33  ;;  %v2211_v33 = vmov 0.0   ;;  %v429_v35 = vld [vmem:[%s3489_s1 + $0xc30] sm:$0xff] }
  0xa0   :  { %2125 = vmatprep.subr.bf16.mxu1 %v2124_v46  ;;  %v2176_v46 = vpack.c.bf16 %v416_v39, %v415_v38  ;;  %v2202_v37 = vpack.c.bf16 %v430_v36, %v429_v35  ;;  %v38_v38 = vld [vmem:[%s3490_s0 + $0xc0] sm:$0x3f] }
  0xa1   :  { %2095 = vmatpush3.bf16.msra.mxu0 %v2094_v52  ;;  %v2146_v52 = vpack.c.bf16 %v368_v44, %v367_v43 }
  0xa2   :  { %2129 = vmatprep.subr.bf16.mxu0 %v2128_v54  ;;  %v2148_v54 = vpack.c.bf16 %v386_v49, %v385_v48 }
  0xa3   :  { %2127 = vmatpush3.bf16.msra.mxu1 %v2126_v53  ;;  %v2178_v53 = vpack.c.bf16 %v400_v47, %v399_v45 }
  0xa4   :  { %2161 = vmatprep.subr.bf16.mxu1 %v2160_v58  ;;  %1067 = vmatmul.mubr.f32.vlgmr.msra.gmra.mrb[8].mxu0 %v30_v0  ;;  %v2180_v58 = vpack.c.bf16 %v418_v51, %v417_v50  ;;  %v2150_v0 = vpack.c.bf16 %v370_v56, %v369_v55 }
  0xa5   :  { %2131 = vmatpush3.bf16.msra.mxu0 %v2130_v1  ;;  %1206 = vmatprep.mubr.f32.mxu0 %v35_v14  ;;  %v2182_v1 = vpack.c.bf16 %v402_v59, %v401_v57 }
  0xa6   :  { %1137 = vmatmul.mubr.f32.vlgmr.msra.gmra.mrb[8].mxu1 %v32_v2  ;;  %2133 = vmatprep.subr.bf16.mxu0 %v2132_v4  ;;  %v2152_v2 = vpack.c.bf16 %v388_v61, %v387_v60  ;;  %v372_v4 = vld [vmem:[%s3489_s1 + $0xa68] sm:$0xff] }
  0xa7   :  { %2163 = vmatpush3.bf16.msra.mxu1 %v2162_v3  ;;  %1276 = vmatprep.mubr.f32.mxu1 %v37_v16  ;;  %v371_v3 = vld [vmem:[%s3489_s1 + $0xa60] sm:$0xff]  ;;  %v374_v16 = vld [vmem:[%s3489_s1 + $0xa78] sm:$0xff] }
  0xa8   :  { %2165 = vmatprep.subr.bf16.mxu1 %v2164_v8  ;;  %v389_v8 = vld [vmem:[%s3489_s1 + $0xaf0] sm:$0xff]  ;;  %v2154_v12 = vpack.c.bf16 %v372_v4, %v371_v3 }
  0xa9   :  { %2135 = vmatpush3.bf16.msra.mxu0 %v2134_v15  ;;  %v2156_v14 = vpack.c.bf16 %v390_v9, %v389_v8  ;;  %v373_v15 = vld [vmem:[%s3489_s1 + $0xa70] sm:$0xff] }
  0xaa   :  { %2137 = vmatprep.subr.bf16.mxu0 %v2136_v18  ;;  %v405_v18 = vld [vmem:[%s3489_s1 + $0xb70] sm:$0xff]  ;;  %v2158_v20 = vpack.c.bf16 %v374_v16, %v373_v15 }
  0xab   :  { %2167 = vmatpush3.bf16.msra.mxu1 %v2166_v17  ;;  %v2188_v17 = vpack.c.bf16 %v422_v11, %v421_v10  ;;  %v2190_v21 = vpack.c.bf16 %v406_v19, %v405_v18 }
  0xac   :  { %2169 = vmatprep.subr.bf16.mxu1 %v2168_v22  ;;  %v423_v22 = vld [vmem:[%s3489_s1 + $0xc00] sm:$0xff] }
  0xad   :  { %2139 = vmatpush3.bf16.msra.mxu0 %v2138_v28  ;;  %v2193_v25 = vpack.c.bf16 %v424_v23, %v423_v22  ;;  %v425_v28 = vld [vmem:[%s3489_s1 + $0xc10] sm:$0xff] }
  0xae   :  { %2141 = vmatprep.subr.bf16.mxu0 %v2140_v30 }
  0xaf   :  { %2171 = vmatpush3.bf16.msra.mxu1 %v2170_v29  ;;  %v426_v29 = vld [vmem:[%s3489_s1 + $0xc18] sm:$0xff] }
  0xb0   :  { %2173 = vmatprep.subr.bf16.mxu1 %v2172_v34  ;;  %v2196_v30 = vpack.c.bf16 %v426_v29, %v425_v28  ;;  %v2199_v34 = vpack.c.bf16 %v428_v32, %v427_v31 }
  0xb1   :  { %2143 = vmatpush3.bf16.msra.mxu0 %v2142_v40  ;;  %v1358_v40 = vld [vmem:[%s3491_s2] ss:$0 sm:$0xff] }
  0xb2   :  { %2145 = vmatprep.subr.bf16.mxu0 %v2144_v42 }
  0xb3   :  { %2175 = vmatpush3.bf16.msra.mxu1 %v2174_v41 }
  0xb4   :  { %2177 = vmatprep.subr.bf16.mxu1 %v2176_v46 }
  0xb5   :  { %2147 = vmatpush3.bf16.msra.mxu0 %v2146_v52 }
  0xb6   :  { %2149 = vmatprep.subr.bf16.mxu0 %v2148_v54 }
  0xb7   :  { %2179 = vmatpush3.bf16.msra.mxu1 %v2178_v53 }
  0xb8   :  { %2181 = vmatprep.subr.bf16.mxu1 %v2180_v58 }
  0xb9   :  { %2151 = vmatpush3.bf16.msra.mxu0 %v2150_v0 }
  0xba   :  { %2153 = vmatprep.subr.bf16.mxu0 %v2152_v2 }
  0xbb   :  { %2183 = vmatpush3.bf16.msra.mxu1 %v2182_v1 }
  0xbc   :  { %2185 = vmatprep.subr.bf16.mxu1 %v2184_v6 }
  0xbd   :  { %2155 = vmatpush3.bf16.msra.mxu0 %v2154_v12 }
  0xbe   :  { %2157 = vmatprep.subr.bf16.mxu0 %v2156_v14 }
  0xbf   :  { %2187 = vmatpush3.bf16.msra.mxu1 %v2186_v13 }
  0xc0   :  { %2189 = vmatprep.subr.bf16.mxu1 %v2188_v17 }
  0xc1   :  { %2159 = vmatpush3.bf16.msra.mxu0 %v2158_v20 }
  0xc2   :  { %2192 = vmatprep.subr.bf16.mxu0 %v2209_v26 }
  0xc3   :  { %2191 = vmatpush3.bf16.msra.mxu1 %v2190_v21 }
  0xc4   :  { %1207 = vmatmul.mubr.f32.vlgmr.msra.gmra.mrb[10].mxu0 %v34_v24 }
  0xc5   :  { %2194 = vmatpush3.bf16.msra.mxu0 %v2193_v25  ;;  %1805 = vmatprep.mubr.msk.f32.mxu0 %vm2210_vm0, %v2211_v33 }
  0xc6   :  { %1277 = vmatmul.mubr.f32.vlgmr.msra.gmra.mrb[10].mxu1 %v36_v27  ;;  %2195 = vmatprep.subr.bf16.mxu0 %v2209_v26 }
  0xc9   :  { %2197 = vmatpush3.bf16.msra.mxu0 %v2196_v30 }
  0xca   :  { %2198 = vmatprep.subr.bf16.mxu0 %v2209_v26 }
  0xcd   :  { %2200 = vmatpush3.bf16.msra.mxu0 %v2199_v34 }
  0xce   :  { %2201 = vmatprep.subr.bf16.mxu0 %v2209_v26 }
  0xd1   :  { %2203 = vmatpush3.bf16.msra.mxu0 %v2202_v37 }
  0xd4   :  { %1806 = vmatmul.mubr.msk.f32.vlgmr.msra.gmra.mrb[12].mxu0 %vm438_vm1, %v38_v38 }
  0xf7   :  { %v1392_v39 = vpop.f32.mrb[0].mxu0 }
  0xf8   :  { %v1393_v41 = vpop.f32.mrb[1].mxu0 }
  0xf9   :  { %v1427_v42 = vpop.f32.mrb[0].mxu1  ;;  %v1394_v43 = vadd.f32 %v1393_v41, %v1392_v39 }
  0xfa   :  { %v1428_v44 = vpop.f32.mrb[1].mxu1 }
  0xfb   :  { %v1429_v45 = vadd.f32 %v1428_v44, %v1427_v42  ;;  %v509_v46 = vadd.f32 %v1394_v43, %v1358_v40 }
  0xfd   :  { %v579_v47 = vadd.f32 %v1429_v45, %v509_v46 }
 0x117   :  { %v1462_v48 = vpop.f32.mrb[2].mxu0 }
 0x118   :  { %v1463_v49 = vpop.f32.mrb[3].mxu0 }
 0x119   :  { %v1497_v50 = vpop.f32.mrb[2].mxu1  ;;  %v1464_v51 = vadd.f32 %v1463_v49, %v1462_v48 }
 0x11a   :  { %v1498_v52 = vpop.f32.mrb[3].mxu1 }
 0x11b   :  { %v1499_v53 = vadd.f32 %v1498_v52, %v1497_v50  ;;  %v649_v54 = vadd.f32 %v1464_v51, %v579_v47 }
 0x11d   :  { %v719_v55 = vadd.f32 %v1499_v53, %v649_v54 }
 0x137   :  { %v1532_v56 = vpop.f32.mrb[4].mxu0 }
 0x138   :  { %v1533_v57 = vpop.f32.mrb[5].mxu0 }
 0x139   :  { %v1567_v58 = vpop.f32.mrb[4].mxu1  ;;  %v1534_v59 = vadd.f32 %v1533_v57, %v1532_v56 }
 0x13a   :  { %v1568_v60 = vpop.f32.mrb[5].mxu1 }
 0x13b   :  { %v1569_v61 = vadd.f32 %v1568_v60, %v1567_v58  ;;  %v789_v62 = vadd.f32 %v1534_v59, %v719_v55 }
 0x13d   :  { %v859_v63 = vadd.f32 %v1569_v61, %v789_v62 }
 0x157   :  { %v1602_v0 = vpop.f32.mrb[6].mxu0 }
 0x158   :  { %v1603_v1 = vpop.f32.mrb[7].mxu0 }
 0x159   :  { %v1637_v2 = vpop.f32.mrb[6].mxu1  ;;  %v1604_v3 = vadd.f32 %v1603_v1, %v1602_v0 }
 0x15a   :  { %v1638_v4 = vpop.f32.mrb[7].mxu1 }
 0x15b   :  { %v1639_v5 = vadd.f32 %v1638_v4, %v1637_v2  ;;  %v929_v6 = vadd.f32 %v1604_v3, %v859_v63 }
 0x15d   :  { %v999_v7 = vadd.f32 %v1639_v5, %v929_v6 }
 0x177   :  { %v1672_v8 = vpop.f32.mrb[8].mxu0 }
 0x178   :  { %v1673_v9 = vpop.f32.mrb[9].mxu0 }
 0x179   :  { %v1707_v10 = vpop.f32.mrb[8].mxu1  ;;  %v1674_v11 = vadd.f32 %v1673_v9, %v1672_v8 }
 0x17a   :  { %v1708_v12 = vpop.f32.mrb[9].mxu1 }
 0x17b   :  { %v1709_v13 = vadd.f32 %v1708_v12, %v1707_v10  ;;  %v1069_v14 = vadd.f32 %v1674_v11, %v999_v7 }
 0x17d   :  { %v1139_v15 = vadd.f32 %v1709_v13, %v1069_v14 }
 0x197   :  { %v1742_v16 = vpop.f32.mrb[10].mxu0 }
 0x198   :  { %v1743_v17 = vpop.f32.mrb[11].mxu0 }
 0x199   :  { %v1777_v18 = vpop.f32.mrb[10].mxu1  ;;  %v1744_v19 = vadd.f32 %v1743_v17, %v1742_v16 }
 0x19a   :  { %v1778_v20 = vpop.f32.mrb[11].mxu1 }
 0x19b   :  { %v1779_v21 = vadd.f32 %v1778_v20, %v1777_v18  ;;  %v1209_v22 = vadd.f32 %v1744_v19, %v1139_v15 }
 0x19d   :  { %v1279_v23 = vadd.f32 %v1779_v21, %v1209_v22 }
 0x1a7   :  { %v1348_v24 = vpop.f32.mrb[12].mxu0 }
 0x1a8   :  { %v1349_v25 = vadd.f32 %v1348_v24, %v1279_v23  ;;  %v1807_v26 = vpop.f32.mrb[13].mxu0 }
 0x1aa   :  { %2207 = vtanh.f32 %v1349_v25 }
 0x1b4   :  { %v2208_v27 = vpop.eup %2207 }
 0x1b5   :  { %1353 = vst [vmem:[%s3492_s3] sm:$0x3f] %v2208_v27 }

// kernel: gpt_forward.9
= control target key start
LH: loop header
LB: loop body
LE: loop exit
PB: predicated region body
PF: predicated region fallthrough
CT: control target
= control target key end

     0   :  { %s6113_s0 = inlined_call_operand.vmem [shape: f32[2,3,128], index: 0, kind: input, shape index: {}]   ;;  %s6114_s1 = inlined_call_operand.vmem [shape: f32[2,3,1], index: 1, kind: input, shape index: {}]   ;;  %s6115_s2 = inlined_call_operand.vmem [shape: f32[2,3,128], index: 2, kind: input, shape index: {}]   ;;  %s6116_s3 = inlined_call_operand.vmem [shape: f32[1,128], index: 3, kind: input, shape index: {}]   ;;  %s6117_s4 = inlined_call_operand.vmem [shape: f32[1,128], index: 4, kind: input, shape index: {}]   ;;  %s6118_s5 = inlined_call_operand.vmem [shape: f32[2,1,128], index: 5, kind: input, shape index: {}]   ;;  %s6119_s6 = inlined_call_operand.vmem [shape: f32[2,1,128], index: 6, kind: input, shape index: {}]   ;;  %s6120_s7 = inlined_call_operand.vmem [shape: f32[2,4,128], index: 7, kind: input, shape index: {}]   ;;  %s6121_s8 = inlined_call_operand.vmem [shape: f32[2,1,128], index: 8, kind: input, shape index: {}]   ;;  %s6122_s9 = inlined_call_operand.vmem [shape: f32[2,128,36], index: 9, kind: input, shape index: {}]   ;;  %s6123_s10 = inlined_call_operand.vmem [shape: f32[2,4,128], index: 10, kind: input, shape index: {}]   ;;  %s6124_s11 = inlined_call_operand.vmem [shape: f32[2,1,128], index: 11, kind: input, shape index: {}]   ;;  %s6125_s12 = inlined_call_operand.vmem [shape: f32[2,16,128], index: 12, kind: input, shape index: {}]   ;;  %s6126_s13 = inlined_call_operand.vmem [shape: f32[2,1,128], index: 13, kind: input, shape index: {}]   ;;  %s6127_s14 = inlined_call_operand.vmem [shape: f32[2,1,128], index: 14, kind: input, shape index: {}]   ;;  %s6128_s15 = inlined_call_operand.vmem [shape: f32[2,1,128], index: 15, kind: input, shape index: {}]   ;;  %s6129_s16 = inlined_call_operand.vmem [shape: f32[2,128,512], index: 16, kind: input, shape index: {}]   ;;  %s6130_s17 = inlined_call_operand.vmem [shape: f32[2,1,512], index: 17, kind: input, shape index: {}]   ;;  %s6131_s18 = inlined_call_operand.vmem [shape: f32[2,512,128], index: 18, kind: input, shape index: {}]   ;;  %s6132_s19 = inlined_call_operand.vmem [shape: f32[2,1,128], index: 19, kind: input, shape index: {}]   ;;  %s6133_s20 = inlined_call_operand.vmem [shape: f32[1,128], index: 20, kind: input, shape index: {}]   ;;  %s6134_s21 = inlined_call_operand.vmem [shape: f32[1,128], index: 21, kind: input, shape index: {}]   ;;  %s6135_s22 = inlined_call_operand.vmem [shape: f32[128,128], index: 22, kind: input, shape index: {}]   ;;  %s6136_s23 = inlined_call_operand.vmem [shape: f32[2,3,128], index: 23, kind: output, shape index: {}]  }
   0x1   :  { %6145 = sst [smem:[#allocation3_spill]] %s6113_s0 }
   0x2   :  { %6146 = sst [smem:[#allocation4_spill]] %s6114_s1 }
   0x3   :  { %6147 = sst [smem:[#allocation5_spill]] %s6115_s2 }
   0x4   :  { %6148 = sst [smem:[#allocation6_spill]] %s6116_s3 }
   0x5   :  { %6149 = sst [smem:[#allocation7_spill]] %s6117_s4  ;;  %s4617_s4 = smov 0  }
   0x6   :  { %6150 = sst [smem:[#allocation8_spill]] %s6118_s5 }
   0x7   :  { %6151 = sst [smem:[#allocation9_spill]] %s6119_s6 }
   0x8   :  { %6152 = sst [smem:[#allocation10_spill]] %s6120_s7 }
   0x9   :  { %6153 = sst [smem:[#allocation11_spill]] %s6136_s23 }
   0xa LB: > { %6154 = sst [smem:[#allocation2_spill]] %s4482_s4  ;;  %s3450_s30 = sadd.s32 4294967295, %s4482_s4   ;;  %s4482_s4 = sphi %s4617_s4, %s33_s4  }
   0xb   : > { %p3454_p0 = scmp.ge.s32.totalorder %s4482_s4, 1  ;;  %p654_p1 = scmp.lt.s32.totalorder %s4482_s4, 3 }
   0xd   : > { %p655_p2 = pnand %p3454_p0, %p654_p1 }
   0xe   : > { %p724_p3 = scmp.lt.s32.totalorder (!%p655_p2), %s3450_s30, 1  ;;  %v4484_v0 = vmov (!%p655_p2), 0   ;;  %s6155_s1 = sld [smem:[#allocation4_spill]] (!%p655_p2)  ;;  %vm783_vm0 = vcmask (!%p655_p2), 1040384   ;;  %vm785_vm1 = vcmask (!%p655_p2), 1041408   ;;  %vm787_vm2 = vcmask (!%p655_p2), 1042432  }
   0xf   : > { %658 = sbr.rel (%p655_p2) target bundleno = 4372 (0x1114), region = 112  ;;  %4301 = vset.pattern.permute.xlu0 (!%p655_p2), %v4484_v0  ;;  %s6156_s27 = sld [smem:[#allocation5_spill]] (!%p655_p2)  ;;  %vm789_vm3 = vcmask (!%p655_p2), 1043456   ;;  %vm791_vm4 = vcmask (!%p655_p2), 1044480   ;;  %vm793_vm5 = vcmask (!%p655_p2), 1045504   ;;  %vm795_vm6 = vcmask (!%p655_p2), 1046528  }
  0x10   : > { %s6157_s3 = sld [smem:[#allocation6_spill]] (!%p655_p2)  ;;  %s6158_s4 = sld [smem:[#allocation7_spill]] (!%p655_p2)  ;;  %v889_v29 = vld [vmem:[%s6122_s9] sm:$0xff] (!%p655_p2)  ;;  %v890_v30 = vld [vmem:[%s6122_s9 + $0x8] sm:$0xff] (!%p655_p2)  ;;  %v891_v31 = vld [vmem:[%s6122_s9 + $0x10] sm:$0xff] (!%p655_p2)  ;;  %v4485_v32 = vmov (!%p655_p2), 0.0|0.0   ;;  %v831_v58 = vlaneseq (!%p655_p2) }
  0x11   : > { %3952 = vmatprep.subr.bf16.mxu0 (!%p655_p2), %v4485_v32  ;;  %v3953_v33 = vpack.c.bf16 (!%p655_p2), %v890_v30, %v889_v29  ;;  %v892_v34 = vld [vmem:[%s6122_s9 + $0x18] sm:$0xff] (!%p655_p2)  ;;  %vm4486_vm7 = vmmov (!%p655_p2), 0   ;;  %v4487_v35 = vmov (!%p655_p2), 0.0   ;;  %v893_v37 = vld [vmem:[%s6122_s9 + $0x20] sm:$0xff] (!%p655_p2)  ;;  %v894_v38 = vld [vmem:[%s6122_s9 + $0x28] sm:$0xff] (!%p655_p2)  ;;  %s6160_s29 = sld [smem:[#allocation8_spill]] (!%p655_p2) }
  0x12   : > { %3869 = vmatprep.mubr.msk.f32.mxu0 (!%p655_p2), %vm4486_vm7, %v4487_v35  ;;  %1706 = vmatprep.mubr.f32.mxu1 (!%p655_p2), %v4487_v35  ;;  %v3956_v36 = vpack.c.bf16 (!%p655_p2), %v892_v34, %v891_v31  ;;  %v3959_v39 = vpack.c.bf16 (!%p655_p2), %v894_v38, %v893_v37  ;;  %v895_v40 = vld [vmem:[%s6122_s9 + $0x30] sm:$0xff] (!%p655_p2)  ;;  %v896_v41 = vld [vmem:[%s6122_s9 + $0x38] sm:$0xff] (!%p655_p2)  ;;  %v897_v43 = vld [vmem:[%s6122_s9 + $0x40] sm:$0xff] (!%p655_p2)  ;;  %v4717_v59 = vshrl.u32 (!%p655_p2), %v831_v58, 7  ;;  %vm1054_vm8 = vcmask (!%p655_p2), 31744   ;;  %s6163_s23 = smov (!%p655_p2), 108  }
  0x13   : > { %3954 = vmatpush3.bf16.msra.mxu0 (!%p655_p2), %v3953_v33  ;;  %v3962_v42 = vpack.c.bf16 (!%p655_p2), %v896_v41, %v895_v40  ;;  %v898_v44 = vld [vmem:[%s6122_s9 + $0x48] sm:$0xff] (!%p655_p2)  ;;  %v899_v46 = vld [vmem:[%s6122_s9 + $0x50] sm:$0xff] (!%p655_p2)  ;;  %v900_v47 = vld [vmem:[%s6122_s9 + $0x58] sm:$0xff] (!%p655_p2)  ;;  %v4494_v58 = vmov (!%p655_p2), 3   ;;  %s6164_s25 = smov (!%p655_p2), 124  }
  0x14   : > { %3955 = vmatprep.subr.bf16.mxu0 (!%p655_p2), %v4485_v32  ;;  %v3965_v45 = vpack.c.bf16 (!%p655_p2), %v898_v44, %v897_v43  ;;  %v3968_v48 = vpack.c.bf16 (!%p655_p2), %v900_v47, %v899_v46  ;;  %v901_v49 = vld [vmem:[%s6122_s9 + $0x60] sm:$0xff] (!%p655_p2)  ;;  %v902_v50 = vld [vmem:[%s6122_s9 + $0x68] sm:$0xff] (!%p655_p2)  ;;  %v903_v52 = vld [vmem:[%s6122_s9 + $0x70] sm:$0xff] (!%p655_p2)  ;;  %v4723_v63 = vsub.s32 (!%p655_p2), 1, %v4717_v59 }
  0x15   : > { %v3971_v51 = vpack.c.bf16 (!%p655_p2), %v902_v50, %v901_v49  ;;  %v904_v53 = vld [vmem:[%s6122_s9 + $0x78] sm:$0xff] (!%p655_p2)  ;;  %v1046_v44 = vld [vmem:[%s6123_s10] sm:$0xf] (!%p655_p2)  ;;  %v4490_v49 = vmov (!%p655_p2), 6  }
  0x16   : > { %s6169_s30 = smov (!%p724_p3, %s3450_s30), 1  ;;  %v3459_v3 = vld [vmem:[%s6157_s3] ss:$0 sm:$0xff]  ;;  %v3974_v54 = vpack.c.bf16 %v904_v53, %v903_v52 }
  0x17   : > { %s4626_s24 = sshll.u32 %s6169_s30, 2  ;;  %v3460_v4 = vld [vmem:[%s6158_s4] ss:$0 sm:$0xff]  ;;  %3957 = vmatpush3.bf16.msra.mxu0 %v3956_v36  ;;  %s6161_s30 = sld [smem:[#allocation9_spill]] }
  0x18   : > { %s731_s26 = scalar_lea.vmem %s6155_s1, %s4626_s24  ;;  %s735_s7 = scalar_lea.vmem %s6156_s27, %s4626_s24  ;;  %3958 = vmatprep.subr.bf16.mxu0 %v4485_v32  ;;  %v3461_v61 = vld [vmem:[%s6160_s29] ss:$0 sm:$0xff] }
  0x19   : > { %v741_v1 = vld [vmem:[%s731_s26] sm:$0x7]  ;;  %s6159_s1 = sld [smem:[#allocation3_spill]]  ;;  %s6143_s27 = smov 124  }
  0x1a   : > { %745 = vperm.xlu0 %4301, %v741_v1   ;;  %v764_v2 = vld [vmem:[%s735_s7] sm:$0x7]  ;;  %v4726_v1 = vsub.s32 2, %v4717_v59  ;;  %s6144_s7 = smov 108  }
  0x1b   : > { %4366 = vtanh.f32 %v764_v2  ;;  %3960 = vmatpush3.bf16.msra.mxu0 %v3959_v39  ;;  %v4729_v2 = vsub.s32 3, %v4717_v59 }
  0x1c   : > { %3961 = vmatprep.subr.bf16.mxu0 %v4485_v32 }
  0x1f   : > { %s727_s26 = scalar_lea.vmem %s6159_s1, %s4626_s24  ;;  %3963 = vmatpush3.bf16.msra.mxu0 %v3962_v42  ;;  %s6162_s1 = sld [smem:[#allocation10_spill]] }
  0x20   : > { %v740_v8 = vld [vmem:[%s727_s26] sm:$0x7]  ;;  %3964 = vmatprep.subr.bf16.mxu0 %v4485_v32 }
  0x21   : > { %v767_v10 = vrot.slane %v740_v8, 7  ;;  %v775_v13 = vrot.slane %v740_v8, 5  ;;  %v781_v18 = vrot.slane %v740_v8, 3 }
  0x23   : > { %3966 = vmatpush3.bf16.msra.mxu0 %v3965_v45 }
  0x24   : > { %3967 = vmatprep.subr.bf16.mxu0 %v4485_v32 }
  0x25   : > { %v4367_v9 = vpop.eup %4366 }
  0x26   : > { %v770_v11 = vrot.slane %v4367_v9, 7  ;;  %v777_v15 = vrot.slane %v4367_v9, 5 }
  0x27   : > { %3969 = vmatpush3.bf16.msra.mxu0 %v3968_v48 }
  0x28   : > { %3970 = vmatprep.subr.bf16.mxu0 %v4485_v32 }
  0x2b   : > { %3972 = vmatpush3.bf16.msra.mxu0 %v3971_v51 }
  0x2c   : > { %3973 = vmatprep.subr.bf16.mxu0 %v4485_v32 }
  0x2f   : > { %3975 = vmatpush3.bf16.msra.mxu0 %v3974_v54  ;;  %v4491_v54 = vmov 2  }
  0x30   : > { %3872 = vmatprep.subr.mxu0 %v4487_v35 }
  0x99   : > { %v746_v5 = vpop.permute.xlu0 %745 }
  0x9a   : > { %v754_v6 = vmul.f32 %v3459_v3, %v746_v5  ;;  %v3462_v3 = vld [vmem:[%s6161_s30] ss:$0 sm:$0xff]  ;;  %v4738_v5 = vsub.s32 0, %v4717_v59 }
  0x9c   : > { %v762_v7 = vadd.f32 %v3460_v4, %v754_v6  ;;  %v825_v4 = vld [vmem:[%s6162_s1] sm:$0xf] }
  0x9d   : > { %v846_v8 = vrot.slane %v825_v4, %v4723_v63  ;;  %v859_v9 = vrot.slane %v825_v4, %v4726_v1 }
  0x9e   : > { %4368 = vtanh.f32 %v762_v7 }
  0xa8   : > { %v4369_v12 = vpop.eup %4368 }
  0xa9   : > { %v773_v14 = vrot.slane %v4369_v12, 6  ;;  %v784_v16 = vsel %vm783_vm0, %v4369_v12, %v767_v10  ;;  %v779_v20 = vrot.slane %v4369_v12, 4  ;;  %v872_v10 = vrot.slane %v825_v4, %v4729_v2 }
  0xaa   : > { %v786_v17 = vsel %vm785_vm1, %v784_v16, %v770_v11  ;;  %v834_v11 = vrot.slane %v825_v4, %v4738_v5 }
  0xab   : > { %v788_v19 = vsel %vm787_vm2, %v786_v17, %v773_v14  ;;  %v3463_v14 = vld [vmem:[%s6121_s8] ss:$0 sm:$0xff] }
  0xac   : > { %v790_v21 = vsel %vm789_vm3, %v788_v19, %v775_v13 }
  0xad   : > { %v792_v22 = vsel %vm791_vm4, %v790_v21, %v777_v15 }
  0xae   : > { %v794_v23 = vsel %vm793_vm5, %v792_v22, %v779_v20 }
  0xaf   : > { %v4653_v24 = vsel %vm795_vm6, %v794_v23, %v781_v18 }
  0xb0   : > { %799 = vadd.xlane.f32.xlu0 %v4653_v24 }
 0x13d   : > { %v800_v25 = vpop.xlane.xlu0 %799 }
 0x13e   : > { %v802_v26 = vmul.f32 0.0078125, %v800_v25 }
 0x140   : > { %v803_v27 = vsub.f32 %v4653_v24, %v802_v26 }
 0x142   : > { %v804_v28 = vmul.f32 %v803_v27, %v803_v27 }
 0x144   : > { %805 = vadd.xlane.f32.xlu1 %v804_v28 }
 0x1d1   : > { %v806_v55 = vpop.xlane.xlu1 %805 }
 0x1d2   : > { %v807_v56 = vmul.f32 0.0078125, %v806_v55  ;;  %v4492_v55 = vmov 1  }
 0x1d4   : > { %v808_v57 = vadd.f32 1e-05, %v807_v56  ;;  %v4493_v56 = vmov 4  }
 0x1d6   : > { %4370 = vrsqrt.f32 %v808_v57 }
 0x1e0   : > { %v4371_v60 = vpop.eup %4370 }
 0x1e1   : > { %v810_v62 = vmul.f32 %v4371_v60, %v803_v27 }
 0x1e3   : > { %v817_v6 = vmul.f32 %v3461_v61, %v810_v62  ;;  %v4495_v61 = vmov 5   ;;  %v6141_v62 = vmov 7  }
 0x1e5   : > { %v824_v7 = vadd.f32 %v3462_v3, %v817_v6  ;;  %v3464_v3 = vld [vmem:[%s6124_s11] ss:$0 sm:$0xff] }
 0x1e7   : > { %v827_v12 = vrot.slane %v824_v7, 5 }
 0x1e9   : > { %v829_v13 = vsel %vm787_vm2, 0.0, %v827_v12  ;;  %v848_v15 = vmul.f32 %v846_v8, %v827_v12  ;;  %v861_v16 = vmul.f32 %v859_v9, %v827_v12  ;;  %v874_v17 = vmul.f32 %v872_v10, %v827_v12 }
 0x1ea   : > { %v835_v18 = vmul.f32 %v834_v11, %v829_v13  ;;  %v847_v19 = vmul.f32 %v846_v8, %v829_v13  ;;  %v860_v20 = vmul.f32 %v859_v9, %v829_v13  ;;  %v873_v21 = vmul.f32 %v872_v10, %v829_v13 }
 0x1eb   : > { %v852_v22 = vrot.slane %v848_v15, 1  ;;  %v865_v27 = vrot.slane %v861_v16, 2  ;;  %v878_v30 = vrot.slane %v874_v17, 3 }
 0x1ec   : > { %v842_v23 = vadd.f32 %v3463_v14, %v835_v18  ;;  %v851_v25 = vrot.slane %v847_v19, 1  ;;  %v864_v26 = vrot.slane %v860_v20, 2  ;;  %v877_v29 = vrot.slane %v873_v21, 3 }
 0x1ee   : > { %v853_v28 = vsel %vm795_vm6, %v851_v25, %v852_v22  ;;  %v866_v33 = vsel %vm793_vm5, %v864_v26, %v865_v27  ;;  %v879_v36 = vsel %vm791_vm4, %v877_v29, %v878_v30 }
 0x1ef   : > { %v855_v31 = vadd.f32 %v853_v28, %v842_v23  ;;  %v4819_v28 = vld [vmem:[%s6125_s12] sm:$0xff] }
 0x1f1   : > { %v868_v34 = vadd.f32 %v866_v33, %v855_v31  ;;  %v4827_v31 = vld [vmem:[%s6125_s12 + $0x8] sm:$0xff] }
 0x1f3   : > { %v881_v37 = vadd.f32 %v879_v36, %v868_v34 }
 0x1f5   : > { %v882_v38 = vsub.f32 0.0, %v881_v37 }
 0x1f7   : > { %v883_v39 = vmul.f32 1.442695, %v882_v38 }
 0x1f9   : > { %4372 = vpow2.f32 %v883_v39 }
 0x203   : > { %v4373_v40 = vpop.eup %4372 }
 0x204   : > { %v885_v41 = vadd.f32 1.0, %v4373_v40 }
 0x206   : > { %4374 = vrcp.f32 %v885_v41 }
 0x210   : > { %v4375_v42 = vpop.eup %4374 }
 0x211   : > { %v4751_v43 = vmul.f32 %v4375_v42, %v881_v37 }
 0x213   : > { %3870 = vmatmul.mubr.f32.vlgmr.msra.gmra.mrb[0].mxu0 %v4751_v43 }
 0x214   : > { %3874 = vmatprep.mubr.msk.f32.mxu0 %vm4486_vm7, %v4487_v35  ;;  %3873 = vmatpush3.msk.msra.mxu0 %vm789_vm3, %v1046_v44 }
 0x2e6   : > { %v971_v45 = vpop.f32.mrb[0].mxu0 }
 0x2e7   : > { %976 = vrot.lane.b32.xlu1 %v971_v45, %s6143_s27  ;;  %v3871_v46 = vpop.f32.mrb[1].mxu0  ;;  %3875 = vmatmul.mubr.msk.f32.vlgmr.msra.gmra.mrb[2].mxu0 %vm1054_vm8, %v971_v45 }
 0x2e8   : > { %1777 = vmatprep.mubr.f32.mxu0 %v4487_v35 }
 0x2eb   : > { %1011 = vrot.lane.b32.xlu1 %v971_v45, %s6144_s7 }
 0x359   : > { %v977_v47 = vpop.permute.xlu1 %976 }
 0x35a   : > { %979 = vxpose.xlu1.b32.start.end [1/1] (short) (narrow) %v977_v47, 16 }
 0x35d   : > { %v1012_v48 = vpop.permute.xlu1 %1011 }
 0x35e   : > { %1014 = vxpose.xlu0.b32.start.end [1/1] (short) (narrow) %v1012_v48, 16 }
 0x378   : > { %4302 = vset.pattern.permute.xlu1 %v4484_v0 }
 0x387   : > { %4308 = vset.pattern.permute.xlu0 %v4490_v49 }
 0x3ba   : > { %v4766_v50 = vpop.f32.mrb[2].mxu0 }
 0x3bb   : > { %v3876_v51 = vpop.f32.mrb[3].mxu0  ;;  %v1127_v4 = vadd.f32 %v3464_v3, %v4766_v50 }
 0x3bd   : > { %v1131_v6 = vand.u32 2147483647, %v1127_v4  ;;  %v1130_v22 = vmax.f32 %v1127_v4, 0.0 }
 0x3bf   : > { %v1132_v7 = vsub.f32 0.0, %v1131_v6 }
 0x3c1   : > { %v1133_v8 = vmul.f32 1.442695, %v1132_v7 }
 0x3c3   : > { %4376 = vpow2.f32 %v1133_v8 }
 0x3cd   : > { %v4377_v9 = vpop.eup %4376 }
 0x3ce   : > { %v1135_v10 = vadd.f32 1.0, %v4377_v9  ;;  %v1138_v13 = vmul.f32 -0.5, %v4377_v9  ;;  %v1141_v17 = vand.u32 2147483647, %v4377_v9 }
 0x3d0   : > { %4378 = vlog2.f32 %v1135_v10  ;;  %v1139_v16 = vadd.f32 1.0, %v1138_v13  ;;  %vm1142_vm9 = vcmp.lt.f32.partialorder %v1141_v17, 0.0004427343 }
 0x3d2   : > { %v1140_v20 = vmul.f32 %v4377_v9, %v1139_v16  ;;  %v4863_v16 = vsub.s32 4, %v4717_v59 }
 0x3da   : > { %v995_v52 = vpop.trf.xlu1  ;;  %v4379_v15 = vpop.eup %4378 }
 0x3db   : > { %1435 = vperm.xlu0 %4308, %v995_v52   ;;  %1162 = vperm.xlu1 %4302, %v995_v52   ;;  %v1137_v18 = vmul.f32 0.6931472, %v4379_v15 }
 0x3dd   : > { %v1143_v21 = vsel %vm1142_vm9, %v1140_v20, %v1137_v18 }
 0x3de   : > { %v1030_v53 = vpop.trf.xlu0  ;;  %v996_v57 = vpop.trf.xlu1  ;;  %v4810_v25 = vadd.f32 %v1143_v21, %v1130_v22 }
 0x3df   : > { %4311 = vset.pattern.permute.xlu0 %v4491_v54  ;;  %4303 = vset.pattern.permute.xlu1 %v4492_v55 }
 0x3e0   : > { %1271 = vperm.xlu0 %4311, %v1030_v53   ;;  %1210 = vperm.xlu1 %4303, %v995_v52   ;;  %v1151_v26 = vrot.slane %v4810_v25, %v4738_v5  ;;  %v1200_v34 = vrot.slane %v4810_v25, %v4723_v63  ;;  %v1245_v45 = vrot.slane %v4810_v25, %v4726_v1 }
 0x3e1   : > { %v4845_v46 = vmul.f32 %v4810_v25, %v4751_v43  ;;  %v1290_v4 = vrot.slane %v4810_v25, %v4729_v2 }
 0x3e2   : > { %v1031_v60 = vpop.trf.xlu0  ;;  %v1152_v29 = vmul.f32 %v1151_v26, %v4819_v28  ;;  %v1153_v37 = vmul.f32 %v1151_v26, %v4827_v31  ;;  %v1201_v39 = vmul.f32 %v1200_v34, %v4819_v28  ;;  %v1202_v47 = vmul.f32 %v1200_v34, %v4827_v31 }
 0x3e3   : > { %v1246_v50 = vmul.f32 %v1245_v45, %v4819_v28  ;;  %v1292_v17 = vmul.f32 %v1290_v4, %v4827_v31  ;;  %v1291_v18 = vmul.f32 %v1290_v4, %v4819_v28  ;;  %v1220_v20 = vrot.slane %v4845_v46, %v4723_v63 }
 0x3e4   : > { %4314 = vset.pattern.permute.xlu0 %v4493_v56  ;;  %4304 = vset.pattern.permute.xlu1 %v4491_v54  ;;  %v1154_v33 = vmul.f32 1.442695, %v1152_v29  ;;  %v1156_v41 = vmul.f32 1.442695, %v1153_v37  ;;  %v1203_v44 = vmul.f32 1.442695, %v1201_v39  ;;  %v1335_v34 = vrot.slane %v4810_v25, %v4863_v16 }
 0x3e5   : > { %1361 = vperm.xlu0 %4314, %v1030_v53   ;;  %1255 = vperm.xlu1 %4304, %v995_v52   ;;  %v1248_v6 = vmul.f32 1.442695, %v1246_v50  ;;  %v1295_v37 = vmul.f32 1.442695, %v1292_v17  ;;  %v1293_v39 = vmul.f32 1.442695, %v1291_v18 }
 0x3e6   : > { %4380 = vpow2.f32 %v1154_v33 }
 0x3e7   : > { %4382 = vpow2.f32 %v1156_v41 }
 0x3e8   : > { %4384 = vpow2.f32 %v1203_v44 }
 0x3e9   : > { %4317 = vset.pattern.permute.xlu0 %v4484_v0  ;;  %4305 = vset.pattern.permute.xlu1 %v4494_v58 }
 0x3ea   : > { %1300 = vperm.xlu1 %4305, %v995_v52   ;;  %1167 = vperm.xlu0 %4317, %v996_v57  }
 0x3ee   : > { %4306 = vset.pattern.permute.xlu1 %v4493_v56  ;;  %4321 = vset.pattern.permute.xlu0 %v4493_v56 }
 0x3ef   : > { %1345 = vperm.xlu1 %4306, %v995_v52   ;;  %1349 = vperm.xlu0 %4321, %v996_v57  }
 0x3f3   : > { %4307 = vset.pattern.permute.xlu1 %v4495_v61  ;;  %4324 = vset.pattern.permute.xlu0 %v4484_v0 }
 0x3f4   : > { %1390 = vperm.xlu1 %4307, %v995_v52   ;;  %1185 = vperm.xlu0 %4324, %v1031_v60  }
 0x3f8   : > { %4309 = vset.pattern.permute.xlu1 %v4484_v0  ;;  %4327 = vset.pattern.permute.xlu0 %v4494_v58 }
 0x3f9   : > { %1180 = vperm.xlu1 %4309, %v1030_v53   ;;  %1320 = vperm.xlu0 %4327, %v1031_v60  }
 0x3fd   : > { %4310 = vset.pattern.permute.xlu1 %v4492_v55  ;;  %4330 = vset.pattern.permute.xlu0 %v4495_v61 }
 0x3fe   : > { %1226 = vperm.xlu1 %4310, %v1030_v53   ;;  %1410 = vperm.xlu0 %4330, %v1031_v60  }
 0x402   : > { %4312 = vset.pattern.permute.xlu1 %v4494_v58  ;;  %4331 = vset.pattern.permute.xlu0 %v6141_v62 }
 0x403   : > { %1316 = vperm.xlu1 %4312, %v1030_v53   ;;  %1496 = vperm.xlu0 %4331, %v1030_v53  }
 0x407   : > { %4313 = vset.pattern.permute.xlu1 %v6141_v62 }
 0x408   : > { %1480 = vperm.xlu1 %4313, %v995_v52   ;;  %v1173_v52 = vrot.slane %v4845_v46, %v4738_v5 }
 0x40c   : > { %4315 = vset.pattern.permute.xlu1 %v4495_v61 }
 0x40d   : > { %1406 = vperm.xlu1 %4315, %v1030_v53  }
 0x411   : > { %4316 = vset.pattern.permute.xlu1 %v4490_v49 }
 0x412   : > { %1451 = vperm.xlu1 %4316, %v1030_v53   ;;  %v1205_v53 = vmul.f32 1.442695, %v1202_v47  ;;  %v4880_v47 = vsub.s32 5, %v4717_v59 }
 0x414   : > { %4386 = vpow2.f32 %v1205_v53 }
 0x415   : > { %4388 = vpow2.f32 %v1248_v6 }
 0x416   : > { %4318 = vset.pattern.permute.xlu1 %v4492_v55 }
 0x417   : > { %1214 = vperm.xlu1 %4318, %v996_v57  }
 0x41b   : > { %4319 = vset.pattern.permute.xlu1 %v4491_v54 }
 0x41c   : > { %1259 = vperm.xlu1 %4319, %v996_v57  }
 0x420   : > { %4320 = vset.pattern.permute.xlu1 %v4494_v58 }
 0x421   : > { %1304 = vperm.xlu1 %4320, %v996_v57  }
 0x425   : > { %4322 = vset.pattern.permute.xlu1 %v4495_v61 }
 0x426   : > { %1394 = vperm.xlu1 %4322, %v996_v57  }
 0x42a   : > { %4323 = vset.pattern.permute.xlu1 %v4490_v49 }
 0x42b   : > { %1439 = vperm.xlu1 %4323, %v996_v57  }
 0x42f   : > { %4325 = vset.pattern.permute.xlu1 %v4492_v55 }
 0x430   : > { %1230 = vperm.xlu1 %4325, %v1031_v60  }
 0x434   : > { %4326 = vset.pattern.permute.xlu1 %v4491_v54 }
 0x435   : > { %1275 = vperm.xlu1 %4326, %v1031_v60  }
 0x439   : > { %4328 = vset.pattern.permute.xlu1 %v6141_v62 }
 0x43a   : > { %1484 = vperm.xlu1 %4328, %v996_v57   ;;  %v1247_v57 = vmul.f32 %v1245_v45, %v4827_v31 }
 0x43c   : > { %v1250_v10 = vmul.f32 1.442695, %v1247_v57 }
 0x43e   : > { %4329 = vset.pattern.permute.xlu1 %v4493_v56  ;;  %4390 = vpow2.f32 %v1250_v10  ;;  %v1380_v10 = vrot.slane %v4810_v25, %v4880_v47 }
 0x43f   : > { %1365 = vperm.xlu1 %4329, %v1031_v60   ;;  %4392 = vpow2.f32 %v1295_v37 }
 0x440   : > { %4394 = vpow2.f32 %v1293_v39 }
 0x443   : > { %4332 = vset.pattern.permute.xlu1 %v4490_v49 }
 0x444   : > { %1455 = vperm.xlu1 %4332, %v1031_v60  }
 0x448   : > { %4333 = vset.pattern.permute.xlu1 %v6141_v62 }
 0x449   : > { %1500 = vperm.xlu1 %4333, %v1031_v60   ;;  %v4381_v60 = vpop.eup %4380 }
 0x44a   : > { %v1158_v7 = vmul.f32 0.0, %v4381_v60  ;;  %v4383_v13 = vpop.eup %4382  ;;  %v1265_v60 = vrot.slane %v4845_v46, %v4726_v1 }
 0x44b   : > { %v4385_v21 = vpop.eup %4384  ;;  %v1159_v22 = vmul.f32 0.0, %v4383_v13 }
 0x44c   : > { %v4387_v44 = vpop.eup %4386 }
 0x45a   : > { %v1163_v11 = vpop.permute.xlu1 %1162  ;;  %v4831_v36 = vpop.permute.xlu0 %1435 }
 0x45b   : > { %v1174_v3 = vmul.f32 %v1173_v52, %v1163_v11 }
 0x45d   : > { %v4860_v15 = vadd.f32 %v1174_v3, %v1158_v7  ;;  %v4389_v3 = vpop.eup %4388 }
 0x45e   : > { %v4391_v6 = vpop.eup %4390 }
 0x45f   : > { %v4802_v12 = vpop.permute.xlu1 %1210  ;;  %v4837_v40 = vpop.permute.xlu0 %1271  ;;  %v1207_v29 = vmul.f32 %v4385_v21, %v4860_v15 }
 0x460   : > { %v1221_v33 = vmul.f32 %v1220_v20, %v4802_v12  ;;  %v1336_v12 = vmul.f32 %v1335_v34, %v4819_v28  ;;  %v4393_v37 = vpop.eup %4392 }
 0x462   : > { %v4877_v45 = vadd.f32 %v1221_v33, %v1207_v29  ;;  %v1338_v17 = vmul.f32 1.442695, %v1336_v12  ;;  %v1382_v29 = vmul.f32 %v1380_v10, %v4827_v31  ;;  %v4897_v33 = vsub.s32 6, %v4717_v59 }
 0x464   : > { %v4804_v14 = vpop.permute.xlu1 %1255  ;;  %v4848_v48 = vpop.permute.xlu0 %1361  ;;  %v1252_v7 = vmul.f32 %v4389_v3, %v4877_v45  ;;  %v1425_v3 = vrot.slane %v4810_v25, %v4897_v33 }
 0x469   : > { %v4806_v19 = vpop.permute.xlu1 %1300  ;;  %v1168_v8 = vpop.permute.xlu0 %1167 }
 0x46a   : > { %v1175_v11 = vmul.f32 %v1173_v52, %v1168_v8  ;;  %v1337_v52 = vmul.f32 %v1335_v34, %v4827_v31  ;;  %v1266_v8 = vmul.f32 %v1265_v60, %v4804_v14  ;;  %v1310_v14 = vrot.slane %v4845_v46, %v4729_v2 }
 0x46b   : > { %v1381_v34 = vmul.f32 %v1380_v10, %v4819_v28 }
 0x46c   : > { %v4875_v41 = vadd.f32 %v1175_v11, %v1159_v22  ;;  %v1340_v13 = vmul.f32 1.442695, %v1337_v52  ;;  %v4891_v22 = vadd.f32 %v1266_v8, %v1252_v7 }
 0x46e   : > { %v4808_v23 = vpop.permute.xlu1 %1345  ;;  %v1208_v53 = vmul.f32 %v4387_v44, %v4875_v41  ;;  %4396 = vpow2.f32 %v1340_v13  ;;  %v4395_v44 = vpop.eup %4394  ;;  %v1426_v13 = vmul.f32 %v1425_v3, %v4819_v28 }
 0x46f   : > { %4398 = vpow2.f32 %v1338_v17  ;;  %v1297_v12 = vmul.f32 %v4395_v44, %v4891_v22 }
 0x470   : > { %v1428_v44 = vmul.f32 1.442695, %v1426_v13 }
 0x473   : > { %v4814_v27 = vpop.permute.xlu1 %1390 }
 0x478   : > { %v4822_v30 = vpop.permute.xlu1 %1180  ;;  %v4397_v17 = vpop.eup %4396 }
 0x47d   : > { %v4834_v38 = vpop.permute.xlu1 %1226 }
 0x482   : > { %v4839_v42 = vpop.permute.xlu1 %1316 }
 0x487   : > { %v4851_v51 = vpop.permute.xlu1 %1480 }
 0x48c   : > { %v4858_v9 = vpop.permute.xlu1 %1406 }
 0x491   : > { %v4869_v26 = vpop.permute.xlu1 %1451 }
 0x496   : > { %v1215_v50 = vpop.permute.xlu1 %1214 }
 0x497   : > { %v1222_v57 = vmul.f32 %v1220_v20, %v1215_v50 }
 0x499   : > { %v1224_v4 = vadd.f32 %v1222_v57, %v1208_v53  ;;  %v1311_v53 = vmul.f32 %v1310_v14, %v4806_v19  ;;  %v1385_v57 = vmul.f32 1.442695, %v1382_v29  ;;  %v1355_v19 = vrot.slane %v4845_v46, %v4863_v16 }
 0x49b   : > { %v1260_v11 = vpop.permute.xlu1 %1259  ;;  %v1253_v18 = vmul.f32 %v4391_v6, %v1224_v4  ;;  %v4908_v6 = vsub.s32 7, %v4717_v59  ;;  %v1313_v10 = vadd.f32 %v1311_v53, %v1297_v12  ;;  %4400 = vpow2.f32 %v1385_v57 }
 0x49c   : > { %v1267_v21 = vmul.f32 %v1265_v60, %v1260_v11  ;;  %v1383_v60 = vmul.f32 1.442695, %v1381_v34  ;;  %v1350_v11 = vpop.permute.xlu0 %1349  ;;  %v1356_v59 = vmul.f32 %v1355_v19, %v4808_v23  ;;  %v1400_v23 = vrot.slane %v4845_v46, %v4880_v47 }
 0x49e   : > { %v4893_v20 = vadd.f32 %v1267_v21, %v1253_v18  ;;  %4402 = vpow2.f32 %v1383_v60  ;;  %v4399_v18 = vpop.eup %4398  ;;  %v1470_v21 = vrot.slane %v4810_v25, %v4908_v6  ;;  %v1188_v25 = vmul.f32 %v4822_v30, %v4860_v15 }
 0x49f   : > { %4404 = vpow2.f32 %v1428_v44 }
 0x4a0   : > { %v1305_v39 = vpop.permute.xlu1 %1304  ;;  %v1298_v50 = vmul.f32 %v4393_v37, %v4893_v20  ;;  %v1427_v37 = vmul.f32 %v1425_v3, %v4827_v31  ;;  %v1186_v53 = vpop.permute.xlu0 %1185  ;;  %v1472_v30 = vmul.f32 %v1470_v21, %v4827_v31 }
 0x4a1   : > { %v1312_v52 = vmul.f32 %v1310_v14, %v1305_v39  ;;  %v1342_v14 = vmul.f32 %v4399_v18, %v1313_v10  ;;  %v1357_v39 = vmul.f32 %v1355_v19, %v1350_v11  ;;  %v1189_v3 = vmul.f32 %v1186_v53, %v4875_v41 }
 0x4a2   : > { %v1430_v57 = vmul.f32 1.442695, %v1427_v37  ;;  %v1278_v41 = vmul.f32 %v4837_v40, %v4891_v22 }
 0x4a3   : > { %v1314_v7 = vadd.f32 %v1312_v52, %v1298_v50  ;;  %v1471_v50 = vmul.f32 %v1470_v21, %v4819_v28  ;;  %v1358_v12 = vadd.f32 %v1356_v59, %v1342_v14  ;;  %v1233_v28 = vmul.f32 %v4834_v38, %v4877_v45 }
 0x4a4   : > { %v1321_v14 = vpop.permute.xlu0 %1320  ;;  %4406 = vpow2.f32 %v1430_v57  ;;  %v1190_v15 = vadd.f32 %v1189_v3, %v1188_v25 }
 0x4a5   : > { %v1395_v8 = vpop.permute.xlu1 %1394  ;;  %v1343_v29 = vmul.f32 %v4397_v17, %v1314_v7  ;;  %v4401_v17 = vpop.eup %4400  ;;  %v1473_v13 = vmul.f32 1.442695, %v1471_v50 }
 0x4a6   : > { %v1402_v59 = vmul.f32 %v1400_v23, %v1395_v8  ;;  %v1191_v50 = vrot.slane %v1190_v15, 4 }
 0x4a7   : > { %v1359_v52 = vadd.f32 %v1357_v39, %v1343_v29  ;;  %v1401_v29 = vmul.f32 %v1400_v23, %v4814_v27  ;;  %4408 = vpow2.f32 %v1473_v13  ;;  %v1323_v27 = vmul.f32 %v4839_v42, %v1313_v10 }
 0x4a8   : > { %v4403_v62 = vpop.eup %4402  ;;  %v1411_v31 = vpop.permute.xlu0 %1410  ;;  %v1192_v22 = vadd.f32 %v1191_v50, %v1190_v15 }
 0x4a9   : > { %v1388_v11 = vmul.f32 %v4401_v17, %v1359_v52  ;;  %v1387_v19 = vmul.f32 %v4403_v62, %v1358_v12  ;;  %v1475_v62 = vmul.f32 1.442695, %v1472_v30  ;;  %v4405_v21 = vpop.eup %4404  ;;  %v1445_v17 = vrot.slane %v4845_v46, %v4897_v33 }
 0x4aa   : > { %v4916_v34 = vpop.permute.xlu1 %1439  ;;  %v1193_v30 = vrot.slane %v1192_v22, 2 }
 0x4ab   : > { %v1404_v44 = vadd.f32 %v1402_v59, %v1388_v11  ;;  %v1403_v45 = vadd.f32 %v1401_v29, %v1387_v19  ;;  %4410 = vpow2.f32 %v1475_v62  ;;  %v1446_v42 = vmul.f32 %v1445_v17, %v4831_v36 }
 0x4ac   : > { %v1490_v19 = vrot.slane %v4845_v46, %v4908_v6  ;;  %v1447_v15 = vmul.f32 %v1445_v17, %v4916_v34  ;;  %v1194_v62 = vadd.f32 %v1193_v30, %v1192_v22 }
 0x4ad   : > { %v1414_v25 = vmul.f32 %v1411_v31, %v1404_v44  ;;  %v1432_v40 = vmul.f32 %v4405_v21, %v1403_v45 }
 0x4ae   : > { %v1195_v22 = vrot.slane %v1194_v62, 1 }
 0x4af   : > { %v1231_v60 = vpop.permute.xlu1 %1230  ;;  %v1448_v11 = vadd.f32 %v1446_v42, %v1432_v40 }
 0x4b0   : > { %v1234_v18 = vmul.f32 %v1231_v60, %v1224_v4  ;;  %v1324_v4 = vmul.f32 %v1321_v14, %v1314_v7  ;;  %v1368_v14 = vmul.f32 %v4848_v48, %v1358_v12 }
 0x4b1   : > { %v1458_v34 = vmul.f32 %v4869_v26, %v1448_v11 }
 0x4b2   : > { %v1235_v37 = vadd.f32 %v1234_v18, %v1233_v28  ;;  %v1325_v8 = vadd.f32 %v1324_v4, %v1323_v27  ;;  %v4407_v18 = vpop.eup %4406 }
 0x4b3   : > { %v1433_v13 = vmul.f32 %v4407_v18, %v1404_v44 }
 0x4b4   : > { %v1276_v39 = vpop.permute.xlu1 %1275  ;;  %v1236_v53 = vrot.slane %v1235_v37, 4  ;;  %v1326_v3 = vrot.slane %v1325_v8, 4 }
 0x4b5   : > { %v1279_v38 = vmul.f32 %v1276_v39, %v4893_v20  ;;  %v1413_v20 = vmul.f32 %v4858_v9, %v1403_v45  ;;  %v1491_v39 = vmul.f32 %v1490_v19, %v4851_v51  ;;  %v1449_v44 = vadd.f32 %v1447_v15, %v1433_v13 }
 0x4b6   : > { %v1237_v23 = vadd.f32 %v1236_v53, %v1235_v37  ;;  %v4409_v37 = vpop.eup %4408  ;;  %v1327_v4 = vadd.f32 %v1326_v3, %v1325_v8  ;;  %v1196_v15 = vadd.f32 %v1195_v22, %v1194_v62  ;;  %v1556_v22 = vld [vmem:[%s6129_s16] sm:$0xff] }
 0x4b7   : > { %v1280_v57 = vadd.f32 %v1279_v38, %v1278_v41  ;;  %v1415_v28 = vadd.f32 %v1414_v25, %v1413_v20  ;;  %v1477_v45 = vmul.f32 %v4409_v37, %v1448_v11  ;;  %v4411_v48 = vpop.eup %4410 }
 0x4b8   : > { %v1238_v59 = vrot.slane %v1237_v23, 2  ;;  %v1328_v31 = vrot.slane %v1327_v4, 2  ;;  %v1478_v25 = vmul.f32 %v4411_v48, %v1449_v44 }
 0x4b9   : > { %v1281_v60 = vrot.slane %v1280_v57, 4  ;;  %v1485_v7 = vpop.permute.xlu1 %1484  ;;  %v1416_v41 = vrot.slane %v1415_v28, 4  ;;  %v1493_v12 = vadd.f32 %v1491_v39, %v1477_v45 }
 0x4ba   : > { %v1239_v50 = vadd.f32 %v1238_v59, %v1237_v23  ;;  %v1492_v46 = vmul.f32 %v1490_v19, %v1485_v7  ;;  %v1329_v3 = vadd.f32 %v1328_v31, %v1327_v4 }
 0x4bb   : > { %v1282_v10 = vadd.f32 %v1281_v60, %v1280_v57  ;;  %v1417_v21 = vadd.f32 %v1416_v41, %v1415_v28  ;;  %v1497_v60 = vpop.permute.xlu0 %1496 }
 0x4bc   : > { %v1240_v17 = vrot.slane %v1239_v50, 1  ;;  %v1494_v20 = vadd.f32 %v1492_v46, %v1478_v25  ;;  %v1503_v42 = vmul.f32 %v1497_v60, %v1493_v12  ;;  %v1330_v59 = vrot.slane %v1329_v3, 1 }
 0x4bd   : > { %v1283_v36 = vrot.slane %v1282_v10, 2  ;;  %v1418_v13 = vrot.slane %v1417_v21, 2 }
 0x4be   : > { %v1366_v29 = vpop.permute.xlu1 %1365  ;;  %v1241_v11 = vadd.f32 %v1240_v17, %v1239_v50  ;;  %v1331_v45 = vadd.f32 %v1330_v59, %v1329_v3  ;;  %v1557_v17 = vld [vmem:[%s6129_s16 + $0x8] sm:$0xff]  ;;  %v1562_v3 = vld [vmem:[%s6129_s16 + $0x30] sm:$0xff] }
 0x4bf   : > { %v1369_v9 = vmul.f32 %v1366_v29, %v1359_v52  ;;  %v1284_v57 = vadd.f32 %v1283_v36, %v1282_v10 }
 0x4c0   : > { %v1512_v36 = vsel %vm783_vm0, %v1196_v15, %v1241_v11  ;;  %v1571_v11 = vld [vmem:[%s6129_s16 + $0x78] sm:$0xff]  ;;  %v1566_v15 = vld [vmem:[%s6129_s16 + $0x50] sm:$0xff] }
 0x4c1   : > { %v1370_v38 = vadd.f32 %v1369_v9, %v1368_v14  ;;  %v1285_v23 = vrot.slane %v1284_v57, 1  ;;  %v1419_v9 = vadd.f32 %v1418_v13, %v1417_v21  ;;  %v1565_v13 = vld [vmem:[%s6129_s16 + $0x48] sm:$0xff] }
 0x4c3   : > { %v1371_v27 = vrot.slane %v1370_v38, 4  ;;  %v1456_v53 = vpop.permute.xlu1 %1455  ;;  %v1286_v28 = vadd.f32 %v1285_v23, %v1284_v57  ;;  %v1420_v46 = vrot.slane %v1419_v9, 1  ;;  %v3467_v57 = vld [vmem:[%s6126_s13] ss:$0 sm:$0xff] }
 0x4c4   : > { %v1459_v52 = vmul.f32 %v1456_v53, %v1449_v44  ;;  %v1560_v23 = vld [vmem:[%s6129_s16 + $0x20] sm:$0xff] }
 0x4c5   : > { %v1372_v51 = vadd.f32 %v1371_v27, %v1370_v38  ;;  %v1513_v38 = vsel %vm785_vm1, %v1512_v36, %v1286_v28  ;;  %v1421_v12 = vadd.f32 %v1420_v46, %v1419_v9  ;;  %v1570_v9 = vld [vmem:[%s6129_s16 + $0x70] sm:$0xff]  ;;  %v1576_v46 = vld [vmem:[%s6129_s16 + $0xa0] sm:$0xff] }
 0x4c6   : > { %v1460_v8 = vadd.f32 %v1459_v52, %v1458_v34  ;;  %v1514_v50 = vsel %vm787_vm2, %v1513_v38, %v1331_v45  ;;  %v4014_v36 = vpack.c.bf16 %v1570_v9, %v1566_v15  ;;  %v1575_v38 = vld [vmem:[%s6129_s16 + $0x98] sm:$0xff] }
 0x4c7   : > { %v1373_v40 = vrot.slane %v1372_v51, 2  ;;  %v1603_v9 = vld [vmem:[%s6129_s16 + $0x178] sm:$0xff] }
 0x4c8   : > { %v1461_v7 = vrot.slane %v1460_v8, 4  ;;  %v1501_v18 = vpop.permute.xlu1 %1500 }
 0x4c9   : > { %v1374_v19 = vadd.f32 %v1373_v40, %v1372_v51  ;;  %v1504_v26 = vmul.f32 %v1501_v18, %v1494_v20  ;;  %v1526_v51 = vmul.f32 %v3467_v57, %v4751_v43  ;;  %v1561_v40 = vld [vmem:[%s6129_s16 + $0x28] sm:$0xff]  ;;  %v1559_v43 = vld [vmem:[%s6129_s16 + $0x18] sm:$0xff]  ;;  %v3978_v18 = vpack.c.bf16 %v1560_v23, %v1556_v22 }
 0x4ca   : > { %v1462_v10 = vadd.f32 %v1461_v7, %v1460_v8  ;;  %v3976_v20 = vpack.c.bf16 %v1561_v40, %v1557_v17  ;;  %v1584_v17 = vld [vmem:[%s6129_s16 + $0xe0] sm:$0xff]  ;;  %v1589_v22 = vld [vmem:[%s6129_s16 + $0x108] sm:$0xff] }
 0x4cb   : > { %v1505_v29 = vadd.f32 %v1504_v26, %v1503_v42  ;;  %v1375_v14 = vrot.slane %v1374_v19, 1  ;;  %v1558_v42 = vld [vmem:[%s6129_s16 + $0x10] sm:$0xff]  ;;  %v1569_v26 = vld [vmem:[%s6129_s16 + $0x68] sm:$0xff] }
 0x4cc   : > { %v1463_v30 = vrot.slane %v1462_v10, 2  ;;  %3977 = vmatprep.subr.bf16.mxu1 %v3976_v20  ;;  %v1582_v20 = vld [vmem:[%s6129_s16 + $0xd0] sm:$0xff] }
 0x4cd   : > { %v1506_v37 = vrot.slane %v1505_v29, 4  ;;  %v1376_v4 = vadd.f32 %v1375_v14, %v1374_v19  ;;  %v4010_v19 = vpack.c.bf16 %v1562_v3, %v1558_v42  ;;  %3979 = vmatpush1.bf16.msra.mxu1 %v3978_v18  ;;  %v1564_v14 = vld [vmem:[%s6129_s16 + $0x40] sm:$0xff]  ;;  %v1591_v18 = vld [vmem:[%s6129_s16 + $0x118] sm:$0xff] }
 0x4ce   : > { %v1464_v39 = vadd.f32 %v1463_v30, %v1462_v10  ;;  %v1567_v10 = vld [vmem:[%s6129_s16 + $0x58] sm:$0xff]  ;;  %v1568_v30 = vld [vmem:[%s6129_s16 + $0x60] sm:$0xff] }
 0x4cf   : > { %v1507_v41 = vadd.f32 %v1506_v37, %v1505_v29  ;;  %v1515_v48 = vsel %vm789_vm3, %v1514_v50, %v1376_v4  ;;  %v3980_v29 = vpack.c.bf16 %v1569_v26, %v1565_v13  ;;  %v4012_v28 = vpack.c.bf16 %v1571_v11, %v1567_v10  ;;  %v1573_v37 = vld [vmem:[%s6129_s16 + $0x88] sm:$0xff]  ;;  %v1579_v4 = vld [vmem:[%s6129_s16 + $0xb8] sm:$0xff]  ;;  %v1578_v50 = vld [vmem:[%s6129_s16 + $0xb0] sm:$0xff] }
 0x4d0   : > { %v1465_v44 = vrot.slane %v1464_v39, 1  ;;  %v1516_v31 = vsel %vm791_vm4, %v1515_v48, %v1421_v12  ;;  %v3982_v59 = vpack.c.bf16 %v1568_v30, %v1564_v14  ;;  %v4016_v45 = vpack.c.bf16 %v1579_v4, %v1575_v38  ;;  %v1595_v42 = vld [vmem:[%s6129_s16 + $0x138] sm:$0xff]  ;;  %v1592_v26 = vld [vmem:[%s6129_s16 + $0x120] sm:$0xff]  ;;  %v1590_v10 = vld [vmem:[%s6129_s16 + $0x110] sm:$0xff] }
 0x4d1   : > { %v1508_v27 = vrot.slane %v1507_v41, 2  ;;  %3981 = vmatprep.subr.bf16.mxu1 %v3980_v29  ;;  %v4024_v13 = vpack.c.bf16 %v1595_v42, %v1591_v18  ;;  %v1594_v29 = vld [vmem:[%s6129_s16 + $0x130] sm:$0xff]  ;;  %v1601_v14 = vld [vmem:[%s6129_s16 + $0x168] sm:$0xff]  ;;  %v1820_v42 = vld [vmem:[%s6131_s18 + $0x80] sm:$0xff] }
 0x4d2   : > { %v1466_v62 = vadd.f32 %v1465_v44, %v1464_v39  ;;  %v1577_v39 = vld [vmem:[%s6129_s16 + $0xa8] sm:$0xff]  ;;  %v1572_v44 = vld [vmem:[%s6129_s16 + $0x80] sm:$0xff]  ;;  %3983 = vmatpush1.bf16.msra.mxu1 %v3982_v59  ;;  %v4026_v30 = vpack.c.bf16 %v1594_v29, %v1590_v10  ;;  %v1599_v59 = vld [vmem:[%s6129_s16 + $0x158] sm:$0xff] }
 0x4d3   : > { %v1509_v53 = vadd.f32 %v1508_v27, %v1507_v41  ;;  %v3984_v41 = vpack.c.bf16 %v1577_v39, %v1573_v37  ;;  %v1574_v27 = vld [vmem:[%s6129_s16 + $0x90] sm:$0xff]  ;;  %v1596_v37 = vld [vmem:[%s6129_s16 + $0x140] sm:$0xff]  ;;  %v4028_v39 = vpack.c.bf16 %v1603_v9, %v1599_v59  ;;  %v1805_v9 = vld [vmem:[%s6131_s18 + $0x8] sm:$0xff] }
 0x4d4   : > { %v1517_v21 = vsel %vm793_vm5, %v1516_v31, %v1466_v62  ;;  %v4018_v48 = vpack.c.bf16 %v1578_v50, %v1574_v27  ;;  %v1585_v31 = vld [vmem:[%s6129_s16 + $0xe8] sm:$0xff]  ;;  %v1602_v38 = vld [vmem:[%s6129_s16 + $0x170] sm:$0xff]  ;;  %v1804_v59 = vld [vmem:[%s6131_s18] sm:$0xff] }
 0x4d5   : > { %v1510_v34 = vrot.slane %v1509_v53, 1  ;;  %3985 = vmatprep.subr.bf16.mxu1 %v3984_v41  ;;  %v1598_v41 = vld [vmem:[%s6129_s16 + $0x150] sm:$0xff] }
 0x4d6   : > { %v4030_v27 = vpack.c.bf16 %v1602_v38, %v1598_v41  ;;  %v1822_v41 = vld [vmem:[%s6131_s18 + $0x90] sm:$0xff]  ;;  %v1823_v38 = vld [vmem:[%s6131_s18 + $0x98] sm:$0xff] }
 0x4d7   : > { %v1511_v52 = vadd.f32 %v1510_v34, %v1509_v53  ;;  %v3986_v53 = vpack.c.bf16 %v1576_v46, %v1572_v44  ;;  %v1605_v44 = vld [vmem:[%s6129_s16 + $0x188] sm:$0xff]  ;;  %v1607_v46 = vld [vmem:[%s6129_s16 + $0x198] sm:$0xff] }
 0x4d9   : > { %v1518_v25 = vsel %vm795_vm6, %v1517_v21, %v1511_v52  ;;  %3987 = vmatpush1.bf16.msra.mxu1 %v3986_v53  ;;  %v1581_v52 = vld [vmem:[%s6129_s16 + $0xc8] sm:$0xff]  ;;  %v1583_v21 = vld [vmem:[%s6129_s16 + $0xd8] sm:$0xff] }
 0x4da   : > { %v1527_v8 = vadd.f32 %v1526_v51, %v1518_v25  ;;  %v3988_v51 = vpack.c.bf16 %v1585_v31, %v1581_v52  ;;  %v1587_v25 = vld [vmem:[%s6129_s16 + $0xf8] sm:$0xff]  ;;  %v1610_v52 = vld [vmem:[%s6129_s16 + $0x1b0] sm:$0xff]  ;;  %v1613_v31 = vld [vmem:[%s6129_s16 + $0x1c8] sm:$0xff] }
 0x4db   : > { %v4020_v40 = vpack.c.bf16 %v1587_v25, %v1583_v21  ;;  %v1611_v53 = vld [vmem:[%s6129_s16 + $0x1b8] sm:$0xff]  ;;  %v1617_v21 = vld [vmem:[%s6129_s16 + $0x1e8] sm:$0xff] }
 0x4dc   : > { %v4955_v60 = vadd.f32 %v1527_v8, %v4653_v24  ;;  %v1563_v24 = vld [vmem:[%s6129_s16 + $0x38] sm:$0xff]  ;;  %v1580_v8 = vld [vmem:[%s6129_s16 + $0xc0] sm:$0xff]  ;;  %3989 = vmatprep.subr.bf16.mxu1 %v3988_v51 }
 0x4dd   : > { %v4008_v7 = vpack.c.bf16 %v1563_v24, %v1559_v43  ;;  %v3990_v43 = vpack.c.bf16 %v1584_v17, %v1580_v8  ;;  %v1586_v24 = vld [vmem:[%s6129_s16 + $0xf0] sm:$0xff]  ;;  %v1615_v51 = vld [vmem:[%s6129_s16 + $0x1d8] sm:$0xff] }
 0x4de   : > { %1531 = vadd.xlane.f32.xlu1 %v4955_v60  ;;  %v4022_v23 = vpack.c.bf16 %v1586_v24, %v1582_v20  ;;  %v1619_v25 = vld [vmem:[%s6129_s16 + $0x1f8] sm:$0xff]  ;;  %v1616_v20 = vld [vmem:[%s6129_s16 + $0x1e0] sm:$0xff] }
 0x4df   : > { %4009 = vmatprep.subr.bf16.mxu0 %v4008_v7  ;;  %v1593_v7 = vld [vmem:[%s6129_s16 + $0x128] sm:$0xff]  ;;  %3991 = vmatpush1.bf16.msra.mxu1 %v3990_v43  ;;  %v1612_v43 = vld [vmem:[%s6129_s16 + $0x1c0] sm:$0xff]  ;;  %v4036_v24 = vpack.c.bf16 %v1619_v25, %v1615_v51 }
 0x4e0   : > { %4011 = vmatpush1.bf16.msra.mxu0 %v4010_v19  ;;  %v3992_v3 = vpack.c.bf16 %v1593_v7, %v1589_v22  ;;  %v1588_v19 = vld [vmem:[%s6129_s16 + $0x100] sm:$0xff]  ;;  %v1614_v22 = vld [vmem:[%s6129_s16 + $0x1d0] sm:$0xff]  ;;  %v4006_v7 = vpack.c.bf16 %v1616_v20, %v1612_v43  ;;  %v1857_v51 = vld [vmem:[%s6131_s18 + $0x1a8] sm:$0xff] }
 0x4e1   : > { %4013 = vmatprep.subr.bf16.mxu0 %v4012_v28  ;;  %v3994_v11 = vpack.c.bf16 %v1592_v26, %v1588_v19  ;;  %v1597_v28 = vld [vmem:[%s6129_s16 + $0x148] sm:$0xff] }
 0x4e2   : > { %3993 = vmatprep.subr.bf16.mxu1 %v3992_v3  ;;  %v3996_v15 = vpack.c.bf16 %v1601_v14, %v1597_v28  ;;  %v1821_v3 = vld [vmem:[%s6131_s18 + $0x88] sm:$0xff]  ;;  %v3468_v14 = vld [vmem:[%s6127_s14] ss:$0 sm:$0xff] }
 0x4e3   : > { %3995 = vmatpush1.bf16.msra.mxu1 %v3994_v11  ;;  %v4040_v19 = vpack.c.bf16 %v1821_v3, %v1820_v42  ;;  %v1853_v26 = vld [vmem:[%s6131_s18 + $0x188] sm:$0xff]  ;;  %v1827_v42 = vld [vmem:[%s6131_s18 + $0xb8] sm:$0xff]  ;;  %v1858_v3 = vld [vmem:[%s6131_s18 + $0x1b0] sm:$0xff] }
 0x4e4   : > { %4015 = vmatpush1.bf16.msra.mxu0 %v4014_v36  ;;  %v1600_v36 = vld [vmem:[%s6129_s16 + $0x160] sm:$0xff]  ;;  %3997 = vmatprep.subr.bf16.mxu1 %v3996_v15  ;;  %v1809_v20 = vld [vmem:[%s6131_s18 + $0x28] sm:$0xff] }
 0x4e5   : > { %4017 = vmatprep.subr.bf16.mxu0 %v4016_v45  ;;  %v3998_v4 = vpack.c.bf16 %v1600_v36, %v1596_v37  ;;  %v1609_v45 = vld [vmem:[%s6129_s16 + $0x1a8] sm:$0xff]  ;;  %v3469_v15 = vld [vmem:[%s6128_s15] ss:$0 sm:$0xff] }
 0x4e6   : > { %v4000_v50 = vpack.c.bf16 %v1609_v45, %v1605_v44  ;;  %v1837_v36 = vld [vmem:[%s6131_s18 + $0x108] sm:$0xff]  ;;  %v4042_v45 = vpack.c.bf16 %v1805_v9, %v1804_v59  ;;  %v1860_v9 = vld [vmem:[%s6131_s18 + $0x1c0] sm:$0xff] }
 0x4e7   : > { %3999 = vmatpush1.bf16.msra.mxu1 %v3998_v4  ;;  %v1855_v4 = vld [vmem:[%s6131_s18 + $0x198] sm:$0xff]  ;;  %v1829_v59 = vld [vmem:[%s6131_s18 + $0xc8] sm:$0xff] }
 0x4e8   : > { %4019 = vmatpush1.bf16.msra.mxu0 %v4018_v48  ;;  %v1604_v48 = vld [vmem:[%s6129_s16 + $0x180] sm:$0xff]  ;;  %4001 = vmatprep.subr.bf16.mxu1 %v4000_v50  ;;  %v1807_v50 = vld [vmem:[%s6131_s18 + $0x18] sm:$0xff] }
 0x4e9   : > { %4021 = vmatprep.subr.bf16.mxu0 %v4020_v40  ;;  %v4004_v40 = vpack.c.bf16 %v1617_v21, %v1613_v31  ;;  %v1825_v31 = vld [vmem:[%s6131_s18 + $0xa8] sm:$0xff]  ;;  %v1856_v21 = vld [vmem:[%s6131_s18 + $0x1a0] sm:$0xff] }
 0x4ea   : > { %v4080_v43 = vpack.c.bf16 %v1857_v51, %v1856_v21  ;;  %v1847_v21 = vld [vmem:[%s6131_s18 + $0x158] sm:$0xff]  ;;  %v1832_v51 = vld [vmem:[%s6131_s18 + $0xe0] sm:$0xff] }
 0x4ec   : > { %4023 = vmatpush1.bf16.msra.mxu0 %v4022_v23  ;;  %v1618_v23 = vld [vmem:[%s6129_s16 + $0x1f0] sm:$0xff] }
 0x4ed   : > { %4025 = vmatprep.subr.bf16.mxu0 %v4024_v13  ;;  %v4038_v18 = vpack.c.bf16 %v1618_v23, %v1614_v22  ;;  %v1852_v13 = vld [vmem:[%s6131_s18 + $0x180] sm:$0xff]  ;;  %v1841_v22 = vld [vmem:[%s6131_s18 + $0x128] sm:$0xff] }
 0x4ee   : > { %v4072_v10 = vpack.c.bf16 %v1853_v26, %v1852_v13  ;;  %v1810_v26 = vld [vmem:[%s6131_s18 + $0x30] sm:$0xff] }
 0x4f0   : > { %4027 = vmatpush1.bf16.msra.mxu0 %v4026_v30 }
 0x4f1   : > { %4029 = vmatprep.subr.bf16.mxu0 %v4028_v39  ;;  %v1836_v39 = vld [vmem:[%s6131_s18 + $0x100] sm:$0xff] }
 0x4f4   : > { %4031 = vmatpush1.bf16.msra.mxu0 %v4030_v27  ;;  %v1806_v27 = vld [vmem:[%s6131_s18 + $0x10] sm:$0xff] }
 0x4f5   : > { %v4046_v25 = vpack.c.bf16 %v1807_v50, %v1806_v27  ;;  %v1831_v27 = vld [vmem:[%s6131_s18 + $0xd8] sm:$0xff]  ;;  %v1862_v50 = vld [vmem:[%s6131_s18 + $0x1d0] sm:$0xff] }
 0x56b   : > { %v1532_v62 = vpop.xlane.xlu1 %1531 }
 0x56c   : > { %v1533_v12 = vmul.f32 0.0078125, %v1532_v62  ;;  %v1608_v62 = vld [vmem:[%s6129_s16 + $0x1a0] sm:$0xff] }
 0x56d   : > { %v4002_v8 = vpack.c.bf16 %v1608_v62, %v1604_v48  ;;  %v4044_v48 = vpack.c.bf16 %v1823_v38, %v1822_v41  ;;  %v1813_v41 = vld [vmem:[%s6131_s18 + $0x48] sm:$0xff] }
 0x56e   : > { %v5031_v34 = vsub.f32 %v4955_v60, %v1533_v12  ;;  %v4032_v12 = vpack.c.bf16 %v1611_v53, %v1607_v46  ;;  %v4074_v46 = vpack.c.bf16 %v1837_v36, %v1836_v39  ;;  %v1861_v39 = vld [vmem:[%s6131_s18 + $0x1c8] sm:$0xff]  ;;  %v1812_v36 = vld [vmem:[%s6131_s18 + $0x40] sm:$0xff] }
 0x56f   : > { %4003 = vmatpush1.bf16.msra.mxu1 %v4002_v8  ;;  %v4088_v38 = vpack.c.bf16 %v1861_v39, %v1860_v9  ;;  %v1620_v9 = vld [vmem:[%s6130_s17] sm:$0xf] }
 0x570   : > { %v1535_v57 = vmul.f32 %v5031_v34, %v5031_v34  ;;  %4033 = vmatprep.subr.bf16.mxu0 %v4032_v12  ;;  %4005 = vmatprep.subr.bf16.mxu1 %v4004_v40  ;;  %v1838_v12 = vld [vmem:[%s6131_s18 + $0x110] sm:$0xff]  ;;  %v1633_v39 = vrot.slane %v1620_v9, %v4726_v1 }
 0x572   : > { %1536 = vadd.xlane.f32.xlu0 %v1535_v57  ;;  %v1606_v57 = vld [vmem:[%s6129_s16 + $0x190] sm:$0xff] }
 0x573   : > { %v4034_v17 = vpack.c.bf16 %v1610_v52, %v1606_v57  ;;  %4007 = vmatpush1.bf16.msra.mxu1 %v4006_v7  ;;  %v1839_v57 = vld [vmem:[%s6131_s18 + $0x118] sm:$0xff]  ;;  %v1824_v52 = vld [vmem:[%s6131_s18 + $0xa0] sm:$0xff] }
 0x574   : > { %4041 = vmatprep.subr.bf16.mxu1 %v4040_v19  ;;  %v4078_v8 = vpack.c.bf16 %v1839_v57, %v1838_v12  ;;  %v4048_v40 = vpack.c.bf16 %v1825_v31, %v1824_v52  ;;  %v1859_v19 = vld [vmem:[%s6131_s18 + $0x1b8] sm:$0xff]  ;;  %v1814_v12 = vld [vmem:[%s6131_s18 + $0x50] sm:$0xff] }
 0x575   : > { %4035 = vmatpush1.bf16.msra.mxu0 %v4034_v17  ;;  %v1808_v17 = vld [vmem:[%s6131_s18 + $0x20] sm:$0xff]  ;;  %v1815_v57 = vld [vmem:[%s6131_s18 + $0x58] sm:$0xff]  ;;  %v1846_v52 = vld [vmem:[%s6131_s18 + $0x150] sm:$0xff] }
 0x576   : > { %4037 = vmatprep.subr.bf16.mxu0 %v4036_v24  ;;  %v1840_v24 = vld [vmem:[%s6131_s18 + $0x120] sm:$0xff]  ;;  %v4050_v23 = vpack.c.bf16 %v1809_v20, %v1808_v17  ;;  %v4062_v31 = vpack.c.bf16 %v1815_v57, %v1814_v12 }
 0x577   : > { %v4082_v7 = vpack.c.bf16 %v1841_v22, %v1840_v24  ;;  %v1816_v20 = vld [vmem:[%s6131_s18 + $0x60] sm:$0xff]  ;;  %v1817_v22 = vld [vmem:[%s6131_s18 + $0x68] sm:$0xff] }
 0x579   : > { %4039 = vmatpush1.bf16.msra.mxu0 %v4038_v18  ;;  %v1826_v18 = vld [vmem:[%s6131_s18 + $0xb0] sm:$0xff] }
 0x57a   : > { %4073 = vmatprep.subr.bf16.mxu0 %v4072_v10  ;;  %v4052_v13 = vpack.c.bf16 %v1827_v42, %v1826_v18  ;;  %v1811_v10 = vld [vmem:[%s6131_s18 + $0x38] sm:$0xff]  ;;  %v4066_v18 = vpack.c.bf16 %v1817_v22, %v1816_v20  ;;  %v1834_v42 = vld [vmem:[%s6131_s18 + $0xf0] sm:$0xff] }
 0x5ff   : > { %v1537_v11 = vpop.xlane.xlu0 %1536 }
 0x600   : > { %v1538_v29 = vmul.f32 0.0078125, %v1537_v11  ;;  %v4084_v11 = vpack.c.bf16 %v1859_v19, %v1858_v3  ;;  %v1835_v3 = vld [vmem:[%s6131_s18 + $0xf8] sm:$0xff] }
 0x602   : > { %v1539_v28 = vadd.f32 1e-05, %v1538_v29  ;;  %v4054_v29 = vpack.c.bf16 %v1811_v10, %v1810_v26  ;;  %v4068_v26 = vpack.c.bf16 %v1835_v3, %v1834_v42  ;;  %v1867_v10 = vld [vmem:[%s6131_s18 + $0x1f8] sm:$0xff] }
 0x604   : > { %4412 = vrsqrt.f32 %v1539_v28  ;;  %v1842_v28 = vld [vmem:[%s6131_s18 + $0x130] sm:$0xff] }
 0x60e   : > { %v4413_v30 = vpop.eup %4412 }
 0x60f   : > { %v1541_v37 = vmul.f32 %v4413_v30, %v5031_v34  ;;  %v1854_v34 = vld [vmem:[%s6131_s18 + $0x190] sm:$0xff] }
 0x610   : > { %v4076_v62 = vpack.c.bf16 %v1855_v4, %v1854_v34  ;;  %v4058_v34 = vpack.c.bf16 %v1813_v41, %v1812_v36  ;;  %v1844_v4 = vld [vmem:[%s6131_s18 + $0x140] sm:$0xff]  ;;  %v1629_v36 = vrot.slane %v1620_v9, %v4723_v63  ;;  %v1637_v41 = vrot.slane %v1620_v9, %v4729_v2 }
 0x611   : > { %v1548_v44 = vmul.f32 %v3468_v14, %v1541_v37  ;;  %v1843_v14 = vld [vmem:[%s6131_s18 + $0x138] sm:$0xff] }
 0x612   : > { %v4086_v30 = vpack.c.bf16 %v1843_v14, %v1842_v28  ;;  %v1850_v14 = vld [vmem:[%s6131_s18 + $0x170] sm:$0xff] }
 0x613   : > { %v1555_v53 = vadd.f32 %v3469_v15, %v1548_v44  ;;  %v1828_v15 = vld [vmem:[%s6131_s18 + $0xc0] sm:$0xff]  ;;  %v1845_v44 = vld [vmem:[%s6131_s18 + $0x148] sm:$0xff] }
 0x614   : > { %v4056_v37 = vpack.c.bf16 %v1829_v59, %v1828_v15 }
 0x615   : > { %1707 = vmatmul.mubr.f32.vlgmr.msra.gmra.mrb[0].mxu1 %v1555_v53  ;;  %1778 = vmatmul.mubr.f32.vlgmr.msra.gmra.mrb[4].mxu0 %v1555_v53  ;;  %v1863_v53 = vld [vmem:[%s6131_s18 + $0x1d8] sm:$0xff] }
 0x616   : > { %4043 = vmatpush3.bf16.msra.mxu1 %v4042_v45  ;;  %4075 = vmatpush3.bf16.msra.mxu0 %v4074_v46  ;;  %v1830_v45 = vld [vmem:[%s6131_s18 + $0xd0] sm:$0xff]  ;;  %v4090_v46 = vpack.c.bf16 %v1845_v44, %v1844_v4 }
 0x617   : > { %4045 = vmatprep.subr.bf16.mxu1 %v4044_v48  ;;  %4077 = vmatprep.subr.bf16.mxu0 %v4076_v62  ;;  %v4060_v48 = vpack.c.bf16 %v1831_v27, %v1830_v45  ;;  %v4092_v62 = vpack.c.bf16 %v1863_v53, %v1862_v50 }
 0x61a   : > { %4047 = vmatpush3.bf16.msra.mxu1 %v4046_v25  ;;  %4079 = vmatpush3.bf16.msra.mxu0 %v4078_v8  ;;  %v1833_v25 = vld [vmem:[%s6131_s18 + $0xe8] sm:$0xff]  ;;  %v4094_v8 = vpack.c.bf16 %v1847_v21, %v1846_v52 }
 0x61b   : > { %4049 = vmatprep.subr.bf16.mxu1 %v4048_v40  ;;  %4081 = vmatprep.subr.bf16.mxu0 %v4080_v43  ;;  %v4064_v17 = vpack.c.bf16 %v1833_v25, %v1832_v51  ;;  %v1864_v40 = vld [vmem:[%s6131_s18 + $0x1e0] sm:$0xff]  ;;  %v1865_v43 = vld [vmem:[%s6131_s18 + $0x1e8] sm:$0xff] }
 0x61c   : > { %v4096_v24 = vpack.c.bf16 %v1865_v43, %v1864_v40 }
 0x61e   : > { %4051 = vmatpush3.bf16.msra.mxu1 %v4050_v23  ;;  %4083 = vmatpush3.bf16.msra.mxu0 %v4082_v7  ;;  %v1848_v23 = vld [vmem:[%s6131_s18 + $0x160] sm:$0xff]  ;;  %v1849_v7 = vld [vmem:[%s6131_s18 + $0x168] sm:$0xff] }
 0x61f   : > { %4053 = vmatprep.subr.bf16.mxu1 %v4052_v13  ;;  %4085 = vmatprep.subr.bf16.mxu0 %v4084_v11  ;;  %v1866_v13 = vld [vmem:[%s6131_s18 + $0x1f0] sm:$0xff]  ;;  %v4098_v19 = vpack.c.bf16 %v1849_v7, %v1848_v23 }
 0x620   : > { %v1818_v11 = vld [vmem:[%s6131_s18 + $0x70] sm:$0xff]  ;;  %v4100_v28 = vpack.c.bf16 %v1867_v10, %v1866_v13  ;;  %v3470_v13 = vld [vmem:[%s6132_s19] ss:$0 sm:$0xff] }
 0x622   : > { %4055 = vmatpush3.bf16.msra.mxu1 %v4054_v29  ;;  %4087 = vmatpush3.bf16.msra.mxu0 %v4086_v30  ;;  %v1819_v29 = vld [vmem:[%s6131_s18 + $0x78] sm:$0xff] }
 0x623   : > { %4057 = vmatprep.subr.bf16.mxu1 %v4056_v37  ;;  %4089 = vmatprep.subr.bf16.mxu0 %v4088_v38  ;;  %v1851_v30 = vld [vmem:[%s6131_s18 + $0x178] sm:$0xff]  ;;  %v4070_v15 = vpack.c.bf16 %v1819_v29, %v1818_v11  ;;  %v1625_v37 = vrot.slane %v1620_v9, %v4738_v5 }
 0x624   : > { %v4102_v59 = vpack.c.bf16 %v1851_v30, %v1850_v14 }
 0x626   : > { %4059 = vmatpush3.bf16.msra.mxu1 %v4058_v34  ;;  %4091 = vmatpush3.bf16.msra.mxu0 %v4090_v46 }
 0x627   : > { %4061 = vmatprep.subr.bf16.mxu1 %v4060_v48  ;;  %4093 = vmatprep.subr.bf16.mxu0 %v4092_v62 }
 0x62a   : > { %4063 = vmatpush3.bf16.msra.mxu1 %v4062_v31  ;;  %4095 = vmatpush3.bf16.msra.mxu0 %v4094_v8 }
 0x62b   : > { %4065 = vmatprep.subr.bf16.mxu1 %v4064_v17  ;;  %4097 = vmatprep.subr.bf16.mxu0 %v4096_v24 }
 0x62e   : > { %4067 = vmatpush3.bf16.msra.mxu1 %v4066_v18  ;;  %4099 = vmatpush3.bf16.msra.mxu0 %v4098_v19 }
 0x62f   : > { %4069 = vmatprep.subr.bf16.mxu1 %v4068_v26  ;;  %4101 = vmatprep.subr.bf16.mxu0 %v4100_v28 }
 0x632   : > { %4071 = vmatpush3.bf16.msra.mxu1 %v4070_v15  ;;  %4103 = vmatpush3.bf16.msra.mxu0 %v4102_v59 }
 0x633   : > { %4104 = vmatprep.subr.bf16.mxu1 %v4485_v32  ;;  %3912 = vmatprep.subr.mxu0 %v4487_v35 }
 0x6e8   : > { %v1708_v38 = vpop.f32.mrb[0].mxu1  ;;  %v1779_v34 = vpop.f32.mrb[4].mxu0 }
 0x6e9   : > { %v1709_v4 = vadd.f32 %v1708_v38, %v1625_v37  ;;  %v1780_v44 = vadd.f32 %v1779_v34, %v1633_v39  ;;  %v1710_v45 = vpop.f32.mrb[1].mxu1  ;;  %v1781_v46 = vpop.f32.mrb[5].mxu0  ;;  %v3478_v37 = vld [vmem:[%s6122_s9 + $0x80] sm:$0xff]  ;;  %v3479_v39 = vld [vmem:[%s6122_s9 + $0x88] sm:$0xff] }
 0x6ea   : > { %v1711_v27 = vadd.f32 %v1710_v45, %v1629_v36  ;;  %v1782_v50 = vadd.f32 %v1781_v46, %v1637_v41  ;;  %v4105_v36 = vpack.c.bf16 %v3479_v39, %v3478_v37  ;;  %v3481_v41 = vld [vmem:[%s6122_s9 + $0x98] sm:$0xff]  ;;  %v3482_v34 = vld [vmem:[%s6122_s9 + $0xa0] sm:$0xff]  ;;  %v3484_v45 = vld [vmem:[%s6122_s9 + $0xb0] sm:$0xff] }
 0x6eb   : > { %v1788_v53 = vmul.f32 0.70710677, %v1709_v4  ;;  %v1790_v48 = vmul.f32 0.70710677, %v1780_v44  ;;  %v1784_v40 = vmul.f32 0.5, %v1709_v4  ;;  %v1786_v24 = vmul.f32 0.5, %v1780_v44 }
 0x6ec   : > { %v1789_v62 = vmul.f32 0.70710677, %v1711_v27  ;;  %v1791_v12 = vmul.f32 0.70710677, %v1782_v50  ;;  %v1785_v8 = vmul.f32 0.5, %v1711_v27  ;;  %v1787_v43 = vmul.f32 0.5, %v1782_v50 }
 0x6ed   : > { %4414 = verf.f32 %v1788_v53  ;;  %v3483_v4 = vld [vmem:[%s6122_s9 + $0xa8] sm:$0xff]  ;;  %v3485_v46 = vld [vmem:[%s6122_s9 + $0xb8] sm:$0xff]  ;;  %v3486_v50 = vld [vmem:[%s6122_s9 + $0xc0] sm:$0xff] }
 0x6ee   : > { %4416 = verf.f32 %v1790_v48  ;;  %v4111_v44 = vpack.c.bf16 %v3483_v4, %v3482_v34  ;;  %v4114_v27 = vpack.c.bf16 %v3485_v46, %v3484_v45  ;;  %v3487_v53 = vld [vmem:[%s6122_s9 + $0xc8] sm:$0xff] }
 0x6ef   : > { %4418 = verf.f32 %v1789_v62  ;;  %v4117_v48 = vpack.c.bf16 %v3487_v53, %v3486_v50  ;;  %v3488_v62 = vld [vmem:[%s6122_s9 + $0xd0] sm:$0xff] }
 0x6f0   : > { %4420 = verf.f32 %v1791_v12  ;;  %v3489_v12 = vld [vmem:[%s6122_s9 + $0xd8] sm:$0xff] }
 0x6f7   : > { %v4415_v57 = vpop.eup %4414 }
 0x6f8   : > { %v4417_v52 = vpop.eup %4416  ;;  %v1796_v21 = vadd.f32 1.0, %v4415_v57  ;;  %v4120_v57 = vpack.c.bf16 %v3489_v12, %v3488_v62 }
 0x6f9   : > { %v4419_v31 = vpop.eup %4418  ;;  %v1798_v25 = vadd.f32 1.0, %v4417_v52  ;;  %v3490_v52 = vld [vmem:[%s6122_s9 + $0xe0] sm:$0xff] }
 0x6fa   : > { %v4421_v51 = vpop.eup %4420  ;;  %v1797_v17 = vadd.f32 1.0, %v4419_v31  ;;  %v1800_v23 = vmul.f32 %v1796_v21, %v1784_v40  ;;  %v3491_v31 = vld [vmem:[%s6122_s9 + $0xe8] sm:$0xff] }
 0x6fb   : > { %v1799_v20 = vadd.f32 1.0, %v4421_v51  ;;  %v1802_v18 = vmul.f32 %v1798_v25, %v1786_v24  ;;  %v4123_v21 = vpack.c.bf16 %v3491_v31, %v3490_v52  ;;  %v3492_v51 = vld [vmem:[%s6122_s9 + $0xf0] sm:$0xff]  ;;  %v3493_v25 = vld [vmem:[%s6122_s9 + $0xf8] sm:$0xff]  ;;  %v3473_v24 = vld [vmem:[%s6160_s29 + $0x1] ss:$0 sm:$0xff] }
 0x6fc   : > { %v1801_v22 = vmul.f32 %v1797_v17, %v1785_v8  ;;  %v4126_v8 = vpack.c.bf16 %v3493_v25, %v3492_v51  ;;  %v3494_v51 = vld [vmem:[%s6123_s10 + $0x4] sm:$0xf] }
 0x6fd   : > { %v1803_v7 = vmul.f32 %v1799_v20, %v1787_v43 }
 0x6fe   : > { %1939 = vmatprep.mubr.f32.mxu1 %v1801_v22 }
 0x6ff   : > { %2009 = vmatprep.mubr.f32.mxu0 %v1803_v7  ;;  %1940 = vmatmul.mubr.f32.vlgmr.msra.gmra.mrb[2].mxu1 %v1800_v23  ;;  %v3474_v23 = vld [vmem:[%s6161_s30 + $0x1] ss:$0 sm:$0xff]  ;;  %v3475_v7 = vld [vmem:[%s6162_s1 + $0x4] sm:$0xf] }
 0x700   : > { %2010 = vmatmul.mubr.f32.vlgmr.msra.gmra.mrb[6].mxu0 %v1802_v18  ;;  %3909 = vmatprep.mubr.msk.f32.mxu1 %vm4486_vm7, %v4487_v35 }
 0x701   : > { %3914 = vmatprep.mubr.msk.f32.mxu0 %vm4486_vm7, %v4487_v35  ;;  %4106 = vmatpush3.bf16.msra.mxu1 %v4105_v36 }
 0x702   : > { %4107 = vmatprep.subr.bf16.mxu1 %v4485_v32  ;;  %3913 = vmatpush3.msk.msra.mxu0 %vm789_vm3, %v3494_v51 }
 0x7d2   : > { %v3693_v42 = vpop.f32.mrb[2].mxu1 }
 0x7d3   : > { %v3728_v3 = vpop.f32.mrb[6].mxu0  ;;  %v3694_v19 = vpop.f32.mrb[3].mxu1 }
 0x7d4   : > { %v3695_v26 = vadd.f32 %v3694_v19, %v3693_v42  ;;  %v3729_v10 = vpop.f32.mrb[7].mxu0  ;;  %v2094_v19 = vrot.slane %v3475_v7, %v4729_v2 }
 0x7d5   : > { %v3730_v11 = vadd.f32 %v3729_v10, %v3728_v3  ;;  %v2068_v3 = vrot.slane %v3475_v7, %v4723_v63 }
 0x7d6   : > { %v1942_v29 = vadd.f32 %v3695_v26, %v3470_v13  ;;  %v2081_v13 = vrot.slane %v3475_v7, %v4726_v1  ;;  %v2056_v26 = vrot.slane %v3475_v7, %v4738_v5 }
 0x7d8   : > { %v2012_v28 = vadd.f32 %v3730_v11, %v1942_v29  ;;  %v3477_v29 = vld [vmem:[%s6121_s8 + $0x1] ss:$0 sm:$0xff] }
 0x7da   : > { %v5371_v14 = vadd.f32 %v2012_v28, %v4955_v60  ;;  %v3480_v60 = vld [vmem:[%s6122_s9 + $0x90] sm:$0xff] }
 0x7db   : > { %v4108_v38 = vpack.c.bf16 %v3481_v41, %v3480_v60 }
 0x7dc   : > { %2020 = vadd.xlane.f32.xlu0 %v5371_v14 }
 0x7dd   : > { %4109 = vmatpush3.bf16.msra.mxu1 %v4108_v38 }
 0x7de   : > { %4110 = vmatprep.subr.bf16.mxu1 %v4485_v32 }
 0x7e1   : > { %4112 = vmatpush3.bf16.msra.mxu1 %v4111_v44 }
 0x7e2   : > { %4113 = vmatprep.subr.bf16.mxu1 %v4485_v32 }
 0x7e5   : > { %4115 = vmatpush3.bf16.msra.mxu1 %v4114_v27 }
 0x7e6   : > { %4116 = vmatprep.subr.bf16.mxu1 %v4485_v32 }
 0x7e9   : > { %4118 = vmatpush3.bf16.msra.mxu1 %v4117_v48 }
 0x7ea   : > { %4119 = vmatprep.subr.bf16.mxu1 %v4485_v32 }
 0x7ed   : > { %4121 = vmatpush3.bf16.msra.mxu1 %v4120_v57 }
 0x7ee   : > { %4122 = vmatprep.subr.bf16.mxu1 %v4485_v32 }
 0x7f1   : > { %4124 = vmatpush3.bf16.msra.mxu1 %v4123_v21 }
 0x7f2   : > { %4125 = vmatprep.subr.bf16.mxu1 %v4485_v32 }
 0x7f5   : > { %4127 = vmatpush3.bf16.msra.mxu1 %v4126_v8 }
 0x869   : > { %v2021_v30 = vpop.xlane.xlu0 %2020 }
 0x86a   : > { %v2022_v15 = vmul.f32 0.0078125, %v2021_v30 }
 0x86c   : > { %v2023_v59 = vsub.f32 %v5371_v14, %v2022_v15 }
 0x86e   : > { %v2024_v9 = vmul.f32 %v2023_v59, %v2023_v59 }
 0x870   : > { %2025 = vadd.xlane.f32.xlu0 %v2024_v9 }
 0x8fd   : > { %v2026_v17 = vpop.xlane.xlu0 %2025 }
 0x8fe   : > { %v2027_v40 = vmul.f32 0.0078125, %v2026_v17 }
 0x900   : > { %v2028_v43 = vadd.f32 1e-05, %v2027_v40 }
 0x902   : > { %4422 = vrsqrt.f32 %v2028_v43 }
 0x90c   : > { %v4423_v20 = vpop.eup %4422 }
 0x90d   : > { %v2030_v22 = vmul.f32 %v4423_v20, %v2023_v59 }
 0x90f   : > { %v2037_v18 = vmul.f32 %v3473_v24, %v2030_v22 }
 0x911   : > { %v2044_v42 = vadd.f32 %v3474_v23, %v2037_v18  ;;  %v6165_v18 = vmov 7  }
 0x913   : > { %v2048_v10 = vrot.slane %v2044_v42, 5 }
 0x915   : > { %v2050_v11 = vsel %vm787_vm2, 0.0, %v2048_v10  ;;  %v2070_v28 = vmul.f32 %v2068_v3, %v2048_v10  ;;  %v2083_v30 = vmul.f32 %v2081_v13, %v2048_v10  ;;  %v2096_v15 = vmul.f32 %v2094_v19, %v2048_v10 }
 0x916   : > { %v2057_v59 = vmul.f32 %v2056_v26, %v2050_v11  ;;  %v2069_v9 = vmul.f32 %v2068_v3, %v2050_v11  ;;  %v2082_v37 = vmul.f32 %v2081_v13, %v2050_v11  ;;  %v2095_v39 = vmul.f32 %v2094_v19, %v2050_v11 }
 0x917   : > { %v2074_v60 = vrot.slane %v2070_v28, 1  ;;  %v2087_v34 = vrot.slane %v2083_v30, 2  ;;  %v2100_v45 = vrot.slane %v2096_v15, 3 }
 0x918   : > { %v2064_v36 = vadd.f32 %v3477_v29, %v2057_v59  ;;  %v2073_v41 = vrot.slane %v2069_v9, 1  ;;  %v2086_v38 = vrot.slane %v2082_v37, 2  ;;  %v2099_v44 = vrot.slane %v2095_v39, 3  ;;  %v5510_v39 = vld [vmem:[%s6125_s12 + $0x10] sm:$0xff] }
 0x91a   : > { %v2075_v4 = vsel %vm795_vm6, %v2073_v41, %v2074_v60  ;;  %v2088_v27 = vsel %vm793_vm5, %v2086_v38, %v2087_v34  ;;  %v2101_v53 = vsel %vm791_vm4, %v2099_v44, %v2100_v45  ;;  %v5523_v44 = vld [vmem:[%s6125_s12 + $0x18] sm:$0xff] }
 0x91b   : > { %v2077_v46 = vadd.f32 %v2075_v4, %v2064_v36 }
 0x91d   : > { %v2090_v50 = vadd.f32 %v2088_v27, %v2077_v46 }
 0x91f   : > { %v2103_v48 = vadd.f32 %v2101_v53, %v2090_v50 }
 0x921   : > { %v2104_v62 = vsub.f32 0.0, %v2103_v48 }
 0x923   : > { %v2105_v12 = vmul.f32 1.442695, %v2104_v62 }
 0x925   : > { %4424 = vpow2.f32 %v2105_v12 }
 0x92f   : > { %v4425_v57 = vpop.eup %4424 }
 0x930   : > { %v2107_v52 = vadd.f32 1.0, %v4425_v57 }
 0x932   : > { %4426 = vrcp.f32 %v2107_v52 }
 0x93c   : > { %v4427_v31 = vpop.eup %4426 }
 0x93d   : > { %v5450_v21 = vmul.f32 %v4427_v31, %v2103_v48 }
 0x93f   : > { %3910 = vmatmul.mubr.f32.vlgmr.msra.gmra.mrb[4].mxu1 %v5450_v21 }
 0x940   : > { %2936 = vmatprep.mubr.f32.mxu1 %v4487_v35 }
 0xa12   : > { %v2194_v25 = vpop.f32.mrb[4].mxu1 }
 0xa13   : > { %2234 = vrot.lane.b32.xlu0 %v2194_v25, %s6163_s23  ;;  %2199 = vrot.lane.b32.xlu1 %v2194_v25, %s6164_s25  ;;  %v3911_v8 = vpop.f32.mrb[5].mxu1  ;;  %s6166_s23 = sld [smem:[#allocation11_spill]] }
 0xa14   : > { %3915 = vmatmul.mubr.msk.f32.vlgmr.msra.gmra.mrb[8].mxu0 %vm1054_vm8, %v2194_v25 }
 0xa15   : > { %3007 = vmatprep.mubr.f32.mxu0 %v4487_v35 }
 0xa19   : > { %s739_s25 = scalar_lea.vmem %s6166_s23, %s4626_s24 }
 0xa85   : > { %v2235_v17 = vpop.permute.xlu0 %2234  ;;  %v2200_v40 = vpop.permute.xlu1 %2199 }
 0xa86   : > { %2237 = vxpose.xlu0.b32.start.end [1/1] (short) (narrow) %v2235_v17, 16  ;;  %2202 = vxpose.xlu1.b32.start.end [1/1] (short) (narrow) %v2200_v40, 16 }
 0xaa4   : > { %4335 = vset.pattern.permute.xlu1 %v4492_v55 }
 0xaaf   : > { %4334 = vset.pattern.permute.xlu0 %v4484_v0 }
 0xae7   : > { %v2350_v43 = vpop.f32.mrb[8].mxu0 }
 0xae8   : > { %v3916_v20 = vpop.f32.mrb[9].mxu0 }
 0xb06   : > { %v2218_v24 = vpop.trf.xlu1  ;;  %v2253_v22 = vpop.trf.xlu0 }
 0xb07   : > { %2435 = vperm.xlu1 %4335, %v2218_v24   ;;  %2387 = vperm.xlu0 %4334, %v2218_v24  }
 0xb0a   : > { %v2219_v23 = vpop.trf.xlu1  ;;  %v2254_v7 = vpop.trf.xlu0 }
 0xb0b   : > { %4336 = vset.pattern.permute.xlu1 %v4491_v54  ;;  %4338 = vset.pattern.permute.xlu0 %v4493_v56 }
 0xb0c   : > { %2480 = vperm.xlu1 %4336, %v2218_v24   ;;  %2570 = vperm.xlu0 %4338, %v2218_v24  }
 0xb10   : > { %4337 = vset.pattern.permute.xlu1 %v4494_v58  ;;  %4341 = vset.pattern.permute.xlu0 %v4484_v0 }
 0xb11   : > { %2525 = vperm.xlu1 %4337, %v2218_v24   ;;  %2405 = vperm.xlu0 %4341, %v2253_v22  }
 0xb15   : > { %4339 = vset.pattern.permute.xlu1 %v4495_v61  ;;  %4344 = vset.pattern.permute.xlu0 %v4494_v58 }
 0xb16   : > { %2615 = vperm.xlu1 %4339, %v2218_v24   ;;  %2541 = vperm.xlu0 %4344, %v2253_v22  }
 0xb1a   : > { %4340 = vset.pattern.permute.xlu1 %v4490_v49  ;;  %4347 = vset.pattern.permute.xlu0 %v4495_v61 }
 0xb1b   : > { %2660 = vperm.xlu1 %4340, %v2218_v24   ;;  %2631 = vperm.xlu0 %4347, %v2253_v22  }
 0xb1f   : > { %4342 = vset.pattern.permute.xlu1 %v4492_v55  ;;  %4351 = vset.pattern.permute.xlu0 %v4491_v54 }
 0xb20   : > { %2451 = vperm.xlu1 %4342, %v2253_v22   ;;  %2484 = vperm.xlu0 %4351, %v2219_v23  }
 0xb24   : > { %4343 = vset.pattern.permute.xlu1 %v4491_v54  ;;  %4354 = vset.pattern.permute.xlu0 %v4495_v61 }
 0xb25   : > { %2496 = vperm.xlu1 %4343, %v2253_v22   ;;  %2619 = vperm.xlu0 %4354, %v2219_v23  }
 0xb29   : > { %4345 = vset.pattern.permute.xlu1 %v6165_v18  ;;  %4357 = vset.pattern.permute.xlu0 %v4492_v55 }
 0xb2a   : > { %2705 = vperm.xlu1 %4345, %v2218_v24   ;;  %2455 = vperm.xlu0 %4357, %v2254_v7  }
 0xb2e   : > { %4346 = vset.pattern.permute.xlu1 %v4493_v56  ;;  %4360 = vset.pattern.permute.xlu0 %v6165_v18 }
 0xb2f   : > { %2586 = vperm.xlu1 %4346, %v2253_v22   ;;  %2709 = vperm.xlu0 %4360, %v2219_v23  }
 0xb33   : > { %4348 = vset.pattern.permute.xlu1 %v4490_v49  ;;  %4363 = vset.pattern.permute.xlu0 %v4490_v49 }
 0xb34   : > { %2676 = vperm.xlu1 %4348, %v2253_v22   ;;  %2680 = vperm.xlu0 %4363, %v2254_v7  }
 0xb38   : > { %4349 = vset.pattern.permute.xlu1 %v4484_v0  ;;  %4365 = vset.pattern.permute.xlu0 %v6165_v18 }
 0xb39   : > { %2392 = vperm.xlu1 %4349, %v2219_v23  }
 0xb3d   : > { %4350 = vset.pattern.permute.xlu1 %v4492_v55  ;;  %v3496_v55 = vld [vmem:[%s6124_s11 + $0x1] ss:$0 sm:$0xff] }
 0xb3e   : > { %2439 = vperm.xlu1 %4350, %v2219_v23   ;;  %v2351_v42 = vadd.f32 %v3496_v55, %v2350_v43 }
 0xb40   : > { %v2355_v3 = vand.u32 2147483647, %v2351_v42  ;;  %v2354_v30 = vmax.f32 %v2351_v42, 0.0 }
 0xb42   : > { %4352 = vset.pattern.permute.xlu1 %v4494_v58 }
 0xb43   : > { %2529 = vperm.xlu1 %4352, %v2219_v23  }
 0xb47   : > { %4353 = vset.pattern.permute.xlu1 %v4493_v56 }
 0xb48   : > { %2574 = vperm.xlu1 %4353, %v2219_v23  }
 0xb4c   : > { %4355 = vset.pattern.permute.xlu1 %v4490_v49  ;;  %v2356_v49 = vsub.f32 0.0, %v2355_v3 }
 0xb4d   : > { %2664 = vperm.xlu1 %4355, %v2219_v23  }
 0xb51   : > { %4356 = vset.pattern.permute.xlu1 %v4484_v0  ;;  %v2357_v0 = vmul.f32 1.442695, %v2356_v49 }
 0xb52   : > { %2410 = vperm.xlu1 %4356, %v2254_v7  }
 0xb53   : > { %4428 = vpow2.f32 %v2357_v0 }
 0xb56   : > { %4358 = vset.pattern.permute.xlu1 %v4491_v54 }
 0xb57   : > { %2500 = vperm.xlu1 %4358, %v2254_v7  }
 0xb5b   : > { %4359 = vset.pattern.permute.xlu1 %v4494_v58 }
 0xb5c   : > { %2545 = vperm.xlu1 %4359, %v2254_v7  }
 0xb5d   : > { %v4429_v54 = vpop.eup %4428 }
 0xb5e   : > { %v2359_v13 = vadd.f32 1.0, %v4429_v54  ;;  %v2362_v58 = vmul.f32 -0.5, %v4429_v54  ;;  %v2365_v11 = vand.u32 2147483647, %v4429_v54 }
 0xb60   : > { %4361 = vset.pattern.permute.xlu1 %v4493_v56  ;;  %4430 = vlog2.f32 %v2359_v13  ;;  %v2363_v10 = vadd.f32 1.0, %v2362_v58  ;;  %vm2366_vm10 = vcmp.lt.f32.partialorder %v2365_v11, 0.0004427343 }
 0xb61   : > { %2590 = vperm.xlu1 %4361, %v2254_v7  }
 0xb62   : > { %v2364_v28 = vmul.f32 %v4429_v54, %v2363_v10 }
 0xb65   : > { %4362 = vset.pattern.permute.xlu1 %v4495_v61 }
 0xb66   : > { %2635 = vperm.xlu1 %4362, %v2254_v7  }
 0xb6a   : > { %4364 = vset.pattern.permute.xlu1 %v6165_v18  ;;  %v4431_v26 = vpop.eup %4430 }
 0xb6b   : > { %2721 = vperm.xlu1 %4364, %v2253_v22   ;;  %v2361_v56 = vmul.f32 0.6931472, %v4431_v26 }
 0xb6d   : > { %v2367_v61 = vsel %vm2366_vm10, %v2364_v28, %v2361_v56 }
 0xb6e   : > { %v5501_v59 = vadd.f32 %v2367_v61, %v2354_v30 }
 0xb6f   : > { %2725 = vperm.xlu1 %4364, %v2254_v7  }
 0xb70   : > { %v2376_v9 = vrot.slane %v5501_v59, %v4738_v5  ;;  %v2425_v38 = vrot.slane %v5501_v59, %v4723_v63  ;;  %v2470_v53 = vrot.slane %v5501_v59, %v4726_v1  ;;  %v5532_v48 = vmul.f32 %v5501_v59, %v5450_v21 }
 0xb71   : > { %v2515_v40 = vrot.slane %v5501_v59, %v4729_v2  ;;  %v2560_v3 = vrot.slane %v5501_v59, %v4863_v16  ;;  %v2605_v30 = vrot.slane %v5501_v59, %v4880_v47 }
 0xb72   : > { %v2377_v60 = vmul.f32 %v5510_v39, %v2376_v9  ;;  %v2426_v4 = vmul.f32 %v5510_v39, %v2425_v38  ;;  %v2378_v27 = vmul.f32 %v5523_v44, %v2376_v9  ;;  %v2471_v57 = vmul.f32 %v5510_v39, %v2470_v53 }
 0xb73   : > { %v2398_v31 = vrot.slane %v5532_v48, %v4738_v5  ;;  %v2427_v51 = vmul.f32 %v5523_v44, %v2425_v38  ;;  %v2472_v23 = vmul.f32 %v5523_v44, %v2470_v53  ;;  %v2516_v18 = vmul.f32 %v5510_v39, %v2515_v40 }
 0xb74   : > { %v2379_v41 = vmul.f32 1.442695, %v2377_v60  ;;  %v2428_v50 = vmul.f32 1.442695, %v2426_v4  ;;  %v2381_v62 = vmul.f32 1.442695, %v2378_v27  ;;  %v2517_v54 = vmul.f32 %v5523_v44, %v2515_v40 }
 0xb75   : > { %v2473_v17 = vmul.f32 1.442695, %v2471_v57  ;;  %v2430_v24 = vmul.f32 1.442695, %v2427_v51  ;;  %v2475_v0 = vmul.f32 1.442695, %v2472_v23  ;;  %v2445_v58 = vrot.slane %v5532_v48, %v4723_v63 }
 0xb76   : > { %4432 = vpow2.f32 %v2379_v41  ;;  %v2518_v26 = vmul.f32 1.442695, %v2516_v18  ;;  %v2520_v56 = vmul.f32 1.442695, %v2517_v54  ;;  %v2562_v28 = vmul.f32 %v5523_v44, %v2560_v3 }
 0xb77   : > { %4434 = vpow2.f32 %v2428_v50  ;;  %v2561_v60 = vmul.f32 %v5510_v39, %v2560_v3  ;;  %v2606_v18 = vmul.f32 %v5510_v39, %v2605_v30 }
 0xb78   : > { %4436 = vpow2.f32 %v2381_v62  ;;  %v2490_v62 = vrot.slane %v5532_v48, %v4726_v1 }
 0xb79   : > { %4438 = vpow2.f32 %v2473_v17  ;;  %v2563_v57 = vmul.f32 1.442695, %v2561_v60 }
 0xb7a   : > { %4440 = vpow2.f32 %v2430_v24 }
 0xb7b   : > { %4442 = vpow2.f32 %v2475_v0 }
 0xb7c   : > { %4444 = vpow2.f32 %v2518_v26 }
 0xb7d   : > { %4446 = vpow2.f32 %v2520_v56  ;;  %v2608_v56 = vmul.f32 1.442695, %v2606_v18 }
 0xb80   : > { %v4433_v25 = vpop.eup %4432 }
 0xb81   : > { %v2383_v43 = vmul.f32 0.0, %v4433_v25  ;;  %v4435_v55 = vpop.eup %4434 }
 0xb82   : > { %v4437_v10 = vpop.eup %4436 }
 0xb83   : > { %v2384_v38 = vmul.f32 0.0, %v4437_v10 }
 0xb86   : > { %v2436_v19 = vpop.permute.xlu1 %2435  ;;  %v2388_v45 = vpop.permute.xlu0 %2387 }
 0xb87   : > { %v2399_v8 = vmul.f32 %v2398_v31, %v2388_v45  ;;  %v2446_v11 = vmul.f32 %v2445_v58, %v2436_v19  ;;  %v4439_v45 = vpop.eup %4438  ;;  %v2565_v19 = vmul.f32 1.442695, %v2562_v28 }
 0xb88   : > { %v4441_v50 = vpop.eup %4440 }
 0xb89   : > { %v5549_v7 = vadd.f32 %v2399_v8, %v2383_v43  ;;  %v2607_v8 = vmul.f32 %v5523_v44, %v2605_v30  ;;  %4448 = vpow2.f32 %v2565_v19  ;;  %v4443_v23 = vpop.eup %4442 }
 0xb8a   : > { %4450 = vpow2.f32 %v2563_v57  ;;  %v4445_v26 = vpop.eup %4444 }
 0xb8b   : > { %v5497_v29 = vpop.permute.xlu1 %2480  ;;  %v5534_v12 = vpop.permute.xlu0 %2570  ;;  %v2432_v13 = vmul.f32 %v4435_v55, %v5549_v7  ;;  %v2650_v55 = vrot.slane %v5501_v59, %v4897_v33  ;;  %v2610_v3 = vmul.f32 1.442695, %v2607_v8 }
 0xb8c   : > { %v2491_v17 = vmul.f32 %v2490_v62, %v5497_v29  ;;  %v2535_v29 = vrot.slane %v5532_v48, %v4729_v2 }
 0xb8d   : > { %v5563_v61 = vadd.f32 %v2446_v11, %v2432_v13  ;;  %v4447_v11 = vpop.eup %4446  ;;  %4452 = vpow2.f32 %v2610_v3  ;;  %v2652_v28 = vmul.f32 %v5523_v44, %v2650_v55 }
 0xb8e   : > { %4454 = vpow2.f32 %v2608_v56 }
 0xb8f   : > { %v2477_v53 = vmul.f32 %v4439_v45, %v5563_v61 }
 0xb90   : > { %v5499_v15 = vpop.permute.xlu1 %2525  ;;  %v5546_v22 = vpop.permute.xlu0 %2405 }
 0xb91   : > { %v5578_v43 = vadd.f32 %v2491_v17, %v2477_v53  ;;  %v2536_v30 = vmul.f32 %v2535_v29, %v5499_v15  ;;  %v2651_v53 = vmul.f32 %v5510_v39, %v2650_v55 }
 0xb93   : > { %v2653_v15 = vmul.f32 1.442695, %v2651_v53 }
 0xb95   : > { %v5505_v37 = vpop.permute.xlu1 %2615  ;;  %v5552_v42 = vpop.permute.xlu0 %2541 }
 0xb9a   : > { %v5513_v36 = vpop.permute.xlu1 %2660  ;;  %v5568_v41 = vpop.permute.xlu0 %2631 }
 0xb9f   : > { %v5517_v34 = vpop.permute.xlu1 %2451  ;;  %v2485_v40 = vpop.permute.xlu0 %2484 }
 0xba0   : > { %v2492_v0 = vmul.f32 %v2490_v62, %v2485_v40  ;;  %v2655_v62 = vmul.f32 1.442695, %v2652_v28 }
 0xba2   : > { %4456 = vpow2.f32 %v2655_v62 }
 0xba3   : > { %4458 = vpow2.f32 %v2653_v15 }
 0xba4   : > { %v5525_v46 = vpop.permute.xlu1 %2496  ;;  %v2620_v18 = vpop.permute.xlu0 %2619 }
 0xba9   : > { %v5537_v52 = vpop.permute.xlu1 %2705 }
 0xbae   : > { %v5544_v20 = vpop.permute.xlu1 %2586 }
 0xbb3   : > { %v5556_v49 = vpop.permute.xlu1 %2676 }
 0xbb8   : > { %v2393_v9 = vpop.permute.xlu1 %2392 }
 0xbb9   : > { %v2400_v4 = vmul.f32 %v2398_v31, %v2393_v9 }
 0xbbb   : > { %v5570_v27 = vadd.f32 %v2400_v4, %v2384_v38  ;;  %v2580_v4 = vrot.slane %v5532_v48, %v4863_v16  ;;  %v2625_v16 = vrot.slane %v5532_v48, %v4880_v47 }
 0xbbd   : > { %v2440_v51 = vpop.permute.xlu1 %2439  ;;  %v2433_v25 = vmul.f32 %v4441_v50, %v5570_v27  ;;  %v4449_v50 = vpop.eup %4448  ;;  %v2581_v40 = vmul.f32 %v2580_v4, %v5534_v12  ;;  %v2626_v56 = vmul.f32 %v2625_v16, %v5505_v37  ;;  %v2503_v37 = vmul.f32 %v5525_v46, %v5578_v43 }
 0xbbe   : > { %v2447_v31 = vmul.f32 %v2445_v58, %v2440_v51  ;;  %v2522_v58 = vmul.f32 %v4445_v26, %v5578_v43 }
 0xbc0   : > { %v2449_v24 = vadd.f32 %v2447_v31, %v2433_v25  ;;  %v2538_v45 = vadd.f32 %v2536_v30, %v2522_v58  ;;  %v4451_v25 = vpop.eup %4450 }
 0xbc2   : > { %v2478_v54 = vmul.f32 %v4443_v23, %v2449_v24  ;;  %v2530_v13 = vpop.permute.xlu1 %2529  ;;  %v2567_v8 = vmul.f32 %v4451_v25, %v2538_v45  ;;  %v4453_v23 = vpop.eup %4452 }
 0xbc3   : > { %v2537_v60 = vmul.f32 %v2535_v29, %v2530_v13  ;;  %v2695_v13 = vrot.slane %v5501_v59, %v4908_v6  ;;  %v4455_v26 = vpop.eup %4454 }
 0xbc4   : > { %v2494_v10 = vadd.f32 %v2492_v0, %v2478_v54  ;;  %v2583_v3 = vadd.f32 %v2581_v40, %v2567_v8  ;;  %v2627_v54 = vmul.f32 %v2625_v16, %v2620_v18  ;;  %v4457_v30 = vpop.eup %4456 }
 0xbc5   : > { %v2697_v28 = vmul.f32 %v5523_v44, %v2695_v13 }
 0xbc6   : > { %v2523_v9 = vmul.f32 %v4447_v11, %v2494_v10  ;;  %v2612_v29 = vmul.f32 %v4455_v26, %v2583_v3  ;;  %v2456_v11 = vpop.permute.xlu0 %2455 }
 0xbc7   : > { %v2575_v38 = vpop.permute.xlu1 %2574  ;;  %v2459_v53 = vmul.f32 %v2456_v11, %v2449_v24  ;;  %v2700_v44 = vmul.f32 1.442695, %v2697_v28 }
 0xbc8   : > { %v2539_v19 = vadd.f32 %v2537_v60, %v2523_v9  ;;  %v2582_v51 = vmul.f32 %v2580_v4, %v2575_v38  ;;  %v2696_v9 = vmul.f32 %v5510_v39, %v2695_v13  ;;  %v2670_v60 = vrot.slane %v5532_v48, %v4897_v33 }
 0xbc9   : > { %v2628_v38 = vadd.f32 %v2626_v56, %v2612_v29  ;;  %v2458_v39 = vmul.f32 %v5517_v34, %v5563_v61  ;;  %4460 = vpow2.f32 %v2700_v44  ;;  %v2593_v34 = vmul.f32 %v5544_v20, %v2583_v3 }
 0xbca   : > { %v2568_v57 = vmul.f32 %v4449_v50, %v2539_v19  ;;  %v2413_v50 = vmul.f32 %v5546_v22, %v5549_v7  ;;  %v2698_v8 = vmul.f32 1.442695, %v2696_v9  ;;  %v2671_v24 = vmul.f32 %v2670_v60, %v5513_v36 }
 0xbcb   : > { %v2460_v7 = vadd.f32 %v2459_v53, %v2458_v39 }
 0xbcc   : > { %v2584_v17 = vadd.f32 %v2582_v51, %v2568_v57  ;;  %v2665_v31 = vpop.permute.xlu1 %2664  ;;  %v4459_v57 = vpop.eup %4458  ;;  %4462 = vpow2.f32 %v2698_v8 }
 0xbcd   : > { %v2672_v62 = vmul.f32 %v2670_v60, %v2665_v31  ;;  %v2710_v51 = vpop.permute.xlu0 %2709  ;;  %v2461_v61 = vrot.slane %v2460_v7, 4 }
 0xbce   : > { %v2613_v0 = vmul.f32 %v4453_v23, %v2584_v17 }
 0xbcf   : > { %v2462_v26 = vadd.f32 %v2461_v61, %v2460_v7 }
 0xbd0   : > { %v2629_v58 = vadd.f32 %v2627_v54, %v2613_v0 }
 0xbd1   : > { %v2411_v55 = vpop.permute.xlu1 %2410  ;;  %v2681_v43 = vpop.permute.xlu0 %2680 }
 0xbd2   : > { %v2414_v47 = vmul.f32 %v2411_v55, %v5570_v27  ;;  %v2658_v4 = vmul.f32 %v4457_v30, %v2629_v58  ;;  %v2548_v27 = vmul.f32 %v5552_v42, %v2538_v45  ;;  %v2715_v30 = vrot.slane %v5532_v48, %v4908_v6 }
 0xbd4   : > { %v2415_v33 = vadd.f32 %v2414_v47, %v2413_v50  ;;  %v2674_v15 = vadd.f32 %v2672_v62, %v2658_v4  ;;  %v4461_v47 = vpop.eup %4460  ;;  %v2716_v60 = vmul.f32 %v2715_v30, %v5537_v52  ;;  %v2463_v4 = vrot.slane %v2462_v26, 2 }
 0xbd6   : > { %v2501_v12 = vpop.permute.xlu1 %2500  ;;  %v2416_v31 = vrot.slane %v2415_v33, 4  ;;  %v2684_v42 = vmul.f32 %v2681_v43, %v2674_v15  ;;  %v2703_v50 = vmul.f32 %v4461_v47, %v2674_v15  ;;  %v4463_v53 = vpop.eup %4462 }
 0xbd7   : > { %v2504_v59 = vmul.f32 %v2501_v12, %v2494_v10  ;;  %v2657_v10 = vmul.f32 %v4459_v57, %v2628_v38  ;;  %v2638_v12 = vmul.f32 %v5568_v41, %v2628_v38  ;;  %v2717_v41 = vmul.f32 %v2715_v30, %v2710_v51 }
 0xbd9   : > { %v2505_v40 = vadd.f32 %v2504_v59, %v2503_v37  ;;  %v2673_v23 = vadd.f32 %v2671_v24, %v2657_v10 }
 0xbdb   : > { %v2546_v25 = vpop.permute.xlu1 %2545  ;;  %v2506_v45 = vrot.slane %v2505_v40, 4  ;;  %v2683_v55 = vmul.f32 %v5556_v49, %v2673_v23  ;;  %v2702_v38 = vmul.f32 %v4463_v53, %v2673_v23 }
 0xbdc   : > { %v2549_v22 = vmul.f32 %v2546_v25, %v2539_v19  ;;  %v2417_v19 = vadd.f32 %v2416_v31, %v2415_v33  ;;  %v2719_v25 = vadd.f32 %v2717_v41, %v2703_v50  ;;  %v3512_v50 = vld [vmem:[%s6129_s16 + $0x228] sm:$0xff] }
 0xbdd   : > { %v2685_v13 = vadd.f32 %v2684_v42, %v2683_v55  ;;  %v2507_v36 = vadd.f32 %v2506_v45, %v2505_v40  ;;  %v2718_v33 = vadd.f32 %v2716_v60, %v2702_v38  ;;  %v3513_v38 = vld [vmem:[%s6129_s16 + $0x230] sm:$0xff] }
 0xbde   : > { %v2550_v46 = vadd.f32 %v2549_v22, %v2548_v27  ;;  %v2418_v20 = vrot.slane %v2417_v19, 2  ;;  %v2464_v27 = vadd.f32 %v2463_v4, %v2462_v26 }
 0xbdf   : > { %v2508_v9 = vrot.slane %v2507_v36, 2 }
 0xbe0   : > { %v2591_v18 = vpop.permute.xlu1 %2590  ;;  %v2551_v16 = vrot.slane %v2550_v46, 4  ;;  %v2465_v43 = vrot.slane %v2464_v27, 1 }
 0xbe1   : > { %v2594_v0 = vmul.f32 %v2591_v18, %v2584_v17  ;;  %v2686_v17 = vrot.slane %v2685_v13, 4  ;;  %v2509_v6 = vadd.f32 %v2508_v9, %v2507_v36 }
 0xbe2   : > { %v2552_v29 = vadd.f32 %v2551_v16, %v2550_v46  ;;  %v2466_v16 = vadd.f32 %v2465_v43, %v2464_v27  ;;  %v3518_v27 = vld [vmem:[%s6129_s16 + $0x258] sm:$0xff] }
 0xbe3   : > { %v2595_v54 = vadd.f32 %v2594_v0, %v2593_v34  ;;  %v2687_v57 = vadd.f32 %v2686_v17, %v2685_v13  ;;  %v2510_v24 = vrot.slane %v2509_v6, 1  ;;  %v3526_v43 = vld [vmem:[%s6129_s16 + $0x298] sm:$0xff] }
 0xbe4   : > { %v2553_v59 = vrot.slane %v2552_v29, 2 }
 0xbe5   : > { %v2596_v11 = vrot.slane %v2595_v54, 4  ;;  %v2636_v56 = vpop.permute.xlu1 %2635  ;;  %v2688_v7 = vrot.slane %v2687_v57, 2  ;;  %v2511_v61 = vadd.f32 %v2510_v24, %v2509_v6 }
 0xbe6   : > { %v2639_v28 = vmul.f32 %v2636_v56, %v2629_v58  ;;  %v2419_v58 = vadd.f32 %v2418_v20, %v2417_v19  ;;  %v2554_v39 = vadd.f32 %v2553_v59, %v2552_v29  ;;  %v3502_v20 = vld [vmem:[%s6126_s13 + $0x1] ss:$0 sm:$0xff]  ;;  %v3508_v59 = vld [vmem:[%s6129_s16 + $0x208] sm:$0xff] }
 0xbe7   : > { %v2597_v3 = vadd.f32 %v2596_v11, %v2595_v54  ;;  %v2689_v34 = vadd.f32 %v2688_v7, %v2687_v57  ;;  %v2752_v9 = vmul.f32 %v3502_v20, %v5450_v21  ;;  %v3510_v21 = vld [vmem:[%s6129_s16 + $0x218] sm:$0xff]  ;;  %v4128_v53 = vpack.c.bf16 %v3512_v50, %v3508_v59  ;;  %v3516_v57 = vld [vmem:[%s6129_s16 + $0x248] sm:$0xff]  ;;  %v3537_v20 = vld [vmem:[%s6129_s16 + $0x2f0] sm:$0xff] }
 0xbe8   : > { %v2640_v49 = vadd.f32 %v2639_v28, %v2638_v12  ;;  %v2420_v40 = vrot.slane %v2419_v58, 1  ;;  %v2555_v51 = vrot.slane %v2554_v39, 1  ;;  %v3528_v7 = vld [vmem:[%s6129_s16 + $0x2a8] sm:$0xff]  ;;  %v3539_v50 = vld [vmem:[%s6129_s16 + $0x300] sm:$0xff] }
 0xbe9   : > { %v2598_v37 = vrot.slane %v2597_v3, 2  ;;  %v2690_v26 = vrot.slane %v2689_v34, 1  ;;  %4129 = vmatprep.subr.bf16.mxu1 %v4128_v53  ;;  %v3541_v53 = vld [vmem:[%s6129_s16 + $0x310] sm:$0xff] }
 0xbea   : > { %v2641_v62 = vrot.slane %v2640_v49, 4  ;;  %v2722_v44 = vpop.permute.xlu1 %2721  ;;  %v2421_v42 = vadd.f32 %v2420_v40, %v2419_v58  ;;  %v2556_v0 = vadd.f32 %v2555_v51, %v2554_v39  ;;  %v3509_v58 = vld [vmem:[%s6129_s16 + $0x210] sm:$0xff]  ;;  %v3522_v39 = vld [vmem:[%s6129_s16 + $0x278] sm:$0xff] }
 0xbeb   : > { %v2599_v8 = vadd.f32 %v2598_v37, %v2597_v3  ;;  %v2728_v22 = vmul.f32 %v2722_v44, %v2718_v33  ;;  %v2691_v3 = vadd.f32 %v2690_v26, %v2689_v34  ;;  %v3507_v37 = vld [vmem:[%s6129_s16 + $0x200] sm:$0xff]  ;;  %v4162_v6 = vpack.c.bf16 %v3513_v38, %v3509_v58  ;;  %v3530_v51 = vld [vmem:[%s6129_s16 + $0x2b8] sm:$0xff] }
 0xbec   : > { %v2642_v48 = vadd.f32 %v2641_v62, %v2640_v49  ;;  %v2737_v54 = vsel %vm783_vm0, %v2421_v42, %v2466_v16  ;;  %v3511_v62 = vld [vmem:[%s6129_s16 + $0x220] sm:$0xff]  ;;  %v3550_v38 = vld [vmem:[%s6129_s16 + $0x358] sm:$0xff] }
 0xbed   : > { %v2600_v23 = vrot.slane %v2599_v8, 1  ;;  %v2738_v29 = vsel %vm785_vm1, %v2737_v54, %v2511_v61  ;;  %v4130_v41 = vpack.c.bf16 %v3511_v62, %v3507_v37  ;;  %v3527_v42 = vld [vmem:[%s6129_s16 + $0x2a0] sm:$0xff]  ;;  %v3532_v54 = vld [vmem:[%s6129_s16 + $0x2c8] sm:$0xff]  ;;  %v3545_v37 = vld [vmem:[%s6129_s16 + $0x330] sm:$0xff] }
 0xbee   : > { %v2643_v10 = vrot.slane %v2642_v48, 2  ;;  %v2726_v52 = vpop.permute.xlu1 %2725  ;;  %v2739_v11 = vsel %vm787_vm2, %v2738_v29, %v2556_v0  ;;  %v3538_v29 = vld [vmem:[%s6129_s16 + $0x2f8] sm:$0xff]  ;;  %v3548_v62 = vld [vmem:[%s6129_s16 + $0x348] sm:$0xff] }
 0xbef   : > { %v2729_v15 = vmul.f32 %v2726_v52, %v2719_v25  ;;  %v2601_v19 = vadd.f32 %v2600_v23, %v2599_v8  ;;  %4131 = vmatpush1.bf16.msra.mxu1 %v4130_v41  ;;  %v4164_v25 = vpack.c.bf16 %v3522_v39, %v3518_v27  ;;  %v3515_v8 = vld [vmem:[%s6129_s16 + $0x240] sm:$0xff]  ;;  %v3517_v52 = vld [vmem:[%s6129_s16 + $0x250] sm:$0xff]  ;;  %v4168_v23 = vpack.c.bf16 %v3530_v51, %v3526_v43 }
 0xbf0   : > { %v2644_v46 = vadd.f32 %v2643_v10, %v2642_v48  ;;  %v3520_v48 = vld [vmem:[%s6129_s16 + $0x268] sm:$0xff]  ;;  %v3519_v10 = vld [vmem:[%s6129_s16 + $0x260] sm:$0xff]  ;;  %v4178_v41 = vpack.c.bf16 %v3545_v37, %v3541_v53  ;;  %v3549_v39 = vld [vmem:[%s6129_s16 + $0x350] sm:$0xff] }
 0xbf1   : > { %v2730_v31 = vadd.f32 %v2729_v15, %v2728_v22  ;;  %v2740_v12 = vsel %vm789_vm3, %v2739_v11, %v2601_v19  ;;  %v4132_v33 = vpack.c.bf16 %v3520_v48, %v3516_v57  ;;  %v4134_v40 = vpack.c.bf16 %v3519_v10, %v3515_v8  ;;  %v3521_v22 = vld [vmem:[%s6129_s16 + $0x270] sm:$0xff]  ;;  %v3524_v15 = vld [vmem:[%s6129_s16 + $0x288] sm:$0xff]  ;;  %v3531_v11 = vld [vmem:[%s6129_s16 + $0x2c0] sm:$0xff] }
 0xbf2   : > { %v2645_v45 = vrot.slane %v2644_v46, 1  ;;  %v4166_v24 = vpack.c.bf16 %v3521_v22, %v3517_v52  ;;  %v3554_v57 = vld [vmem:[%s6129_s16 + $0x378] sm:$0xff]  ;;  %v3551_v27 = vld [vmem:[%s6129_s16 + $0x360] sm:$0xff]  ;;  %v3556_v8 = vld [vmem:[%s6129_s16 + $0x388] sm:$0xff] }
 0xbf3   : > { %v2731_v18 = vrot.slane %v2730_v31, 4  ;;  %4133 = vmatprep.subr.bf16.mxu1 %v4132_v33  ;;  %v4180_v48 = vpack.c.bf16 %v3554_v57, %v3550_v38  ;;  %v3553_v33 = vld [vmem:[%s6129_s16 + $0x370] sm:$0xff]  ;;  %v3560_v10 = vld [vmem:[%s6129_s16 + $0x3a8] sm:$0xff]  ;;  %v3558_v52 = vld [vmem:[%s6129_s16 + $0x398] sm:$0xff] }
 0xbf4   : > { %v2646_v13 = vadd.f32 %v2645_v45, %v2644_v46  ;;  %v4136_v46 = vpack.c.bf16 %v3528_v7, %v3524_v15  ;;  %v3525_v45 = vld [vmem:[%s6129_s16 + $0x290] sm:$0xff]  ;;  %4135 = vmatpush1.bf16.msra.mxu1 %v4134_v40  ;;  %v4182_v40 = vpack.c.bf16 %v3553_v33, %v3549_v39  ;;  %v4152_v22 = vpack.c.bf16 %v3560_v10, %v3556_v8  ;;  %v3562_v15 = vld [vmem:[%s6129_s16 + $0x3b8] sm:$0xff]  ;;  %v3555_v7 = vld [vmem:[%s6129_s16 + $0x380] sm:$0xff] }
 0xbf5   : > { %v2732_v55 = vadd.f32 %v2731_v18, %v2730_v31  ;;  %v3523_v31 = vld [vmem:[%s6129_s16 + $0x280] sm:$0xff]  ;;  %v3529_v18 = vld [vmem:[%s6129_s16 + $0x2b0] sm:$0xff]  ;;  %v3605_v53 = vld [vmem:[%s6131_s18 + $0x308] sm:$0xff] }
 0xbf6   : > { %v2741_v30 = vsel %vm791_vm4, %v2740_v12, %v2646_v13  ;;  %v4138_v34 = vpack.c.bf16 %v3527_v42, %v3523_v31  ;;  %4137 = vmatprep.subr.bf16.mxu1 %v4136_v46  ;;  %v4170_v61 = vpack.c.bf16 %v3529_v18, %v3525_v45  ;;  %v3536_v13 = vld [vmem:[%s6129_s16 + $0x2e8] sm:$0xff]  ;;  %v4184_v46 = vpack.c.bf16 %v3562_v15, %v3558_v52  ;;  %v3557_v43 = vld [vmem:[%s6129_s16 + $0x390] sm:$0xff]  ;;  %v3566_v42 = vld [vmem:[%s6129_s16 + $0x3d8] sm:$0xff] }
 0xbf7   : > { %v2733_v36 = vrot.slane %v2732_v55, 2  ;;  %v2742_v17 = vsel %vm793_vm5, %v2741_v30, %v2691_v3  ;;  %v4140_v26 = vpack.c.bf16 %v3536_v13, %v3532_v54  ;;  %v3533_v30 = vld [vmem:[%s6129_s16 + $0x2d0] sm:$0xff]  ;;  %v3540_v3 = vld [vmem:[%s6129_s16 + $0x308] sm:$0xff]  ;;  %v3570_v45 = vld [vmem:[%s6129_s16 + $0x3f8] sm:$0xff] }
 0xbf8   : > { %4139 = vmatpush1.bf16.msra.mxu1 %v4138_v34  ;;  %v3561_v51 = vld [vmem:[%s6129_s16 + $0x3b0] sm:$0xff]  ;;  %v3564_v31 = vld [vmem:[%s6129_s16 + $0x3c8] sm:$0xff]  ;;  %v3591_v37 = vld [vmem:[%s6131_s18 + $0x298] sm:$0xff] }
 0xbf9   : > { %v2734_v56 = vadd.f32 %v2733_v36, %v2732_v55  ;;  %v3534_v36 = vld [vmem:[%s6129_s16 + $0x2d8] sm:$0xff]  ;;  %4141 = vmatprep.subr.bf16.mxu1 %v4140_v26  ;;  %v4186_v34 = vpack.c.bf16 %v3561_v51, %v3557_v43  ;;  %v3565_v54 = vld [vmem:[%s6129_s16 + $0x3d0] sm:$0xff]  ;;  %v3593_v8 = vld [vmem:[%s6131_s18 + $0x2a8] sm:$0xff] }
 0xbfa   : > { %v4172_v12 = vpack.c.bf16 %v3538_v29, %v3534_v36  ;;  %v3569_v13 = vld [vmem:[%s6129_s16 + $0x3f0] sm:$0xff]  ;;  %v3588_v29 = vld [vmem:[%s6131_s18 + $0x280] sm:$0xff]  ;;  %v3575_v57 = vld [vmem:[%s6131_s18 + $0x218] sm:$0xff] }
 0xbfb   : > { %v2735_v28 = vrot.slane %v2734_v56, 1  ;;  %v4190_v26 = vpack.c.bf16 %v3569_v13, %v3565_v54  ;;  %v3574_v38 = vld [vmem:[%s6131_s18 + $0x210] sm:$0xff]  ;;  %v3607_v33 = vld [vmem:[%s6131_s18 + $0x318] sm:$0xff]  ;;  %v3624_v10 = vld [vmem:[%s6131_s18 + $0x3a0] sm:$0xff] }
 0xbfc   : > { %v3606_v39 = vld [vmem:[%s6131_s18 + $0x310] sm:$0xff]  ;;  %v3625_v52 = vld [vmem:[%s6131_s18 + $0x3a8] sm:$0xff]  ;;  %v3576_v15 = vld [vmem:[%s6131_s18 + $0x220] sm:$0xff] }
 0xbfd   : > { %v2736_v47 = vadd.f32 %v2735_v28, %v2734_v56  ;;  %v3535_v56 = vld [vmem:[%s6129_s16 + $0x2e0] sm:$0xff]  ;;  %v3609_v51 = vld [vmem:[%s6131_s18 + $0x328] sm:$0xff]  ;;  %v3610_v13 = vld [vmem:[%s6131_s18 + $0x330] sm:$0xff] }
 0xbfe   : > { %v4142_v28 = vpack.c.bf16 %v3535_v56, %v3531_v11  ;;  %v3589_v11 = vld [vmem:[%s6131_s18 + $0x288] sm:$0xff]  ;;  %v3620_v56 = vld [vmem:[%s6131_s18 + $0x380] sm:$0xff] }
 0xbff   : > { %v2743_v49 = vsel %vm795_vm6, %v2742_v17, %v2736_v47  ;;  %v4174_v47 = vpack.c.bf16 %v3537_v20, %v3533_v30  ;;  %v3544_v17 = vld [vmem:[%s6129_s16 + $0x328] sm:$0xff]  ;;  %v3608_v43 = vld [vmem:[%s6131_s18 + $0x320] sm:$0xff] }
 0xc00   : > { %v2753_v60 = vadd.f32 %v2752_v9, %v2743_v49  ;;  %v3542_v9 = vld [vmem:[%s6129_s16 + $0x318] sm:$0xff]  ;;  %4143 = vmatpush1.bf16.msra.mxu1 %v4142_v28  ;;  %v3621_v28 = vld [vmem:[%s6131_s18 + $0x388] sm:$0xff] }
 0xc01   : > { %v3546_v49 = vld [vmem:[%s6129_s16 + $0x338] sm:$0xff]  ;;  %v4224_v30 = vpack.c.bf16 %v3621_v28, %v3620_v56  ;;  %v3628_v56 = vld [vmem:[%s6131_s18 + $0x3c0] sm:$0xff]  ;;  %v3629_v28 = vld [vmem:[%s6131_s18 + $0x3c8] sm:$0xff] }
 0xc02   : > { %v5628_v4 = vadd.f32 %v2753_v60, %v5371_v14  ;;  %v3514_v14 = vld [vmem:[%s6129_s16 + $0x238] sm:$0xff]  ;;  %v4144_v60 = vpack.c.bf16 %v3544_v17, %v3540_v3  ;;  %v4176_v59 = vpack.c.bf16 %v3546_v49, %v3542_v9  ;;  %v3505_v17 = vld [vmem:[%s6127_s14 + $0x1] ss:$0 sm:$0xff] }
 0xc03   : > { %v4160_v44 = vpack.c.bf16 %v3514_v14, %v3510_v21  ;;  %v3543_v21 = vld [vmem:[%s6129_s16 + $0x320] sm:$0xff] }
 0xc04   : > { %2759 = vadd.xlane.f32.xlu0 %v5628_v4  ;;  %v4146_v14 = vpack.c.bf16 %v3543_v21, %v3539_v50  ;;  %4145 = vmatprep.subr.bf16.mxu1 %v4144_v60  ;;  %v3506_v49 = vld [vmem:[%s6128_s15 + $0x1] ss:$0 sm:$0xff] }
 0xc05   : > { %4161 = vmatprep.subr.bf16.mxu0 %v4160_v44  ;;  %v3552_v44 = vld [vmem:[%s6129_s16 + $0x368] sm:$0xff]  ;;  %v3572_v60 = vld [vmem:[%s6131_s18 + $0x200] sm:$0xff] }
 0xc06   : > { %4163 = vmatpush1.bf16.msra.mxu0 %v4162_v6  ;;  %v4148_v58 = vpack.c.bf16 %v3552_v44, %v3548_v62  ;;  %v3547_v6 = vld [vmem:[%s6129_s16 + $0x340] sm:$0xff]  ;;  %4147 = vmatpush1.bf16.msra.mxu1 %v4146_v14  ;;  %v3590_v14 = vld [vmem:[%s6131_s18 + $0x290] sm:$0xff]  ;;  %v3623_v62 = vld [vmem:[%s6131_s18 + $0x398] sm:$0xff] }
 0xc07   : > { %4165 = vmatprep.subr.bf16.mxu0 %v4164_v25  ;;  %v4150_v25 = vpack.c.bf16 %v3551_v27, %v3547_v6  ;;  %v3604_v21 = vld [vmem:[%s6131_s18 + $0x300] sm:$0xff] }
 0xc08   : > { %4149 = vmatprep.subr.bf16.mxu1 %v4148_v58  ;;  %v4226_v58 = vpack.c.bf16 %v3605_v53, %v3604_v21  ;;  %v3631_v21 = vld [vmem:[%s6131_s18 + $0x3d8] sm:$0xff] }
 0xc0a   : > { %4167 = vmatpush1.bf16.msra.mxu0 %v4166_v24  ;;  %v3559_v24 = vld [vmem:[%s6129_s16 + $0x3a0] sm:$0xff]  ;;  %4151 = vmatpush1.bf16.msra.mxu1 %v4150_v25 }
 0xc0b   : > { %4169 = vmatprep.subr.bf16.mxu0 %v4168_v23  ;;  %v3568_v23 = vld [vmem:[%s6129_s16 + $0x3e8] sm:$0xff]  ;;  %v4154_v18 = vpack.c.bf16 %v3559_v24, %v3555_v7  ;;  %4153 = vmatprep.subr.bf16.mxu1 %v4152_v22  ;;  %v3592_v25 = vld [vmem:[%s6131_s18 + $0x2a0] sm:$0xff]  ;;  %v4230_v22 = vpack.c.bf16 %v3607_v33, %v3606_v39  ;;  %v4232_v24 = vpack.c.bf16 %v3625_v52, %v3624_v10 }
 0xc0c   : > { %v4200_v7 = vpack.c.bf16 %v3593_v8, %v3592_v25  ;;  %v3584_v39 = vld [vmem:[%s6131_s18 + $0x260] sm:$0xff]  ;;  %v3585_v25 = vld [vmem:[%s6131_s18 + $0x268] sm:$0xff] }
 0xc0d   : > { %v3616_v8 = vld [vmem:[%s6131_s18 + $0x360] sm:$0xff]  ;;  %v3617_v10 = vld [vmem:[%s6131_s18 + $0x368] sm:$0xff]  ;;  %v4218_v52 = vpack.c.bf16 %v3585_v25, %v3584_v39 }
 0xc0e   : > { %4171 = vmatpush1.bf16.msra.mxu0 %v4170_v61  ;;  %v4156_v61 = vpack.c.bf16 %v3568_v23, %v3564_v31  ;;  %4155 = vmatpush1.bf16.msra.mxu1 %v4154_v18  ;;  %v4234_v23 = vpack.c.bf16 %v3609_v51, %v3608_v43  ;;  %v3626_v18 = vld [vmem:[%s6131_s18 + $0x3b0] sm:$0xff]  ;;  %v3587_v51 = vld [vmem:[%s6131_s18 + $0x278] sm:$0xff] }
 0xc0f   : > { %4173 = vmatprep.subr.bf16.mxu0 %v4172_v12  ;;  %v4192_v12 = vpack.c.bf16 %v3589_v11, %v3588_v29  ;;  %v3596_v29 = vld [vmem:[%s6131_s18 + $0x2c0] sm:$0xff]  ;;  %v3597_v11 = vld [vmem:[%s6131_s18 + $0x2c8] sm:$0xff]  ;;  %v3586_v43 = vld [vmem:[%s6131_s18 + $0x270] sm:$0xff] }
 0xc10   : > { %4157 = vmatprep.subr.bf16.mxu1 %v4156_v61  ;;  %v3627_v61 = vld [vmem:[%s6131_s18 + $0x3b8] sm:$0xff] }
 0xc12   : > { %4175 = vmatpush1.bf16.msra.mxu0 %v4174_v47 }
 0xc13   : > { %4177 = vmatprep.subr.bf16.mxu0 %v4176_v59  ;;  %v3573_v59 = vld [vmem:[%s6131_s18 + $0x208] sm:$0xff] }
 0xc16   : > { %4179 = vmatpush1.bf16.msra.mxu0 %v4178_v41  ;;  %v4194_v41 = vpack.c.bf16 %v3573_v59, %v3572_v60  ;;  %v3599_v59 = vld [vmem:[%s6131_s18 + $0x2d8] sm:$0xff] }
 0xc17   : > { %4181 = vmatprep.subr.bf16.mxu0 %v4180_v48  ;;  %v4196_v48 = vpack.c.bf16 %v3591_v37, %v3590_v14  ;;  %v3582_v37 = vld [vmem:[%s6131_s18 + $0x250] sm:$0xff] }
 0xc1a   : > { %4183 = vmatpush1.bf16.msra.mxu0 %v4182_v40  ;;  %v4198_v40 = vpack.c.bf16 %v3575_v57, %v3574_v38  ;;  %v3601_v38 = vld [vmem:[%s6131_s18 + $0x2e8] sm:$0xff] }
 0xc1b   : > { %4185 = vmatprep.subr.bf16.mxu0 %v4184_v46  ;;  %v3577_v46 = vld [vmem:[%s6131_s18 + $0x228] sm:$0xff] }
 0xc1c   : > { %v4202_v31 = vpack.c.bf16 %v3577_v46, %v3576_v15  ;;  %v3634_v15 = vld [vmem:[%s6131_s18 + $0x3f0] sm:$0xff]  ;;  %v3635_v46 = vld [vmem:[%s6131_s18 + $0x3f8] sm:$0xff] }
 0xc1e   : > { %4187 = vmatpush1.bf16.msra.mxu0 %v4186_v34 }
 0xc91   : > { %v2760_v16 = vpop.xlane.xlu0 %2759 }
 0xc92   : > { %v2761_v0 = vmul.f32 0.0078125, %v2760_v16  ;;  %v3563_v16 = vld [vmem:[%s6129_s16 + $0x3c0] sm:$0xff] }
 0xc94   : > { %v5704_v55 = vsub.f32 %v5628_v4, %v2761_v0  ;;  %v3567_v0 = vld [vmem:[%s6129_s16 + $0x3e0] sm:$0xff] }
 0xc95   : > { %v4158_v36 = vpack.c.bf16 %v3567_v0, %v3563_v16  ;;  %v3578_v16 = vld [vmem:[%s6131_s18 + $0x230] sm:$0xff]  ;;  %v3579_v0 = vld [vmem:[%s6131_s18 + $0x238] sm:$0xff] }
 0xc96   : > { %v2763_v19 = vmul.f32 %v5704_v55, %v5704_v55  ;;  %v4206_v54 = vpack.c.bf16 %v3579_v0, %v3578_v16 }
 0xc97   : > { %4159 = vmatpush1.bf16.msra.mxu1 %v4158_v36  ;;  %v3611_v36 = vld [vmem:[%s6131_s18 + $0x338] sm:$0xff] }
 0xc98   : > { %2764 = vadd.xlane.f32.xlu1 %v2763_v19  ;;  %v4188_v19 = vpack.c.bf16 %v3570_v45, %v3566_v42  ;;  %4193 = vmatprep.subr.bf16.mxu1 %v4192_v12  ;;  %v3594_v42 = vld [vmem:[%s6131_s18 + $0x2b0] sm:$0xff]  ;;  %v3595_v45 = vld [vmem:[%s6131_s18 + $0x2b8] sm:$0xff]  ;;  %v4208_v12 = vpack.c.bf16 %v3597_v11, %v3596_v29 }
 0xc99   : > { %v4204_v34 = vpack.c.bf16 %v3595_v45, %v3594_v42  ;;  %v3619_v42 = vld [vmem:[%s6131_s18 + $0x378] sm:$0xff]  ;;  %v4222_v45 = vpack.c.bf16 %v3587_v51, %v3586_v43  ;;  %v3291_v43 = vld [vmem:[%s6135_s22 + $0x28] sm:$0xff] }
 0xc9a   : > { %4189 = vmatprep.subr.bf16.mxu0 %v4188_v19  ;;  %v4236_v19 = vpack.c.bf16 %v3627_v61, %v3626_v18 }
 0xc9b   : > { %4191 = vmatpush1.bf16.msra.mxu0 %v4190_v26  ;;  %v4238_v26 = vpack.c.bf16 %v3611_v36, %v3610_v13 }
 0xc9c   : > { %4225 = vmatprep.subr.bf16.mxu0 %v4224_v30  ;;  %v3580_v30 = vld [vmem:[%s6131_s18 + $0x240] sm:$0xff] }
 0xd25   : > { %v2765_v20 = vpop.xlane.xlu1 %2764 }
 0xd26   : > { %v2766_v3 = vmul.f32 0.0078125, %v2765_v20  ;;  %v3581_v20 = vld [vmem:[%s6131_s18 + $0x248] sm:$0xff] }
 0xd28   : > { %v2767_v47 = vadd.f32 1e-05, %v2766_v3  ;;  %v4240_v3 = vpack.c.bf16 %v3629_v28, %v3628_v56 }
 0xd2a   : > { %4464 = vrsqrt.f32 %v2767_v47  ;;  %v4210_v47 = vpack.c.bf16 %v3581_v20, %v3580_v30 }
 0xd34   : > { %v4465_v9 = vpop.eup %4464 }
 0xd35   : > { %v2769_v50 = vmul.f32 %v4465_v9, %v5704_v55  ;;  %v3622_v55 = vld [vmem:[%s6131_s18 + $0x390] sm:$0xff]  ;;  %v3613_v9 = vld [vmem:[%s6131_s18 + $0x348] sm:$0xff] }
 0xd36   : > { %v4228_v27 = vpack.c.bf16 %v3623_v62, %v3622_v55  ;;  %v3583_v55 = vld [vmem:[%s6131_s18 + $0x258] sm:$0xff]  ;;  %v3614_v62 = vld [vmem:[%s6131_s18 + $0x350] sm:$0xff] }
 0xd37   : > { %v2776_v44 = vmul.f32 %v3505_v17, %v2769_v50  ;;  %v3612_v17 = vld [vmem:[%s6131_s18 + $0x340] sm:$0xff]  ;;  %v3630_v50 = vld [vmem:[%s6131_s18 + $0x3d0] sm:$0xff] }
 0xd38   : > { %v4242_v60 = vpack.c.bf16 %v3613_v9, %v3612_v17  ;;  %v4244_v14 = vpack.c.bf16 %v3631_v21, %v3630_v50 }
 0xd39   : > { %v2783_v6 = vadd.f32 %v3506_v49, %v2776_v44  ;;  %v3598_v49 = vld [vmem:[%s6131_s18 + $0x2d0] sm:$0xff]  ;;  %v4214_v44 = vpack.c.bf16 %v3583_v55, %v3582_v37 }
 0xd3a   : > { %v4212_v53 = vpack.c.bf16 %v3599_v59, %v3598_v49 }
 0xd3b   : > { %2937 = vmatmul.mubr.f32.vlgmr.msra.gmra.mrb[6].mxu1 %v2783_v6  ;;  %3008 = vmatmul.mubr.f32.vlgmr.msra.gmra.mrb[10].mxu0 %v2783_v6 }
 0xd3c   : > { %4195 = vmatpush3.bf16.msra.mxu1 %v4194_v41  ;;  %4227 = vmatpush3.bf16.msra.mxu0 %v4226_v58  ;;  %v3615_v41 = vld [vmem:[%s6131_s18 + $0x358] sm:$0xff]  ;;  %v3600_v58 = vld [vmem:[%s6131_s18 + $0x2e0] sm:$0xff] }
 0xd3d   : > { %4197 = vmatprep.subr.bf16.mxu1 %v4196_v48  ;;  %4229 = vmatprep.subr.bf16.mxu0 %v4228_v27  ;;  %v4246_v57 = vpack.c.bf16 %v3615_v41, %v3614_v62  ;;  %v4216_v6 = vpack.c.bf16 %v3601_v38, %v3600_v58  ;;  %v3632_v48 = vld [vmem:[%s6131_s18 + $0x3e0] sm:$0xff]  ;;  %v3633_v27 = vld [vmem:[%s6131_s18 + $0x3e8] sm:$0xff] }
 0xd3e   : > { %v4248_v33 = vpack.c.bf16 %v3633_v27, %v3632_v48  ;;  %v3637_v41 = vld [vmem:[%s6132_s19 + $0x1] ss:$0 sm:$0xff] }
 0xd40   : > { %4199 = vmatpush3.bf16.msra.mxu1 %v4198_v40  ;;  %4231 = vmatpush3.bf16.msra.mxu0 %v4230_v22  ;;  %v3602_v40 = vld [vmem:[%s6131_s18 + $0x2f0] sm:$0xff]  ;;  %v3603_v22 = vld [vmem:[%s6131_s18 + $0x2f8] sm:$0xff] }
 0xd41   : > { %4201 = vmatprep.subr.bf16.mxu1 %v4200_v7  ;;  %4233 = vmatprep.subr.bf16.mxu0 %v4232_v24  ;;  %v4250_v7 = vpack.c.bf16 %v3617_v10, %v3616_v8  ;;  %v4220_v24 = vpack.c.bf16 %v3603_v22, %v3602_v40  ;;  %v3286_v40 = vld [vmem:[%s6135_s22] sm:$0xff]  ;;  %v3287_v22 = vld [vmem:[%s6135_s22 + $0x8] sm:$0xff] }
 0xd44   : > { %4203 = vmatpush3.bf16.msra.mxu1 %v4202_v31  ;;  %4235 = vmatpush3.bf16.msra.mxu0 %v4234_v23  ;;  %v4252_v31 = vpack.c.bf16 %v3635_v46, %v3634_v15  ;;  %v3618_v23 = vld [vmem:[%s6131_s18 + $0x370] sm:$0xff]  ;;  %v4257_v15 = vpack.c.bf16 %v3287_v22, %v3286_v40  ;;  %v3290_v46 = vld [vmem:[%s6135_s22 + $0x20] sm:$0xff] }
 0xd45   : > { %4205 = vmatprep.subr.bf16.mxu1 %v4204_v34  ;;  %4237 = vmatprep.subr.bf16.mxu0 %v4236_v19  ;;  %v4254_v18 = vpack.c.bf16 %v3619_v42, %v3618_v23  ;;  %v3571_v34 = vld [vmem:[%s6130_s17 + $0x4] sm:$0xf]  ;;  %v4263_v51 = vpack.c.bf16 %v3291_v43, %v3290_v46 }
 0xd46   : > { %v2855_v61 = vrot.slane %v3571_v34, %v4738_v5  ;;  %v2863_v16 = vrot.slane %v3571_v34, %v4726_v1  ;;  %v2859_v0 = vrot.slane %v3571_v34, %v4723_v63  ;;  %v2867_v19 = vrot.slane %v3571_v34, %v4729_v2  ;;  %v3292_v34 = vld [vmem:[%s6135_s22 + $0x30] sm:$0xff] }
 0xd48   : > { %4207 = vmatpush3.bf16.msra.mxu1 %v4206_v54  ;;  %4239 = vmatpush3.bf16.msra.mxu0 %v4238_v26 }
 0xd49   : > { %4209 = vmatprep.subr.bf16.mxu1 %v4208_v12  ;;  %4241 = vmatprep.subr.bf16.mxu0 %v4240_v3 }
 0xd4c   : > { %4211 = vmatpush3.bf16.msra.mxu1 %v4210_v47  ;;  %4243 = vmatpush3.bf16.msra.mxu0 %v4242_v60 }
 0xd4d   : > { %4213 = vmatprep.subr.bf16.mxu1 %v4212_v53  ;;  %4245 = vmatprep.subr.bf16.mxu0 %v4244_v14 }
 0xd50   : > { %4215 = vmatpush3.bf16.msra.mxu1 %v4214_v44  ;;  %4247 = vmatpush3.bf16.msra.mxu0 %v4246_v57 }
 0xd51   : > { %4217 = vmatprep.subr.bf16.mxu1 %v4216_v6  ;;  %4249 = vmatprep.subr.bf16.mxu0 %v4248_v33 }
 0xd54   : > { %4219 = vmatpush3.bf16.msra.mxu1 %v4218_v52  ;;  %4251 = vmatpush3.bf16.msra.mxu0 %v4250_v7  ;;  %v3289_v7 = vld [vmem:[%s6135_s22 + $0x18] sm:$0xff] }
 0xd55   : > { %4221 = vmatprep.subr.bf16.mxu1 %v4220_v24  ;;  %4253 = vmatprep.subr.bf16.mxu0 %v4252_v31 }
 0xd58   : > { %4223 = vmatpush3.bf16.msra.mxu1 %v4222_v45  ;;  %4255 = vmatpush3.bf16.msra.mxu0 %v4254_v18 }
 0xd59   : > { %4256 = vmatprep.subr.bf16.mxu1 %v4485_v32 }
 0xe0e   : > { %v2938_v54 = vpop.f32.mrb[6].mxu1  ;;  %v3009_v13 = vpop.f32.mrb[10].mxu0 }
 0xe0f   : > { %v2939_v36 = vadd.f32 %v2938_v54, %v2855_v61  ;;  %v3010_v26 = vadd.f32 %v3009_v13, %v2863_v16  ;;  %v2940_v29 = vpop.f32.mrb[7].mxu1  ;;  %v3011_v11 = vpop.f32.mrb[11].mxu0  ;;  %v3293_v61 = vld [vmem:[%s6135_s22 + $0x38] sm:$0xff]  ;;  %v3294_v16 = vld [vmem:[%s6135_s22 + $0x40] sm:$0xff]  ;;  %v3296_v13 = vld [vmem:[%s6135_s22 + $0x50] sm:$0xff] }
 0xe10   : > { %v2941_v56 = vadd.f32 %v2940_v29, %v2859_v0  ;;  %v3012_v12 = vadd.f32 %v3011_v11, %v2867_v19  ;;  %v4266_v0 = vpack.c.bf16 %v3293_v61, %v3292_v34  ;;  %v3295_v19 = vld [vmem:[%s6135_s22 + $0x48] sm:$0xff]  ;;  %v3298_v29 = vld [vmem:[%s6135_s22 + $0x60] sm:$0xff] }
 0xe11   : > { %v3018_v28 = vmul.f32 0.70710677, %v2939_v36  ;;  %v3020_v30 = vmul.f32 0.70710677, %v3010_v26  ;;  %v3014_v60 = vmul.f32 0.5, %v2939_v36  ;;  %v3016_v21 = vmul.f32 0.5, %v3010_v26 }
 0xe12   : > { %v3019_v20 = vmul.f32 0.70710677, %v2941_v56  ;;  %v3021_v3 = vmul.f32 0.70710677, %v3012_v12  ;;  %v3015_v9 = vmul.f32 0.5, %v2941_v56  ;;  %v3017_v59 = vmul.f32 0.5, %v3012_v12 }
 0xe13   : > { %4466 = verf.f32 %v3018_v28  ;;  %v4269_v54 = vpack.c.bf16 %v3295_v19, %v3294_v16  ;;  %v3297_v36 = vld [vmem:[%s6135_s22 + $0x58] sm:$0xff]  ;;  %v3299_v11 = vld [vmem:[%s6135_s22 + $0x68] sm:$0xff]  ;;  %v3300_v12 = vld [vmem:[%s6135_s22 + $0x70] sm:$0xff] }
 0xe14   : > { %4468 = verf.f32 %v3020_v30  ;;  %v4272_v26 = vpack.c.bf16 %v3297_v36, %v3296_v13  ;;  %v4275_v56 = vpack.c.bf16 %v3299_v11, %v3298_v29  ;;  %v3301_v28 = vld [vmem:[%s6135_s22 + $0x78] sm:$0xff] }
 0xe15   : > { %4470 = verf.f32 %v3019_v20  ;;  %v4278_v30 = vpack.c.bf16 %v3301_v28, %v3300_v12 }
 0xe16   : > { %4472 = verf.f32 %v3021_v3 }
 0xe1d   : > { %v4467_v1 = vpop.eup %4466 }
 0xe1e   : > { %v4469_v63 = vpop.eup %4468  ;;  %v3026_v2 = vadd.f32 1.0, %v4467_v1 }
 0xe1f   : > { %v4471_v5 = vpop.eup %4470  ;;  %v3028_v17 = vadd.f32 1.0, %v4469_v63 }
 0xe20   : > { %v4473_v47 = vpop.eup %4472  ;;  %v3027_v49 = vadd.f32 1.0, %v4471_v5  ;;  %v3030_v14 = vmul.f32 %v3026_v2, %v3014_v60  ;;  %v3638_v5 = vld [vmem:[%s6133_s20] ss:$0 sm:$0xff] }
 0xe21   : > { %v3029_v50 = vadd.f32 1.0, %v4473_v47  ;;  %v3032_v55 = vmul.f32 %v3028_v17, %v3016_v21  ;;  %v3639_v47 = vld [vmem:[%s6134_s21] ss:$0 sm:$0xff] }
 0xe22   : > { %v3031_v53 = vmul.f32 %v3027_v49, %v3015_v9 }
 0xe23   : > { %v3033_v37 = vmul.f32 %v3029_v50, %v3017_v59 }
 0xe24   : > { %3171 = vmatprep.mubr.f32.mxu1 %v3031_v53 }
 0xe25   : > { %3241 = vmatprep.mubr.f32.mxu0 %v3033_v37  ;;  %3172 = vmatmul.mubr.f32.vlgmr.msra.gmra.mrb[8].mxu1 %v3030_v14 }
 0xe26   : > { %3242 = vmatmul.mubr.f32.vlgmr.msra.gmra.mrb[12].mxu0 %v3032_v55  ;;  %3949 = vmatprep.mubr.msk.f32.mxu1 %vm4486_vm7, %v4487_v35 }
 0xe27   : > { %4258 = vmatpush3.bf16.msra.mxu1 %v4257_v15 }
 0xe28   : > { %4259 = vmatprep.subr.bf16.mxu1 %v4485_v32 }
 0xef8   : > { %v3782_v62 = vpop.f32.mrb[8].mxu1 }
 0xef9   : > { %v3817_v44 = vpop.f32.mrb[12].mxu0  ;;  %v3783_v58 = vpop.f32.mrb[9].mxu1 }
 0xefa   : > { %v3784_v38 = vadd.f32 %v3783_v58, %v3782_v62  ;;  %v3818_v57 = vpop.f32.mrb[13].mxu0 }
 0xefb   : > { %v3819_v6 = vadd.f32 %v3818_v57, %v3817_v44 }
 0xefc   : > { %v3174_v48 = vadd.f32 %v3784_v38, %v3637_v41 }
 0xefe   : > { %v3244_v27 = vadd.f32 %v3819_v6, %v3174_v48 }
 0xf00   : > { %v3247_v39 = vadd.f32 %v3244_v27, %v5628_v4  ;;  %v3288_v4 = vld [vmem:[%s6135_s22 + $0x10] sm:$0xff] }
 0xf01   : > { %v4260_v24 = vpack.c.bf16 %v3289_v7, %v3288_v4 }
 0xf02   : > { %v3249_v33 = vrot.slane %v3247_v39, 1  ;;  %v3251_v25 = vrot.slane %v3247_v39, 3  ;;  %v3253_v8 = vrot.slane %v3247_v39, 5 }
 0xf03   : > { %4261 = vmatpush3.bf16.msra.mxu1 %v4260_v24 }
 0xf04   : > { %v3255_v10 = vsel %vm783_vm0, %v3249_v33, %v3251_v25  ;;  %4262 = vmatprep.subr.bf16.mxu1 %v4485_v32 }
 0xf05   : > { %v3256_v35 = vsel %vm785_vm1, %v3255_v10, %v3253_v8 }
 0xf06   : > { %v3259_v52 = vsel %vm787_vm2, %v3256_v35, 0.0 }
 0xf07   : > { %3260 = vadd.xlane.f32.xlu0 %v3259_v52  ;;  %4264 = vmatpush3.bf16.msra.mxu1 %v4263_v51 }
 0xf08   : > { %4265 = vmatprep.subr.bf16.mxu1 %v4485_v32 }
 0xf0b   : > { %4267 = vmatpush3.bf16.msra.mxu1 %v4266_v0 }
 0xf0c   : > { %4268 = vmatprep.subr.bf16.mxu1 %v4485_v32 }
 0xf0f   : > { %4270 = vmatpush3.bf16.msra.mxu1 %v4269_v54 }
 0xf10   : > { %4271 = vmatprep.subr.bf16.mxu1 %v4485_v32 }
 0xf13   : > { %4273 = vmatpush3.bf16.msra.mxu1 %v4272_v26 }
 0xf14   : > { %4274 = vmatprep.subr.bf16.mxu1 %v4485_v32 }
 0xf17   : > { %4276 = vmatpush3.bf16.msra.mxu1 %v4275_v56 }
 0xf18   : > { %4277 = vmatprep.subr.bf16.mxu1 %v4485_v32 }
 0xf1b   : > { %4279 = vmatpush3.bf16.msra.mxu1 %v4278_v30 }
 0xf94   : > { %v3261_v31 = vpop.xlane.xlu0 %3260 }
 0xf95   : > { %v3262_v23 = vmul.f32 0.0078125, %v3261_v31 }
 0xf97   : > { %v3263_v42 = vsub.f32 %v3256_v35, %v3262_v23 }
 0xf99   : > { %v3264_v45 = vmul.f32 %v3263_v42, %v3263_v42 }
 0xf9b   : > { %v3265_v18 = vsel %vm787_vm2, %v3264_v45, 0.0 }
 0xf9c   : > { %3266 = vadd.xlane.f32.xlu0 %v3265_v18 }
0x1029   : > { %v3267_v20 = vpop.xlane.xlu0 %3266 }
0x102a   : > { %v3268_v3 = vmul.f32 0.0078125, %v3267_v20 }
0x102c   : > { %v3269_v1 = vadd.f32 1e-05, %v3268_v3 }
0x102e   : > { %4474 = vrsqrt.f32 %v3269_v1 }
0x1038   : > { %v4475_v63 = vpop.eup %4474 }
0x1039   : > { %v3271_v2 = vmul.f32 %v4475_v63, %v3263_v42 }
0x103b   : > { %v3278_v17 = vmul.f32 %v3638_v5, %v3271_v2 }
0x103d   : > { %v3285_v9 = vadd.f32 %v3639_v47, %v3278_v17 }
0x103f   : > { %3950 = vmatmul.mubr.f32.vlgmr.msra.gmra.mrb[10].mxu1 %v3285_v9 }
0x1112   : > { %v3368_v32 = vpop.f32.mrb[10].mxu1 }
0x1113   : > { %3372 = vst [vmem:[%s739_s25] sm:$0x7] %v3368_v32  ;;  %v3951_v49 = vpop.f32.mrb[11].mxu1 }
0x1114 PF: > { %s6167_s5 = sld [smem:[#allocation2_spill]] }
0x111a   : > { %s33_s4 = sadd.s32 1, %s6167_s5  }
0x111b   : > { %p30_p4 = scmp.ge.s32.totalorder %s33_s4, 4  }
0x111d   :  { %32 = sbr.rel (!%p30_p4) target bundleno = 10 (0xa), region = 163 }

</bundles_post_ra>
